<compile_context>
chip_gen: v6e
topology: v6e:2x2x1
jax: 0.10.0
libtpu: 0.0.40
codegen_flags: <defaults>
</compile_context>

<pallas_src>
import functools

import jax
import jax.numpy as jnp
from jax.experimental import pallas as pl
from jax.experimental.pallas import tpu as pltpu

EPS = 1e-5                      # torch BatchNorm2d default eps
ACT_DTYPE = jnp.bfloat16        # inter-kernel activation / weight dtype
LANE = 128                      # channel padding target (lane width)


@functools.lru_cache(maxsize=None)
def _vmem_limit_bytes():
    """Generation-aware VMEM scoped limit (~3/4 of physical capacity)."""
    cap = 64 * 1024 * 1024      # conservative fallback (v7x physical VMEM)
    try:
        cap = int(pltpu.get_tpu_info().vmem_capacity_bytes)
    except Exception:
        pass
    return min((cap * 3) // 4, 112 * 1024 * 1024)


def _swish_f32(x):
    # x * sigmoid(x); divide replaced by EUP exp + approx reciprocal.
    return x * pl.reciprocal(1.0 + jnp.exp(-x), approx=True)


def _choose_tm(m, cap=2048):
    """Row tile: near-even split of M, multiple of 8, >=2 grid steps (v7x)."""
    if m <= 16:
        return m
    steps = max(2, -(-m // min(cap, m)))
    tm = -(-m // steps)
    tm = ((tm + 7) // 8) * 8
    return min(tm, m)


def _round_up(n, m=LANE):
    return ((n + m - 1) // m) * m


def _pad_axis(a, axis, size):
    pad = size - a.shape[axis]
    if pad <= 0:
        return a
    widths = [(0, 0)] * a.ndim
    widths[axis] = (0, pad)
    return jnp.pad(a, widths)


def _pad2(w, rows, cols):
    return _pad_axis(_pad_axis(w, 0, rows), 1, cols)


def _padv(v, n):
    return _pad_axis(v, 0, n)


# ---------------------------------------------------------------------------
# Kernel 1: fused 1x1 conv (bf16 MXU matmul) + folded-BN + Swish.
# ---------------------------------------------------------------------------
def _pw_kernel(x_ref, w_ref, s_ref, b_ref, o_ref):
    y = jnp.dot(x_ref[...], w_ref[...], preferred_element_type=jnp.float32)
    o_ref[...] = _swish_f32(y * s_ref[...] + b_ref[...]).astype(o_ref.dtype)


def pointwise_conv(x2d, w, scale, bias, *, out_dtype=ACT_DTYPE):
    M, cin = x2d.shape
    cout = w.shape[1]
    tm = _choose_tm(M)
    return pl.pallas_call(
        _pw_kernel,
        out_shape=jax.ShapeDtypeStruct((M, cout), out_dtype),
        grid=(pl.cdiv(M, tm),),
        in_specs=[
            pl.BlockSpec((tm, cin), lambda i: (i, 0)),
            pl.BlockSpec((cin, cout), lambda i: (0, 0)),
            pl.BlockSpec((1, cout), lambda i: (0, 0)),
            pl.BlockSpec((1, cout), lambda i: (0, 0)),
        ],
        out_specs=pl.BlockSpec((tm, cout), lambda i: (i, 0)),
        compiler_params=pltpu.CompilerParams(
            dimension_semantics=("parallel",),
            vmem_limit_bytes=_vmem_limit_bytes()),
    )(x2d, w,
      scale.reshape(1, cout).astype(jnp.float32),
      bias.reshape(1, cout).astype(jnp.float32))


# ---------------------------------------------------------------------------
# Kernel 2: fused tail  out = cv3(Swish(BN(cat(y1, cv2(x1))))).
# The "concat" lives only in a (tm, 2c) bf16 VMEM slab; cv3 is one K=2c matmul.
# ---------------------------------------------------------------------------
def _tail_kernel(x1_ref, y1_ref, w2_ref, w3_ref,
                 s1_ref, b1_ref, s2_ref, b2_ref, s3_ref, b3_ref,
                 o_ref, z_ref):
    c = x1_ref.shape[-1]
    # y2 = cv2(x1): plain 1x1 conv, no BN, no act.
    y2 = jnp.dot(x1_ref[...], w2_ref[...], preferred_element_type=jnp.float32)
    # BN + Swish per concat half, written lane-aligned into the bf16 slab.
    z_ref[:, :c] = _swish_f32(
        y1_ref[...].astype(jnp.float32) * s1_ref[...] + b1_ref[...]
    ).astype(z_ref.dtype)
    z_ref[:, c:] = _swish_f32(y2 * s2_ref[...] + b2_ref[...]).astype(z_ref.dtype)
    acc = jnp.dot(z_ref[...], w3_ref[...], preferred_element_type=jnp.float32)
    o_ref[...] = _swish_f32(acc * s3_ref[...] + b3_ref[...]).astype(o_ref.dtype)


def csp2_tail(x1, y1, w2, w3, s1, b1, s2, b2, s3, b3, *, out_dtype=jnp.float32):
    M, c = x1.shape
    c2 = w3.shape[1]
    tm = _choose_tm(M)
    row = lambda i: (i, 0)
    const = lambda i: (0, 0)
    return pl.pallas_call(
        _tail_kernel,
        out_shape=jax.ShapeDtypeStruct((M, c2), out_dtype),
        grid=(pl.cdiv(M, tm),),
        in_specs=[
            pl.BlockSpec((tm, c), row),
            pl.BlockSpec((tm, c), row),
            pl.BlockSpec((c, c), const),
            pl.BlockSpec((2 * c, c2), const),
            pl.BlockSpec((1, c), const),
            pl.BlockSpec((1, c), const),
            pl.BlockSpec((1, c), const),
            pl.BlockSpec((1, c), const),
            pl.BlockSpec((1, c2), const),
            pl.BlockSpec((1, c2), const),
        ],
        out_specs=pl.BlockSpec((tm, c2), row),
        scratch_shapes=[pltpu.VMEM((tm, 2 * c), ACT_DTYPE)],
        compiler_params=pltpu.CompilerParams(
            dimension_semantics=("parallel",),
            vmem_limit_bytes=_vmem_limit_bytes()),
    )(x1, y1, w2, w3,
      s1.reshape(1, c).astype(jnp.float32), b1.reshape(1, c).astype(jnp.float32),
      s2.reshape(1, c).astype(jnp.float32), b2.reshape(1, c).astype(jnp.float32),
      s3.reshape(1, c2).astype(jnp.float32), b3.reshape(1, c2).astype(jnp.float32))


# ---------------------------------------------------------------------------
# Kernel 3: one fused Bottleneck block per image:
#   h   = Swish(BN(t @ w1))                      (1x1 conv, fused, stays in VMEM)
#   out = Swish(BN(conv3x3(h)))                  (9 flat-shifted bf16 matmuls)
# The padded slab hpad holds h on a (H+2, W+2) zero-bordered grid, flattened
# with row stride Wp = W+2 plus one slack pad-row on each end, so every tap
# (ky, kx) is a contiguous row-slice of length H*Wp starting at
#   beta + ky*Wp + kx - 1   (beta = Wp).
# Only the 1-element borders are zeroed each step (interior is overwritten).
# ---------------------------------------------------------------------------
def _bottleneck_kernel(t_ref, w1_ref, s1_ref, b1_ref, w9_ref, s2_ref, b2_ref,
                       o_ref, hpad_ref, *, H, W):
    c = t_ref.shape[-1]
    Wp = W + 2
    beta = Wp                                   # one slack row before the slab

    # --- inner 1x1 conv + BN + Swish (no HBM round trip) --------------------
    h = jnp.dot(t_ref[...], w1_ref[...], preferred_element_type=jnp.float32)
    h = _swish_f32(h * s1_ref[...] + b1_ref[...]).astype(hpad_ref.dtype)

    # --- zero the 1-element borders only (not the whole slab) ---------------
    hpad_ref[beta:beta + Wp, :] = jnp.zeros((Wp, c), hpad_ref.dtype)       # top row
    hpad_ref[beta + (H + 1) * Wp - 1:beta + (H + 2) * Wp, :] = \
        jnp.zeros((Wp + 1, c), hpad_ref.dtype)                             # bottom row (+ last right col)
    zpair = jnp.zeros((2, c), hpad_ref.dtype)
    for r in range(1, H + 1):                                              # left/right pad cols
        hpad_ref[beta + r * Wp - 1:beta + r * Wp + 1, :] = zpair

    # --- scatter h rows into the interior of the padded slab ----------------
    for i in range(H):
        base = beta + (i + 1) * Wp + 1
        hpad_ref[base:base + W, :] = h[i * W:(i + 1) * W, :]

    # --- 3x3 conv as 9 flat-shifted matmuls, f32 accumulation ---------------
    acc = None
    for ky in range(3):
        for kx in range(3):
            start = beta + ky * Wp + kx - 1
            xs = hpad_ref[start:start + H * Wp, :]
            part = jnp.dot(xs, w9_ref[ky * 3 + kx],
                           preferred_element_type=jnp.float32)
            acc = part if acc is None else acc + part

    y = _swish_f32(acc * s2_ref[...] + b2_ref[...]).astype(o_ref.dtype)
    # Gather the W valid columns out of each padded-width (Wp) output row.
    for i in range(H):
        o_ref[i * W:(i + 1) * W, :] = y[i * Wp + 1:i * Wp + 1 + W, :]


def bottleneck_block(t3d, w1, s1, b1, w9, s2, b2, *, H, W):
    N, HW, c = t3d.shape
    Wp = W + 2
    kern = functools.partial(_bottleneck_kernel, H=H, W=W)
    const2 = lambda n: (0, 0)
    const3 = lambda n: (0, 0, 0)
    return pl.pallas_call(
        kern,
        out_shape=jax.ShapeDtypeStruct((N, HW, c), ACT_DTYPE),
        grid=(N,),
        in_specs=[
            pl.BlockSpec((None, HW, c), lambda n: (n, 0, 0)),
            pl.BlockSpec((c, c), const2),
            pl.BlockSpec((1, c), const2),
            pl.BlockSpec((1, c), const2),
            pl.BlockSpec((9, c, c), const3),
            pl.BlockSpec((1, c), const2),
            pl.BlockSpec((1, c), const2),
        ],
        out_specs=pl.BlockSpec((None, HW, c), lambda n: (n, 0, 0)),
        scratch_shapes=[pltpu.VMEM(((H + 4) * Wp, c), ACT_DTYPE)],
        compiler_params=pltpu.CompilerParams(
            dimension_semantics=("parallel",),
            vmem_limit_bytes=_vmem_limit_bytes()),
    )(t3d, w1,
      s1.reshape(1, c).astype(jnp.float32), b1.reshape(1, c).astype(jnp.float32),
      w9,
      s2.reshape(1, c).astype(jnp.float32), b2.reshape(1, c).astype(jnp.float32))


# ---------------------------------------------------------------------------
# Parameter construction (deterministic, synthetic) + BN folding.
# ---------------------------------------------------------------------------
def _fold_bn(gamma, beta, mean, var):
    scale = gamma / jnp.sqrt(var + EPS)
    return scale, beta - mean * scale


def init_params(key, c1, c2, n=1):
    c_ = int(c2)
    keys = iter(jax.random.split(key, 64))

    def conv_w(cin, cout, k):
        w = jax.random.normal(next(keys), (k, k, cin, cout), jnp.float32) * 0.2
        return w.astype(ACT_DTYPE)

    def bn(c):
        g = jax.random.uniform(next(keys), (c,), jnp.float32, 0.5, 1.5)
        b = jax.random.normal(next(keys), (c,), jnp.float32) * 0.1
        m = jax.random.normal(next(keys), (c,), jnp.float32) * 0.1
        v = jax.random.uniform(next(keys), (c,), jnp.float32, 0.5, 1.5)
        return _fold_bn(g, b, m, v)

    P = {}
    P['cv1_w'] = conv_w(c1, c_, 1).reshape(c1, c_)          # Conv(c1, c_, 1)
    P['cv1_s'], P['cv1_b'] = bn(c_)
    P['m'] = []
    for _ in range(n):                                       # Bottleneck(c_, c_, e=1.0)
        blk = {}
        blk['cv1_w'] = conv_w(c_, c_, 1).reshape(c_, c_)
        blk['cv1_s'], blk['cv1_b'] = bn(c_)
        blk['cv2_w_hwio'] = conv_w(c_, c_, 3)                # HWIO
        blk['cv2_s'], blk['cv2_b'] = bn(c_)
        P['m'].append(blk)
    P['cv2_w'] = conv_w(c_, c_, 1).reshape(c_, c_)           # plain Conv2d, no BN
    P['bn_s'], P['bn_b'] = bn(2 * c_)                        # BN over concat
    P['cv3_w'] = conv_w(2 * c_, c2, 1).reshape(2 * c_, c2)   # Conv(2c_, c2, 1)
    P['cv3_s'], P['cv3_b'] = bn(c2)
    return P


# ---------------------------------------------------------------------------
# Full BottleneckCSP2 forward (Pallas for all conv/BN/act; transposes, channel
# zero-padding and metadata reshapes are plain-JAX glue).
# ---------------------------------------------------------------------------
def bottleneck_csp2_forward(x_nchw, P):
    N, C1, H, W = x_nchw.shape
    c_ = P['cv1_w'].shape[1]
    c2 = P['cv3_w'].shape[1]
    c1p, cp, c2p = _round_up(C1), _round_up(c_), _round_up(c2)
    M = N * H * W

    # NHWC bf16 rows, channels zero-padded to a lane multiple.  Padded channels
    # stay exactly zero everywhere (padded weights / BN scale+bias are zero).
    x2d = jnp.transpose(x_nchw, (0, 2, 3, 1)).astype(ACT_DTYPE).reshape(M, C1)
    x2d = _pad_axis(x2d, 1, c1p)

    # x1 = cv1(x)
    x1 = pointwise_conv(x2d, _pad2(P['cv1_w'], c1p, cp),
                        _padv(P['cv1_s'], cp), _padv(P['cv1_b'], cp))

    # y1 = m(x1): each Bottleneck(c_, c_, shortcut=False, e=1.0) is ONE fused
    # kernel (1x1 conv+BN+Swish -> 3x3 conv via 9 shifted matmuls +BN+Swish).
    t = x1.reshape(N, H * W, cp)
    for blk in P['m']:
        w9 = _pad_axis(_pad_axis(blk['cv2_w_hwio'].reshape(9, c_, c_), 1, cp), 2, cp)
        t = bottleneck_block(
            t, _pad2(blk['cv1_w'], cp, cp),
            _padv(blk['cv1_s'], cp), _padv(blk['cv1_b'], cp),
            w9, _padv(blk['cv2_s'], cp), _padv(blk['cv2_b'], cp),
            H=H, W=W)
    y1 = t.reshape(M, cp)

    # out = cv3(act(bn(cat(y1, cv2(x1))))) -- fully fused, no HBM concat.
    w3 = jnp.concatenate(
        [_pad2(P['cv3_w'][:c_], cp, c2p), _pad2(P['cv3_w'][c_:], cp, c2p)], axis=0)
    out2d = csp2_tail(
        x1, y1, _pad2(P['cv2_w'], cp, cp), w3,
        _padv(P['bn_s'][:c_], cp), _padv(P['bn_b'][:c_], cp),
        _padv(P['bn_s'][c_:], cp), _padv(P['bn_b'][c_:], cp),
        _padv(P['cv3_s'], c2p), _padv(P['cv3_b'], c2p))
    out = out2d[:, :c2].reshape(N, H, W, c2)
    return jnp.transpose(out, (0, 3, 1, 2))                  # back to NCHW, f32


# ---------------------------------------------------------------------------
# Pure-JAX reference (mirrors the PyTorch module, f32 activations).
# ---------------------------------------------------------------------------
def ref_forward(x_nchw, P):
    f32 = jnp.float32
    x = jnp.transpose(x_nchw, (0, 2, 3, 1)).astype(f32)

    def pw(z, w):
        return jnp.einsum('nhwi,io->nhwo', z, w.astype(f32))

    def bnf(z, s, b):
        return z * s + b

    def swish(z):
        return z * jax.nn.sigmoid(z)

    x1 = swish(bnf(pw(x, P['cv1_w']), P['cv1_s'], P['cv1_b']))
    t = x1
    for blk in P['m']:
        h = swish(bnf(pw(t, blk['cv1_w']), blk['cv1_s'], blk['cv1_b']))
        h = jax.lax.conv_general_dilated(
            h, blk['cv2_w_hwio'].astype(f32), (1, 1), 'SAME',
            dimension_numbers=('NHWC', 'HWIO', 'NHWC'))
        h = swish(bnf(h, blk['cv2_s'], blk['cv2_b']))
        t = h
    y1 = t
    y2 = pw(x1, P['cv2_w'])
    cat = jnp.concatenate([y1, y2], axis=-1)
    z = swish(bnf(cat, P['bn_s'], P['bn_b']))
    out = swish(bnf(pw(z, P['cv3_w']), P['cv3_s'], P['cv3_b']))
    return jnp.transpose(out, (0, 3, 1, 2))


if __name__ == "__main__":
    key = jax.random.PRNGKey(0)
    kx, kp = jax.random.split(key)
    c1, c2, n = 4, 4, 1
    N, H, W = 2, 16, 16
    x = jax.random.normal(kx, (N, c1, H, W), jnp.float32)
    x = x.astype(jnp.bfloat16).astype(jnp.float32)   # share input rounding with ref
    P = init_params(kp, c1, c2, n=n)

    fwd = jax.jit(bottleneck_csp2_forward)
    out = jax.block_until_ready(fwd(x, P))

    ref = ref_forward(x, P)
    assert out.shape == (N, c2, H, W)
    max_err = float(jnp.max(jnp.abs(out - ref)))
    # bf16 activations/weights + approx reciprocal -> generous but meaningful tol.
    assert jnp.allclose(out, ref, atol=6e-2, rtol=6e-2), f"max_err={max_err}"
    print("KERNEL_OK")
</pallas_src>

<mosaic_0001>
module attributes {stable_mosaic.version = 11 : i64} {
  func.func @_pw_kernel(%arg0: i32, %arg1: memref<256x128xbf16, #tpu.memory_space<vmem>>, %arg2: memref<128x128xbf16, #tpu.memory_space<vmem>>, %arg3: memref<1x128xf32, #tpu.memory_space<vmem>>, %arg4: memref<1x128xf32, #tpu.memory_space<vmem>>, %arg5: memref<256x128xbf16, #tpu.memory_space<vmem>>) attributes {dimension_semantics = [#tpu.dimension_semantics<parallel>], iteration_bounds = array<i64: 2>, scalar_prefetch = 0 : i64, scratch_operands = 0 : i64, tpu.core_type = #tpu.core_type<tc>, window_params = [{transform_indices = @transform_0, window_bounds = array<i64: 256, 128>}, {pipeline_mode = #tpu.pipeline_mode<synchronous>, transform_indices = @transform_1, window_bounds = array<i64: 128, 128>}, {pipeline_mode = #tpu.pipeline_mode<synchronous>, transform_indices = @transform_2, window_bounds = array<i64: 1, 128>}, {pipeline_mode = #tpu.pipeline_mode<synchronous>, transform_indices = @transform_3, window_bounds = array<i64: 1, 128>}, {transform_indices = @transform_4, window_bounds = array<i64: 256, 128>}]} {
    %c0 = arith.constant 0 : index
    %c0_0 = arith.constant 0 : index
    %0 = vector.load %arg1[%c0, %c0_0] : memref<256x128xbf16, #tpu.memory_space<vmem>>, vector<256x128xbf16>
    %c0_1 = arith.constant 0 : index
    %c0_2 = arith.constant 0 : index
    %1 = vector.load %arg2[%c0_1, %c0_2] : memref<128x128xbf16, #tpu.memory_space<vmem>>, vector<128x128xbf16>
    %cst = arith.constant dense<0.000000e+00> : vector<256x128xf32>
    %2 = tpu.matmul %0, %1, %cst {dimension_numbers = #tpu.dot_dimension_numbers<[1], [0], [0], [1], [0, 0, 1, 1], [], []>} : vector<256x128xbf16>, vector<128x128xbf16>, vector<256x128xf32> -> vector<256x128xf32>
    %c0_3 = arith.constant 0 : index
    %c0_4 = arith.constant 0 : index
    %3 = vector.load %arg3[%c0_3, %c0_4] : memref<1x128xf32, #tpu.memory_space<vmem>>, vector<1x128xf32>
    %4 = vector.broadcast %3 : vector<1x128xf32> to vector<256x128xf32>
    %5 = arith.mulf %2, %4 : vector<256x128xf32>
    %c0_5 = arith.constant 0 : index
    %c0_6 = arith.constant 0 : index
    %6 = vector.load %arg4[%c0_5, %c0_6] : memref<1x128xf32, #tpu.memory_space<vmem>>, vector<1x128xf32>
    %7 = vector.broadcast %6 : vector<1x128xf32> to vector<256x128xf32>
    %8 = arith.addf %5, %7 : vector<256x128xf32>
    %cst_7 = arith.constant 0.000000e+00 : f32
    %9 = vector.broadcast %cst_7 : f32 to vector<256x128xf32>
    %10 = arith.subf %9, %8 : vector<256x128xf32>
    %11 = math.exp %10 : vector<256x128xf32>
    %cst_8 = arith.constant 1.000000e+00 : f32
    %12 = vector.broadcast %cst_8 : f32 to vector<256x128xf32>
    %13 = arith.addf %12, %11 : vector<256x128xf32>
    %14 = tpu.reciprocal %13 {approx = true} : vector<256x128xf32> -> vector<256x128xf32>
    %15 = arith.mulf %8, %14 : vector<256x128xf32>
    %16 = arith.truncf %15 : vector<256x128xf32> to vector<256x128xbf16>
    %c0_9 = arith.constant 0 : index
    %c0_10 = arith.constant 0 : index
    %17 = vector.load %arg5[%c0_9, %c0_10] : memref<256x128xbf16, #tpu.memory_space<vmem>>, vector<256x128xbf16>
    tpu.vector_store %arg5[%c0_9, %c0_10], %16 {strides = array<i32>} : memref<256x128xbf16, #tpu.memory_space<vmem>>, vector<256x128xbf16>,
    return
  }
  func.func @transform_0(%arg0: i32) -> (i32, i32) {
    %c0_i32 = arith.constant 0 : i32
    %c0_i32_0 = arith.constant 0 : i32
    return %arg0, %c0_i32 : i32, i32
  }
  func.func @transform_1(%arg0: i32) -> (i32, i32) {
    %c0_i32 = arith.constant 0 : i32
    %c0_i32_0 = arith.constant 0 : i32
    %c0_i32_1 = arith.constant 0 : i32
    return %c0_i32, %c0_i32_0 : i32, i32
  }
  func.func @transform_2(%arg0: i32) -> (i32, i32) {
    %c0_i32 = arith.constant 0 : i32
    %c0_i32_0 = arith.constant 0 : i32
    %c0_i32_1 = arith.constant 0 : i32
    return %c0_i32, %c0_i32_0 : i32, i32
  }
  func.func @transform_3(%arg0: i32) -> (i32, i32) {
    %c0_i32 = arith.constant 0 : i32
    %c0_i32_0 = arith.constant 0 : i32
    %c0_i32_1 = arith.constant 0 : i32
    return %c0_i32, %c0_i32_0 : i32, i32
  }
  func.func @transform_4(%arg0: i32) -> (i32, i32) {
    %c0_i32 = arith.constant 0 : i32
    %c0_i32_0 = arith.constant 0 : i32
    return %arg0, %c0_i32 : i32, i32
  }
}

module attributes {stable_mosaic.version = 11 : i64} {
  func.func @_bottleneck_kernel(%arg0: i32, %arg1: memref<1x256x128xbf16, #tpu.memory_space<vmem>>, %arg2: memref<128x128xbf16, #tpu.memory_space<vmem>>, %arg3: memref<1x128xf32, #tpu.memory_space<vmem>>, %arg4: memref<1x128xf32, #tpu.memory_space<vmem>>, %arg5: memref<9x128x128xbf16, #tpu.memory_space<vmem>>, %arg6: memref<1x128xf32, #tpu.memory_space<vmem>>, %arg7: memref<1x128xf32, #tpu.memory_space<vmem>>, %arg8: memref<1x256x128xbf16, #tpu.memory_space<vmem>>, %arg9: memref<360x128xbf16, #tpu.memory_space<vmem>>) attributes {dimension_semantics = [#tpu.dimension_semantics<parallel>], iteration_bounds = array<i64: 2>, scalar_prefetch = 0 : i64, scratch_operands = 1 : i64, tpu.core_type = #tpu.core_type<tc>, window_params = [{transform_indices = @transform_0, window_bounds = array<i64: 1, 256, 128>}, {pipeline_mode = #tpu.pipeline_mode<synchronous>, transform_indices = @transform_1, window_bounds = array<i64: 128, 128>}, {pipeline_mode = #tpu.pipeline_mode<synchronous>, transform_indices = @transform_2, window_bounds = array<i64: 1, 128>}, {pipeline_mode = #tpu.pipeline_mode<synchronous>, transform_indices = @transform_3, window_bounds = array<i64: 1, 128>}, {pipeline_mode = #tpu.pipeline_mode<synchronous>, transform_indices = @transform_4, window_bounds = array<i64: 9, 128, 128>}, {pipeline_mode = #tpu.pipeline_mode<synchronous>, transform_indices = @transform_5, window_bounds = array<i64: 1, 128>}, {pipeline_mode = #tpu.pipeline_mode<synchronous>, transform_indices = @transform_6, window_bounds = array<i64: 1, 128>}, {transform_indices = @transform_7, window_bounds = array<i64: 1, 256, 128>}]} {
    %c0 = arith.constant 0 : index
    %c0_0 = arith.constant 0 : index
    %c0_1 = arith.constant 0 : index
    %0 = vector.load %arg1[%c0, %c0_0, %c0_1] : memref<1x256x128xbf16, #tpu.memory_space<vmem>>, vector<1x256x128xbf16>
    %1 = vector.shape_cast %0 : vector<1x256x128xbf16> to vector<256x128xbf16>
    %c0_2 = arith.constant 0 : index
    %c0_3 = arith.constant 0 : index
    %2 = vector.load %arg2[%c0_2, %c0_3] : memref<128x128xbf16, #tpu.memory_space<vmem>>, vector<128x128xbf16>
    %cst = arith.constant dense<0.000000e+00> : vector<256x128xf32>
    %3 = tpu.matmul %1, %2, %cst {dimension_numbers = #tpu.dot_dimension_numbers<[1], [0], [0], [1], [0, 0, 1, 1], [], []>} : vector<256x128xbf16>, vector<128x128xbf16>, vector<256x128xf32> -> vector<256x128xf32>
    %c0_4 = arith.constant 0 : index
    %c0_5 = arith.constant 0 : index
    %4 = vector.load %arg3[%c0_4, %c0_5] : memref<1x128xf32, #tpu.memory_space<vmem>>, vector<1x128xf32>
    %5 = vector.broadcast %4 : vector<1x128xf32> to vector<256x128xf32>
    %6 = arith.mulf %3, %5 : vector<256x128xf32>
    %c0_6 = arith.constant 0 : index
    %c0_7 = arith.constant 0 : index
    %7 = vector.load %arg4[%c0_6, %c0_7] : memref<1x128xf32, #tpu.memory_space<vmem>>, vector<1x128xf32>
    %8 = vector.broadcast %7 : vector<1x128xf32> to vector<256x128xf32>
    %9 = arith.addf %6, %8 : vector<256x128xf32>
    %cst_8 = arith.constant 0.000000e+00 : f32
    %10 = vector.broadcast %cst_8 : f32 to vector<256x128xf32>
    %11 = arith.subf %10, %9 : vector<256x128xf32>
    %12 = math.exp %11 : vector<256x128xf32>
    %cst_9 = arith.constant 1.000000e+00 : f32
    %13 = vector.broadcast %cst_9 : f32 to vector<256x128xf32>
    %14 = arith.addf %13, %12 : vector<256x128xf32>
    %15 = tpu.reciprocal %14 {approx = true} : vector<256x128xf32> -> vector<256x128xf32>
    %16 = arith.mulf %9, %15 : vector<256x128xf32>
    %17 = arith.truncf %16 : vector<256x128xf32> to vector<256x128xbf16>
    %cst_10 = arith.constant 0.000000e+00 : bf16
    %18 = vector.broadcast %cst_10 : bf16 to vector<18x128xbf16>
    %c18 = arith.constant 18 : index
    %c0_11 = arith.constant 0 : index
    %19 = vector.load %arg9[%c18, %c0_11] : memref<360x128xbf16, #tpu.memory_space<vmem>>, vector<18x128xbf16>
    tpu.vector_store %arg9[%c18, %c0_11], %18 {strides = array<i32>} : memref<360x128xbf16, #tpu.memory_space<vmem>>, vector<18x128xbf16>,
    %cst_12 = arith.constant 0.000000e+00 : bf16
    %20 = vector.broadcast %cst_12 : bf16 to vector<19x128xbf16>
    %c323 = arith.constant 323 : index
    %c0_13 = arith.constant 0 : index
    %21 = vector.load %arg9[%c323, %c0_13] : memref<360x128xbf16, #tpu.memory_space<vmem>>, vector<19x128xbf16>
    tpu.vector_store %arg9[%c323, %c0_13], %20 {strides = array<i32>} : memref<360x128xbf16, #tpu.memory_space<vmem>>, vector<19x128xbf16>,
    %cst_14 = arith.constant 0.000000e+00 : bf16
    %22 = vector.broadcast %cst_14 : bf16 to vector<2x128xbf16>
    %c35 = arith.constant 35 : index
    %c0_15 = arith.constant 0 : index
    %23 = vector.load %arg9[%c35, %c0_15] : memref<360x128xbf16, #tpu.memory_space<vmem>>, vector<2x128xbf16>
    tpu.vector_store %arg9[%c35, %c0_15], %22 {strides = array<i32>} : memref<360x128xbf16, #tpu.memory_space<vmem>>, vector<2x128xbf16>,
    %c53 = arith.constant 53 : index
    %c0_16 = arith.constant 0 : index
    %24 = vector.load %arg9[%c53, %c0_16] : memref<360x128xbf16, #tpu.memory_space<vmem>>, vector<2x128xbf16>
    tpu.vector_store %arg9[%c53, %c0_16], %22 {strides = array<i32>} : memref<360x128xbf16, #tpu.memory_space<vmem>>, vector<2x128xbf16>,
    %c71 = arith.constant 71 : index
    %c0_17 = arith.constant 0 : index
    %25 = vector.load %arg9[%c71, %c0_17] : memref<360x128xbf16, #tpu.memory_space<vmem>>, vector<2x128xbf16>
    tpu.vector_store %arg9[%c71, %c0_17], %22 {strides = array<i32>} : memref<360x128xbf16, #tpu.memory_space<vmem>>, vector<2x128xbf16>,
    %c89 = arith.constant 89 : index
    %c0_18 = arith.constant 0 : index
    %26 = vector.load %arg9[%c89, %c0_18] : memref<360x128xbf16, #tpu.memory_space<vmem>>, vector<2x128xbf16>
    tpu.vector_store %arg9[%c89, %c0_18], %22 {strides = array<i32>} : memref<360x128xbf16, #tpu.memory_space<vmem>>, vector<2x128xbf16>,
    %c107 = arith.constant 107 : index
    %c0_19 = arith.constant 0 : index
    %27 = vector.load %arg9[%c107, %c0_19] : memref<360x128xbf16, #tpu.memory_space<vmem>>, vector<2x128xbf16>
    tpu.vector_store %arg9[%c107, %c0_19], %22 {strides = array<i32>} : memref<360x128xbf16, #tpu.memory_space<vmem>>, vector<2x128xbf16>,
    %c125 = arith.constant 125 : index
    %c0_20 = arith.constant 0 : index
    %28 = vector.load %arg9[%c125, %c0_20] : memref<360x128xbf16, #tpu.memory_space<vmem>>, vector<2x128xbf16>
    tpu.vector_store %arg9[%c125, %c0_20], %22 {strides = array<i32>} : memref<360x128xbf16, #tpu.memory_space<vmem>>, vector<2x128xbf16>,
    %c143 = arith.constant 143 : index
    %c0_21 = arith.constant 0 : index
    %29 = vector.load %arg9[%c143, %c0_21] : memref<360x128xbf16, #tpu.memory_space<vmem>>, vector<2x128xbf16>
    tpu.vector_store %arg9[%c143, %c0_21], %22 {strides = array<i32>} : memref<360x128xbf16, #tpu.memory_space<vmem>>, vector<2x128xbf16>,
    %c161 = arith.constant 161 : index
    %c0_22 = arith.constant 0 : index
    %30 = vector.load %arg9[%c161, %c0_22] : memref<360x128xbf16, #tpu.memory_space<vmem>>, vector<2x128xbf16>
    tpu.vector_store %arg9[%c161, %c0_22], %22 {strides = array<i32>} : memref<360x128xbf16, #tpu.memory_space<vmem>>, vector<2x128xbf16>,
    %c179 = arith.constant 179 : index
    %c0_23 = arith.constant 0 : index
    %31 = vector.load %arg9[%c179, %c0_23] : memref<360x128xbf16, #tpu.memory_space<vmem>>, vector<2x128xbf16>
    tpu.vector_store %arg9[%c179, %c0_23], %22 {strides = array<i32>} : memref<360x128xbf16, #tpu.memory_space<vmem>>, vector<2x128xbf16>,
    %c197 = arith.constant 197 : index
    %c0_24 = arith.constant 0 : index
    %32 = vector.load %arg9[%c197, %c0_24] : memref<360x128xbf16, #tpu.memory_space<vmem>>, vector<2x128xbf16>
    tpu.vector_store %arg9[%c197, %c0_24], %22 {strides = array<i32>} : memref<360x128xbf16, #tpu.memory_space<vmem>>, vector<2x128xbf16>,
    %c215 = arith.constant 215 : index
    %c0_25 = arith.constant 0 : index
    %33 = vector.load %arg9[%c215, %c0_25] : memref<360x128xbf16, #tpu.memory_space<vmem>>, vector<2x128xbf16>
    tpu.vector_store %arg9[%c215, %c0_25], %22 {strides = array<i32>} : memref<360x128xbf16, #tpu.memory_space<vmem>>, vector<2x128xbf16>,
    %c233 = arith.constant 233 : index
    %c0_26 = arith.constant 0 : index
    %34 = vector.load %arg9[%c233, %c0_26] : memref<360x128xbf16, #tpu.memory_space<vmem>>, vector<2x128xbf16>
    tpu.vector_store %arg9[%c233, %c0_26], %22 {strides = array<i32>} : memref<360x128xbf16, #tpu.memory_space<vmem>>, vector<2x128xbf16>,
    %c251 = arith.constant 251 : index
    %c0_27 = arith.constant 0 : index
    %35 = vector.load %arg9[%c251, %c0_27] : memref<360x128xbf16, #tpu.memory_space<vmem>>, vector<2x128xbf16>
    tpu.vector_store %arg9[%c251, %c0_27], %22 {strides = array<i32>} : memref<360x128xbf16, #tpu.memory_space<vmem>>, vector<2x128xbf16>,
    %c269 = arith.constant 269 : index
    %c0_28 = arith.constant 0 : index
    %36 = vector.load %arg9[%c269, %c0_28] : memref<360x128xbf16, #tpu.memory_space<vmem>>, vector<2x128xbf16>
    tpu.vector_store %arg9[%c269, %c0_28], %22 {strides = array<i32>} : memref<360x128xbf16, #tpu.memory_space<vmem>>, vector<2x128xbf16>,
    %c287 = arith.constant 287 : index
    %c0_29 = arith.constant 0 : index
    %37 = vector.load %arg9[%c287, %c0_29] : memref<360x128xbf16, #tpu.memory_space<vmem>>, vector<2x128xbf16>
    tpu.vector_store %arg9[%c287, %c0_29], %22 {strides = array<i32>} : memref<360x128xbf16, #tpu.memory_space<vmem>>, vector<2x128xbf16>,
    %c305 = arith.constant 305 : index
    %c0_30 = arith.constant 0 : index
    %38 = vector.load %arg9[%c305, %c0_30] : memref<360x128xbf16, #tpu.memory_space<vmem>>, vector<2x128xbf16>
    tpu.vector_store %arg9[%c305, %c0_30], %22 {strides = array<i32>} : memref<360x128xbf16, #tpu.memory_space<vmem>>, vector<2x128xbf16>,
    %39 = vector.extract_strided_slice %17 {offsets = [0, 0], sizes = [16, 128], strides = [1, 1]} : vector<256x128xbf16> to vector<16x128xbf16>
    %c37 = arith.constant 37 : index
    %c0_31 = arith.constant 0 : index
    %40 = vector.load %arg9[%c37, %c0_31] : memref<360x128xbf16, #tpu.memory_space<vmem>>, vector<16x128xbf16>
    tpu.vector_store %arg9[%c37, %c0_31], %39 {strides = array<i32>} : memref<360x128xbf16, #tpu.memory_space<vmem>>, vector<16x128xbf16>,
    %41 = vector.extract_strided_slice %17 {offsets = [16, 0], sizes = [16, 128], strides = [1, 1]} : vector<256x128xbf16> to vector<16x128xbf16>
    %c55 = arith.constant 55 : index
    %c0_32 = arith.constant 0 : index
    %42 = vector.load %arg9[%c55, %c0_32] : memref<360x128xbf16, #tpu.memory_space<vmem>>, vector<16x128xbf16>
    tpu.vector_store %arg9[%c55, %c0_32], %41 {strides = array<i32>} : memref<360x128xbf16, #tpu.memory_space<vmem>>, vector<16x128xbf16>,
    %43 = vector.extract_strided_slice %17 {offsets = [32, 0], sizes = [16, 128], strides = [1, 1]} : vector<256x128xbf16> to vector<16x128xbf16>
    %c73 = arith.constant 73 : index
    %c0_33 = arith.constant 0 : index
    %44 = vector.load %arg9[%c73, %c0_33] : memref<360x128xbf16, #tpu.memory_space<vmem>>, vector<16x128xbf16>
    tpu.vector_store %arg9[%c73, %c0_33], %43 {strides = array<i32>} : memref<360x128xbf16, #tpu.memory_space<vmem>>, vector<16x128xbf16>,
    %45 = vector.extract_strided_slice %17 {offsets = [48, 0], sizes = [16, 128], strides = [1, 1]} : vector<256x128xbf16> to vector<16x128xbf16>
    %c91 = arith.constant 91 : index
    %c0_34 = arith.constant 0 : index
    %46 = vector.load %arg9[%c91, %c0_34] : memref<360x128xbf16, #tpu.memory_space<vmem>>, vector<16x128xbf16>
    tpu.vector_store %arg9[%c91, %c0_34], %45 {strides = array<i32>} : memref<360x128xbf16, #tpu.memory_space<vmem>>, vector<16x128xbf16>,
    %47 = vector.extract_strided_slice %17 {offsets = [64, 0], sizes = [16, 128], strides = [1, 1]} : vector<256x128xbf16> to vector<16x128xbf16>
    %c109 = arith.constant 109 : index
    %c0_35 = arith.constant 0 : index
    %48 = vector.load %arg9[%c109, %c0_35] : memref<360x128xbf16, #tpu.memory_space<vmem>>, vector<16x128xbf16>
    tpu.vector_store %arg9[%c109, %c0_35], %47 {strides = array<i32>} : memref<360x128xbf16, #tpu.memory_space<vmem>>, vector<16x128xbf16>,
    %49 = vector.extract_strided_slice %17 {offsets = [80, 0], sizes = [16, 128], strides = [1, 1]} : vector<256x128xbf16> to vector<16x128xbf16>
    %c127 = arith.constant 127 : index
    %c0_36 = arith.constant 0 : index
    %50 = vector.load %arg9[%c127, %c0_36] : memref<360x128xbf16, #tpu.memory_space<vmem>>, vector<16x128xbf16>
    tpu.vector_store %arg9[%c127, %c0_36], %49 {strides = array<i32>} : memref<360x128xbf16, #tpu.memory_space<vmem>>, vector<16x128xbf16>,
    %51 = vector.extract_strided_slice %17 {offsets = [96, 0], sizes = [16, 128], strides = [1, 1]} : vector<256x128xbf16> to vector<16x128xbf16>
    %c145 = arith.constant 145 : index
    %c0_37 = arith.constant 0 : index
    %52 = vector.load %arg9[%c145, %c0_37] : memref<360x128xbf16, #tpu.memory_space<vmem>>, vector<16x128xbf16>
    tpu.vector_store %arg9[%c145, %c0_37], %51 {strides = array<i32>} : memref<360x128xbf16, #tpu.memory_space<vmem>>, vector<16x128xbf16>,
    %53 = vector.extract_strided_slice %17 {offsets = [112, 0], sizes = [16, 128], strides = [1, 1]} : vector<256x128xbf16> to vector<16x128xbf16>
    %c163 = arith.constant 163 : index
    %c0_38 = arith.constant 0 : index
    %54 = vector.load %arg9[%c163, %c0_38] : memref<360x128xbf16, #tpu.memory_space<vmem>>, vector<16x128xbf16>
    tpu.vector_store %arg9[%c163, %c0_38], %53 {strides = array<i32>} : memref<360x128xbf16, #tpu.memory_space<vmem>>, vector<16x128xbf16>,
    %55 = vector.extract_strided_slice %17 {offsets = [128, 0], sizes = [16, 128], strides = [1, 1]} : vector<256x128xbf16> to vector<16x128xbf16>
    %c181 = arith.constant 181 : index
    %c0_39 = arith.constant 0 : index
    %56 = vector.load %arg9[%c181, %c0_39] : memref<360x128xbf16, #tpu.memory_space<vmem>>, vector<16x128xbf16>
    tpu.vector_store %arg9[%c181, %c0_39], %55 {strides = array<i32>} : memref<360x128xbf16, #tpu.memory_space<vmem>>, vector<16x128xbf16>,
    %57 = vector.extract_strided_slice %17 {offsets = [144, 0], sizes = [16, 128], strides = [1, 1]} : vector<256x128xbf16> to vector<16x128xbf16>
    %c199 = arith.constant 199 : index
    %c0_40 = arith.constant 0 : index
    %58 = vector.load %arg9[%c199, %c0_40] : memref<360x128xbf16, #tpu.memory_space<vmem>>, vector<16x128xbf16>
    tpu.vector_store %arg9[%c199, %c0_40], %57 {strides = array<i32>} : memref<360x128xbf16, #tpu.memory_space<vmem>>, vector<16x128xbf16>,
    %59 = vector.extract_strided_slice %17 {offsets = [160, 0], sizes = [16, 128], strides = [1, 1]} : vector<256x128xbf16> to vector<16x128xbf16>
    %c217 = arith.constant 217 : index
    %c0_41 = arith.constant 0 : index
    %60 = vector.load %arg9[%c217, %c0_41] : memref<360x128xbf16, #tpu.memory_space<vmem>>, vector<16x128xbf16>
    tpu.vector_store %arg9[%c217, %c0_41], %59 {strides = array<i32>} : memref<360x128xbf16, #tpu.memory_space<vmem>>, vector<16x128xbf16>,
    %61 = vector.extract_strided_slice %17 {offsets = [176, 0], sizes = [16, 128], strides = [1, 1]} : vector<256x128xbf16> to vector<16x128xbf16>
    %c235 = arith.constant 235 : index
    %c0_42 = arith.constant 0 : index
    %62 = vector.load %arg9[%c235, %c0_42] : memref<360x128xbf16, #tpu.memory_space<vmem>>, vector<16x128xbf16>
    tpu.vector_store %arg9[%c235, %c0_42], %61 {strides = array<i32>} : memref<360x128xbf16, #tpu.memory_space<vmem>>, vector<16x128xbf16>,
    %63 = vector.extract_strided_slice %17 {offsets = [192, 0], sizes = [16, 128], strides = [1, 1]} : vector<256x128xbf16> to vector<16x128xbf16>
    %c253 = arith.constant 253 : index
    %c0_43 = arith.constant 0 : index
    %64 = vector.load %arg9[%c253, %c0_43] : memref<360x128xbf16, #tpu.memory_space<vmem>>, vector<16x128xbf16>
    tpu.vector_store %arg9[%c253, %c0_43], %63 {strides = array<i32>} : memref<360x128xbf16, #tpu.memory_space<vmem>>, vector<16x128xbf16>,
    %65 = vector.extract_strided_slice %17 {offsets = [208, 0], sizes = [16, 128], strides = [1, 1]} : vector<256x128xbf16> to vector<16x128xbf16>
    %c271 = arith.constant 271 : index
    %c0_44 = arith.constant 0 : index
    %66 = vector.load %arg9[%c271, %c0_44] : memref<360x128xbf16, #tpu.memory_space<vmem>>, vector<16x128xbf16>
    tpu.vector_store %arg9[%c271, %c0_44], %65 {strides = array<i32>} : memref<360x128xbf16, #tpu.memory_space<vmem>>, vector<16x128xbf16>,
    %67 = vector.extract_strided_slice %17 {offsets = [224, 0], sizes = [16, 128], strides = [1, 1]} : vector<256x128xbf16> to vector<16x128xbf16>
    %c289 = arith.constant 289 : index
    %c0_45 = arith.constant 0 : index
    %68 = vector.load %arg9[%c289, %c0_45] : memref<360x128xbf16, #tpu.memory_space<vmem>>, vector<16x128xbf16>
    tpu.vector_store %arg9[%c289, %c0_45], %67 {strides = array<i32>} : memref<360x128xbf16, #tpu.memory_space<vmem>>, vector<16x128xbf16>,
    %69 = vector.extract_strided_slice %17 {offsets = [240, 0], sizes = [16, 128], strides = [1, 1]} : vector<256x128xbf16> to vector<16x128xbf16>
    %c307 = arith.constant 307 : index
    %c0_46 = arith.constant 0 : index
    %70 = vector.load %arg9[%c307, %c0_46] : memref<360x128xbf16, #tpu.memory_space<vmem>>, vector<16x128xbf16>
    tpu.vector_store %arg9[%c307, %c0_46], %69 {strides = array<i32>} : memref<360x128xbf16, #tpu.memory_space<vmem>>, vector<16x128xbf16>,
    %c17 = arith.constant 17 : index
    %c0_47 = arith.constant 0 : index
    %71 = vector.load %arg9[%c17, %c0_47] : memref<360x128xbf16, #tpu.memory_space<vmem>>, vector<288x128xbf16>
    %c0_48 = arith.constant 0 : index
    %c0_49 = arith.constant 0 : index
    %c0_50 = arith.constant 0 : index
    %72 = vector.load %arg5[%c0_48, %c0_49, %c0_50] : memref<9x128x128xbf16, #tpu.memory_space<vmem>>, vector<1x128x128xbf16>
    %73 = vector.shape_cast %72 : vector<1x128x128xbf16> to vector<128x128xbf16>
    %cst_51 = arith.constant dense<0.000000e+00> : vector<288x128xf32>
    %74 = tpu.matmul %71, %73, %cst_51 {dimension_numbers = #tpu.dot_dimension_numbers<[1], [0], [0], [1], [0, 0, 1, 1], [], []>} : vector<288x128xbf16>, vector<128x128xbf16>, vector<288x128xf32> -> vector<288x128xf32>
    %c18_52 = arith.constant 18 : index
    %c0_53 = arith.constant 0 : index
    %75 = vector.load %arg9[%c18_52, %c0_53] : memref<360x128xbf16, #tpu.memory_space<vmem>>, vector<288x128xbf16>
    %c1 = arith.constant 1 : index
    %c0_54 = arith.constant 0 : index
    %c0_55 = arith.constant 0 : index
    %76 = vector.load %arg5[%c1, %c0_54, %c0_55] : memref<9x128x128xbf16, #tpu.memory_space<vmem>>, vector<1x128x128xbf16>
    %77 = vector.shape_cast %76 : vector<1x128x128xbf16> to vector<128x128xbf16>
    %cst_56 = arith.constant dense<0.000000e+00> : vector<288x128xf32>
    %78 = tpu.matmul %75, %77, %cst_56 {dimension_numbers = #tpu.dot_dimension_numbers<[1], [0], [0], [1], [0, 0, 1, 1], [], []>} : vector<288x128xbf16>, vector<128x128xbf16>, vector<288x128xf32> -> vector<288x128xf32>
    %79 = arith.addf %74, %78 : vector<288x128xf32>
    %c19 = arith.constant 19 : index
    %c0_57 = arith.constant 0 : index
    %80 = vector.load %arg9[%c19, %c0_57] : memref<360x128xbf16, #tpu.memory_space<vmem>>, vector<288x128xbf16>
    %c2 = arith.constant 2 : index
    %c0_58 = arith.constant 0 : index
    %c0_59 = arith.constant 0 : index
    %81 = vector.load %arg5[%c2, %c0_58, %c0_59] : memref<9x128x128xbf16, #tpu.memory_space<vmem>>, vector<1x128x128xbf16>
    %82 = vector.shape_cast %81 : vector<1x128x128xbf16> to vector<128x128xbf16>
    %cst_60 = arith.constant dense<0.000000e+00> : vector<288x128xf32>
    %83 = tpu.matmul %80, %82, %cst_60 {dimension_numbers = #tpu.dot_dimension_numbers<[1], [0], [0], [1], [0, 0, 1, 1], [], []>} : vector<288x128xbf16>, vector<128x128xbf16>, vector<288x128xf32> -> vector<288x128xf32>
    %84 = arith.addf %79, %83 : vector<288x128xf32>
    %c35_61 = arith.constant 35 : index
    %c0_62 = arith.constant 0 : index
    %85 = vector.load %arg9[%c35_61, %c0_62] : memref<360x128xbf16, #tpu.memory_space<vmem>>, vector<288x128xbf16>
    %c3 = arith.constant 3 : index
    %c0_63 = arith.constant 0 : index
    %c0_64 = arith.constant 0 : index
    %86 = vector.load %arg5[%c3, %c0_63, %c0_64] : memref<9x128x128xbf16, #tpu.memory_space<vmem>>, vector<1x128x128xbf16>
    %87 = vector.shape_cast %86 : vector<1x128x128xbf16> to vector<128x128xbf16>
    %cst_65 = arith.constant dense<0.000000e+00> : vector<288x128xf32>
    %88 = tpu.matmul %85, %87, %cst_65 {dimension_numbers = #tpu.dot_dimension_numbers<[1], [0], [0], [1], [0, 0, 1, 1], [], []>} : vector<288x128xbf16>, vector<128x128xbf16>, vector<288x128xf32> -> vector<288x128xf32>
    %89 = arith.addf %84, %88 : vector<288x128xf32>
    %c36 = arith.constant 36 : index
    %c0_66 = arith.constant 0 : index
    %90 = vector.load %arg9[%c36, %c0_66] : memref<360x128xbf16, #tpu.memory_space<vmem>>, vector<288x128xbf16>
    %c4 = arith.constant 4 : index
    %c0_67 = arith.constant 0 : index
    %c0_68 = arith.constant 0 : index
    %91 = vector.load %arg5[%c4, %c0_67, %c0_68] : memref<9x128x128xbf16, #tpu.memory_space<vmem>>, vector<1x128x128xbf16>
    %92 = vector.shape_cast %91 : vector<1x128x128xbf16> to vector<128x128xbf16>
    %cst_69 = arith.constant dense<0.000000e+00> : vector<288x128xf32>
    %93 = tpu.matmul %90, %92, %cst_69 {dimension_numbers = #tpu.dot_dimension_numbers<[1], [0], [0], [1], [0, 0, 1, 1], [], []>} : vector<288x128xbf16>, vector<128x128xbf16>, vector<288x128xf32> -> vector<288x128xf32>
    %94 = arith.addf %89, %93 : vector<288x128xf32>
    %c37_70 = arith.constant 37 : index
    %c0_71 = arith.constant 0 : index
    %95 = vector.load %arg9[%c37_70, %c0_71] : memref<360x128xbf16, #tpu.memory_space<vmem>>, vector<288x128xbf16>
    %c5 = arith.constant 5 : index
    %c0_72 = arith.constant 0 : index
    %c0_73 = arith.constant 0 : index
    %96 = vector.load %arg5[%c5, %c0_72, %c0_73] : memref<9x128x128xbf16, #tpu.memory_space<vmem>>, vector<1x128x128xbf16>
    %97 = vector.shape_cast %96 : vector<1x128x128xbf16> to vector<128x128xbf16>
    %cst_74 = arith.constant dense<0.000000e+00> : vector<288x128xf32>
    %98 = tpu.matmul %95, %97, %cst_74 {dimension_numbers = #tpu.dot_dimension_numbers<[1], [0], [0], [1], [0, 0, 1, 1], [], []>} : vector<288x128xbf16>, vector<128x128xbf16>, vector<288x128xf32> -> vector<288x128xf32>
    %99 = arith.addf %94, %98 : vector<288x128xf32>
    %c53_75 = arith.constant 53 : index
    %c0_76 = arith.constant 0 : index
    %100 = vector.load %arg9[%c53_75, %c0_76] : memref<360x128xbf16, #tpu.memory_space<vmem>>, vector<288x128xbf16>
    %c6 = arith.constant 6 : index
    %c0_77 = arith.constant 0 : index
    %c0_78 = arith.constant 0 : index
    %101 = vector.load %arg5[%c6, %c0_77, %c0_78] : memref<9x128x128xbf16, #tpu.memory_space<vmem>>, vector<1x128x128xbf16>
    %102 = vector.shape_cast %101 : vector<1x128x128xbf16> to vector<128x128xbf16>
    %cst_79 = arith.constant dense<0.000000e+00> : vector<288x128xf32>
    %103 = tpu.matmul %100, %102, %cst_79 {dimension_numbers = #tpu.dot_dimension_numbers<[1], [0], [0], [1], [0, 0, 1, 1], [], []>} : vector<288x128xbf16>, vector<128x128xbf16>, vector<288x128xf32> -> vector<288x128xf32>
    %104 = arith.addf %99, %103 : vector<288x128xf32>
    %c54 = arith.constant 54 : index
    %c0_80 = arith.constant 0 : index
    %105 = vector.load %arg9[%c54, %c0_80] : memref<360x128xbf16, #tpu.memory_space<vmem>>, vector<288x128xbf16>
    %c7 = arith.constant 7 : index
    %c0_81 = arith.constant 0 : index
    %c0_82 = arith.constant 0 : index
    %106 = vector.load %arg5[%c7, %c0_81, %c0_82] : memref<9x128x128xbf16, #tpu.memory_space<vmem>>, vector<1x128x128xbf16>
    %107 = vector.shape_cast %106 : vector<1x128x128xbf16> to vector<128x128xbf16>
    %cst_83 = arith.constant dense<0.000000e+00> : vector<288x128xf32>
    %108 = tpu.matmul %105, %107, %cst_83 {dimension_numbers = #tpu.dot_dimension_numbers<[1], [0], [0], [1], [0, 0, 1, 1], [], []>} : vector<288x128xbf16>, vector<128x128xbf16>, vector<288x128xf32> -> vector<288x128xf32>
    %109 = arith.addf %104, %108 : vector<288x128xf32>
    %c55_84 = arith.constant 55 : index
    %c0_85 = arith.constant 0 : index
    %110 = vector.load %arg9[%c55_84, %c0_85] : memref<360x128xbf16, #tpu.memory_space<vmem>>, vector<288x128xbf16>
    %c8 = arith.constant 8 : index
    %c0_86 = arith.constant 0 : index
    %c0_87 = arith.constant 0 : index
    %111 = vector.load %arg5[%c8, %c0_86, %c0_87] : memref<9x128x128xbf16, #tpu.memory_space<vmem>>, vector<1x128x128xbf16>
    %112 = vector.shape_cast %111 : vector<1x128x128xbf16> to vector<128x128xbf16>
    %cst_88 = arith.constant dense<0.000000e+00> : vector<288x128xf32>
    %113 = tpu.matmul %110, %112, %cst_88 {dimension_numbers = #tpu.dot_dimension_numbers<[1], [0], [0], [1], [0, 0, 1, 1], [], []>} : vector<288x128xbf16>, vector<128x128xbf16>, vector<288x128xf32> -> vector<288x128xf32>
    %114 = arith.addf %109, %113 : vector<288x128xf32>
    %c0_89 = arith.constant 0 : index
    %c0_90 = arith.constant 0 : index
    %115 = vector.load %arg6[%c0_89, %c0_90] : memref<1x128xf32, #tpu.memory_space<vmem>>, vector<1x128xf32>
    %116 = vector.broadcast %115 : vector<1x128xf32> to vector<288x128xf32>
    %117 = arith.mulf %114, %116 : vector<288x128xf32>
    %c0_91 = arith.constant 0 : index
    %c0_92 = arith.constant 0 : index
    %118 = vector.load %arg7[%c0_91, %c0_92] : memref<1x128xf32, #tpu.memory_space<vmem>>, vector<1x128xf32>
    %119 = vector.broadcast %118 : vector<1x128xf32> to vector<288x128xf32>
    %120 = arith.addf %117, %119 : vector<288x128xf32>
    %cst_93 = arith.constant 0.000000e+00 : f32
    %121 = vector.broadcast %cst_93 : f32 to vector<288x128xf32>
    %122 = arith.subf %121, %120 : vector<288x128xf32>
    %123 = math.exp %122 : vector<288x128xf32>
    %cst_94 = arith.constant 1.000000e+00 : f32
    %124 = vector.broadcast %cst_94 : f32 to vector<288x128xf32>
    %125 = arith.addf %124, %123 : vector<288x128xf32>
    %126 = tpu.reciprocal %125 {approx = true} : vector<288x128xf32> -> vector<288x128xf32>
    %127 = arith.mulf %120, %126 : vector<288x128xf32>
    %128 = arith.truncf %127 : vector<288x128xf32> to vector<288x128xbf16>
    %129 = vector.extract_strided_slice %128 {offsets = [1, 0], sizes = [16, 128], strides = [1, 1]} : vector<288x128xbf16> to vector<16x128xbf16>
    %c0_95 = arith.constant 0 : index
    %c0_96 = arith.constant 0 : index
    %c0_97 = arith.constant 0 : index
    %130 = vector.load %arg8[%c0_95, %c0_96, %c0_97] : memref<1x256x128xbf16, #tpu.memory_space<vmem>>, vector<1x16x128xbf16>
    %131 = vector.shape_cast %130 : vector<1x16x128xbf16> to vector<16x128xbf16>
    %132 = vector.shape_cast %129 : vector<16x128xbf16> to vector<1x16x128xbf16>
    tpu.vector_store %arg8[%c0_95, %c0_96, %c0_97], %132 {strides = array<i32>} : memref<1x256x128xbf16, #tpu.memory_space<vmem>>, vector<1x16x128xbf16>,
    %133 = vector.extract_strided_slice %128 {offsets = [19, 0], sizes = [16, 128], strides = [1, 1]} : vector<288x128xbf16> to vector<16x128xbf16>
    %c0_98 = arith.constant 0 : index
    %c16 = arith.constant 16 : index
    %c0_99 = arith.constant 0 : index
    %134 = vector.load %arg8[%c0_98, %c16, %c0_99] : memref<1x256x128xbf16, #tpu.memory_space<vmem>>, vector<1x16x128xbf16>
    %135 = vector.shape_cast %134 : vector<1x16x128xbf16> to vector<16x128xbf16>
    %136 = vector.shape_cast %133 : vector<16x128xbf16> to vector<1x16x128xbf16>
    tpu.vector_store %arg8[%c0_98, %c16, %c0_99], %136 {strides = array<i32>} : memref<1x256x128xbf16, #tpu.memory_space<vmem>>, vector<1x16x128xbf16>,
    %137 = vector.extract_strided_slice %128 {offsets = [37, 0], sizes = [16, 128], strides = [1, 1]} : vector<288x128xbf16> to vector<16x128xbf16>
    %c0_100 = arith.constant 0 : index
    %c32 = arith.constant 32 : index
    %c0_101 = arith.constant 0 : index
    %138 = vector.load %arg8[%c0_100, %c32, %c0_101] : memref<1x256x128xbf16, #tpu.memory_space<vmem>>, vector<1x16x128xbf16>
    %139 = vector.shape_cast %138 : vector<1x16x128xbf16> to vector<16x128xbf16>
    %140 = vector.shape_cast %137 : vector<16x128xbf16> to vector<1x16x128xbf16>
    tpu.vector_store %arg8[%c0_100, %c32, %c0_101], %140 {strides = array<i32>} : memref<1x256x128xbf16, #tpu.memory_space<vmem>>, vector<1x16x128xbf16>,
    %141 = vector.extract_strided_slice %128 {offsets = [55, 0], sizes = [16, 128], strides = [1, 1]} : vector<288x128xbf16> to vector<16x128xbf16>
    %c0_102 = arith.constant 0 : index
    %c48 = arith.constant 48 : index
    %c0_103 = arith.constant 0 : index
    %142 = vector.load %arg8[%c0_102, %c48, %c0_103] : memref<1x256x128xbf16, #tpu.memory_space<vmem>>, vector<1x16x128xbf16>
    %143 = vector.shape_cast %142 : vector<1x16x128xbf16> to vector<16x128xbf16>
    %144 = vector.shape_cast %141 : vector<16x128xbf16> to vector<1x16x128xbf16>
    tpu.vector_store %arg8[%c0_102, %c48, %c0_103], %144 {strides = array<i32>} : memref<1x256x128xbf16, #tpu.memory_space<vmem>>, vector<1x16x128xbf16>,
    %145 = vector.extract_strided_slice %128 {offsets = [73, 0], sizes = [16, 128], strides = [1, 1]} : vector<288x128xbf16> to vector<16x128xbf16>
    %c0_104 = arith.constant 0 : index
    %c64 = arith.constant 64 : index
    %c0_105 = arith.constant 0 : index
    %146 = vector.load %arg8[%c0_104, %c64, %c0_105] : memref<1x256x128xbf16, #tpu.memory_space<vmem>>, vector<1x16x128xbf16>
    %147 = vector.shape_cast %146 : vector<1x16x128xbf16> to vector<16x128xbf16>
    %148 = vector.shape_cast %145 : vector<16x128xbf16> to vector<1x16x128xbf16>
    tpu.vector_store %arg8[%c0_104, %c64, %c0_105], %148 {strides = array<i32>} : memref<1x256x128xbf16, #tpu.memory_space<vmem>>, vector<1x16x128xbf16>,
    %149 = vector.extract_strided_slice %128 {offsets = [91, 0], sizes = [16, 128], strides = [1, 1]} : vector<288x128xbf16> to vector<16x128xbf16>
    %c0_106 = arith.constant 0 : index
    %c80 = arith.constant 80 : index
    %c0_107 = arith.constant 0 : index
    %150 = vector.load %arg8[%c0_106, %c80, %c0_107] : memref<1x256x128xbf16, #tpu.memory_space<vmem>>, vector<1x16x128xbf16>
    %151 = vector.shape_cast %150 : vector<1x16x128xbf16> to vector<16x128xbf16>
    %152 = vector.shape_cast %149 : vector<16x128xbf16> to vector<1x16x128xbf16>
    tpu.vector_store %arg8[%c0_106, %c80, %c0_107], %152 {strides = array<i32>} : memref<1x256x128xbf16, #tpu.memory_space<vmem>>, vector<1x16x128xbf16>,
    %153 = vector.extract_strided_slice %128 {offsets = [109, 0], sizes = [16, 128], strides = [1, 1]} : vector<288x128xbf16> to vector<16x128xbf16>
    %c0_108 = arith.constant 0 : index
    %c96 = arith.constant 96 : index
    %c0_109 = arith.constant 0 : index
    %154 = vector.load %arg8[%c0_108, %c96, %c0_109] : memref<1x256x128xbf16, #tpu.memory_space<vmem>>, vector<1x16x128xbf16>
    %155 = vector.shape_cast %154 : vector<1x16x128xbf16> to vector<16x128xbf16>
    %156 = vector.shape_cast %153 : vector<16x128xbf16> to vector<1x16x128xbf16>
    tpu.vector_store %arg8[%c0_108, %c96, %c0_109], %156 {strides = array<i32>} : memref<1x256x128xbf16, #tpu.memory_space<vmem>>, vector<1x16x128xbf16>,
    %157 = vector.extract_strided_slice %128 {offsets = [127, 0], sizes = [16, 128], strides = [1, 1]} : vector<288x128xbf16> to vector<16x128xbf16>
    %c0_110 = arith.constant 0 : index
    %c112 = arith.constant 112 : index
    %c0_111 = arith.constant 0 : index
    %158 = vector.load %arg8[%c0_110, %c112, %c0_111] : memref<1x256x128xbf16, #tpu.memory_space<vmem>>, vector<1x16x128xbf16>
    %159 = vector.shape_cast %158 : vector<1x16x128xbf16> to vector<16x128xbf16>
    %160 = vector.shape_cast %157 : vector<16x128xbf16> to vector<1x16x128xbf16>
    tpu.vector_store %arg8[%c0_110, %c112, %c0_111], %160 {strides = array<i32>} : memref<1x256x128xbf16, #tpu.memory_space<vmem>>, vector<1x16x128xbf16>,
    %161 = vector.extract_strided_slice %128 {offsets = [145, 0], sizes = [16, 128], strides = [1, 1]} : vector<288x128xbf16> to vector<16x128xbf16>
    %c0_112 = arith.constant 0 : index
    %c128 = arith.constant 128 : index
    %c0_113 = arith.constant 0 : index
    %162 = vector.load %arg8[%c0_112, %c128, %c0_113] : memref<1x256x128xbf16, #tpu.memory_space<vmem>>, vector<1x16x128xbf16>
    %163 = vector.shape_cast %162 : vector<1x16x128xbf16> to vector<16x128xbf16>
    %164 = vector.shape_cast %161 : vector<16x128xbf16> to vector<1x16x128xbf16>
    tpu.vector_store %arg8[%c0_112, %c128, %c0_113], %164 {strides = array<i32>} : memref<1x256x128xbf16, #tpu.memory_space<vmem>>, vector<1x16x128xbf16>,
    %165 = vector.extract_strided_slice %128 {offsets = [163, 0], sizes = [16, 128], strides = [1, 1]} : vector<288x128xbf16> to vector<16x128xbf16>
    %c0_114 = arith.constant 0 : index
    %c144 = arith.constant 144 : index
    %c0_115 = arith.constant 0 : index
    %166 = vector.load %arg8[%c0_114, %c144, %c0_115] : memref<1x256x128xbf16, #tpu.memory_space<vmem>>, vector<1x16x128xbf16>
    %167 = vector.shape_cast %166 : vector<1x16x128xbf16> to vector<16x128xbf16>
    %168 = vector.shape_cast %165 : vector<16x128xbf16> to vector<1x16x128xbf16>
    tpu.vector_store %arg8[%c0_114, %c144, %c0_115], %168 {strides = array<i32>} : memref<1x256x128xbf16, #tpu.memory_space<vmem>>, vector<1x16x128xbf16>,
    %169 = vector.extract_strided_slice %128 {offsets = [181, 0], sizes = [16, 128], strides = [1, 1]} : vector<288x128xbf16> to vector<16x128xbf16>
    %c0_116 = arith.constant 0 : index
    %c160 = arith.constant 160 : index
    %c0_117 = arith.constant 0 : index
    %170 = vector.load %arg8[%c0_116, %c160, %c0_117] : memref<1x256x128xbf16, #tpu.memory_space<vmem>>, vector<1x16x128xbf16>
    %171 = vector.shape_cast %170 : vector<1x16x128xbf16> to vector<16x128xbf16>
    %172 = vector.shape_cast %169 : vector<16x128xbf16> to vector<1x16x128xbf16>
    tpu.vector_store %arg8[%c0_116, %c160, %c0_117], %172 {strides = array<i32>} : memref<1x256x128xbf16, #tpu.memory_space<vmem>>, vector<1x16x128xbf16>,
    %173 = vector.extract_strided_slice %128 {offsets = [199, 0], sizes = [16, 128], strides = [1, 1]} : vector<288x128xbf16> to vector<16x128xbf16>
    %c0_118 = arith.constant 0 : index
    %c176 = arith.constant 176 : index
    %c0_119 = arith.constant 0 : index
    %174 = vector.load %arg8[%c0_118, %c176, %c0_119] : memref<1x256x128xbf16, #tpu.memory_space<vmem>>, vector<1x16x128xbf16>
    %175 = vector.shape_cast %174 : vector<1x16x128xbf16> to vector<16x128xbf16>
    %176 = vector.shape_cast %173 : vector<16x128xbf16> to vector<1x16x128xbf16>
    tpu.vector_store %arg8[%c0_118, %c176, %c0_119], %176 {strides = array<i32>} : memref<1x256x128xbf16, #tpu.memory_space<vmem>>, vector<1x16x128xbf16>,
    %177 = vector.extract_strided_slice %128 {offsets = [217, 0], sizes = [16, 128], strides = [1, 1]} : vector<288x128xbf16> to vector<16x128xbf16>
    %c0_120 = arith.constant 0 : index
    %c192 = arith.constant 192 : index
    %c0_121 = arith.constant 0 : index
    %178 = vector.load %arg8[%c0_120, %c192, %c0_121] : memref<1x256x128xbf16, #tpu.memory_space<vmem>>, vector<1x16x128xbf16>
    %179 = vector.shape_cast %178 : vector<1x16x128xbf16> to vector<16x128xbf16>
    %180 = vector.shape_cast %177 : vector<16x128xbf16> to vector<1x16x128xbf16>
    tpu.vector_store %arg8[%c0_120, %c192, %c0_121], %180 {strides = array<i32>} : memref<1x256x128xbf16, #tpu.memory_space<vmem>>, vector<1x16x128xbf16>,
    %181 = vector.extract_strided_slice %128 {offsets = [235, 0], sizes = [16, 128], strides = [1, 1]} : vector<288x128xbf16> to vector<16x128xbf16>
    %c0_122 = arith.constant 0 : index
    %c208 = arith.constant 208 : index
    %c0_123 = arith.constant 0 : index
    %182 = vector.load %arg8[%c0_122, %c208, %c0_123] : memref<1x256x128xbf16, #tpu.memory_space<vmem>>, vector<1x16x128xbf16>
    %183 = vector.shape_cast %182 : vector<1x16x128xbf16> to vector<16x128xbf16>
    %184 = vector.shape_cast %181 : vector<16x128xbf16> to vector<1x16x128xbf16>
    tpu.vector_store %arg8[%c0_122, %c208, %c0_123], %184 {strides = array<i32>} : memref<1x256x128xbf16, #tpu.memory_space<vmem>>, vector<1x16x128xbf16>,
    %185 = vector.extract_strided_slice %128 {offsets = [253, 0], sizes = [16, 128], strides = [1, 1]} : vector<288x128xbf16> to vector<16x128xbf16>
    %c0_124 = arith.constant 0 : index
    %c224 = arith.constant 224 : index
    %c0_125 = arith.constant 0 : index
    %186 = vector.load %arg8[%c0_124, %c224, %c0_125] : memref<1x256x128xbf16, #tpu.memory_space<vmem>>, vector<1x16x128xbf16>
    %187 = vector.shape_cast %186 : vector<1x16x128xbf16> to vector<16x128xbf16>
    %188 = vector.shape_cast %185 : vector<16x128xbf16> to vector<1x16x128xbf16>
    tpu.vector_store %arg8[%c0_124, %c224, %c0_125], %188 {strides = array<i32>} : memref<1x256x128xbf16, #tpu.memory_space<vmem>>, vector<1x16x128xbf16>,
    %189 = vector.extract_strided_slice %128 {offsets = [271, 0], sizes = [16, 128], strides = [1, 1]} : vector<288x128xbf16> to vector<16x128xbf16>
    %c0_126 = arith.constant 0 : index
    %c240 = arith.constant 240 : index
    %c0_127 = arith.constant 0 : index
    %190 = vector.load %arg8[%c0_126, %c240, %c0_127] : memref<1x256x128xbf16, #tpu.memory_space<vmem>>, vector<1x16x128xbf16>
    %191 = vector.shape_cast %190 : vector<1x16x128xbf16> to vector<16x128xbf16>
    %192 = vector.shape_cast %189 : vector<16x128xbf16> to vector<1x16x128xbf16>
    tpu.vector_store %arg8[%c0_126, %c240, %c0_127], %192 {strides = array<i32>} : memref<1x256x128xbf16, #tpu.memory_space<vmem>>, vector<1x16x128xbf16>,
    return
  }
  func.func @transform_0(%arg0: i32) -> (i32, i32, i32) {
    %c0_i32 = arith.constant 0 : i32
    %c0_i32_0 = arith.constant 0 : i32
    %c0_i32_1 = arith.constant 0 : i32
    return %arg0, %c0_i32, %c0_i32_0 : i32, i32, i32
  }
  func.func @transform_1(%arg0: i32) -> (i32, i32) {
    %c0_i32 = arith.constant 0 : i32
    %c0_i32_0 = arith.constant 0 : i32
    %c0_i32_1 = arith.constant 0 : i32
    return %c0_i32, %c0_i32_0 : i32, i32
  }
  func.func @transform_2(%arg0: i32) -> (i32, i32) {
    %c0_i32 = arith.constant 0 : i32
    %c0_i32_0 = arith.constant 0 : i32
    %c0_i32_1 = arith.constant 0 : i32
    return %c0_i32, %c0_i32_0 : i32, i32
  }
  func.func @transform_3(%arg0: i32) -> (i32, i32) {
    %c0_i32 = arith.constant 0 : i32
    %c0_i32_0 = arith.constant 0 : i32
    %c0_i32_1 = arith.constant 0 : i32
    return %c0_i32, %c0_i32_0 : i32, i32
  }
  func.func @transform_4(%arg0: i32) -> (i32, i32, i32) {
    %c0_i32 = arith.constant 0 : i32
    %c0_i32_0 = arith.constant 0 : i32
    %c0_i32_1 = arith.constant 0 : i32
    %c0_i32_2 = arith.constant 0 : i32
    return %c0_i32, %c0_i32_0, %c0_i32_1 : i32, i32, i32
  }
  func.func @transform_5(%arg0: i32) -> (i32, i32) {
    %c0_i32 = arith.constant 0 : i32
    %c0_i32_0 = arith.constant 0 : i32
    %c0_i32_1 = arith.constant 0 : i32
    return %c0_i32, %c0_i32_0 : i32, i32
  }
  func.func @transform_6(%arg0: i32) -> (i32, i32) {
    %c0_i32 = arith.constant 0 : i32
    %c0_i32_0 = arith.constant 0 : i32
    %c0_i32_1 = arith.constant 0 : i32
    return %c0_i32, %c0_i32_0 : i32, i32
  }
  func.func @transform_7(%arg0: i32) -> (i32, i32, i32) {
    %c0_i32 = arith.constant 0 : i32
    %c0_i32_0 = arith.constant 0 : i32
    %c0_i32_1 = arith.constant 0 : i32
    return %arg0, %c0_i32, %c0_i32_0 : i32, i32, i32
  }
}

module attributes {stable_mosaic.version = 11 : i64} {
  func.func @_tail_kernel(%arg0: i32, %arg1: memref<256x128xbf16, #tpu.memory_space<vmem>>, %arg2: memref<256x128xbf16, #tpu.memory_space<vmem>>, %arg3: memref<128x128xbf16, #tpu.memory_space<vmem>>, %arg4: memref<256x128xbf16, #tpu.memory_space<vmem>>, %arg5: memref<1x128xf32, #tpu.memory_space<vmem>>, %arg6: memref<1x128xf32, #tpu.memory_space<vmem>>, %arg7: memref<1x128xf32, #tpu.memory_space<vmem>>, %arg8: memref<1x128xf32, #tpu.memory_space<vmem>>, %arg9: memref<1x128xf32, #tpu.memory_space<vmem>>, %arg10: memref<1x128xf32, #tpu.memory_space<vmem>>, %arg11: memref<256x128xf32, #tpu.memory_space<vmem>>, %arg12: memref<256x256xbf16, #tpu.memory_space<vmem>>) attributes {dimension_semantics = [#tpu.dimension_semantics<parallel>], iteration_bounds = array<i64: 2>, scalar_prefetch = 0 : i64, scratch_operands = 1 : i64, tpu.core_type = #tpu.core_type<tc>, window_params = [{transform_indices = @transform_0, window_bounds = array<i64: 256, 128>}, {transform_indices = @transform_1, window_bounds = array<i64: 256, 128>}, {pipeline_mode = #tpu.pipeline_mode<synchronous>, transform_indices = @transform_2, window_bounds = array<i64: 128, 128>}, {pipeline_mode = #tpu.pipeline_mode<synchronous>, transform_indices = @transform_3, window_bounds = array<i64: 256, 128>}, {pipeline_mode = #tpu.pipeline_mode<synchronous>, transform_indices = @transform_4, window_bounds = array<i64: 1, 128>}, {pipeline_mode = #tpu.pipeline_mode<synchronous>, transform_indices = @transform_5, window_bounds = array<i64: 1, 128>}, {pipeline_mode = #tpu.pipeline_mode<synchronous>, transform_indices = @transform_6, window_bounds = array<i64: 1, 128>}, {pipeline_mode = #tpu.pipeline_mode<synchronous>, transform_indices = @transform_7, window_bounds = array<i64: 1, 128>}, {pipeline_mode = #tpu.pipeline_mode<synchronous>, transform_indices = @transform_8, window_bounds = array<i64: 1, 128>}, {pipeline_mode = #tpu.pipeline_mode<synchronous>, transform_indices = @transform_9, window_bounds = array<i64: 1, 128>}, {transform_indices = @transform_10, window_bounds = array<i64: 256, 128>}]} {
    %c0 = arith.constant 0 : index
    %c0_0 = arith.constant 0 : index
    %0 = vector.load %arg1[%c0, %c0_0] : memref<256x128xbf16, #tpu.memory_space<vmem>>, vector<256x128xbf16>
    %c0_1 = arith.constant 0 : index
    %c0_2 = arith.constant 0 : index
    %1 = vector.load %arg3[%c0_1, %c0_2] : memref<128x128xbf16, #tpu.memory_space<vmem>>, vector<128x128xbf16>
    %cst = arith.constant dense<0.000000e+00> : vector<256x128xf32>
    %2 = tpu.matmul %0, %1, %cst {dimension_numbers = #tpu.dot_dimension_numbers<[1], [0], [0], [1], [0, 0, 1, 1], [], []>} : vector<256x128xbf16>, vector<128x128xbf16>, vector<256x128xf32> -> vector<256x128xf32>
    %c0_3 = arith.constant 0 : index
    %c0_4 = arith.constant 0 : index
    %3 = vector.load %arg2[%c0_3, %c0_4] : memref<256x128xbf16, #tpu.memory_space<vmem>>, vector<256x128xbf16>
    %4 = arith.extf %3 : vector<256x128xbf16> to vector<256x128xf32>
    %c0_5 = arith.constant 0 : index
    %c0_6 = arith.constant 0 : index
    %5 = vector.load %arg5[%c0_5, %c0_6] : memref<1x128xf32, #tpu.memory_space<vmem>>, vector<1x128xf32>
    %6 = vector.broadcast %5 : vector<1x128xf32> to vector<256x128xf32>
    %7 = arith.mulf %4, %6 : vector<256x128xf32>
    %c0_7 = arith.constant 0 : index
    %c0_8 = arith.constant 0 : index
    %8 = vector.load %arg6[%c0_7, %c0_8] : memref<1x128xf32, #tpu.memory_space<vmem>>, vector<1x128xf32>
    %9 = vector.broadcast %8 : vector<1x128xf32> to vector<256x128xf32>
    %10 = arith.addf %7, %9 : vector<256x128xf32>
    %cst_9 = arith.constant 0.000000e+00 : f32
    %11 = vector.broadcast %cst_9 : f32 to vector<256x128xf32>
    %12 = arith.subf %11, %10 : vector<256x128xf32>
    %13 = math.exp %12 : vector<256x128xf32>
    %cst_10 = arith.constant 1.000000e+00 : f32
    %14 = vector.broadcast %cst_10 : f32 to vector<256x128xf32>
    %15 = arith.addf %14, %13 : vector<256x128xf32>
    %16 = tpu.reciprocal %15 {approx = true} : vector<256x128xf32> -> vector<256x128xf32>
    %17 = arith.mulf %10, %16 : vector<256x128xf32>
    %18 = arith.truncf %17 : vector<256x128xf32> to vector<256x128xbf16>
    %c0_11 = arith.constant 0 : index
    %c0_12 = arith.constant 0 : index
    %19 = vector.load %arg12[%c0_11, %c0_12] : memref<256x256xbf16, #tpu.memory_space<vmem>>, vector<256x128xbf16>
    tpu.vector_store %arg12[%c0_11, %c0_12], %18 {strides = array<i32>} : memref<256x256xbf16, #tpu.memory_space<vmem>>, vector<256x128xbf16>,
    %c0_13 = arith.constant 0 : index
    %c0_14 = arith.constant 0 : index
    %20 = vector.load %arg7[%c0_13, %c0_14] : memref<1x128xf32, #tpu.memory_space<vmem>>, vector<1x128xf32>
    %21 = vector.broadcast %20 : vector<1x128xf32> to vector<256x128xf32>
    %22 = arith.mulf %2, %21 : vector<256x128xf32>
    %c0_15 = arith.constant 0 : index
    %c0_16 = arith.constant 0 : index
    %23 = vector.load %arg8[%c0_15, %c0_16] : memref<1x128xf32, #tpu.memory_space<vmem>>, vector<1x128xf32>
    %24 = vector.broadcast %23 : vector<1x128xf32> to vector<256x128xf32>
    %25 = arith.addf %22, %24 : vector<256x128xf32>
    %cst_17 = arith.constant 0.000000e+00 : f32
    %26 = vector.broadcast %cst_17 : f32 to vector<256x128xf32>
    %27 = arith.subf %26, %25 : vector<256x128xf32>
    %28 = math.exp %27 : vector<256x128xf32>
    %cst_18 = arith.constant 1.000000e+00 : f32
    %29 = vector.broadcast %cst_18 : f32 to vector<256x128xf32>
    %30 = arith.addf %29, %28 : vector<256x128xf32>
    %31 = tpu.reciprocal %30 {approx = true} : vector<256x128xf32> -> vector<256x128xf32>
    %32 = arith.mulf %25, %31 : vector<256x128xf32>
    %33 = arith.truncf %32 : vector<256x128xf32> to vector<256x128xbf16>
    %c0_19 = arith.constant 0 : index
    %c128 = arith.constant 128 : index
    %34 = vector.load %arg12[%c0_19, %c128] : memref<256x256xbf16, #tpu.memory_space<vmem>>, vector<256x128xbf16>
    tpu.vector_store %arg12[%c0_19, %c128], %33 {strides = array<i32>} : memref<256x256xbf16, #tpu.memory_space<vmem>>, vector<256x128xbf16>,
    %c0_20 = arith.constant 0 : index
    %c0_21 = arith.constant 0 : index
    %35 = vector.load %arg12[%c0_20, %c0_21] : memref<256x256xbf16, #tpu.memory_space<vmem>>, vector<256x256xbf16>
    %c0_22 = arith.constant 0 : index
    %c0_23 = arith.constant 0 : index
    %36 = vector.load %arg4[%c0_22, %c0_23] : memref<256x128xbf16, #tpu.memory_space<vmem>>, vector<256x128xbf16>
    %cst_24 = arith.constant dense<0.000000e+00> : vector<256x128xf32>
    %37 = tpu.matmul %35, %36, %cst_24 {dimension_numbers = #tpu.dot_dimension_numbers<[1], [0], [0], [1], [0, 0, 1, 1], [], []>} : vector<256x256xbf16>, vector<256x128xbf16>, vector<256x128xf32> -> vector<256x128xf32>
    %c0_25 = arith.constant 0 : index
    %c0_26 = arith.constant 0 : index
    %38 = vector.load %arg9[%c0_25, %c0_26] : memref<1x128xf32, #tpu.memory_space<vmem>>, vector<1x128xf32>
    %39 = vector.broadcast %38 : vector<1x128xf32> to vector<256x128xf32>
    %40 = arith.mulf %37, %39 : vector<256x128xf32>
    %c0_27 = arith.constant 0 : index
    %c0_28 = arith.constant 0 : index
    %41 = vector.load %arg10[%c0_27, %c0_28] : memref<1x128xf32, #tpu.memory_space<vmem>>, vector<1x128xf32>
    %42 = vector.broadcast %41 : vector<1x128xf32> to vector<256x128xf32>
    %43 = arith.addf %40, %42 : vector<256x128xf32>
    %cst_29 = arith.constant 0.000000e+00 : f32
    %44 = vector.broadcast %cst_29 : f32 to vector<256x128xf32>
    %45 = arith.subf %44, %43 : vector<256x128xf32>
    %46 = math.exp %45 : vector<256x128xf32>
    %cst_30 = arith.constant 1.000000e+00 : f32
    %47 = vector.broadcast %cst_30 : f32 to vector<256x128xf32>
    %48 = arith.addf %47, %46 : vector<256x128xf32>
    %49 = tpu.reciprocal %48 {approx = true} : vector<256x128xf32> -> vector<256x128xf32>
    %50 = arith.mulf %43, %49 : vector<256x128xf32>
    %c0_31 = arith.constant 0 : index
    %c0_32 = arith.constant 0 : index
    %51 = vector.load %arg11[%c0_31, %c0_32] : memref<256x128xf32, #tpu.memory_space<vmem>>, vector<256x128xf32>
    tpu.vector_store %arg11[%c0_31, %c0_32], %50 {strides = array<i32>} : memref<256x128xf32, #tpu.memory_space<vmem>>, vector<256x128xf32>,
    return
  }
  func.func @transform_0(%arg0: i32) -> (i32, i32) {
    %c0_i32 = arith.constant 0 : i32
    %c0_i32_0 = arith.constant 0 : i32
    return %arg0, %c0_i32 : i32, i32
  }
  func.func @transform_1(%arg0: i32) -> (i32, i32) {
    %c0_i32 = arith.constant 0 : i32
    %c0_i32_0 = arith.constant 0 : i32
    return %arg0, %c0_i32 : i32, i32
  }
  func.func @transform_2(%arg0: i32) -> (i32, i32) {
    %c0_i32 = arith.constant 0 : i32
    %c0_i32_0 = arith.constant 0 : i32
    %c0_i32_1 = arith.constant 0 : i32
    return %c0_i32, %c0_i32_0 : i32, i32
  }
  func.func @transform_3(%arg0: i32) -> (i32, i32) {
    %c0_i32 = arith.constant 0 : i32
    %c0_i32_0 = arith.constant 0 : i32
    %c0_i32_1 = arith.constant 0 : i32
    return %c0_i32, %c0_i32_0 : i32, i32
  }
  func.func @transform_4(%arg0: i32) -> (i32, i32) {
    %c0_i32 = arith.constant 0 : i32
    %c0_i32_0 = arith.constant 0 : i32
    %c0_i32_1 = arith.constant 0 : i32
    return %c0_i32, %c0_i32_0 : i32, i32
  }
  func.func @transform_5(%arg0: i32) -> (i32, i32) {
    %c0_i32 = arith.constant 0 : i32
    %c0_i32_0 = arith.constant 0 : i32
    %c0_i32_1 = arith.constant 0 : i32
    return %c0_i32, %c0_i32_0 : i32, i32
  }
  func.func @transform_6(%arg0: i32) -> (i32, i32) {
    %c0_i32 = arith.constant 0 : i32
    %c0_i32_0 = arith.constant 0 : i32
    %c0_i32_1 = arith.constant 0 : i32
    return %c0_i32, %c0_i32_0 : i32, i32
  }
  func.func @transform_7(%arg0: i32) -> (i32, i32) {
    %c0_i32 = arith.constant 0 : i32
    %c0_i32_0 = arith.constant 0 : i32
    %c0_i32_1 = arith.constant 0 : i32
    return %c0_i32, %c0_i32_0 : i32, i32
  }
  func.func @transform_8(%arg0: i32) -> (i32, i32) {
    %c0_i32 = arith.constant 0 : i32
    %c0_i32_0 = arith.constant 0 : i32
    %c0_i32_1 = arith.constant 0 : i32
    return %c0_i32, %c0_i32_0 : i32, i32
  }
  func.func @transform_9(%arg0: i32) -> (i32, i32) {
    %c0_i32 = arith.constant 0 : i32
    %c0_i32_0 = arith.constant 0 : i32
    %c0_i32_1 = arith.constant 0 : i32
    return %c0_i32, %c0_i32_0 : i32, i32
  }
  func.func @transform_10(%arg0: i32) -> (i32, i32) {
    %c0_i32 = arith.constant 0 : i32
    %c0_i32_0 = arith.constant 0 : i32
    return %arg0, %c0_i32 : i32, i32
  }
}

</mosaic_0001>

<bundles_post_ra>
// kernel: bottleneck_csp2_forward.3
= control target key start
LH: loop header
LB: loop body
LE: loop exit
PB: predicated region body
PF: predicated region fallthrough
CT: control target
= control target key end

     0   :  { %s1518_s15 = smov 0   ;;  %s1804_s0 = inlined_call_operand.vmem [shape: bf16[512,128], index: 0, kind: input, shape index: {}]   ;;  %s1805_s1 = inlined_call_operand.vmem [shape: bf16[128,128], index: 1, kind: input, shape index: {}]   ;;  %s1806_s2 = inlined_call_operand.vmem [shape: f32[1,128], index: 2, kind: input, shape index: {}]   ;;  %s1807_s3 = inlined_call_operand.vmem [shape: f32[1,128], index: 3, kind: input, shape index: {}]   ;;  %s1808_s4 = inlined_call_operand.vmem [shape: bf16[512,128], index: 4, kind: output, shape index: {}]  }
   0x1 LB: > { %s1041_s16 = sadd.s32 4294967295, %s1491_s15   ;;  %p1045_p0 = scmp.ge.s32.totalorder %s1491_s15, 1  ;;  %s1491_s15 = sphi %s1518_s15, %s14_s15  }
   0x2   : > { %p163_p1 = scmp.lt.s32.totalorder %s1491_s15, 3 }
   0x4   : > { %p164_p2 = pnand %p1045_p0, %p163_p1 }
   0x5   : > { %s1046_s19 = sshll.u32 (!%p164_p2), %s1041_s16, 5 }
   0x6   : > { %167 = sbr.rel (%p164_p2) target bundleno = 338 (0x152), region = 36  ;;  %p190_p3 = scmp.lt.s32.totalorder (!%p164_p2), %s1046_s19, 63 }
   0xb   : > { %v1333_v0 = vld [vmem:[%s1805_s1 + $0x38] sm:$0xff]   ;;  %v1334_v1 = vld [vmem:[%s1805_s1 + $0x30] sm:$0xff]   ;;  %s1810_s19 = smov (!%p190_p3, %s1046_s19), 63  ;;  %v1335_v2 = vld [vmem:[%s1805_s1 + $0x28] sm:$0xff]  }
   0xc   : > { %1261 = vmatprep.subr.bf16.mxu0 %v1333_v0  ;;  %1309 = vmatprep.subr.bf16.mxu1 %v1333_v0  ;;  %s1047_s24 = sshll.u32 %s1810_s19, 2  ;;  %v1336_v3 = vld [vmem:[%s1805_s1 + $0x20] sm:$0xff]   ;;  %v1337_v6 = vld [vmem:[%s1805_s1 + $0x18] sm:$0xff]   ;;  %v1338_v7 = vld [vmem:[%s1805_s1 + $0x10] sm:$0xff]  }
   0xd   : > { %1262 = vmatpush3.bf16.msra.mxu0 %v1333_v0  ;;  %1317 = vmatpush3.bf16.msra.mxu1 %v1333_v0  ;;  %s1543_s27 = scalar_lea.vmem %s1804_s0, %s1047_s24  ;;  %v1339_v8 = vld [vmem:[%s1805_s1 + $0x8] sm:$0xff]   ;;  %v1340_v9 = vld [vmem:[%s1805_s1] sm:$0xff]   ;;  %s1738_s20 = scalar_lea.vmem %s1808_s4, %s1047_s24 }
   0xe   : > { %1263 = vmatprep.subr.bf16.mxu0 %v1334_v1  ;;  %1310 = vmatprep.subr.bf16.mxu1 %v1334_v1  ;;  %v1341_v4 = vld [vmem:[%s1543_s27] sm:$0xff]   ;;  %v1343_v10 = vld [vmem:[%s1543_s27 + $0x8] sm:$0xff]   ;;  %v1345_v12 = vld [vmem:[%s1543_s27 + $0x10] sm:$0xff]  }
   0xf   : > { %v1342_v5 = vld [vmem:[%s1543_s27 + $0x40] sm:$0xff]   ;;  %1277 = vmatprep.mubr.bf16.mxu0 %v1341_v4  ;;  %v1344_v11 = vld [vmem:[%s1543_s27 + $0x48] sm:$0xff]   ;;  %v1346_v13 = vld [vmem:[%s1543_s27 + $0x50] sm:$0xff]  }
  0x10   : > { %1293 = vmatprep.mubr.bf16.mxu1 %v1342_v5  ;;  %v1347_v14 = vld [vmem:[%s1543_s27 + $0x18] sm:$0xff]   ;;  %v1349_v16 = vld [vmem:[%s1543_s27 + $0x20] sm:$0xff]   ;;  %v1351_v18 = vld [vmem:[%s1543_s27 + $0x28] sm:$0xff]  }
  0x11   : > { %1264 = vmatpush3.bf16.msra.mxu0 %v1334_v1  ;;  %1318 = vmatpush3.bf16.msra.mxu1 %v1334_v1  ;;  %v1348_v15 = vld [vmem:[%s1543_s27 + $0x58] sm:$0xff]   ;;  %v1350_v17 = vld [vmem:[%s1543_s27 + $0x60] sm:$0xff]   ;;  %v1352_v19 = vld [vmem:[%s1543_s27 + $0x68] sm:$0xff]  }
  0x12   : > { %1265 = vmatprep.subr.bf16.mxu0 %v1335_v2  ;;  %1311 = vmatprep.subr.bf16.mxu1 %v1335_v2  ;;  %v1353_v20 = vld [vmem:[%s1543_s27 + $0x30] sm:$0xff]   ;;  %v1355_v22 = vld [vmem:[%s1543_s27 + $0x38] sm:$0xff]   ;;  %v1579_v24 = vld [vmem:[%s1806_s2] ss:$0 sm:$0xff] }
  0x13   : > { %v1354_v21 = vld [vmem:[%s1543_s27 + $0x70] sm:$0xff]   ;;  %v1356_v23 = vld [vmem:[%s1543_s27 + $0x78] sm:$0xff]   ;;  %v1584_v26 = vld [vmem:[%s1807_s3] ss:$0 sm:$0xff] }
  0x15   : > { %1266 = vmatpush3.bf16.msra.mxu0 %v1335_v2  ;;  %1319 = vmatpush3.bf16.msra.mxu1 %v1335_v2 }
  0x16   : > { %1267 = vmatprep.subr.bf16.mxu0 %v1336_v3  ;;  %1312 = vmatprep.subr.bf16.mxu1 %v1336_v3 }
  0x19   : > { %1268 = vmatpush3.bf16.msra.mxu0 %v1336_v3  ;;  %1320 = vmatpush3.bf16.msra.mxu1 %v1336_v3 }
  0x1a   : > { %1269 = vmatprep.subr.bf16.mxu0 %v1337_v6  ;;  %1313 = vmatprep.subr.bf16.mxu1 %v1337_v6 }
  0x1d   : > { %1270 = vmatpush3.bf16.msra.mxu0 %v1337_v6  ;;  %1321 = vmatpush3.bf16.msra.mxu1 %v1337_v6 }
  0x1e   : > { %1271 = vmatprep.subr.bf16.mxu0 %v1338_v7  ;;  %1314 = vmatprep.subr.bf16.mxu1 %v1338_v7 }
  0x21   : > { %1272 = vmatpush3.bf16.msra.mxu0 %v1338_v7  ;;  %1322 = vmatpush3.bf16.msra.mxu1 %v1338_v7 }
  0x22   : > { %1273 = vmatprep.subr.bf16.mxu0 %v1339_v8  ;;  %1315 = vmatprep.subr.bf16.mxu1 %v1339_v8 }
  0x25   : > { %1274 = vmatpush3.bf16.msra.mxu0 %v1339_v8  ;;  %1323 = vmatpush3.bf16.msra.mxu1 %v1339_v8 }
  0x26   : > { %1275 = vmatprep.subr.bf16.mxu0 %v1340_v9  ;;  %1316 = vmatprep.subr.bf16.mxu1 %v1340_v9 }
  0x29   : > { %1276 = vmatpush3.bf16.msra.mxu0 %v1340_v9  ;;  %1324 = vmatpush3.bf16.msra.mxu1 %v1340_v9 }
  0x2c   : > { %1278 = vmatmul.mubr.bf16.vlgmr.msra.gmra.mxu0 %v1343_v10  ;;  %1294 = vmatmul.mubr.bf16.vlgmr.msra.gmra.mxu1 %v1344_v11 }
  0x2d   : > { %1281 = vmatprep.mubr.bf16.mxu0 %v1345_v12  ;;  %1297 = vmatprep.mubr.bf16.mxu1 %v1346_v13 }
  0x34   : > { %1282 = vmatmul.mubr.bf16.gmra.mxu0 %v1347_v14  ;;  %1298 = vmatmul.mubr.bf16.gmra.mxu1 %v1348_v15 }
  0x35   : > { %1285 = vmatprep.mubr.bf16.mxu0 %v1349_v16  ;;  %1301 = vmatprep.mubr.bf16.mxu1 %v1350_v17 }
  0x3c   : > { %1286 = vmatmul.mubr.bf16.gmra.mxu0 %v1351_v18  ;;  %1302 = vmatmul.mubr.bf16.gmra.mxu1 %v1352_v19 }
  0x3d   : > { %1289 = vmatprep.mubr.bf16.mxu0 %v1353_v20  ;;  %1305 = vmatprep.mubr.bf16.mxu1 %v1354_v21 }
  0x44   : > { %1290 = vmatmul.mubr.bf16.gmra.mxu0 %v1355_v22  ;;  %1306 = vmatmul.mubr.bf16.gmra.mxu1 %v1356_v23 }
  0xec   : > { %v1279_v25 = vpop.f32.mrf.mxu0  ;;  %v1295_v27 = vpop.f32.mrf.mxu1 }
  0xed   : > { %v564_v28 = vmul.f32 %v1279_v25, %v1579_v24  ;;  %v580_v29 = vmul.f32 %v1295_v27, %v1579_v24 }
  0xee   : > { %v428_v30 = vpop.f32.mrf.mxu0  ;;  %v492_v31 = vpop.f32.mrf.mxu1 }
  0xef   : > { %v1589_v32 = vadd.f32 %v1584_v26, %v564_v28  ;;  %v1592_v33 = vadd.f32 %v1584_v26, %v580_v29  ;;  %v562_v34 = vmul.f32 %v1579_v24, %v428_v30  ;;  %v578_v35 = vmul.f32 %v1579_v24, %v492_v31 }
  0xf0   : > { %v1280_v36 = vpop.f32.mrf.mxu0  ;;  %v1296_v37 = vpop.f32.mrf.mxu1 }
  0xf1   : > { %v635_v38 = vsub.f32 0.0, %v1589_v32  ;;  %v651_v39 = vsub.f32 0.0, %v1592_v33  ;;  %v1599_v40 = vadd.f32 %v1584_v26, %v562_v34  ;;  %v1602_v41 = vadd.f32 %v1584_v26, %v578_v35 }
  0xf2   : > { %v565_v42 = vmul.f32 %v1280_v36, %v1579_v24  ;;  %v581_v43 = vmul.f32 %v1296_v37, %v1579_v24  ;;  %v431_v44 = vpop.f32.mrf.mxu0  ;;  %v495_v45 = vpop.f32.mrf.mxu1 }
  0xf3   : > { %v669_v46 = vmul.f32 1.442695, %v635_v38  ;;  %v701_v47 = vmul.f32 1.442695, %v651_v39  ;;  %v633_v48 = vsub.f32 0.0, %v1599_v40  ;;  %v649_v49 = vsub.f32 0.0, %v1602_v41 }
  0xf4   : > { %v1609_v50 = vadd.f32 %v1584_v26, %v565_v42  ;;  %v1612_v51 = vadd.f32 %v1584_v26, %v581_v43  ;;  %v563_v52 = vmul.f32 %v1579_v24, %v431_v44  ;;  %v579_v53 = vmul.f32 %v1579_v24, %v495_v45  ;;  %v1283_v54 = vpop.f32.mrf.mxu0  ;;  %v1299_v55 = vpop.f32.mrf.mxu1 }
  0xf5   : > { %1357 = vpow2.f32 %v669_v46  ;;  %v665_v56 = vmul.f32 1.442695, %v633_v48  ;;  %v697_v57 = vmul.f32 1.442695, %v649_v49  ;;  %v568_v58 = vmul.f32 %v1283_v54, %v1579_v24 }
  0xf6   : > { %1359 = vpow2.f32 %v701_v47  ;;  %v636_v59 = vsub.f32 0.0, %v1609_v50  ;;  %v652_v60 = vsub.f32 0.0, %v1612_v51  ;;  %v1620_v61 = vadd.f32 %v1584_v26, %v563_v52  ;;  %v444_v62 = vpop.f32.mrf.mxu0  ;;  %v508_v63 = vpop.f32.mrf.mxu1 }
  0xf7   : > { %1361 = vpow2.f32 %v665_v56  ;;  %v1623_v0 = vadd.f32 %v1584_v26, %v579_v53  ;;  %v1626_v1 = vadd.f32 %v1584_v26, %v568_v58  ;;  %v584_v2 = vmul.f32 %v1299_v55, %v1579_v24 }
  0xf8   : > { %1363 = vpow2.f32 %v697_v57  ;;  %v671_v3 = vmul.f32 1.442695, %v636_v59  ;;  %v703_v4 = vmul.f32 1.442695, %v652_v60  ;;  %v634_v5 = vsub.f32 0.0, %v1620_v61  ;;  %v1284_v6 = vpop.f32.mrf.mxu0  ;;  %v1300_v7 = vpop.f32.mrf.mxu1 }
  0xf9   : > { %v650_v8 = vsub.f32 0.0, %v1623_v0  ;;  %v639_v9 = vsub.f32 0.0, %v1626_v1  ;;  %v1633_v10 = vadd.f32 %v1584_v26, %v584_v2  ;;  %v566_v11 = vmul.f32 %v1579_v24, %v444_v62 }
  0xfa   : > { %1365 = vpow2.f32 %v671_v3  ;;  %v667_v12 = vmul.f32 1.442695, %v634_v5  ;;  %v582_v13 = vmul.f32 %v1579_v24, %v508_v63  ;;  %v569_v14 = vmul.f32 %v1284_v6, %v1579_v24  ;;  %v447_v15 = vpop.f32.mrf.mxu0  ;;  %v511_v16 = vpop.f32.mrf.mxu1 }
  0xfb   : > { %1367 = vpow2.f32 %v703_v4  ;;  %v699_v17 = vmul.f32 1.442695, %v650_v8  ;;  %v677_v18 = vmul.f32 1.442695, %v639_v9  ;;  %v655_v19 = vsub.f32 0.0, %v1633_v10 }
  0xfc   : > { %1369 = vpow2.f32 %v667_v12  ;;  %v1640_v20 = vadd.f32 %v1584_v26, %v566_v11  ;;  %v1643_v21 = vadd.f32 %v1584_v26, %v582_v13  ;;  %v1646_v22 = vadd.f32 %v1584_v26, %v569_v14  ;;  %v1287_v23 = vpop.f32.mrf.mxu0  ;;  %v1303_v25 = vpop.f32.mrf.mxu1 }
  0xfd   : > { %1371 = vpow2.f32 %v699_v17  ;;  %v709_v27 = vmul.f32 1.442695, %v655_v19  ;;  %v585_v28 = vmul.f32 %v1300_v7, %v1579_v24  ;;  %v567_v29 = vmul.f32 %v1579_v24, %v447_v15 }
  0xfe   : > { %1373 = vpow2.f32 %v677_v18  ;;  %v637_v30 = vsub.f32 0.0, %v1640_v20  ;;  %v653_v31 = vsub.f32 0.0, %v1643_v21  ;;  %v640_v34 = vsub.f32 0.0, %v1646_v22  ;;  %v460_v38 = vpop.f32.mrf.mxu0  ;;  %v524_v45 = vpop.f32.mrf.mxu1 }
  0xff   : > { %1375 = vpow2.f32 %v709_v27  ;;  %v1654_v35 = vadd.f32 %v1584_v26, %v585_v28  ;;  %v1657_v36 = vadd.f32 %v1584_v26, %v567_v29  ;;  %v583_v37 = vmul.f32 %v1579_v24, %v511_v16 }
 0x100   : > { %v673_v39 = vmul.f32 1.442695, %v637_v30  ;;  %v705_v42 = vmul.f32 1.442695, %v653_v31  ;;  %v679_v43 = vmul.f32 1.442695, %v640_v34  ;;  %v572_v44 = vmul.f32 %v1287_v23, %v1579_v24  ;;  %v1288_v58 = vpop.f32.mrf.mxu0  ;;  %v1304_v2 = vpop.f32.mrf.mxu1 }
 0x101   : > { %v656_v46 = vsub.f32 0.0, %v1654_v35  ;;  %v1663_v47 = vadd.f32 %v1584_v26, %v583_v37  ;;  %v588_v48 = vmul.f32 %v1303_v25, %v1579_v24  ;;  %v570_v53 = vmul.f32 %v1579_v24, %v460_v38 }
 0x102   : > { %v1358_v49 = vpop.eup %1357  ;;  %1377 = vpow2.f32 %v673_v39  ;;  %v1667_v52 = vadd.f32 %v1584_v26, %v572_v44  ;;  %v638_v56 = vsub.f32 0.0, %v1657_v36  ;;  %v586_v57 = vmul.f32 %v1579_v24, %v524_v45  ;;  %v463_v14 = vpop.f32.mrf.mxu0 }
 0x103   : > { %v1360_v54 = vpop.eup %1359  ;;  %v731_v55 = vadd.f32 1.0, %v1358_v49  ;;  %1379 = vpow2.f32 %v705_v42  ;;  %v711_v62 = vmul.f32 1.442695, %v656_v46  ;;  %v654_v63 = vsub.f32 0.0, %v1663_v47  ;;  %v527_v19 = vpop.f32.mrf.mxu1 }
 0x104   : > { %v1362_v59 = vpop.eup %1361  ;;  %v747_v60 = vadd.f32 1.0, %v1360_v54  ;;  %1381 = vpow2.f32 %v679_v43  ;;  %v1674_v5 = vadd.f32 %v1584_v26, %v588_v48  ;;  %v1677_v6 = vadd.f32 %v1584_v26, %v570_v53  ;;  %v1291_v43 = vpop.f32.mrf.mxu0 }
 0x105   : > { %v1364_v3 = vpop.eup %1363  ;;  %1383 = vrcp.f32 %v731_v55  ;;  %v729_v4 = vadd.f32 1.0, %v1362_v59  ;;  %v643_v8 = vsub.f32 0.0, %v1667_v52  ;;  %v675_v11 = vmul.f32 1.442695, %v638_v56  ;;  %v1307_v49 = vpop.f32.mrf.mxu1 }
 0x106   : > { %1385 = vrcp.f32 %v747_v60  ;;  %v745_v7 = vadd.f32 1.0, %v1364_v3  ;;  %v659_v12 = vsub.f32 0.0, %v1674_v5  ;;  %v641_v13 = vsub.f32 0.0, %v1677_v6 }
 0x107   : > { %v1366_v9 = vpop.eup %1365  ;;  %1387 = vrcp.f32 %v729_v4  ;;  %v573_v17 = vmul.f32 %v1288_v58, %v1579_v24  ;;  %v589_v18 = vmul.f32 %v1304_v2, %v1579_v24  ;;  %v707_v27 = vmul.f32 1.442695, %v654_v63  ;;  %v476_v2 = vpop.f32.mrf.mxu0 }
 0x108   : > { %v1368_v15 = vpop.eup %1367  ;;  %1389 = vrcp.f32 %v745_v7  ;;  %v732_v16 = vadd.f32 1.0, %v1366_v9  ;;  %v1685_v28 = vadd.f32 %v1584_v26, %v586_v57  ;;  %v685_v31 = vmul.f32 1.442695, %v643_v8 }
 0x109   : > { %v1370_v23 = vpop.eup %1369  ;;  %v748_v25 = vadd.f32 1.0, %v1368_v15  ;;  %1391 = vpow2.f32 %v711_v62  ;;  %v1688_v34 = vadd.f32 %v1584_v26, %v573_v17  ;;  %v1691_v39 = vadd.f32 %v1584_v26, %v589_v18  ;;  %v540_v18 = vpop.f32.mrf.mxu1 }
 0x10a   : > { %v1372_v29 = vpop.eup %1371  ;;  %1393 = vrcp.f32 %v732_v16  ;;  %v730_v30 = vadd.f32 1.0, %v1370_v23  ;;  %v571_v42 = vmul.f32 %v1579_v24, %v463_v14  ;;  %v717_v46 = vmul.f32 1.442695, %v659_v12 }
 0x10b   : > { %v1374_v37 = vpop.eup %1373  ;;  %1395 = vrcp.f32 %v748_v25  ;;  %v746_v38 = vadd.f32 1.0, %v1372_v29  ;;  %v681_v48 = vmul.f32 1.442695, %v641_v13  ;;  %v657_v54 = vsub.f32 0.0, %v1685_v28 }
 0x10c   : > { %v1376_v44 = vpop.eup %1375  ;;  %1397 = vrcp.f32 %v730_v30  ;;  %v735_v45 = vadd.f32 1.0, %v1374_v37  ;;  %v1696_v55 = vadd.f32 %v1584_v26, %v571_v42  ;;  %v644_v56 = vsub.f32 0.0, %v1688_v34 }
 0x10d   : > { %1399 = vrcp.f32 %v746_v38  ;;  %v751_v53 = vadd.f32 1.0, %v1376_v44  ;;  %v587_v57 = vmul.f32 %v1579_v24, %v527_v19  ;;  %v576_v58 = vmul.f32 %v1291_v43, %v1579_v24 }
 0x10e   : > { %1401 = vrcp.f32 %v735_v45  ;;  %v660_v60 = vsub.f32 0.0, %v1691_v39  ;;  %v642_v62 = vsub.f32 0.0, %v1696_v55  ;;  %v592_v63 = vmul.f32 %v1307_v49, %v1579_v24 }
 0x10f   : > { %v1378_v59 = vpop.eup %1377  ;;  %1403 = vrcp.f32 %v751_v53  ;;  %v1705_v7 = vadd.f32 %v1584_v26, %v587_v57  ;;  %v1708_v8 = vadd.f32 %v1584_v26, %v576_v58  ;;  %v713_v13 = vmul.f32 1.442695, %v657_v54 }
 0x110   : > { %v1380_v3 = vpop.eup %1379  ;;  %v733_v4 = vadd.f32 1.0, %v1378_v59  ;;  %1405 = vpow2.f32 %v675_v11  ;;  %v1711_v14 = vadd.f32 %v1584_v26, %v592_v63  ;;  %v687_v23 = vmul.f32 1.442695, %v644_v56 }
 0x111   : > { %v1382_v9 = vpop.eup %1381  ;;  %v749_v12 = vadd.f32 1.0, %v1380_v3  ;;  %1407 = vpow2.f32 %v707_v27  ;;  %v658_v17 = vsub.f32 0.0, %v1705_v7  ;;  %v647_v11 = vsub.f32 0.0, %v1708_v8  ;;  %v1292_v27 = vpop.f32.mrf.mxu0 }
 0x112   : > { %v1384_v15 = vpop.eup %1383  ;;  %1409 = vrcp.f32 %v733_v4  ;;  %v736_v16 = vadd.f32 1.0, %v1382_v9  ;;  %v663_v25 = vsub.f32 0.0, %v1711_v14  ;;  %v574_v29 = vmul.f32 %v1579_v24, %v476_v2 }
 0x113   : > { %v1386_v19 = vpop.eup %1385  ;;  %1411 = vrcp.f32 %v749_v12  ;;  %v795_v37 = vmul.f32 %v1384_v15, %v1589_v32  ;;  %v719_v38 = vmul.f32 1.442695, %v660_v60  ;;  %v683_v42 = vmul.f32 1.442695, %v642_v62  ;;  %v1308_v32 = vpop.f32.mrf.mxu1 }
 0x114   : > { %v1388_v30 = vpop.eup %1387  ;;  %1413 = vrcp.f32 %v736_v16  ;;  %v811_v44 = vmul.f32 %v1386_v19, %v1592_v33  ;;  %v715_v45 = vmul.f32 1.442695, %v658_v17  ;;  %v693_v49 = vmul.f32 1.442695, %v647_v11 }
 0x115   : > { %v1390_v43 = vpop.eup %1389  ;;  %1415 = vpow2.f32 %v685_v31  ;;  %v1720_v54 = vadd.f32 %v1584_v26, %v574_v29  ;;  %v590_v56 = vmul.f32 %v1579_v24, %v540_v18  ;;  %v577_v57 = vmul.f32 %v1292_v27, %v1579_v24  ;;  %v543_v27 = vpop.f32.mrf.mxu1 }
 0x116   : > { %v1392_v53 = vpop.eup %1391  ;;  %1417 = vpow2.f32 %v717_v46  ;;  %v793_v59 = vmul.f32 %v1388_v30, %v1599_v40  ;;  %v725_v33 = vmul.f32 1.442695, %v663_v25  ;;  %v809_v3 = vmul.f32 %v1390_v43, %v1602_v41 }
 0x117   : > { %v1394_v58 = vpop.eup %1393  ;;  %v752_v60 = vadd.f32 1.0, %v1392_v53  ;;  %1419 = vpow2.f32 %v681_v48  ;;  %v1727_v46 = vadd.f32 %v1584_v26, %v590_v56  ;;  %v1730_v63 = vadd.f32 %v1584_v26, %v577_v57 }
 0x118   : > { %v1396_v31 = vpop.eup %1395  ;;  %v796_v62 = vmul.f32 %v1394_v58, %v1609_v50  ;;  %1421 = vpow2.f32 %v713_v13  ;;  %v593_v50 = vmul.f32 %v1308_v32, %v1579_v24  ;;  %v645_v41 = vsub.f32 0.0, %v1720_v54 }
 0x119   : > { %v1398_v2 = vpop.eup %1397  ;;  %v812_v40 = vmul.f32 %v1396_v31, %v1612_v51  ;;  %1423 = vrcp.f32 %v752_v60  ;;  %v661_v16 = vsub.f32 0.0, %v1727_v46  ;;  %v648_v11 = vsub.f32 0.0, %v1730_v63 }
 0x11a   : > { %v1400_v48 = vpop.eup %1399  ;;  %v1150_v4 = vpack.c.bf16 %v796_v62, %v795_v37  ;;  %v794_v9 = vmul.f32 %v1398_v2, %v1620_v61  ;;  %1425 = vpow2.f32 %v687_v23  ;;  %v1750_v19 = vadd.f32 %v1584_v26, %v593_v50  ;;  %v479_v23 = vpop.f32.mrf.mxu0 }
 0x11b   : > { %v1402_v12 = vpop.eup %1401  ;;  %v1190_v13 = vpack.c.bf16 %v812_v40, %v811_v44  ;;  %v810_v15 = vmul.f32 %v1400_v48, %v1623_v0  ;;  %1427 = vpow2.f32 %v719_v38  ;;  %v689_v29 = vmul.f32 1.442695, %v645_v41 }
 0x11c   : > { %v1404_v51 = vpop.eup %1403  ;;  %1222 = vst [vmem:[%s1738_s20 + $0x8] sm:$0xff] %v1150_v4   ;;  %v1145_v17 = vpack.c.bf16 %v794_v9, %v793_v59  ;;  %1429 = vpow2.f32 %v683_v42  ;;  %v721_v38 = vmul.f32 1.442695, %v661_v16  ;;  %v695_v43 = vmul.f32 1.442695, %v648_v11 }
 0x11d   : > { %v1406_v18 = vpop.eup %1405  ;;  %1230 = vst [vmem:[%s1738_s20 + $0x48] sm:$0xff] %v1190_v13   ;;  %v1185_v61 = vpack.c.bf16 %v810_v15, %v809_v3  ;;  %1431 = vpow2.f32 %v715_v45  ;;  %v575_v44 = vmul.f32 %v1579_v24, %v479_v23  ;;  %v664_v53 = vsub.f32 0.0, %v1750_v19 }
 0x11e   : > { %v1408_v25 = vpop.eup %1407  ;;  %1146 = vst [vmem:[%s1738_s20] sm:$0xff] %v1145_v17   ;;  %v734_v0 = vadd.f32 1.0, %v1406_v18  ;;  %1433 = vpow2.f32 %v693_v49  ;;  %v591_v56 = vmul.f32 %v1579_v24, %v543_v27  ;;  %v799_v49 = vmul.f32 %v1402_v12, %v1626_v1 }
 0x11f   : > { %v1410_v30 = vpop.eup %1409  ;;  %1229 = vst [vmem:[%s1738_s20 + $0x40] sm:$0xff] %v1185_v61   ;;  %v750_v37 = vadd.f32 1.0, %v1408_v25  ;;  %1435 = vpow2.f32 %v725_v33  ;;  %v1760_v62 = vadd.f32 %v1584_v26, %v575_v44  ;;  %v727_v3 = vmul.f32 1.442695, %v664_v53 }
 0x120   : > { %v1412_v42 = vpop.eup %1411  ;;  %1437 = vrcp.f32 %v734_v0  ;;  %v1763_v1 = vadd.f32 %v1584_v26, %v591_v56  ;;  %v815_v48 = vmul.f32 %v1404_v51, %v1633_v10  ;;  %v797_v0 = vmul.f32 %v1410_v30, %v1640_v20 }
 0x121   : > { %v1414_v45 = vpop.eup %1413  ;;  %1439 = vrcp.f32 %v750_v37  ;;  %v646_v12 = vsub.f32 0.0, %v1760_v62 }
 0x122   : > { %v1416_v57 = vpop.eup %1415  ;;  %v800_v32 = vmul.f32 %v1414_v45, %v1646_v22  ;;  %1441 = vpow2.f32 %v689_v29  ;;  %v662_v16 = vsub.f32 0.0, %v1763_v1 }
 0x123   : > { %v1418_v58 = vpop.eup %1417  ;;  %v739_v59 = vadd.f32 1.0, %v1416_v57  ;;  %1443 = vpow2.f32 %v721_v38  ;;  %v691_v51 = vmul.f32 1.442695, %v646_v12  ;;  %v813_v38 = vmul.f32 %v1412_v42, %v1643_v21 }
 0x124   : > { %v1420_v60 = vpop.eup %1419  ;;  %v1160_v33 = vpack.c.bf16 %v800_v32, %v799_v49  ;;  %v755_v31 = vadd.f32 1.0, %v1418_v58  ;;  %1445 = vpow2.f32 %v695_v43  ;;  %v723_v23 = vmul.f32 1.442695, %v662_v16 }
 0x125   : > { %v1422_v2 = vpop.eup %1421  ;;  %1447 = vrcp.f32 %v739_v59  ;;  %v737_v24 = vadd.f32 1.0, %v1420_v60 }
 0x126   : > { %v1424_v22 = vpop.eup %1423  ;;  %1224 = vst [vmem:[%s1738_s20 + $0x18] sm:$0xff] %v1160_v33   ;;  %1449 = vrcp.f32 %v755_v31  ;;  %v753_v40 = vadd.f32 1.0, %v1422_v2 }
 0x127   : > { %v1426_v50 = vpop.eup %1425  ;;  %v816_v4 = vmul.f32 %v1424_v22, %v1654_v35  ;;  %1451 = vrcp.f32 %v737_v24 }
 0x128   : > { %v1428_v9 = vpop.eup %1427  ;;  %1453 = vrcp.f32 %v753_v40  ;;  %v740_v41 = vadd.f32 1.0, %v1426_v50 }
 0x129   : > { %v1430_v13 = vpop.eup %1429  ;;  %v1200_v15 = vpack.c.bf16 %v816_v4, %v815_v48  ;;  %v756_v26 = vadd.f32 1.0, %v1428_v9  ;;  %1455 = vpow2.f32 %v727_v3 }
 0x12a   : > { %v1432_v17 = vpop.eup %1431  ;;  %1457 = vrcp.f32 %v740_v41  ;;  %v738_v11 = vadd.f32 1.0, %v1430_v13 }
 0x12b   : > { %v1434_v18 = vpop.eup %1433  ;;  %1232 = vst [vmem:[%s1738_s20 + $0x58] sm:$0xff] %v1200_v15   ;;  %1459 = vrcp.f32 %v756_v26  ;;  %v754_v10 = vadd.f32 1.0, %v1432_v17 }
 0x12c   : > { %v1436_v35 = vpop.eup %1435  ;;  %1461 = vrcp.f32 %v738_v11  ;;  %v743_v27 = vadd.f32 1.0, %v1434_v18 }
 0x12d   : > { %v1438_v61 = vpop.eup %1437  ;;  %1463 = vrcp.f32 %v754_v10 }
 0x12e   : > { %v1440_v25 = vpop.eup %1439  ;;  %v798_v29 = vmul.f32 %v1438_v61, %v1657_v36  ;;  %1465 = vpow2.f32 %v691_v51  ;;  %v759_v36 = vadd.f32 1.0, %v1436_v35 }
 0x12f   : > { %v1442_v37 = vpop.eup %1441  ;;  %v814_v43 = vmul.f32 %v1440_v25, %v1663_v47  ;;  %1467 = vpow2.f32 %v723_v23 }
 0x130   : > { %v1444_v44 = vpop.eup %1443  ;;  %v1155_v45 = vpack.c.bf16 %v798_v29, %v797_v0  ;;  %1469 = vrcp.f32 %v743_v27  ;;  %v741_v50 = vadd.f32 1.0, %v1442_v37 }
 0x131   : > { %v1446_v53 = vpop.eup %1445  ;;  %v1195_v56 = vpack.c.bf16 %v814_v43, %v813_v38  ;;  %v757_v4 = vadd.f32 1.0, %v1444_v44 }
 0x132   : > { %v1448_v57 = vpop.eup %1447  ;;  %1223 = vst [vmem:[%s1738_s20 + $0x10] sm:$0xff] %v1155_v45   ;;  %v744_v49 = vadd.f32 1.0, %v1446_v53 }
 0x133   : > { %v1450_v20 = vpop.eup %1449  ;;  %1231 = vst [vmem:[%s1738_s20 + $0x50] sm:$0xff] %v1195_v56   ;;  %v803_v59 = vmul.f32 %v1448_v57, %v1667_v52 }
 0x134   : > { %v1452_v30 = vpop.eup %1451  ;;  %1471 = vrcp.f32 %v744_v49  ;;  %v819_v31 = vmul.f32 %v1450_v20, %v1674_v5 }
 0x135   : > { %v1454_v32 = vpop.eup %1453  ;;  %1473 = vrcp.f32 %v759_v36  ;;  %v801_v3 = vmul.f32 %v1452_v30, %v1677_v6 }
 0x136   : > { %v1456_v58 = vpop.eup %1455  ;;  %v817_v52 = vmul.f32 %v1454_v32, %v1685_v28 }
 0x137   : > { %v1458_v21 = vpop.eup %1457  ;;  %v760_v47 = vadd.f32 1.0, %v1456_v58 }
 0x138   : > { %v1460_v42 = vpop.eup %1459  ;;  %v804_v60 = vmul.f32 %v1458_v21, %v1688_v34 }
 0x139   : > { %v1462_v33 = vpop.eup %1461  ;;  %v820_v2 = vmul.f32 %v1460_v42, %v1691_v39  ;;  %1475 = vrcp.f32 %v760_v47 }
 0x13a   : > { %v1464_v24 = vpop.eup %1463  ;;  %v1170_v22 = vpack.c.bf16 %v804_v60, %v803_v59  ;;  %v802_v40 = vmul.f32 %v1462_v33, %v1696_v55  ;;  %1477 = vrcp.f32 %v741_v50 }
 0x13b   : > { %v1210_v48 = vpack.c.bf16 %v820_v2, %v819_v31  ;;  %v818_v34 = vmul.f32 %v1464_v24, %v1705_v7  ;;  %v1466_v9 = vpop.eup %1465  ;;  %1479 = vrcp.f32 %v757_v4 }
 0x13c   : > { %1226 = vst [vmem:[%s1738_s20 + $0x28] sm:$0xff] %v1170_v22   ;;  %v1165_v5 = vpack.c.bf16 %v802_v40, %v801_v3  ;;  %v1468_v41 = vpop.eup %1467  ;;  %v742_v6 = vadd.f32 1.0, %v1466_v9 }
 0x13d   : > { %1234 = vst [vmem:[%s1738_s20 + $0x68] sm:$0xff] %v1210_v48   ;;  %v1205_v39 = vpack.c.bf16 %v818_v34, %v817_v52  ;;  %v1470_v12 = vpop.eup %1469  ;;  %v758_v55 = vadd.f32 1.0, %v1468_v41 }
 0x13e   : > { %1225 = vst [vmem:[%s1738_s20 + $0x20] sm:$0xff] %v1165_v5   ;;  %1481 = vrcp.f32 %v742_v6  ;;  %v807_v7 = vmul.f32 %v1470_v12, %v1708_v8 }
 0x13f   : > { %1233 = vst [vmem:[%s1738_s20 + $0x60] sm:$0xff] %v1205_v39   ;;  %1483 = vrcp.f32 %v758_v55 }
 0x141   : > { %v1472_v28 = vpop.eup %1471 }
 0x142   : > { %v808_v13 = vmul.f32 %v1472_v28, %v1730_v63  ;;  %v1474_v15 = vpop.eup %1473 }
 0x143   : > { %v823_v17 = vmul.f32 %v1474_v15, %v1711_v14 }
 0x144   : > { %v1180_v26 = vpack.c.bf16 %v808_v13, %v807_v7 }
 0x146   : > { %v1476_v16 = vpop.eup %1475  ;;  %1228 = vst [vmem:[%s1738_s20 + $0x38] sm:$0xff] %v1180_v26  }
 0x147   : > { %v824_v11 = vmul.f32 %v1476_v16, %v1750_v19  ;;  %v1478_v10 = vpop.eup %1477 }
 0x148   : > { %v1480_v35 = vpop.eup %1479  ;;  %v805_v8 = vmul.f32 %v1478_v10, %v1720_v54 }
 0x149   : > { %v1220_v18 = vpack.c.bf16 %v824_v11, %v823_v17  ;;  %v821_v23 = vmul.f32 %v1480_v35, %v1727_v46 }
 0x14b   : > { %1236 = vst [vmem:[%s1738_s20 + $0x78] sm:$0xff] %v1220_v18   ;;  %v1482_v51 = vpop.eup %1481 }
 0x14c   : > { %v1484_v61 = vpop.eup %1483  ;;  %v806_v63 = vmul.f32 %v1482_v51, %v1760_v62 }
 0x14d   : > { %v822_v25 = vmul.f32 %v1484_v61, %v1763_v1 }
 0x14e   : > { %v1175_v0 = vpack.c.bf16 %v806_v63, %v805_v8 }
 0x14f   : > { %v1215_v29 = vpack.c.bf16 %v822_v25, %v821_v23 }
 0x150   : > { %1227 = vst [vmem:[%s1738_s20 + $0x30] sm:$0xff] %v1175_v0  }
 0x151   : > { %1235 = vst [vmem:[%s1738_s20 + $0x70] sm:$0xff] %v1215_v29  }
 0x152 PF: > { %s14_s15 = sadd.s32 1, %s1491_s15  }
 0x153   : > { %p11_p4 = scmp.ge.s32.totalorder %s14_s15, 4  }
 0x155   :  { %13 = sbr.rel (!%p11_p4) target bundleno = 1 (0x1), region = 66 }

// kernel: bottleneck_csp2_forward.5
= control target key start
LH: loop header
LB: loop body
LE: loop exit
PB: predicated region body
PF: predicated region fallthrough
CT: control target
= control target key end

     0   :  { %s3555_s13 = smov 0   ;;  %s4331_s0 = inlined_call_operand.vmem [shape: bf16[512,128], index: 0, kind: input, shape index: {}]   ;;  %s4332_s1 = inlined_call_operand.vmem [shape: bf16[512,128], index: 1, kind: input, shape index: {}]   ;;  %s4333_s2 = inlined_call_operand.vmem [shape: bf16[128,128], index: 2, kind: input, shape index: {}]   ;;  %s4334_s3 = inlined_call_operand.vmem [shape: bf16[256,128], index: 3, kind: input, shape index: {}]   ;;  %s4335_s4 = inlined_call_operand.vmem [shape: f32[1,128], index: 4, kind: input, shape index: {}]   ;;  %s4336_s5 = inlined_call_operand.vmem [shape: f32[1,128], index: 5, kind: input, shape index: {}]   ;;  %s4337_s6 = inlined_call_operand.vmem [shape: f32[1,128], index: 6, kind: input, shape index: {}]   ;;  %s4338_s7 = inlined_call_operand.vmem [shape: f32[1,128], index: 7, kind: input, shape index: {}]   ;;  %s4339_s8 = inlined_call_operand.vmem [shape: f32[1,128], index: 8, kind: input, shape index: {}]   ;;  %s4340_s9 = inlined_call_operand.vmem [shape: f32[1,128], index: 9, kind: input, shape index: {}]   ;;  %s4341_s10 = inlined_call_operand.vmem [shape: f32[512,128], index: 10, kind: output, shape index: {}]  }
   0x1 LB: > { %s2514_s14 = sadd.s32 4294967295, %s3498_s13   ;;  %p2518_p0 = scmp.ge.s32.totalorder %s3498_s13, 1  ;;  %s3498_s13 = sphi %s3555_s13, %s20_s13  }
   0x2   : > { %p324_p1 = scmp.lt.s32.totalorder %s3498_s13, 3 }
   0x4   : > { %p325_p2 = pnand %p2518_p0, %p324_p1 }
   0x5   : > { %s2519_s17 = sshll.u32 (!%p325_p2), %s2514_s14, 5 }
   0x6   : > { %328 = sbr.rel (%p325_p2) target bundleno = 642 (0x282), region = 60  ;;  %p368_p3 = scmp.lt.s32.totalorder (!%p325_p2), %s2519_s17, 63 }
   0xb   : > { %v3020_v0 = vld [vmem:[%s4333_s2 + $0x38] sm:$0xff]   ;;  %v3021_v1 = vld [vmem:[%s4333_s2 + $0x30] sm:$0xff]   ;;  %s4343_s17 = smov (!%p368_p3, %s2519_s17), 63  ;;  %v3022_v2 = vld [vmem:[%s4333_s2 + $0x28] sm:$0xff]  }
   0xc   : > { %2948 = vmatprep.subr.bf16.mxu0 %v3020_v0  ;;  %s2520_s22 = sshll.u32 %s4343_s17, 2  ;;  %v3023_v3 = vld [vmem:[%s4333_s2 + $0x20] sm:$0xff]   ;;  %v3024_v5 = vld [vmem:[%s4333_s2 + $0x18] sm:$0xff]   ;;  %v3025_v6 = vld [vmem:[%s4333_s2 + $0x10] sm:$0xff]   ;;  %s2524_s30 = sshll.u32 %s4343_s17, 3 }
   0xd   : > { %2949 = vmatpush3.bf16.msra.mxu0 %v3020_v0  ;;  %s3580_s25 = scalar_lea.vmem %s4331_s0, %s2520_s22  ;;  %v3026_v7 = vld [vmem:[%s4333_s2 + $0x8] sm:$0xff]   ;;  %v3027_v8 = vld [vmem:[%s4333_s2] sm:$0xff]   ;;  %s3618_s20 = scalar_lea.vmem %s4332_s1, %s2520_s22 }
   0xe   : > { %2950 = vmatprep.subr.bf16.mxu0 %v3021_v1  ;;  %v3028_v4 = vld [vmem:[%s3580_s25] sm:$0xff]   ;;  %v3029_v9 = vld [vmem:[%s3580_s25 + $0x8] sm:$0xff]   ;;  %v3030_v10 = vld [vmem:[%s3580_s25 + $0x10] sm:$0xff]   ;;  %s4174_s14 = scalar_lea.vmem %s4341_s10, %s2524_s30 }
   0xf   : > { %2964 = vmatprep.mubr.bf16.mxu0 %v3028_v4  ;;  %v3031_v11 = vld [vmem:[%s3580_s25 + $0x18] sm:$0xff]   ;;  %v3032_v12 = vld [vmem:[%s3580_s25 + $0x20] sm:$0xff]   ;;  %v3033_v13 = vld [vmem:[%s3580_s25 + $0x28] sm:$0xff]  }
  0x10   : > { %v3034_v14 = vld [vmem:[%s3580_s25 + $0x30] sm:$0xff]   ;;  %v3035_v15 = vld [vmem:[%s3580_s25 + $0x38] sm:$0xff]   ;;  %v3036_v16 = vld [vmem:[%s3580_s25 + $0x40] sm:$0xff]  }
  0x11   : > { %2951 = vmatpush3.bf16.msra.mxu0 %v3021_v1  ;;  %v3037_v17 = vld [vmem:[%s3580_s25 + $0x48] sm:$0xff]   ;;  %v3038_v18 = vld [vmem:[%s3580_s25 + $0x50] sm:$0xff]   ;;  %v3039_v19 = vld [vmem:[%s3580_s25 + $0x58] sm:$0xff]  }
  0x12   : > { %2952 = vmatprep.subr.bf16.mxu0 %v3022_v2  ;;  %v3040_v20 = vld [vmem:[%s3580_s25 + $0x60] sm:$0xff]   ;;  %v3041_v21 = vld [vmem:[%s3580_s25 + $0x68] sm:$0xff]   ;;  %v3042_v22 = vld [vmem:[%s3580_s25 + $0x70] sm:$0xff]  }
  0x13   : > { %v3043_v23 = vld [vmem:[%s3580_s25 + $0x78] sm:$0xff]   ;;  %v2797_v24 = vld [vmem:[%s3618_s20 + $0x8] sm:$0xff]   ;;  %v2734_v26 = vld [vmem:[%s3618_s20] sm:$0xff]  }
  0x14   : > { %v2739_v25 = vunpack.c.l.bf16 %v2797_v24  ;;  %v3625_v27 = vld [vmem:[%s4335_s4] ss:$0 sm:$0xff]  ;;  %v2735_v28 = vunpack.c.l.bf16 %v2734_v26  ;;  %v2740_v32 = vunpack.c.h.bf16 %v2797_v24  ;;  %v2736_v34 = vunpack.c.h.bf16 %v2734_v26  ;;  %v2799_v42 = vld [vmem:[%s3618_s20 + $0x18] sm:$0xff]   ;;  %v2798_v47 = vld [vmem:[%s3618_s20 + $0x10] sm:$0xff]  }
  0x15   : > { %2953 = vmatpush3.bf16.msra.mxu0 %v3022_v2  ;;  %v3631_v30 = vld [vmem:[%s4336_s5] ss:$0 sm:$0xff]  ;;  %v2747_v43 = vunpack.c.l.bf16 %v2799_v42  ;;  %v2743_v48 = vunpack.c.l.bf16 %v2798_v47  ;;  %v2748_v53 = vunpack.c.h.bf16 %v2799_v42  ;;  %v2744_v56 = vunpack.c.h.bf16 %v2798_v47  ;;  %v2801_v60 = vld [vmem:[%s3618_s20 + $0x28] sm:$0xff]   ;;  %v3047_v42 = vld [vmem:[%s4334_s3 + $0x30] sm:$0xff]  }
  0x16   : > { %2954 = vmatprep.subr.bf16.mxu0 %v3023_v3  ;;  %v812_v29 = vmul.f32 %v2739_v25, %v3625_v27  ;;  %v810_v31 = vmul.f32 %v2735_v28, %v3625_v27  ;;  %v813_v36 = vmul.f32 %v2740_v32, %v3625_v27  ;;  %v811_v38 = vmul.f32 %v2736_v34, %v3625_v27  ;;  %v2800_v1 = vld [vmem:[%s3618_s20 + $0x20] sm:$0xff]   ;;  %v2802_v32 = vld [vmem:[%s3618_s20 + $0x30] sm:$0xff]  }
  0x17   : > { %v816_v49 = vmul.f32 %v2747_v43, %v3625_v27  ;;  %v814_v52 = vmul.f32 %v2743_v48, %v3625_v27  ;;  %v817_v58 = vmul.f32 %v2748_v53, %v3625_v27  ;;  %v815_v61 = vmul.f32 %v2744_v56, %v3625_v27  ;;  %v3048_v53 = vld [vmem:[%s4334_s3 + $0x68] sm:$0xff]  }
  0x18   : > { %v3635_v33 = vadd.f32 %v3631_v30, %v812_v29  ;;  %v3638_v35 = vadd.f32 %v3631_v30, %v810_v31  ;;  %v3645_v40 = vadd.f32 %v3631_v30, %v813_v36  ;;  %v3649_v44 = vadd.f32 %v3631_v30, %v811_v38  ;;  %v3046_v36 = vld [vmem:[%s4334_s3 + $0x70] sm:$0xff]  }
  0x19   : > { %2955 = vmatpush3.bf16.msra.mxu0 %v3023_v3  ;;  %v3657_v54 = vadd.f32 %v3631_v30, %v816_v49  ;;  %v3660_v57 = vadd.f32 %v3631_v30, %v814_v52  ;;  %v3668_v63 = vadd.f32 %v3631_v30, %v817_v58  ;;  %v2755_v2 = vunpack.c.l.bf16 %v2801_v60 }
  0x1a   : > { %2956 = vmatprep.subr.bf16.mxu0 %v3024_v5  ;;  %v883_v37 = vsub.f32 0.0, %v3635_v33  ;;  %v881_v39 = vsub.f32 0.0, %v3638_v35  ;;  %v884_v46 = vsub.f32 0.0, %v3645_v40  ;;  %v882_v50 = vsub.f32 0.0, %v3649_v44 }
  0x1b   : > { %v887_v59 = vsub.f32 0.0, %v3657_v54  ;;  %v885_v62 = vsub.f32 0.0, %v3660_v57  ;;  %v3672_v3 = vadd.f32 %v3631_v30, %v815_v61  ;;  %v2760_v56 = vunpack.c.h.bf16 %v2802_v32 }
  0x1c   : > { %v917_v41 = vmul.f32 1.442695, %v883_v37  ;;  %v913_v45 = vmul.f32 1.442695, %v881_v39  ;;  %v919_v51 = vmul.f32 1.442695, %v884_v46  ;;  %v2759_v39 = vunpack.c.l.bf16 %v2802_v32 }
  0x1d   : > { %2957 = vmatpush3.bf16.msra.mxu0 %v3024_v5  ;;  %v915_v55 = vmul.f32 1.442695, %v882_v50  ;;  %v925_v0 = vmul.f32 1.442695, %v887_v59  ;;  %v921_v4 = vmul.f32 1.442695, %v885_v62  ;;  %v2751_v5 = vunpack.c.l.bf16 %v2800_v1 }
  0x1e   : > { %2958 = vmatprep.subr.bf16.mxu0 %v3025_v6  ;;  %3108 = vpow2.f32 %v917_v41  ;;  %v822_v48 = vmul.f32 %v2759_v39, %v3625_v27  ;;  %v3049_v59 = vld [vmem:[%s4334_s3 + $0x28] sm:$0xff]  }
  0x1f   : > { %3110 = vpow2.f32 %v913_v45  ;;  %v2805_v62 = vld [vmem:[%s3618_s20 + $0x48] sm:$0xff]  }
  0x20   : > { %3112 = vpow2.f32 %v919_v51  ;;  %v3719_v58 = vadd.f32 %v3631_v30, %v822_v48 }
  0x21   : > { %2959 = vmatpush3.bf16.msra.mxu0 %v3025_v6  ;;  %3114 = vpow2.f32 %v915_v55  ;;  %v888_v6 = vsub.f32 0.0, %v3668_v63 }
  0x22   : > { %2960 = vmatprep.subr.bf16.mxu0 %v3026_v7  ;;  %3116 = vpow2.f32 %v925_v0 }
  0x23   : > { %3118 = vpow2.f32 %v921_v4  ;;  %v2771_v4 = vunpack.c.l.bf16 %v2805_v62 }
  0x25   : > { %2961 = vmatpush3.bf16.msra.mxu0 %v3026_v7  ;;  %v820_v7 = vmul.f32 %v2755_v2, %v3625_v27  ;;  %v893_v2 = vsub.f32 0.0, %v3719_v58 }
  0x26   : > { %2962 = vmatprep.subr.bf16.mxu0 %v3027_v8 }
  0x29   : > { %2963 = vmatpush3.bf16.msra.mxu0 %v3027_v8  ;;  %v886_v8 = vsub.f32 0.0, %v3672_v3 }
  0x2c   : > { %2965 = vmatmul.mubr.bf16.vlgmr.msra.gmra.mxu0 %v3029_v9  ;;  %v818_v9 = vmul.f32 %v2751_v5, %v3625_v27 }
  0x2d   : > { %2968 = vmatprep.mubr.bf16.mxu0 %v3030_v10  ;;  %v927_v10 = vmul.f32 1.442695, %v888_v6 }
  0x2f   : > { %3120 = vpow2.f32 %v927_v10 }
  0x34   : > { %2969 = vmatmul.mubr.bf16.gmra.mxu0 %v3031_v11  ;;  %v3044_v11 = vld [vmem:[%s4334_s3 + $0x78] sm:$0xff]  }
  0x35   : > { %2972 = vmatprep.mubr.bf16.mxu0 %v3032_v12  ;;  %v2756_v12 = vunpack.c.h.bf16 %v2801_v60  ;;  %2836 = vmatprep.subr.bf16.mxu0 %v3044_v11 }
  0x36   : > { %2996 = vmatprep.subr.bf16.mxu1 %v3044_v11  ;;  %v937_v11 = vmul.f32 1.442695, %v893_v2 }
  0x3c   : > { %2973 = vmatmul.mubr.bf16.gmra.mxu0 %v3033_v13  ;;  %v3682_v13 = vadd.f32 %v3631_v30, %v820_v7 }
  0x3d   : > { %2976 = vmatprep.mubr.bf16.mxu0 %v3034_v14  ;;  %v3109_v14 = vpop.eup %3108 }
  0x44   : > { %2977 = vmatmul.mubr.bf16.gmra.mxu0 %v3035_v15  ;;  %v3045_v15 = vld [vmem:[%s4334_s3 + $0x38] sm:$0xff]  }
  0x45   : > { %2980 = vmatprep.mubr.bf16.mxu0 %v3036_v16  ;;  %v923_v16 = vmul.f32 1.442695, %v886_v8  ;;  %2837 = vmatpush3.bf16.msra.mxu0 %v3045_v15  ;;  %v2804_v8 = vld [vmem:[%s3618_s20 + $0x40] sm:$0xff]  }
  0x46   : > { %3004 = vmatpush3.bf16.msra.mxu1 %v3045_v15  ;;  %2838 = vmatprep.subr.bf16.mxu0 %v3046_v36  ;;  %v3050_v15 = vld [vmem:[%s4334_s3 + $0x60] sm:$0xff]  }
  0x47   : > { %3122 = vpow2.f32 %v923_v16  ;;  %2997 = vmatprep.subr.bf16.mxu1 %v3046_v36  ;;  %v2768_v36 = vunpack.c.h.bf16 %v2804_v8 }
  0x49   : > { %2839 = vmatpush3.bf16.msra.mxu0 %v3047_v42 }
  0x4a   : > { %3005 = vmatpush3.bf16.msra.mxu1 %v3047_v42  ;;  %2840 = vmatprep.subr.bf16.mxu0 %v3048_v53  ;;  %v3755_v42 = vld [vmem:[%s3618_s20 + $0x58] sm:$0xff]  }
  0x4b   : > { %2998 = vmatprep.subr.bf16.mxu1 %v3048_v53 }
  0x4c   : > { %2981 = vmatmul.mubr.bf16.gmra.mxu0 %v3037_v17  ;;  %v2752_v17 = vunpack.c.h.bf16 %v2800_v1  ;;  %v823_v1 = vmul.f32 %v2760_v56, %v3625_v27 }
  0x4d   : > { %2984 = vmatprep.mubr.bf16.mxu0 %v3038_v18  ;;  %v3688_v18 = vadd.f32 %v3631_v30, %v818_v9  ;;  %2841 = vmatpush3.bf16.msra.mxu0 %v3049_v59 }
  0x4e   : > { %v819_v24 = vmul.f32 %v2752_v17, %v3625_v27  ;;  %3006 = vmatpush3.bf16.msra.mxu1 %v3049_v59  ;;  %v3734_v10 = vadd.f32 %v3631_v30, %v823_v1  ;;  %2842 = vmatprep.subr.bf16.mxu0 %v3050_v15 }
  0x4f   : > { %v889_v25 = vsub.f32 0.0, %v3688_v18  ;;  %2999 = vmatprep.subr.bf16.mxu1 %v3050_v15 }
  0x50   : > { %v3703_v37 = vadd.f32 %v3631_v30, %v819_v24 }
  0x51   : > { %v929_v38 = vmul.f32 1.442695, %v889_v25 }
  0x52   : > { %v890_v47 = vsub.f32 0.0, %v3703_v37 }
  0x54   : > { %2985 = vmatmul.mubr.bf16.gmra.mxu0 %v3039_v19  ;;  %v979_v19 = vadd.f32 1.0, %v3109_v14  ;;  %v931_v55 = vmul.f32 1.442695, %v890_v47 }
  0x55   : > { %2988 = vmatprep.mubr.bf16.mxu0 %v3040_v20  ;;  %v821_v20 = vmul.f32 %v2756_v12, %v3625_v27  ;;  %v2767_v12 = vunpack.c.l.bf16 %v2804_v8 }
  0x56   : > { %3124 = vrcp.f32 %v979_v19  ;;  %v828_v19 = vmul.f32 %v2771_v4, %v3625_v27 }
  0x57   : > { %v3696_v29 = vadd.f32 %v3631_v30, %v821_v20  ;;  %v3051_v20 = vld [vmem:[%s4334_s3 + $0x20] sm:$0xff]  }
  0x58   : > { %2843 = vmatpush3.bf16.msra.mxu0 %v3051_v20  ;;  %3007 = vmatpush3.bf16.msra.mxu1 %v3051_v20 }
  0x59   : > { %v892_v45 = vsub.f32 0.0, %v3696_v29 }
  0x5b   : > { %v935_v51 = vmul.f32 1.442695, %v892_v45  ;;  %v3052_v45 = vld [vmem:[%s4334_s3 + $0x58] sm:$0xff]  }
  0x5c   : > { %2989 = vmatmul.mubr.bf16.gmra.mxu0 %v3041_v21  ;;  %v891_v21 = vsub.f32 0.0, %v3682_v13  ;;  %2844 = vmatprep.subr.bf16.mxu0 %v3052_v45 }
  0x5d   : > { %2992 = vmatprep.mubr.bf16.mxu0 %v3042_v22  ;;  %v2803_v22 = vld [vmem:[%s3618_s20 + $0x38] sm:$0xff]   ;;  %3000 = vmatprep.subr.bf16.mxu1 %v3052_v45 }
  0x5e   : > { %v2763_v26 = vunpack.c.l.bf16 %v2803_v22  ;;  %v933_v31 = vmul.f32 1.442695, %v891_v21  ;;  %v2764_v49 = vunpack.c.h.bf16 %v2803_v22  ;;  %v894_v22 = vsub.f32 0.0, %v3734_v10 }
  0x60   : > { %v824_v41 = vmul.f32 %v2763_v26, %v3625_v27  ;;  %v825_v60 = vmul.f32 %v2764_v49, %v3625_v27  ;;  %v2772_v26 = vunpack.c.h.bf16 %v2805_v62  ;;  %v3053_v49 = vld [vmem:[%s4334_s3 + $0x18] sm:$0xff]  }
  0x61   : > { %2845 = vmatpush3.bf16.msra.mxu0 %v3053_v49  ;;  %3008 = vmatpush3.bf16.msra.mxu1 %v3053_v49 }
  0x62   : > { %v3713_v52 = vadd.f32 %v3631_v30, %v824_v41  ;;  %v3730_v7 = vadd.f32 %v3631_v30, %v825_v60  ;;  %v829_v41 = vmul.f32 %v2772_v26, %v3625_v27  ;;  %v2780_v26 = vunpack.c.h.bf16 %v3755_v42 }
  0x64   : > { %2993 = vmatmul.mubr.bf16.gmra.mxu0 %v3043_v23  ;;  %v3111_v23 = vpop.eup %3110  ;;  %v895_v61 = vsub.f32 0.0, %v3713_v52  ;;  %v896_v16 = vsub.f32 0.0, %v3730_v7  ;;  %v3772_v60 = vadd.f32 %v3631_v30, %v829_v41 }
  0x65   : > { %v977_v28 = vadd.f32 1.0, %v3111_v23  ;;  %v3113_v34 = vpop.eup %3112  ;;  %v826_v23 = vmul.f32 %v2767_v12, %v3625_v27 }
  0x66   : > { %v980_v43 = vadd.f32 1.0, %v3113_v34  ;;  %v3115_v46 = vpop.eup %3114  ;;  %v941_v17 = vmul.f32 1.442695, %v895_v61  ;;  %v943_v25 = vmul.f32 1.442695, %v896_v16  ;;  %v2806_v61 = vld [vmem:[%s3618_s20 + $0x50] sm:$0xff]  }
  0x67   : > { %3126 = vrcp.f32 %v977_v28  ;;  %v978_v50 = vadd.f32 1.0, %v3115_v46  ;;  %v3117_v0 = vpop.eup %3116  ;;  %v3747_v28 = vadd.f32 %v3631_v30, %v828_v19  ;;  %v939_v34 = vmul.f32 1.442695, %v894_v22  ;;  %v3055_v16 = vld [vmem:[%s4334_s3 + $0x10] sm:$0xff]  }
  0x68   : > { %3128 = vpow2.f32 %v929_v38  ;;  %v3119_v5 = vpop.eup %3118  ;;  %v983_v6 = vadd.f32 1.0, %v3117_v0  ;;  %v3751_v39 = vadd.f32 %v3631_v30, %v826_v23  ;;  %v827_v46 = vmul.f32 %v2768_v36, %v3625_v27  ;;  %v3786_v23 = vld [vmem:[%s3618_s20 + $0x68] sm:$0xff]  }
  0x69   : > { %3130 = vrcp.f32 %v980_v43  ;;  %v981_v9 = vadd.f32 1.0, %v3119_v5  ;;  %v3121_v14 = vpop.eup %3120  ;;  %v899_v47 = vsub.f32 0.0, %v3747_v28  ;;  %v900_v8 = vsub.f32 0.0, %v3772_v60 }
  0x6a   : > { %3132 = vpow2.f32 %v933_v31  ;;  %v984_v21 = vadd.f32 1.0, %v3121_v14  ;;  %v3123_v24 = vpop.eup %3122  ;;  %v897_v53 = vsub.f32 0.0, %v3751_v39  ;;  %v3769_v59 = vadd.f32 %v3631_v30, %v827_v46 }
  0x6b   : > { %3134 = vrcp.f32 %v978_v50  ;;  %v3125_v31 = vpop.eup %3124  ;;  %v982_v32 = vadd.f32 1.0, %v3123_v24  ;;  %v949_v2 = vmul.f32 1.442695, %v899_v47  ;;  %v951_v20 = vmul.f32 1.442695, %v900_v8  ;;  %v2808_v8 = vld [vmem:[%s3618_s20 + $0x60] sm:$0xff]  }
  0x6c   : > { %3136 = vpow2.f32 %v931_v55  ;;  %v1043_v38 = vmul.f32 %v3125_v31, %v3635_v33  ;;  %v2779_v33 = vunpack.c.l.bf16 %v3755_v42  ;;  %v945_v1 = vmul.f32 1.442695, %v897_v53  ;;  %v3057_v42 = vld [vmem:[%s4334_s3 + $0x8] sm:$0xff]  }
  0x6d   : > { %3138 = vpow2.f32 %v935_v51  ;;  %v2787_v41 = vunpack.c.l.bf16 %v3786_v23  ;;  %v833_v47 = vmul.f32 %v2780_v26, %v3625_v27 }
  0x6e   : > { %3140 = vrcp.f32 %v983_v6  ;;  %v2671_v51 = vpack.c.bf16 %v1043_v38, %v1043_v38  ;;  %v898_v6 = vsub.f32 0.0, %v3769_v59  ;;  %v832_v31 = vmul.f32 %v2779_v33, %v3625_v27 }
  0x6f   : > { %3142 = vrcp.f32 %v981_v9 }
  0x70   : > { %3144 = vpow2.f32 %v937_v11  ;;  %1203 = vst [vmem:[#allocation2 + $0x10] sm:$0xf] %v2671_v51  ;;  %v3054_v11 = vld [vmem:[%s4334_s3 + $0x50] sm:$0xff]   ;;  %v947_v19 = vmul.f32 1.442695, %v898_v6 }
  0x71   : > { %3146 = vrcp.f32 %v984_v21  ;;  %2846 = vmatprep.subr.bf16.mxu0 %v3054_v11  ;;  %3001 = vmatprep.subr.bf16.mxu1 %v3054_v11 }
  0x72   : > { %3148 = vpow2.f32 %v941_v17  ;;  %2847 = vmatpush3.bf16.msra.mxu0 %v3055_v16  ;;  %3009 = vmatpush3.bf16.msra.mxu1 %v3055_v16 }
  0x73   : > { %3150 = vrcp.f32 %v982_v32 }
  0x74   : > { %v3127_v43 = vpop.eup %3126  ;;  %3152 = vpow2.f32 %v939_v34  ;;  %v3056_v34 = vld [vmem:[%s4334_s3 + $0x48] sm:$0xff]  }
  0x75   : > { %v3129_v48 = vpop.eup %3128  ;;  %v1041_v50 = vmul.f32 %v3127_v43, %v3638_v35  ;;  %3154 = vpow2.f32 %v943_v25  ;;  %2848 = vmatprep.subr.bf16.mxu0 %v3056_v34  ;;  %3002 = vmatprep.subr.bf16.mxu1 %v3056_v34 }
  0x76   : > { %v3131_v55 = vpop.eup %3130  ;;  %v985_v56 = vadd.f32 1.0, %v3129_v48  ;;  %2849 = vmatpush3.bf16.msra.mxu0 %v3057_v42  ;;  %3010 = vmatpush3.bf16.msra.mxu1 %v3057_v42 }
  0x77   : > { %v3133_v62 = vpop.eup %3132  ;;  %v2669_v0 = vpack.c.bf16 %v1041_v50, %v1041_v50  ;;  %v1044_v35 = vmul.f32 %v3131_v55, %v3645_v40  ;;  %v2775_v40 = vunpack.c.l.bf16 %v2806_v61  ;;  %v3811_v55 = vadd.f32 %v3631_v30, %v832_v31 }
  0x78   : > { %v3135_v4 = vpop.eup %3134  ;;  %3156 = vrcp.f32 %v985_v56  ;;  %v987_v5 = vadd.f32 1.0, %v3133_v62 }
  0x79   : > { %v3137_v9 = vpop.eup %3136  ;;  %v1042_v12 = vmul.f32 %v3135_v4, %v3649_v44  ;;  %1201 = vst [vmem:[#allocation2] sm:$0xf] %v2669_v0  ;;  %v2672_v14 = vpack.c.bf16 %v1044_v35, %v1044_v35  ;;  %3158 = vpow2.f32 %v945_v1  ;;  %v2776_v44 = vunpack.c.h.bf16 %v2806_v61  ;;  %v3058_v61 = vld [vmem:[%s4334_s3 + $0x40] sm:$0xff]  }
  0x7a   : > { %v3139_v15 = vpop.eup %3138  ;;  %v986_v17 = vadd.f32 1.0, %v3137_v9  ;;  %3160 = vrcp.f32 %v987_v5  ;;  %v830_v25 = vmul.f32 %v2775_v40, %v3625_v27  ;;  %v3818_v35 = vadd.f32 %v3631_v30, %v833_v47  ;;  %v3059_v1 = vld [vmem:[%s4334_s3] sm:$0xff]   ;;  %2850 = vmatprep.subr.bf16.mxu0 %v3058_v61  ;;  %3003 = vmatprep.subr.bf16.mxu1 %v3058_v61 }
  0x7b   : > { %v2670_v21 = vpack.c.bf16 %v1042_v12, %v1042_v12  ;;  %1204 = vst [vmem:[#allocation2 + $0x18] sm:$0xf] %v2672_v14  ;;  %v988_v22 = vadd.f32 1.0, %v3139_v15  ;;  %3162 = vpow2.f32 %v949_v2  ;;  %v3141_v24 = vpop.eup %3140  ;;  %v831_v38 = vmul.f32 %v2776_v44, %v3625_v27  ;;  %2851 = vmatpush3.bf16.msra.mxu0 %v3059_v1  ;;  %3011 = vmatpush3.bf16.msra.mxu1 %v3059_v1 }
  0x7c   : > { %3164 = vrcp.f32 %v986_v17  ;;  %v3143_v32 = vpop.eup %3142  ;;  %v1047_v36 = vmul.f32 %v3141_v24, %v3657_v54  ;;  %v3802_v46 = vadd.f32 %v3631_v30, %v830_v25  ;;  %v903_v6 = vsub.f32 0.0, %v3811_v55 }
  0x7d   : > { %1202 = vst [vmem:[#allocation2 + $0x8] sm:$0xf] %v2670_v21  ;;  %3166 = vrcp.f32 %v988_v22  ;;  %v3145_v43 = vpop.eup %3144  ;;  %v1045_v45 = vmul.f32 %v3143_v32, %v3660_v57  ;;  %v3806_v49 = vadd.f32 %v3631_v30, %v831_v38  ;;  %v904_v14 = vsub.f32 0.0, %v3818_v35 }
  0x7e   : > { %3168 = vpow2.f32 %v947_v19  ;;  %v3147_v33 = vpop.eup %3146  ;;  %v2675_v54 = vpack.c.bf16 %v1047_v36, %v1047_v36  ;;  %v989_v48 = vadd.f32 1.0, %v3145_v43  ;;  %v901_v53 = vsub.f32 0.0, %v3802_v46 }
  0x7f   : > { %3170 = vpow2.f32 %v951_v20  ;;  %v3149_v50 = vpop.eup %3148  ;;  %v2673_v51 = vpack.c.bf16 %v1045_v45, %v1045_v45  ;;  %v1048_v57 = vmul.f32 %v3147_v33, %v3668_v63  ;;  %v902_v0 = vsub.f32 0.0, %v3806_v49 }
  0x80   : > { %v3151_v56 = vpop.eup %3150  ;;  %1207 = vst [vmem:[#allocation2 + $0x30] sm:$0xf] %v2675_v54  ;;  %3172 = vrcp.f32 %v989_v48  ;;  %v991_v62 = vadd.f32 1.0, %v3149_v50  ;;  %v953_v5 = vmul.f32 1.442695, %v901_v53  ;;  %v2783_v19 = vunpack.c.l.bf16 %v2808_v8 }
  0x81   : > { %v3153_v63 = vpop.eup %3152  ;;  %v1046_v2 = vmul.f32 %v3151_v56, %v3672_v3  ;;  %1205 = vst [vmem:[#allocation2 + $0x20] sm:$0xf] %v2673_v51  ;;  %v2676_v4 = vpack.c.bf16 %v1048_v57, %v1048_v57  ;;  %v955_v12 = vmul.f32 1.442695, %v902_v0  ;;  %v957_v3 = vmul.f32 1.442695, %v903_v6 }
  0x82   : > { %v3155_v9 = vpop.eup %3154  ;;  %v990_v11 = vadd.f32 1.0, %v3153_v63  ;;  %3174 = vrcp.f32 %v991_v62  ;;  %v959_v17 = vmul.f32 1.442695, %v904_v14  ;;  %v2784_v20 = vunpack.c.h.bf16 %v2808_v8  ;;  %v2810_v57 = vld [vmem:[%s3618_s20 + $0x70] sm:$0xff]   ;;  %v2811_v0 = vld [vmem:[%s3618_s20 + $0x78] sm:$0xff]  }
  0x83   : > { %v2674_v40 = vpack.c.bf16 %v1046_v2, %v1046_v2  ;;  %1208 = vst [vmem:[#allocation2 + $0x38] sm:$0xf] %v2676_v4  ;;  %v992_v15 = vadd.f32 1.0, %v3155_v9  ;;  %3176 = vpow2.f32 %v953_v5  ;;  %v2788_v44 = vunpack.c.h.bf16 %v3786_v23 }
  0x84   : > { %3178 = vrcp.f32 %v990_v11  ;;  %v836_v24 = vmul.f32 %v2787_v41, %v3625_v27  ;;  %v834_v31 = vmul.f32 %v2783_v19, %v3625_v27  ;;  %v835_v32 = vmul.f32 %v2784_v20, %v3625_v27 }
  0x85   : > { %v3157_v16 = vpop.eup %3156  ;;  %1206 = vst [vmem:[#allocation2 + $0x28] sm:$0xf] %v2674_v40  ;;  %3180 = vrcp.f32 %v992_v15  ;;  %v837_v43 = vmul.f32 %v2788_v44, %v3625_v27  ;;  %v2791_v8 = vunpack.c.l.bf16 %v2810_v57  ;;  %v2792_v11 = vunpack.c.h.bf16 %v2810_v57 }
  0x86   : > { %v3159_v21 = vpop.eup %3158  ;;  %v1049_v22 = vmul.f32 %v3157_v16, %v3688_v18  ;;  %3182 = vpow2.f32 %v955_v12  ;;  %v3835_v41 = vadd.f32 %v3631_v30, %v834_v31  ;;  %v3838_v42 = vadd.f32 %v3631_v30, %v835_v32 }
  0x87   : > { %v3161_v25 = vpop.eup %3160  ;;  %v993_v26 = vadd.f32 1.0, %v3159_v21  ;;  %3184 = vpow2.f32 %v957_v3  ;;  %v3849_v61 = vadd.f32 %v3631_v30, %v837_v43  ;;  %v2795_v12 = vunpack.c.l.bf16 %v2811_v0 }
  0x88   : > { %v3163_v34 = vpop.eup %3162  ;;  %v2677_v36 = vpack.c.bf16 %v1049_v22, %v1049_v22  ;;  %v1051_v38 = vmul.f32 %v3161_v25, %v3682_v13  ;;  %v3842_v13 = vadd.f32 %v3631_v30, %v836_v24  ;;  %v905_v50 = vsub.f32 0.0, %v3835_v41 }
  0x89   : > { %v3165_v18 = vpop.eup %3164  ;;  %3186 = vrcp.f32 %v993_v26  ;;  %v995_v23 = vadd.f32 1.0, %v3163_v34  ;;  %v906_v51 = vsub.f32 0.0, %v3838_v42  ;;  %v908_v5 = vsub.f32 0.0, %v3849_v61 }
  0x8a   : > { %v3167_v45 = vpop.eup %3166  ;;  %v1050_v47 = vmul.f32 %v3165_v18, %v3703_v37  ;;  %1209 = vst [vmem:[#allocation2 + $0x40] sm:$0xf] %v2677_v36  ;;  %v2679_v33 = vpack.c.bf16 %v1051_v38, %v1051_v38  ;;  %3188 = vpow2.f32 %v959_v17  ;;  %v907_v62 = vsub.f32 0.0, %v3842_v13 }
  0x8b   : > { %v3169_v54 = vpop.eup %3168  ;;  %v1052_v48 = vmul.f32 %v3167_v45, %v3696_v29  ;;  %3190 = vrcp.f32 %v995_v23  ;;  %v961_v2 = vmul.f32 1.442695, %v905_v50  ;;  %v963_v29 = vmul.f32 1.442695, %v906_v51 }
  0x8c   : > { %v3171_v53 = vpop.eup %3170  ;;  %v2678_v56 = vpack.c.bf16 %v1050_v47, %v1050_v47  ;;  %1211 = vst [vmem:[#allocation2 + $0x50] sm:$0xf] %v2679_v33  ;;  %v994_v37 = vadd.f32 1.0, %v3169_v54  ;;  %v965_v6 = vmul.f32 1.442695, %v907_v62  ;;  %v838_v15 = vmul.f32 %v2791_v8, %v3625_v27 }
  0x8d   : > { %v2680_v63 = vpack.c.bf16 %v1052_v48, %v1052_v48  ;;  %v996_v1 = vadd.f32 1.0, %v3171_v53  ;;  %v3173_v4 = vpop.eup %3172  ;;  %v967_v40 = vmul.f32 1.442695, %v908_v5  ;;  %v2796_v3 = vunpack.c.h.bf16 %v2811_v0 }
  0x8e   : > { %1210 = vst [vmem:[#allocation2 + $0x48] sm:$0xf] %v2678_v56  ;;  %3192 = vrcp.f32 %v994_v37  ;;  %v1053_v9 = vmul.f32 %v3173_v4, %v3719_v58  ;;  %v839_v20 = vmul.f32 %v2792_v11, %v3625_v27  ;;  %v3859_v58 = vadd.f32 %v3631_v30, %v838_v15 }
  0x8f   : > { %1212 = vst [vmem:[#allocation2 + $0x58] sm:$0xf] %v2680_v63  ;;  %3194 = vrcp.f32 %v996_v1  ;;  %v3175_v14 = vpop.eup %3174  ;;  %v840_v44 = vmul.f32 %v2795_v12, %v3625_v27  ;;  %v841_v36 = vmul.f32 %v2796_v3, %v3625_v27 }
  0x90   : > { %3196 = vpow2.f32 %v961_v2  ;;  %v3177_v16 = vpop.eup %3176  ;;  %v2681_v17 = vpack.c.bf16 %v1053_v9, %v1053_v9  ;;  %v1055_v19 = vmul.f32 %v3175_v14, %v3713_v52  ;;  %v3864_v31 = vadd.f32 %v3631_v30, %v839_v20 }
  0x91   : > { %3198 = vpow2.f32 %v963_v29  ;;  %v3179_v21 = vpop.eup %3178  ;;  %v997_v22 = vadd.f32 1.0, %v3177_v16  ;;  %v909_v34 = vsub.f32 0.0, %v3859_v58  ;;  %v3871_v23 = vadd.f32 %v3631_v30, %v840_v44 }
  0x92   : > { %3200 = vpow2.f32 %v965_v6  ;;  %v3181_v24 = vpop.eup %3180  ;;  %v1054_v25 = vmul.f32 %v3179_v21, %v3734_v10  ;;  %1213 = vst [vmem:[#allocation2 + $0x60] sm:$0xf] %v2681_v17  ;;  %v2683_v26 = vpack.c.bf16 %v1055_v19, %v1055_v19  ;;  %v910_v10 = vsub.f32 0.0, %v3864_v31 }
  0x93   : > { %3202 = vpow2.f32 %v967_v40  ;;  %v3183_v52 = vpop.eup %3182  ;;  %v1056_v32 = vmul.f32 %v3181_v24, %v3730_v7  ;;  %v969_v54 = vmul.f32 1.442695, %v909_v34  ;;  %v3874_v7 = vadd.f32 %v3631_v30, %v841_v36 }
  0x94   : > { %3204 = vrcp.f32 %v997_v22  ;;  %v3185_v38 = vpop.eup %3184  ;;  %v2682_v43 = vpack.c.bf16 %v1054_v25, %v1054_v25  ;;  %1215 = vst [vmem:[#allocation2 + $0x70] sm:$0xf] %v2683_v26  ;;  %v998_v18 = vadd.f32 1.0, %v3183_v52  ;;  %v971_v50 = vmul.f32 1.442695, %v910_v10 }
  0x95   : > { %v2684_v47 = vpack.c.bf16 %v1056_v32, %v1056_v32  ;;  %v999_v33 = vadd.f32 1.0, %v3185_v38  ;;  %v911_v51 = vsub.f32 0.0, %v3871_v23  ;;  %v912_v56 = vsub.f32 0.0, %v3874_v7 }
  0x96   : > { %v3187_v45 = vpop.eup %3186  ;;  %1214 = vst [vmem:[#allocation2 + $0x68] sm:$0xf] %v2682_v43  ;;  %3206 = vrcp.f32 %v998_v18 }
  0x97   : > { %v3189_v48 = vpop.eup %3188  ;;  %v1057_v27 = vmul.f32 %v3187_v45, %v3751_v39  ;;  %1216 = vst [vmem:[#allocation2 + $0x78] sm:$0xf] %v2684_v47  ;;  %3208 = vrcp.f32 %v999_v33  ;;  %v973_v30 = vmul.f32 1.442695, %v911_v51  ;;  %v975_v0 = vmul.f32 1.442695, %v912_v56 }
  0x98   : > { %v3191_v57 = vpop.eup %3190  ;;  %v1000_v53 = vadd.f32 1.0, %v3189_v48  ;;  %3210 = vpow2.f32 %v969_v54 }
  0x99   : > { %v2685_v37 = vpack.c.bf16 %v1057_v27, %v1057_v27  ;;  %v1059_v62 = vmul.f32 %v3191_v57, %v3747_v28 }
  0x9a   : > { %3212 = vrcp.f32 %v1000_v53 }
  0x9b   : > { %v3193_v63 = vpop.eup %3192  ;;  %1217 = vst [vmem:[#allocation2 + $0x80] sm:$0xf] %v2685_v37  ;;  %v2687_v39 = vpack.c.bf16 %v1059_v62, %v1059_v62  ;;  %3214 = vpow2.f32 %v971_v50 }
  0x9c   : > { %v3195_v1 = vpop.eup %3194  ;;  %v1058_v2 = vmul.f32 %v3193_v63, %v3769_v59  ;;  %3216 = vpow2.f32 %v973_v30 }
  0x9d   : > { %v3197_v29 = vpop.eup %3196  ;;  %v1060_v4 = vmul.f32 %v3195_v1, %v3772_v60  ;;  %1219 = vst [vmem:[#allocation2 + $0x90] sm:$0xf] %v2687_v39  ;;  %3218 = vpow2.f32 %v975_v0 }
  0x9e   : > { %v3199_v5 = vpop.eup %3198  ;;  %v2686_v6 = vpack.c.bf16 %v1058_v2, %v1058_v2  ;;  %v1001_v28 = vadd.f32 1.0, %v3197_v29 }
  0x9f   : > { %v3201_v8 = vpop.eup %3200  ;;  %v2688_v9 = vpack.c.bf16 %v1060_v4, %v1060_v4  ;;  %v1002_v11 = vadd.f32 1.0, %v3199_v5 }
  0xa0   : > { %v3203_v12 = vpop.eup %3202  ;;  %1218 = vst [vmem:[#allocation2 + $0x88] sm:$0xf] %v2686_v6  ;;  %3220 = vrcp.f32 %v1001_v28  ;;  %v1003_v14 = vadd.f32 1.0, %v3201_v8 }
  0xa1   : > { %v3205_v40 = vpop.eup %3204  ;;  %1220 = vst [vmem:[#allocation2 + $0x98] sm:$0xf] %v2688_v9  ;;  %3222 = vrcp.f32 %v1002_v11  ;;  %v1004_v59 = vadd.f32 1.0, %v3203_v12 }
  0xa2   : > { %v1061_v15 = vmul.f32 %v3205_v40, %v3802_v46  ;;  %3224 = vrcp.f32 %v1003_v14 }
  0xa3   : > { %3226 = vrcp.f32 %v1004_v59  ;;  %v3207_v60 = vpop.eup %3206 }
  0xa4   : > { %v2689_v3 = vpack.c.bf16 %v1061_v15, %v1061_v15  ;;  %v3209_v16 = vpop.eup %3208  ;;  %v1062_v17 = vmul.f32 %v3207_v60, %v3806_v49 }
  0xa5   : > { %v3211_v19 = vpop.eup %3210  ;;  %v1063_v20 = vmul.f32 %v3209_v16, %v3811_v55 }
  0xa6   : > { %1221 = vst [vmem:[#allocation2 + $0xa0] sm:$0xf] %v2689_v3  ;;  %v2690_v22 = vpack.c.bf16 %v1062_v17, %v1062_v17  ;;  %v1005_v44 = vadd.f32 1.0, %v3211_v19 }
  0xa7   : > { %v3213_v21 = vpop.eup %3212  ;;  %v2691_v26 = vpack.c.bf16 %v1063_v20, %v1063_v20 }
  0xa8   : > { %v3215_v24 = vpop.eup %3214  ;;  %v1064_v25 = vmul.f32 %v3213_v21, %v3818_v35  ;;  %1222 = vst [vmem:[#allocation2 + $0xa8] sm:$0xf] %v2690_v22  ;;  %3228 = vrcp.f32 %v1005_v44 }
  0xa9   : > { %v3217_v52 = vpop.eup %3216  ;;  %v1006_v46 = vadd.f32 1.0, %v3215_v24  ;;  %1223 = vst [vmem:[#allocation2 + $0xb0] sm:$0xf] %v2691_v26 }
  0xaa   : > { %v3219_v32 = vpop.eup %3218  ;;  %v2692_v34 = vpack.c.bf16 %v1064_v25, %v1064_v25  ;;  %v1007_v36 = vadd.f32 1.0, %v3217_v52 }
  0xab   : > { %3230 = vrcp.f32 %v1006_v46  ;;  %v1008_v49 = vadd.f32 1.0, %v3219_v32 }
  0xac   : > { %1224 = vst [vmem:[#allocation2 + $0xb8] sm:$0xf] %v2692_v34  ;;  %3232 = vrcp.f32 %v1007_v36 }
  0xad   : > { %v3221_v55 = vpop.eup %3220  ;;  %3234 = vrcp.f32 %v1008_v49 }
  0xae   : > { %v3223_v38 = vpop.eup %3222  ;;  %v1065_v43 = vmul.f32 %v3221_v55, %v3835_v41 }
  0xaf   : > { %v3225_v18 = vpop.eup %3224  ;;  %v1066_v35 = vmul.f32 %v3223_v38, %v3838_v42 }
  0xb0   : > { %v3227_v10 = vpop.eup %3226  ;;  %v2693_v45 = vpack.c.bf16 %v1065_v43, %v1065_v43  ;;  %v1067_v47 = vmul.f32 %v3225_v18, %v3842_v13 }
  0xb1   : > { %v2694_v33 = vpack.c.bf16 %v1066_v35, %v1066_v35  ;;  %v1068_v54 = vmul.f32 %v3227_v10, %v3849_v61 }
  0xb2   : > { %1225 = vst [vmem:[#allocation2 + $0xc0] sm:$0xf] %v2693_v45  ;;  %v2695_v48 = vpack.c.bf16 %v1067_v47, %v1067_v47 }
  0xb3   : > { %1226 = vst [vmem:[#allocation2 + $0xc8] sm:$0xf] %v2694_v33  ;;  %v2696_v27 = vpack.c.bf16 %v1068_v54, %v1068_v54 }
  0xb4   : > { %1227 = vst [vmem:[#allocation2 + $0xd0] sm:$0xf] %v2695_v48 }
  0xb5   : > { %1228 = vst [vmem:[#allocation2 + $0xd8] sm:$0xf] %v2696_v27  ;;  %v3229_v50 = vpop.eup %3228 }
  0xb6   : > { %v1069_v51 = vmul.f32 %v3229_v50, %v3859_v58  ;;  %v3897_v58 = vld [vmem:[%s4337_s6] ss:$0 sm:$0xff] }
  0xb8   : > { %v3231_v41 = vpop.eup %3230  ;;  %v2697_v53 = vpack.c.bf16 %v1069_v51, %v1069_v51 }
  0xb9   : > { %v3233_v57 = vpop.eup %3232  ;;  %v1070_v42 = vmul.f32 %v3231_v41, %v3864_v31  ;;  %v3902_v31 = vld [vmem:[%s4338_s7] ss:$0 sm:$0xff] }
  0xba   : > { %v3235_v56 = vpop.eup %3234  ;;  %v1071_v13 = vmul.f32 %v3233_v57, %v3871_v23  ;;  %1229 = vst [vmem:[#allocation2 + $0xe0] sm:$0xf] %v2697_v53 }
  0xbb   : > { %v2698_v37 = vpack.c.bf16 %v1070_v42, %v1070_v42  ;;  %v1072_v61 = vmul.f32 %v3235_v56, %v3874_v7 }
  0xbc   : > { %v2699_v62 = vpack.c.bf16 %v1071_v13, %v1071_v13 }
  0xbd   : > { %1230 = vst [vmem:[#allocation2 + $0xe8] sm:$0xf] %v2698_v37  ;;  %v2700_v30 = vpack.c.bf16 %v1072_v61, %v1072_v61 }
  0xbe   : > { %1231 = vst [vmem:[#allocation2 + $0xf0] sm:$0xf] %v2699_v62 }
  0xbf   : > { %1232 = vst [vmem:[#allocation2 + $0xf8] sm:$0xf] %v2700_v30 }
  0xec   : > { %v2966_v0 = vpop.f32.mrf.mxu0 }
  0xed   : > { %v1242_v23 = vmul.f32 %v2966_v0, %v3897_v58 }
  0xee   : > { %v612_v63 = vpop.f32.mrf.mxu0 }
  0xef   : > { %v3906_v7 = vadd.f32 %v3902_v31, %v1242_v23  ;;  %v1240_v39 = vmul.f32 %v3897_v58, %v612_v63 }
  0xf0   : > { %v2967_v1 = vpop.f32.mrf.mxu0 }
  0xf1   : > { %v1313_v2 = vsub.f32 0.0, %v3906_v7  ;;  %v3911_v29 = vadd.f32 %v3902_v31, %v1240_v39  ;;  %v1243_v4 = vmul.f32 %v2967_v1, %v3897_v58 }
  0xf2   : > { %v615_v5 = vpop.f32.mrf.mxu0 }
  0xf3   : > { %v1347_v6 = vmul.f32 1.442695, %v1313_v2  ;;  %v1311_v28 = vsub.f32 0.0, %v3911_v29  ;;  %v3916_v8 = vadd.f32 %v3902_v31, %v1243_v4  ;;  %v1241_v9 = vmul.f32 %v3897_v58, %v615_v5 }
  0xf4   : > { %v2970_v11 = vpop.f32.mrf.mxu0 }
  0xf5   : > { %3236 = vpow2.f32 %v1347_v6  ;;  %v1343_v12 = vmul.f32 1.442695, %v1311_v28  ;;  %v1314_v14 = vsub.f32 0.0, %v3916_v8  ;;  %v3921_v40 = vadd.f32 %v3902_v31, %v1241_v9 }
  0xf6   : > { %v1246_v59 = vmul.f32 %v2970_v11, %v3897_v58  ;;  %v628_v15 = vpop.f32.mrf.mxu0 }
  0xf7   : > { %3238 = vpow2.f32 %v1343_v12  ;;  %v1349_v60 = vmul.f32 1.442695, %v1314_v14  ;;  %v1312_v3 = vsub.f32 0.0, %v3921_v40  ;;  %v1244_v16 = vmul.f32 %v3897_v58, %v628_v15 }
  0xf8   : > { %v3927_v17 = vadd.f32 %v3902_v31, %v1246_v59  ;;  %v2971_v19 = vpop.f32.mrf.mxu0 }
  0xf9   : > { %3240 = vpow2.f32 %v1349_v60  ;;  %v1345_v20 = vmul.f32 1.442695, %v1312_v3  ;;  %v3930_v21 = vadd.f32 %v3902_v31, %v1244_v16  ;;  %v1247_v22 = vmul.f32 %v2971_v19, %v3897_v58 }
  0xfa   : > { %v1317_v44 = vsub.f32 0.0, %v3927_v17  ;;  %v631_v24 = vpop.f32.mrf.mxu0 }
  0xfb   : > { %3242 = vpow2.f32 %v1345_v20  ;;  %v1315_v25 = vsub.f32 0.0, %v3930_v21  ;;  %v3936_v26 = vadd.f32 %v3902_v31, %v1247_v22  ;;  %v1245_v52 = vmul.f32 %v3897_v58, %v631_v24 }
  0xfc   : > { %v1355_v46 = vmul.f32 1.442695, %v1317_v44  ;;  %v2974_v32 = vpop.f32.mrf.mxu0 }
  0xfd   : > { %v1351_v34 = vmul.f32 1.442695, %v1315_v25  ;;  %v1318_v36 = vsub.f32 0.0, %v3936_v26  ;;  %v3941_v49 = vadd.f32 %v3902_v31, %v1245_v52  ;;  %v1250_v55 = vmul.f32 %v2974_v32, %v3897_v58 }
  0xfe   : > { %3244 = vpow2.f32 %v1355_v46  ;;  %v644_v38 = vpop.f32.mrf.mxu0 }
  0xff   : > { %3246 = vpow2.f32 %v1351_v34  ;;  %v1357_v43 = vmul.f32 1.442695, %v1318_v36  ;;  %v1316_v18 = vsub.f32 0.0, %v3941_v49  ;;  %v3946_v35 = vadd.f32 %v3902_v31, %v1250_v55 }
 0x100   : > { %v1248_v10 = vmul.f32 %v3897_v58, %v644_v38  ;;  %v2975_v45 = vpop.f32.mrf.mxu0 }
 0x101   : > { %3248 = vpow2.f32 %v1357_v43  ;;  %v1353_v47 = vmul.f32 1.442695, %v1316_v18  ;;  %v1321_v33 = vsub.f32 0.0, %v3946_v35  ;;  %v1251_v54 = vmul.f32 %v2975_v45, %v3897_v58 }
 0x102   : > { %v3237_v48 = vpop.eup %3236  ;;  %v3952_v27 = vadd.f32 %v3902_v31, %v1248_v10  ;;  %v647_v50 = vpop.f32.mrf.mxu0 }
 0x103   : > { %v1409_v51 = vadd.f32 1.0, %v3237_v48  ;;  %3250 = vpow2.f32 %v1353_v47  ;;  %v1363_v41 = vmul.f32 1.442695, %v1321_v33  ;;  %v3955_v57 = vadd.f32 %v3902_v31, %v1251_v54 }
 0x104   : > { %v3239_v42 = vpop.eup %3238  ;;  %v1319_v53 = vsub.f32 0.0, %v3952_v27  ;;  %v1249_v56 = vmul.f32 %v3897_v58, %v647_v50  ;;  %v2978_v13 = vpop.f32.mrf.mxu0 }
 0x105   : > { %3252 = vrcp.f32 %v1409_v51  ;;  %v1407_v37 = vadd.f32 1.0, %v3239_v42  ;;  %v1322_v61 = vsub.f32 0.0, %v3955_v57  ;;  %v1254_v62 = vmul.f32 %v2978_v13, %v3897_v58 }
 0x106   : > { %v3241_v30 = vpop.eup %3240  ;;  %3254 = vpow2.f32 %v1363_v41  ;;  %v1359_v0 = vmul.f32 1.442695, %v1319_v53  ;;  %v3962_v23 = vadd.f32 %v3902_v31, %v1249_v56  ;;  %v660_v63 = vpop.f32.mrf.mxu0 }
 0x107   : > { %3256 = vrcp.f32 %v1407_v37  ;;  %v1410_v39 = vadd.f32 1.0, %v3241_v30  ;;  %v1365_v1 = vmul.f32 1.442695, %v1322_v61  ;;  %v3965_v2 = vadd.f32 %v3902_v31, %v1254_v62 }
 0x108   : > { %v3243_v4 = vpop.eup %3242  ;;  %3258 = vpow2.f32 %v1359_v0  ;;  %v1320_v5 = vsub.f32 0.0, %v3962_v23  ;;  %v1252_v6 = vmul.f32 %v3897_v58, %v660_v63  ;;  %v2979_v28 = vpop.f32.mrf.mxu0 }
 0x109   : > { %3260 = vrcp.f32 %v1410_v39  ;;  %v1408_v9 = vadd.f32 1.0, %v3243_v4  ;;  %v1325_v11 = vsub.f32 0.0, %v3965_v2  ;;  %v1255_v12 = vmul.f32 %v2979_v28, %v3897_v58 }
 0x10a   : > { %3262 = vpow2.f32 %v1365_v1  ;;  %v1361_v14 = vmul.f32 1.442695, %v1320_v5  ;;  %v3972_v59 = vadd.f32 %v3902_v31, %v1252_v6  ;;  %v663_v15 = vpop.f32.mrf.mxu0 }
 0x10b   : > { %v3245_v60 = vpop.eup %3244  ;;  %3264 = vrcp.f32 %v1408_v9  ;;  %v1371_v3 = vmul.f32 1.442695, %v1325_v11  ;;  %v3975_v16 = vadd.f32 %v3902_v31, %v1255_v12  ;;  %v1253_v19 = vmul.f32 %v3897_v58, %v663_v15 }
 0x10c   : > { %v3247_v20 = vpop.eup %3246  ;;  %v1413_v22 = vadd.f32 1.0, %v3245_v60  ;;  %3266 = vpow2.f32 %v1361_v14  ;;  %v1323_v44 = vsub.f32 0.0, %v3972_v59  ;;  %v2982_v24 = vpop.f32.mrf.mxu0 }
 0x10d   : > { %v1411_v25 = vadd.f32 1.0, %v3247_v20  ;;  %3268 = vpow2.f32 %v1371_v3  ;;  %v1326_v52 = vsub.f32 0.0, %v3975_v16  ;;  %v3981_v46 = vadd.f32 %v3902_v31, %v1253_v19 }
 0x10e   : > { %v3249_v32 = vpop.eup %3248  ;;  %3270 = vrcp.f32 %v1413_v22  ;;  %v1367_v34 = vmul.f32 1.442695, %v1323_v44  ;;  %v1258_v36 = vmul.f32 %v2982_v24, %v3897_v58  ;;  %v676_v55 = vpop.f32.mrf.mxu0 }
 0x10f   : > { %3272 = vrcp.f32 %v1411_v25  ;;  %v1414_v38 = vadd.f32 1.0, %v3249_v32  ;;  %v1373_v43 = vmul.f32 1.442695, %v1326_v52  ;;  %v1324_v18 = vsub.f32 0.0, %v3981_v46 }
 0x110   : > { %v3251_v10 = vpop.eup %3250  ;;  %3274 = vpow2.f32 %v1367_v34  ;;  %v3986_v45 = vadd.f32 %v3902_v31, %v1258_v36  ;;  %v1256_v47 = vmul.f32 %v3897_v58, %v676_v55  ;;  %v2983_v33 = vpop.f32.mrf.mxu0 }
 0x111   : > { %3276 = vrcp.f32 %v1414_v38  ;;  %v1412_v54 = vadd.f32 1.0, %v3251_v10  ;;  %v1369_v48 = vmul.f32 1.442695, %v1324_v18  ;;  %v1259_v50 = vmul.f32 %v2983_v33, %v3897_v58 }
 0x112   : > { %v3253_v51 = vpop.eup %3252  ;;  %3278 = vpow2.f32 %v1373_v43  ;;  %v1329_v41 = vsub.f32 0.0, %v3986_v45  ;;  %v3992_v42 = vadd.f32 %v3902_v31, %v1256_v47  ;;  %v679_v53 = vpop.f32.mrf.mxu0 }
 0x113   : > { %v3255_v56 = vpop.eup %3254  ;;  %v1473_v13 = vmul.f32 %v3253_v51, %v3906_v7  ;;  %3280 = vrcp.f32 %v1412_v54  ;;  %v3996_v37 = vadd.f32 %v3902_v31, %v1259_v50  ;;  %v1257_v61 = vmul.f32 %v3897_v58, %v679_v53 }
 0x114   : > { %v3257_v62 = vpop.eup %3256  ;;  %v1417_v30 = vadd.f32 1.0, %v3255_v56  ;;  %3282 = vpow2.f32 %v1369_v48  ;;  %v1379_v0 = vmul.f32 1.442695, %v1329_v41  ;;  %v1327_v63 = vsub.f32 0.0, %v3992_v42  ;;  %v2986_v39 = vpop.f32.mrf.mxu0 }
 0x115   : > { %v3259_v1 = vpop.eup %3258  ;;  %v2703_v4 = vpack.c.bf16 %v1473_v13, %v1473_v13  ;;  %v1471_v5 = vmul.f32 %v3257_v62, %v3911_v29  ;;  %v1330_v6 = vsub.f32 0.0, %v3996_v37  ;;  %v4003_v7 = vadd.f32 %v3902_v31, %v1257_v61 }
 0x116   : > { %v3261_v28 = vpop.eup %3260  ;;  %3284 = vrcp.f32 %v1417_v30  ;;  %v1415_v9 = vadd.f32 1.0, %v3259_v1  ;;  %v1375_v11 = vmul.f32 1.442695, %v1327_v63  ;;  %v1262_v12 = vmul.f32 %v2986_v39, %v3897_v58  ;;  %v692_v14 = vpop.f32.mrf.mxu0 }
 0x117   : > { %v3263_v15 = vpop.eup %3262  ;;  %1633 = vst [vmem:[#allocation2 + $0x14] sm:$0xf] %v2703_v4  ;;  %v2701_v60 = vpack.c.bf16 %v1471_v5, %v1471_v5  ;;  %v1474_v3 = vmul.f32 %v3261_v28, %v3916_v8  ;;  %3286 = vpow2.f32 %v1379_v0  ;;  %v1381_v19 = vmul.f32 1.442695, %v1330_v6 }
 0x118   : > { %v3265_v29 = vpop.eup %3264  ;;  %3288 = vrcp.f32 %v1415_v9  ;;  %v1418_v20 = vadd.f32 1.0, %v3263_v15  ;;  %v1328_v22 = vsub.f32 0.0, %v4003_v7  ;;  %v4009_v44 = vadd.f32 %v3902_v31, %v1262_v12  ;;  %v2987_v24 = vpop.f32.mrf.mxu0 }
 0x119   : > { %v3267_v25 = vpop.eup %3266  ;;  %1631 = vst [vmem:[#allocation2 + $0x4] sm:$0xf] %v2701_v60  ;;  %v2704_v52 = vpack.c.bf16 %v1474_v3, %v1474_v3  ;;  %v1472_v32 = vmul.f32 %v3265_v29, %v3921_v40  ;;  %3290 = vpow2.f32 %v1375_v11  ;;  %v1260_v34 = vmul.f32 %v3897_v58, %v692_v14 }
 0x11a   : > { %v3269_v8 = vpop.eup %3268  ;;  %3292 = vrcp.f32 %v1418_v20  ;;  %v1416_v36 = vadd.f32 1.0, %v3267_v25  ;;  %v1377_v55 = vmul.f32 1.442695, %v1328_v22  ;;  %v1333_v38 = vsub.f32 0.0, %v4009_v44  ;;  %v695_v43 = vpop.f32.mrf.mxu0 }
 0x11b   : > { %v3271_v18 = vpop.eup %3270  ;;  %1634 = vst [vmem:[#allocation2 + $0x1c] sm:$0xf] %v2704_v52  ;;  %v2702_v10 = vpack.c.bf16 %v1472_v32, %v1472_v32  ;;  %v1421_v47 = vadd.f32 1.0, %v3269_v8  ;;  %3294 = vpow2.f32 %v1381_v19  ;;  %v4015_v33 = vadd.f32 %v3902_v31, %v1260_v34 }
 0x11c   : > { %v3273_v54 = vpop.eup %3272  ;;  %v1477_v40 = vmul.f32 %v3271_v18, %v3927_v17  ;;  %3296 = vrcp.f32 %v1416_v36  ;;  %v1387_v48 = vmul.f32 1.442695, %v1333_v38  ;;  %v1263_v50 = vmul.f32 %v2987_v24, %v3897_v58  ;;  %v2990_v51 = vpop.f32.mrf.mxu0  ;;  %v3060_v36 = vld [vmem:[#allocation2] ss:$8 sps:$4 sm:$0xff]  }
 0x11d   : > { %v3275_v41 = vpop.eup %3274  ;;  %1632 = vst [vmem:[#allocation2 + $0xc] sm:$0xf] %v2702_v10  ;;  %v1475_v53 = vmul.f32 %v3273_v54, %v3930_v21  ;;  %3298 = vrcp.f32 %v1421_v47  ;;  %v1331_v56 = vsub.f32 0.0, %v4015_v33  ;;  %v1261_v13 = vmul.f32 %v3897_v58, %v695_v43 }
 0x11e   : > { %v3277_v61 = vpop.eup %3276  ;;  %v2707_v62 = vpack.c.bf16 %v1477_v40, %v1477_v40  ;;  %v1419_v30 = vadd.f32 1.0, %v3275_v41  ;;  %3300 = vpow2.f32 %v1377_v55  ;;  %v4023_v17 = vadd.f32 %v3902_v31, %v1263_v50  ;;  %v708_v0 = vpop.f32.mrf.mxu0 }
 0x11f   : > { %v3279_v63 = vpop.eup %3278  ;;  %v2705_v39 = vpack.c.bf16 %v1475_v53, %v1475_v53  ;;  %v1478_v1 = vmul.f32 %v3277_v61, %v3936_v26  ;;  %3302 = vpow2.f32 %v1387_v48  ;;  %v1383_v4 = vmul.f32 1.442695, %v1331_v56 }
 0x120   : > { %v3281_v21 = vpop.eup %3280  ;;  %1637 = vst [vmem:[#allocation2 + $0x34] sm:$0xf] %v2707_v62  ;;  %3304 = vrcp.f32 %v1419_v30  ;;  %v1422_v5 = vadd.f32 1.0, %v3279_v63  ;;  %v1334_v6 = vsub.f32 0.0, %v4023_v17  ;;  %v4028_v28 = vadd.f32 %v3902_v31, %v1261_v13  ;;  %v2991_v9 = vpop.f32.mrf.mxu0 }
 0x121   : > { %v3283_v11 = vpop.eup %3282  ;;  %1635 = vst [vmem:[#allocation2 + $0x24] sm:$0xf] %v2705_v39  ;;  %v2708_v12 = vpack.c.bf16 %v1478_v1, %v1478_v1  ;;  %v1476_v14 = vmul.f32 %v3281_v21, %v3941_v49  ;;  %3306 = vpow2.f32 %v1383_v4  ;;  %v1266_v26 = vmul.f32 %v2990_v51, %v3897_v58 }
 0x122   : > { %3308 = vrcp.f32 %v1422_v5  ;;  %v1420_v15 = vadd.f32 1.0, %v3283_v11  ;;  %v1389_v60 = vmul.f32 1.442695, %v1334_v6  ;;  %v1332_v3 = vsub.f32 0.0, %v4028_v28  ;;  %v711_v19 = vpop.f32.mrf.mxu0  ;;  %v3063_v50 = vld [vmem:[#allocation2 + $0x14] ss:$8 sps:$4 sm:$0xff]  }
 0x123   : > { %v3285_v29 = vpop.eup %3284  ;;  %1638 = vst [vmem:[#allocation2 + $0x3c] sm:$0xf] %v2708_v12  ;;  %v2706_v20 = vpack.c.bf16 %v1476_v14, %v1476_v14  ;;  %v4034_v22 = vadd.f32 %v3902_v31, %v1266_v26  ;;  %v1264_v24 = vmul.f32 %v3897_v58, %v708_v0  ;;  %v1267_v25 = vmul.f32 %v2991_v9, %v3897_v58 }
 0x124   : > { %v3287_v49 = vpop.eup %3286  ;;  %v1481_v52 = vmul.f32 %v3285_v29, %v3946_v35  ;;  %3310 = vrcp.f32 %v1420_v15  ;;  %v1385_v32 = vmul.f32 1.442695, %v1332_v3  ;;  %v1265_v34 = vmul.f32 %v3897_v58, %v711_v19  ;;  %v2994_v8 = vpop.f32.mrf.mxu0  ;;  %v3062_v10 = vld [vmem:[#allocation2 + $0x4] ss:$8 sps:$4 sm:$0xff]  }
 0x125   : > { %v3289_v55 = vpop.eup %3288  ;;  %1636 = vst [vmem:[#allocation2 + $0x2c] sm:$0xf] %v2706_v20  ;;  %v1425_v38 = vadd.f32 1.0, %v3287_v49  ;;  %3312 = vpow2.f32 %v1389_v60  ;;  %v1337_v43 = vsub.f32 0.0, %v4034_v22  ;;  %v4042_v18 = vadd.f32 %v3902_v31, %v1264_v24  ;;  %2015 = vmatprep.mubr.bf16.mxu0 %v3062_v10 }
 0x126   : > { %v3291_v47 = vpop.eup %3290  ;;  %v2711_v54 = vpack.c.bf16 %v1481_v52, %v1481_v52  ;;  %v1479_v35 = vmul.f32 %v3289_v55, %v3952_v27  ;;  %3314 = vpow2.f32 %v1385_v32  ;;  %v4046_v40 = vadd.f32 %v3902_v31, %v1267_v25  ;;  %v724_v48 = vpop.f32.mrf.mxu0  ;;  %2016 = vmatmul.mubr.bf16.vlgmr.msra.gmra.mxu0 %v3060_v36  ;;  %v3065_v32 = vld [vmem:[#allocation2 + $0x10] ss:$8 sps:$4 sm:$0xff]  }
 0x127   : > { %v3293_v51 = vpop.eup %3292  ;;  %3316 = vrcp.f32 %v1425_v38  ;;  %v1423_v41 = vadd.f32 1.0, %v3291_v47  ;;  %v1395_v53 = vmul.f32 1.442695, %v1337_v43  ;;  %v1335_v56 = vsub.f32 0.0, %v4042_v18  ;;  %2023 = vmatprep.mubr.bf16.mxu0 %v3063_v50 }
 0x128   : > { %v3295_v13 = vpop.eup %3294  ;;  %1641 = vst [vmem:[#allocation2 + $0x54] sm:$0xf] %v2711_v54  ;;  %v2709_v61 = vpack.c.bf16 %v1479_v35, %v1479_v35  ;;  %v1482_v62 = vmul.f32 %v3293_v51, %v3955_v57  ;;  %v1338_v27 = vsub.f32 0.0, %v4046_v40  ;;  %v4052_v30 = vadd.f32 %v3902_v31, %v1265_v34  ;;  %v2995_v0 = vpop.f32.mrf.mxu0 }
 0x129   : > { %v3297_v63 = vpop.eup %3296  ;;  %3318 = vrcp.f32 %v1423_v41  ;;  %v1426_v39 = vadd.f32 1.0, %v3295_v13  ;;  %v1391_v1 = vmul.f32 1.442695, %v1335_v56  ;;  %v1270_v4 = vmul.f32 %v2994_v8, %v3897_v58 }
 0x12a   : > { %v3299_v21 = vpop.eup %3298  ;;  %1639 = vst [vmem:[#allocation2 + $0x44] sm:$0xf] %v2709_v61  ;;  %v2712_v5 = vpack.c.bf16 %v1482_v62, %v1482_v62  ;;  %v1480_v6 = vmul.f32 %v3297_v63, %v3962_v23  ;;  %3320 = vpow2.f32 %v1395_v53  ;;  %v1397_v57 = vmul.f32 1.442695, %v1338_v27  ;;  %v727_v19 = vpop.f32.mrf.mxu0 }
 0x12b   : > { %v3301_v9 = vpop.eup %3300  ;;  %v1485_v11 = vmul.f32 %v3299_v21, %v3965_v2  ;;  %3322 = vrcp.f32 %v1426_v39  ;;  %v1336_v12 = vsub.f32 0.0, %v4052_v30  ;;  %v4059_v14 = vadd.f32 %v3902_v31, %v1270_v4 }
 0x12c   : > { %v3303_v26 = vpop.eup %3302  ;;  %1642 = vst [vmem:[#allocation2 + $0x5c] sm:$0xf] %v2712_v5  ;;  %v2710_v15 = vpack.c.bf16 %v1480_v6, %v1480_v6  ;;  %v1424_v60 = vadd.f32 1.0, %v3301_v9  ;;  %3324 = vpow2.f32 %v1391_v1  ;;  %v1268_v3 = vmul.f32 %v3897_v58, %v724_v48  ;;  %v3066_v38 = vld [vmem:[#allocation2 + $0x24] ss:$8 sps:$4 sm:$0xff]  }
 0x12d   : > { %v3305_v23 = vpop.eup %3304  ;;  %v2715_v29 = vpack.c.bf16 %v1485_v11, %v1485_v11  ;;  %v1429_v20 = vadd.f32 1.0, %v3303_v26  ;;  %3326 = vpow2.f32 %v1397_v57  ;;  %v1393_v24 = vmul.f32 1.442695, %v1336_v12  ;;  %v3072_v57 = vld [vmem:[#allocation2 + $0x34] ss:$8 sps:$4 sm:$0xff]  }
 0x12e   : > { %v3307_v2 = vpop.eup %3306  ;;  %1640 = vst [vmem:[#allocation2 + $0x4c] sm:$0xf] %v2710_v15  ;;  %v1483_v25 = vmul.f32 %v3305_v23, %v3972_v59  ;;  %3328 = vrcp.f32 %v1424_v60  ;;  %v1341_v49 = vsub.f32 0.0, %v4059_v14  ;;  %v4065_v52 = vadd.f32 %v3902_v31, %v1268_v3  ;;  %2024 = vmatmul.mubr.bf16.gmra.mxu0 %v3065_v32  ;;  %v3076_v32 = vld [vmem:[#allocation2 + $0x30] ss:$8 sps:$4 sm:$0xff]  }
 0x12f   : > { %v3309_v34 = vpop.eup %3308  ;;  %1645 = vst [vmem:[#allocation2 + $0x74] sm:$0xf] %v2715_v29  ;;  %3330 = vrcp.f32 %v1429_v20  ;;  %v1427_v8 = vadd.f32 1.0, %v3307_v2  ;;  %v1271_v36 = vmul.f32 %v2995_v0, %v3897_v58  ;;  %v1269_v55 = vmul.f32 %v3897_v58, %v727_v19  ;;  %2031 = vmatprep.mubr.bf16.mxu0 %v3066_v38 }
 0x130   : > { %v2713_v43 = vpack.c.bf16 %v1483_v25, %v1483_v25  ;;  %v1486_v10 = vmul.f32 %v3309_v34, %v3975_v16  ;;  %3332 = vpow2.f32 %v1393_v24  ;;  %v1403_v59 = vmul.f32 1.442695, %v1341_v49 }
 0x131   : > { %v3311_v47 = vpop.eup %3310  ;;  %3334 = vrcp.f32 %v1427_v8  ;;  %v1339_v54 = vsub.f32 0.0, %v4065_v52  ;;  %v4072_v35 = vadd.f32 %v3902_v31, %v1271_v36  ;;  %v4075_v48 = vadd.f32 %v3902_v31, %v1269_v55  ;;  %v3071_v31 = vld [vmem:[#allocation2 + $0x20] ss:$8 sps:$4 sm:$0xff]   ;;  %v3077_v55 = vld [vmem:[#allocation2 + $0x50] ss:$8 sps:$4 sm:$0xff]  }
 0x132   : > { %v3313_v50 = vpop.eup %3312  ;;  %1643 = vst [vmem:[#allocation2 + $0x64] sm:$0xf] %v2713_v43  ;;  %v2716_v58 = vpack.c.bf16 %v1486_v10, %v1486_v10  ;;  %v1484_v51 = vmul.f32 %v3311_v47, %v3981_v46  ;;  %3336 = vpow2.f32 %v1403_v59  ;;  %v3068_v46 = vld [vmem:[#allocation2 + $0x40] ss:$8 sps:$4 sm:$0xff]  }
 0x133   : > { %v3315_v16 = vpop.eup %3314  ;;  %v1430_v41 = vadd.f32 1.0, %v3313_v50  ;;  %v1399_v53 = vmul.f32 1.442695, %v1339_v54  ;;  %v1342_v56 = vsub.f32 0.0, %v4072_v35  ;;  %v1340_v13 = vsub.f32 0.0, %v4075_v48 }
 0x134   : > { %v3317_v61 = vpop.eup %3316  ;;  %1646 = vst [vmem:[#allocation2 + $0x7c] sm:$0xf] %v2716_v58  ;;  %v2714_v62 = vpack.c.bf16 %v1484_v51, %v1484_v51  ;;  %v1428_v27 = vadd.f32 1.0, %v3315_v16 }
 0x135   : > { %v1489_v0 = vmul.f32 %v3317_v61, %v3986_v45  ;;  %3338 = vrcp.f32 %v1430_v41  ;;  %v1405_v63 = vmul.f32 1.442695, %v1342_v56  ;;  %v1401_v39 = vmul.f32 1.442695, %v1340_v13  ;;  %v3070_v4 = vld [vmem:[#allocation2 + $0x44] ss:$8 sps:$4 sm:$0xff]  }
 0x136   : > { %v3319_v1 = vpop.eup %3318  ;;  %1644 = vst [vmem:[#allocation2 + $0x6c] sm:$0xf] %v2714_v62  ;;  %3340 = vrcp.f32 %v1428_v27  ;;  %2047 = vmatprep.mubr.bf16.mxu1 %v3070_v4  ;;  %2032 = vmatmul.mubr.bf16.gmra.mxu0 %v3071_v31  ;;  %v3074_v45 = vld [vmem:[#allocation2 + $0x54] ss:$8 sps:$4 sm:$0xff]   ;;  %v3080_v13 = vld [vmem:[#allocation2 + $0x60] ss:$8 sps:$4 sm:$0xff]  }
 0x137   : > { %v3321_v21 = vpop.eup %3320  ;;  %v2719_v5 = vpack.c.bf16 %v1489_v0, %v1489_v0  ;;  %v1487_v6 = vmul.f32 %v3319_v1, %v3992_v42  ;;  %3342 = vpow2.f32 %v1399_v53  ;;  %2048 = vmatmul.mubr.bf16.vlgmr.msra.gmra.mxu1 %v3068_v46  ;;  %2039 = vmatprep.mubr.bf16.mxu0 %v3072_v57  ;;  %v3083_v4 = vld [vmem:[#allocation2 + $0x70] ss:$8 sps:$4 sm:$0xff]  }
 0x138   : > { %v3323_v9 = vpop.eup %3322  ;;  %v1433_v11 = vadd.f32 1.0, %v3321_v21  ;;  %3344 = vpow2.f32 %v1405_v63  ;;  %2055 = vmatprep.mubr.bf16.mxu1 %v3074_v45 }
 0x139   : > { %v3325_v12 = vpop.eup %3324  ;;  %1649 = vst [vmem:[#allocation2 + $0x94] sm:$0xf] %v2719_v5  ;;  %v2717_v26 = vpack.c.bf16 %v1487_v6, %v1487_v6  ;;  %v1490_v15 = vmul.f32 %v3323_v9, %v3996_v37  ;;  %3346 = vpow2.f32 %v1401_v39 }
 0x13a   : > { %v3327_v60 = vpop.eup %3326  ;;  %3348 = vrcp.f32 %v1433_v11  ;;  %v1431_v3 = vadd.f32 1.0, %v3325_v12 }
 0x13b   : > { %v3329_v42 = vpop.eup %3328  ;;  %1647 = vst [vmem:[#allocation2 + $0x84] sm:$0xf] %v2717_v26  ;;  %v2720_v19 = vpack.c.bf16 %v1490_v15, %v1490_v15  ;;  %v1434_v23 = vadd.f32 1.0, %v3327_v60  ;;  %v3081_v62 = vld [vmem:[#allocation2 + $0x74] ss:$8 sps:$4 sm:$0xff]  }
 0x13c   : > { %v3331_v29 = vpop.eup %3330  ;;  %v1488_v20 = vmul.f32 %v3329_v42, %v4003_v7  ;;  %3350 = vrcp.f32 %v1431_v3  ;;  %v3086_v26 = vld [vmem:[#allocation2 + $0x80] ss:$8 sps:$4 sm:$0xff]   ;;  %v3089_v3 = vld [vmem:[#allocation2 + $0x90] ss:$8 sps:$4 sm:$0xff]  }
 0x13d   : > { %v3333_v24 = vpop.eup %3332  ;;  %1650 = vst [vmem:[#allocation2 + $0x9c] sm:$0xf] %v2720_v19  ;;  %v1493_v2 = vmul.f32 %v3331_v29, %v4009_v44  ;;  %3352 = vrcp.f32 %v1434_v23  ;;  %v3078_v7 = vld [vmem:[#allocation2 + $0x64] ss:$8 sps:$4 sm:$0xff]  }
 0x13e   : > { %v3335_v37 = vpop.eup %3334  ;;  %v2718_v25 = vpack.c.bf16 %v1488_v20, %v1488_v20  ;;  %v1432_v49 = vadd.f32 1.0, %v3333_v24  ;;  %2040 = vmatmul.mubr.bf16.gmra.mxu0 %v3076_v32  ;;  %v3101_v20 = vld [vmem:[#allocation2 + $0xd0] ss:$8 sps:$4 sm:$0xff]  }
 0x13f   : > { %v3337_v34 = vpop.eup %3336  ;;  %v2723_v8 = vpack.c.bf16 %v1493_v2, %v1493_v2  ;;  %v1491_v36 = vmul.f32 %v3335_v37, %v4015_v33  ;;  %2056 = vmatmul.mubr.bf16.gmra.mxu1 %v3077_v55  ;;  %v3104_v2 = vld [vmem:[#allocation2 + $0xe0] ss:$8 sps:$4 sm:$0xff]  }
 0x140   : > { %1648 = vst [vmem:[#allocation2 + $0x8c] sm:$0xf] %v2718_v25  ;;  %3354 = vrcp.f32 %v1432_v49  ;;  %v1437_v38 = vadd.f32 1.0, %v3337_v34  ;;  %2063 = vmatprep.mubr.bf16.mxu1 %v3078_v7  ;;  %v3107_v25 = vld [vmem:[#allocation2 + $0xf0] ss:$8 sps:$4 sm:$0xff]  }
 0x141   : > { %1653 = vst [vmem:[#allocation2 + $0xb4] sm:$0xf] %v2723_v8  ;;  %v2721_v43 = vpack.c.bf16 %v1491_v36, %v1491_v36  ;;  %v4099_v34 = vld [vmem:[%s4339_s8] ss:$0 sm:$0xff] }
 0x142   : > { %v3339_v10 = vpop.eup %3338  ;;  %3356 = vrcp.f32 %v1437_v38  ;;  %v4104_v36 = vld [vmem:[%s4340_s9] ss:$0 sm:$0xff] }
 0x143   : > { %v3341_v44 = vpop.eup %3340  ;;  %1651 = vst [vmem:[#allocation2 + $0xa4] sm:$0xf] %v2721_v43  ;;  %v1494_v59 = vmul.f32 %v3339_v10, %v4023_v17 }
 0x144   : > { %v3343_v47 = vpop.eup %3342  ;;  %v1492_v54 = vmul.f32 %v3341_v44, %v4028_v28  ;;  %v3087_v60 = vld [vmem:[#allocation2 + $0x94] ss:$8 sps:$4 sm:$0xff]  }
 0x145   : > { %v3345_v33 = vpop.eup %3344  ;;  %v2724_v50 = vpack.c.bf16 %v1494_v59, %v1494_v59  ;;  %v1435_v58 = vadd.f32 1.0, %v3343_v47 }
 0x146   : > { %v3347_v51 = vpop.eup %3346  ;;  %v2722_v16 = vpack.c.bf16 %v1492_v54, %v1492_v54  ;;  %v1438_v41 = vadd.f32 1.0, %v3345_v33 }
 0x147   : > { %v3349_v53 = vpop.eup %3348  ;;  %1654 = vst [vmem:[#allocation2 + $0xbc] sm:$0xf] %v2724_v50  ;;  %3358 = vrcp.f32 %v1435_v58  ;;  %v1436_v56 = vadd.f32 1.0, %v3347_v51  ;;  %2064 = vmatmul.mubr.bf16.gmra.mxu1 %v3080_v13  ;;  %v3084_v6 = vld [vmem:[#allocation2 + $0x84] ss:$8 sps:$4 sm:$0xff]  }
 0x148   : > { %1652 = vst [vmem:[#allocation2 + $0xac] sm:$0xf] %v2722_v16  ;;  %v1497_v61 = vmul.f32 %v3349_v53, %v4034_v22  ;;  %3360 = vrcp.f32 %v1438_v41  ;;  %2071 = vmatprep.mubr.bf16.mxu1 %v3081_v62 }
 0x149   : > { %v3351_v17 = vpop.eup %3350  ;;  %3362 = vrcp.f32 %v1436_v56 }
 0x14a   : > { %v3353_v28 = vpop.eup %3352  ;;  %v2727_v27 = vpack.c.bf16 %v1497_v61, %v1497_v61  ;;  %v1495_v31 = vmul.f32 %v3351_v17, %v4042_v18 }
 0x14b   : > { %v1498_v0 = vmul.f32 %v3353_v28, %v4046_v40 }
 0x14c   : > { %1657 = vst [vmem:[#allocation2 + $0xd4] sm:$0xf] %v2727_v27  ;;  %v2725_v63 = vpack.c.bf16 %v1495_v31, %v1495_v31 }
 0x14d   : > { %v3355_v39 = vpop.eup %3354  ;;  %v2728_v1 = vpack.c.bf16 %v1498_v0, %v1498_v0 }
 0x14e   : > { %1655 = vst [vmem:[#allocation2 + $0xc4] sm:$0xf] %v2725_v63  ;;  %v1496_v46 = vmul.f32 %v3355_v39, %v4052_v30  ;;  %v3093_v19 = vld [vmem:[#allocation2 + $0xb4] ss:$8 sps:$4 sm:$0xff]  }
 0x14f   : > { %v3357_v22 = vpop.eup %3356  ;;  %1658 = vst [vmem:[#allocation2 + $0xdc] sm:$0xf] %v2728_v1  ;;  %2072 = vmatmul.mubr.bf16.gmra.mxu1 %v3083_v4  ;;  %v3090_v42 = vld [vmem:[#allocation2 + $0xa4] ss:$8 sps:$4 sm:$0xff]  }
 0x150   : > { %v2726_v21 = vpack.c.bf16 %v1496_v46, %v1496_v46  ;;  %v1501_v5 = vmul.f32 %v3357_v22, %v4059_v14  ;;  %2079 = vmatprep.mubr.bf16.mxu1 %v3084_v6 }
 0x152   : > { %1656 = vst [vmem:[#allocation2 + $0xcc] sm:$0xf] %v2726_v21  ;;  %v2731_v18 = vpack.c.bf16 %v1501_v5, %v1501_v5 }
 0x154   : > { %v3359_v57 = vpop.eup %3358  ;;  %1661 = vst [vmem:[#allocation2 + $0xf4] sm:$0xf] %v2731_v18 }
 0x155   : > { %v3361_v40 = vpop.eup %3360  ;;  %v1499_v9 = vmul.f32 %v3359_v57, %v4065_v52  ;;  %v3092_v52 = vld [vmem:[#allocation2 + $0xa0] ss:$8 sps:$4 sm:$0xff]  }
 0x156   : > { %v3363_v11 = vpop.eup %3362  ;;  %v1502_v45 = vmul.f32 %v3361_v40, %v4072_v35  ;;  %v3095_v35 = vld [vmem:[#allocation2 + $0xb0] ss:$8 sps:$4 sm:$0xff]   ;;  %v3099_v29 = vld [vmem:[#allocation2 + $0xd4] ss:$8 sps:$4 sm:$0xff]  }
 0x157   : > { %v2729_v30 = vpack.c.bf16 %v1499_v9, %v1499_v9  ;;  %v1500_v12 = vmul.f32 %v3363_v11, %v4075_v48  ;;  %2080 = vmatmul.mubr.bf16.gmra.mxu1 %v3086_v26  ;;  %v3098_v48 = vld [vmem:[#allocation2 + $0xc0] ss:$8 sps:$4 sm:$0xff]  }
 0x158   : > { %v2732_v15 = vpack.c.bf16 %v1502_v45, %v1502_v45  ;;  %2087 = vmatprep.mubr.bf16.mxu1 %v3087_v60 }
 0x159   : > { %1659 = vst [vmem:[#allocation2 + $0xe4] sm:$0xf] %v2729_v30  ;;  %v2730_v14 = vpack.c.bf16 %v1500_v12, %v1500_v12  ;;  %v3096_v23 = vld [vmem:[#allocation2 + $0xc4] ss:$8 sps:$4 sm:$0xff]  }
 0x15a   : > { %1662 = vst [vmem:[#allocation2 + $0xfc] sm:$0xf] %v2732_v15 }
 0x15b   : > { %1660 = vst [vmem:[#allocation2 + $0xec] sm:$0xf] %v2730_v14 }
 0x15f   : > { %2088 = vmatmul.mubr.bf16.gmra.mxu1 %v3089_v3 }
 0x160   : > { %2095 = vmatprep.mubr.bf16.mxu1 %v3090_v42 }
 0x161   : > { %v3105_v37 = vld [vmem:[#allocation2 + $0xf4] ss:$8 sps:$4 sm:$0xff]  }
 0x162   : > { %v3102_v24 = vld [vmem:[#allocation2 + $0xe4] ss:$8 sps:$4 sm:$0xff]  }
 0x167   : > { %2096 = vmatmul.mubr.bf16.gmra.mxu1 %v3092_v52 }
 0x168   : > { %2103 = vmatprep.mubr.bf16.mxu1 %v3093_v19 }
 0x16f   : > { %2104 = vmatmul.mubr.bf16.gmra.mxu1 %v3095_v35 }
 0x170   : > { %2111 = vmatprep.mubr.bf16.mxu1 %v3096_v23 }
 0x177   : > { %2112 = vmatmul.mubr.bf16.gmra.mxu1 %v3098_v48 }
 0x178   : > { %2119 = vmatprep.mubr.bf16.mxu1 %v3099_v29 }
 0x17f   : > { %2120 = vmatmul.mubr.bf16.gmra.mxu1 %v3101_v20 }
 0x180   : > { %2127 = vmatprep.mubr.bf16.mxu1 %v3102_v24 }
 0x187   : > { %2128 = vmatmul.mubr.bf16.gmra.mxu1 %v3104_v2 }
 0x188   : > { %2135 = vmatprep.mubr.bf16.mxu1 %v3105_v37 }
 0x18f   : > { %2136 = vmatmul.mubr.bf16.gmra.mxu1 %v3107_v25 }
 0x1e6   : > { %v2852_v49 = vpop.f32.mrf.mxu0 }
 0x1e8   : > { %v2853_v32 = vpop.f32.mrf.mxu0 }
 0x1e9   : > { %v2854_v8 = vadd.f32 %v2853_v32, %v2852_v49 }
 0x1ea   : > { %v2855_v55 = vpop.f32.mrf.mxu0 }
 0x1eb   : > { %v2151_v38 = vmul.f32 %v2854_v8, %v4099_v34 }
 0x1ec   : > { %v2856_v7 = vpop.f32.mrf.mxu0 }
 0x1ed   : > { %v4108_v43 = vadd.f32 %v4104_v36, %v2151_v38  ;;  %v2857_v10 = vadd.f32 %v2856_v7, %v2855_v55 }
 0x1ee   : > { %v2858_v44 = vpop.f32.mrf.mxu0 }
 0x1ef   : > { %v2222_v59 = vsub.f32 0.0, %v4108_v43  ;;  %v2152_v47 = vmul.f32 %v2857_v10, %v4099_v34 }
 0x1f0   : > { %v2859_v54 = vpop.f32.mrf.mxu0 }
 0x1f1   : > { %v2254_v33 = vmul.f32 1.442695, %v2222_v59  ;;  %v4113_v50 = vadd.f32 %v4104_v36, %v2152_v47  ;;  %v2860_v58 = vadd.f32 %v2859_v54, %v2858_v44 }
 0x1f2   : > { %v2861_v51 = vpop.f32.mrf.mxu0 }
 0x1f3   : > { %3364 = vpow2.f32 %v2254_v33  ;;  %v2223_v16 = vsub.f32 0.0, %v4113_v50  ;;  %v2153_v41 = vmul.f32 %v2860_v58, %v4099_v34 }
 0x1f4   : > { %v2862_v53 = vpop.f32.mrf.mxu0 }
 0x1f5   : > { %v2256_v56 = vmul.f32 1.442695, %v2223_v16  ;;  %v4118_v13 = vadd.f32 %v4104_v36, %v2153_v41  ;;  %v2863_v61 = vadd.f32 %v2862_v53, %v2861_v51 }
 0x1f6   : > { %v2864_v62 = vpop.f32.mrf.mxu0 }
 0x1f7   : > { %3366 = vpow2.f32 %v2256_v56  ;;  %v2224_v17 = vsub.f32 0.0, %v4118_v13  ;;  %v2154_v28 = vmul.f32 %v2863_v61, %v4099_v34  ;;  %v2876_v27 = vpop.f32.mrf.mxu1 }
 0x1f8   : > { %v2865_v31 = vpop.f32.mrf.mxu0 }
 0x1f9   : > { %v2258_v0 = vmul.f32 1.442695, %v2224_v17  ;;  %v4123_v63 = vadd.f32 %v4104_v36, %v2154_v28  ;;  %v2866_v39 = vadd.f32 %v2865_v31, %v2864_v62  ;;  %v2877_v1 = vpop.f32.mrf.mxu1 }
 0x1fa   : > { %v2878_v46 = vadd.f32 %v2877_v1, %v2876_v27  ;;  %v2867_v22 = vpop.f32.mrf.mxu0 }
 0x1fb   : > { %3368 = vpow2.f32 %v2258_v0  ;;  %v2225_v4 = vsub.f32 0.0, %v4123_v63  ;;  %v2155_v21 = vmul.f32 %v2866_v39, %v4099_v34  ;;  %v2879_v5 = vpop.f32.mrf.mxu1 }
 0x1fc   : > { %v2159_v6 = vmul.f32 %v2878_v46, %v4099_v34  ;;  %v2868_v18 = vpop.f32.mrf.mxu0 }
 0x1fd   : > { %v2260_v57 = vmul.f32 1.442695, %v2225_v4  ;;  %v4129_v40 = vadd.f32 %v4104_v36, %v2155_v21  ;;  %v2869_v9 = vadd.f32 %v2868_v18, %v2867_v22  ;;  %v2880_v11 = vpop.f32.mrf.mxu1 }
 0x1fe   : > { %v4132_v45 = vadd.f32 %v4104_v36, %v2159_v6  ;;  %v2881_v30 = vadd.f32 %v2880_v11, %v2879_v5  ;;  %v2870_v12 = vpop.f32.mrf.mxu0 }
 0x1ff   : > { %3370 = vpow2.f32 %v2260_v57  ;;  %v2226_v26 = vsub.f32 0.0, %v4129_v40  ;;  %v2156_v15 = vmul.f32 %v2869_v9, %v4099_v34  ;;  %v2882_v60 = vpop.f32.mrf.mxu1 }
 0x200   : > { %v3365_v14 = vpop.eup %3364  ;;  %v2230_v3 = vsub.f32 0.0, %v4132_v45  ;;  %v2160_v42 = vmul.f32 %v2881_v30, %v4099_v34  ;;  %v2871_v52 = vpop.f32.mrf.mxu0 }
 0x201   : > { %v2318_v19 = vadd.f32 1.0, %v3365_v14  ;;  %v2262_v35 = vmul.f32 1.442695, %v2226_v26  ;;  %v4139_v23 = vadd.f32 %v4104_v36, %v2156_v15  ;;  %v2872_v48 = vadd.f32 %v2871_v52, %v2870_v12  ;;  %v2883_v29 = vpop.f32.mrf.mxu1 }
 0x202   : > { %v2270_v20 = vmul.f32 1.442695, %v2230_v3  ;;  %v4142_v24 = vadd.f32 %v4104_v36, %v2160_v42  ;;  %v2884_v2 = vadd.f32 %v2883_v29, %v2882_v60  ;;  %v2873_v37 = vpop.f32.mrf.mxu0 }
 0x203   : > { %3372 = vrcp.f32 %v2318_v19  ;;  %v2227_v25 = vsub.f32 0.0, %v4139_v23  ;;  %v2157_v49 = vmul.f32 %v2872_v48, %v4099_v34  ;;  %v2885_v32 = vpop.f32.mrf.mxu1 }
 0x204   : > { %v3367_v8 = vpop.eup %3366  ;;  %3374 = vpow2.f32 %v2262_v35  ;;  %v2231_v55 = vsub.f32 0.0, %v4142_v24  ;;  %v2161_v38 = vmul.f32 %v2884_v2, %v4099_v34  ;;  %v2874_v7 = vpop.f32.mrf.mxu0 }
 0x205   : > { %v2319_v10 = vadd.f32 1.0, %v3367_v8  ;;  %3376 = vpow2.f32 %v2270_v20  ;;  %v2264_v44 = vmul.f32 1.442695, %v2227_v25  ;;  %v4149_v59 = vadd.f32 %v4104_v36, %v2157_v49  ;;  %v2886_v47 = vpop.f32.mrf.mxu1 }
 0x206   : > { %v2272_v54 = vmul.f32 1.442695, %v2231_v55  ;;  %v4152_v33 = vadd.f32 %v4104_v36, %v2161_v38  ;;  %v2875_v58 = vadd.f32 %v2874_v7, %v2873_v37  ;;  %v2887_v51 = vadd.f32 %v2886_v47, %v2885_v32 }
 0x207   : > { %3378 = vrcp.f32 %v2319_v10  ;;  %v2228_v16 = vsub.f32 0.0, %v4149_v59  ;;  %v2888_v41 = vpop.f32.mrf.mxu1 }
 0x208   : > { %v3369_v53 = vpop.eup %3368  ;;  %3380 = vpow2.f32 %v2264_v44  ;;  %v2232_v56 = vsub.f32 0.0, %v4152_v33  ;;  %v2158_v61 = vmul.f32 %v2875_v58, %v4099_v34  ;;  %v2162_v62 = vmul.f32 %v2887_v51, %v4099_v34 }
 0x209   : > { %v2320_v17 = vadd.f32 1.0, %v3369_v53  ;;  %3382 = vpow2.f32 %v2272_v54  ;;  %v2266_v28 = vmul.f32 1.442695, %v2228_v16  ;;  %v2889_v27 = vpop.f32.mrf.mxu1 }
 0x20a   : > { %v2274_v31 = vmul.f32 1.442695, %v2232_v56  ;;  %v4159_v0 = vadd.f32 %v4104_v36, %v2158_v61  ;;  %v4162_v39 = vadd.f32 %v4104_v36, %v2162_v62  ;;  %v2890_v1 = vadd.f32 %v2889_v27, %v2888_v41 }
 0x20b   : > { %3384 = vrcp.f32 %v2320_v17  ;;  %v2891_v46 = vpop.f32.mrf.mxu1 }
 0x20c   : > { %v3371_v22 = vpop.eup %3370  ;;  %3386 = vpow2.f32 %v2266_v28  ;;  %v2229_v4 = vsub.f32 0.0, %v4159_v0  ;;  %v2233_v21 = vsub.f32 0.0, %v4162_v39  ;;  %v2163_v5 = vmul.f32 %v2890_v1, %v4099_v34 }
 0x20d   : > { %v2321_v6 = vadd.f32 1.0, %v3371_v22  ;;  %3388 = vpow2.f32 %v2274_v31  ;;  %v2892_v18 = vpop.f32.mrf.mxu1 }
 0x20e   : > { %v2268_v57 = vmul.f32 1.442695, %v2229_v4  ;;  %v2276_v9 = vmul.f32 1.442695, %v2233_v21  ;;  %v4169_v11 = vadd.f32 %v4104_v36, %v2163_v5  ;;  %v2893_v30 = vadd.f32 %v2892_v18, %v2891_v46 }
 0x20f   : > { %3390 = vrcp.f32 %v2321_v6  ;;  %v2894_v12 = vpop.f32.mrf.mxu1 }
 0x210   : > { %v3373_v26 = vpop.eup %3372  ;;  %3392 = vpow2.f32 %v2268_v57  ;;  %v2234_v15 = vsub.f32 0.0, %v4169_v11  ;;  %v2164_v60 = vmul.f32 %v2893_v30, %v4099_v34 }
 0x211   : > { %v3375_v14 = vpop.eup %3374  ;;  %v2382_v3 = vmul.f32 %v3373_v26, %v4108_v43  ;;  %3394 = vpow2.f32 %v2276_v9  ;;  %v2895_v42 = vpop.f32.mrf.mxu1 }
 0x212   : > { %v3377_v52 = vpop.eup %3376  ;;  %v2322_v19 = vadd.f32 1.0, %v3375_v14  ;;  %v2278_v35 = vmul.f32 1.442695, %v2234_v15  ;;  %v4180_v48 = vadd.f32 %v4104_v36, %v2164_v60  ;;  %v2896_v29 = vadd.f32 %v2895_v42, %v2894_v12 }
 0x213   : > { %2414 = vst [vmem:[%s4174_s14] sm:$0xff] %v2382_v3  ;;  %v2326_v20 = vadd.f32 1.0, %v3377_v52  ;;  %v2897_v2 = vpop.f32.mrf.mxu1 }
 0x214   : > { %v3379_v37 = vpop.eup %3378  ;;  %3396 = vrcp.f32 %v2322_v19  ;;  %v2235_v25 = vsub.f32 0.0, %v4180_v48  ;;  %v2165_v49 = vmul.f32 %v2896_v29, %v4099_v34 }
 0x215   : > { %v3381_v43 = vpop.eup %3380  ;;  %v2383_v32 = vmul.f32 %v3379_v37, %v4113_v50  ;;  %3398 = vrcp.f32 %v2326_v20  ;;  %v2898_v8 = vpop.f32.mrf.mxu1 }
 0x216   : > { %v3383_v55 = vpop.eup %3382  ;;  %v2323_v38 = vadd.f32 1.0, %v3381_v43  ;;  %3400 = vpow2.f32 %v2278_v35  ;;  %v2280_v7 = vmul.f32 1.442695, %v2235_v25  ;;  %v4187_v10 = vadd.f32 %v4104_v36, %v2165_v49 }
 0x217   : > { %2415 = vst [vmem:[%s4174_s14 + $0x8] sm:$0xff] %v2383_v32  ;;  %v2327_v44 = vadd.f32 1.0, %v3383_v55  ;;  %v2899_v47 = vadd.f32 %v2898_v8, %v2897_v2  ;;  %v2900_v54 = vpop.f32.mrf.mxu1 }
 0x218   : > { %v3385_v58 = vpop.eup %3384  ;;  %3402 = vrcp.f32 %v2323_v38  ;;  %v2236_v51 = vsub.f32 0.0, %v4187_v10 }
 0x219   : > { %v3387_v16 = vpop.eup %3386  ;;  %v2384_v50 = vmul.f32 %v3385_v58, %v4118_v13  ;;  %3404 = vrcp.f32 %v2327_v44  ;;  %v2166_v41 = vmul.f32 %v2899_v47, %v4099_v34  ;;  %v2901_v53 = vpop.f32.mrf.mxu1 }
 0x21a   : > { %v3389_v56 = vpop.eup %3388  ;;  %v2324_v61 = vadd.f32 1.0, %v3387_v16  ;;  %3406 = vpow2.f32 %v2280_v7  ;;  %v2282_v62 = vmul.f32 1.442695, %v2236_v51  ;;  %v2902_v17 = vadd.f32 %v2901_v53, %v2900_v54 }
 0x21b   : > { %2416 = vst [vmem:[%s4174_s14 + $0x10] sm:$0xff] %v2384_v50  ;;  %v2328_v28 = vadd.f32 1.0, %v3389_v56  ;;  %v4195_v27 = vadd.f32 %v4104_v36, %v2166_v41  ;;  %v2903_v31 = vpop.f32.mrf.mxu1 }
 0x21c   : > { %v3391_v1 = vpop.eup %3390  ;;  %3408 = vrcp.f32 %v2324_v61  ;;  %v2167_v13 = vmul.f32 %v2902_v17, %v4099_v34 }
 0x21d   : > { %v3393_v46 = vpop.eup %3392  ;;  %v2385_v22 = vmul.f32 %v3391_v1, %v4123_v63  ;;  %3410 = vrcp.f32 %v2328_v28  ;;  %v2237_v4 = vsub.f32 0.0, %v4195_v27  ;;  %v2904_v21 = vpop.f32.mrf.mxu1 }
 0x21e   : > { %v3395_v5 = vpop.eup %3394  ;;  %v2325_v6 = vadd.f32 1.0, %v3393_v46  ;;  %3412 = vpow2.f32 %v2282_v62  ;;  %v4201_v18 = vadd.f32 %v4104_v36, %v2167_v13  ;;  %v2905_v57 = vadd.f32 %v2904_v21, %v2903_v31 }
 0x21f   : > { %2417 = vst [vmem:[%s4174_s14 + $0x18] sm:$0xff] %v2385_v22  ;;  %v2329_v9 = vadd.f32 1.0, %v3395_v5  ;;  %v2284_v30 = vmul.f32 1.442695, %v2237_v4  ;;  %v2906_v12 = vpop.f32.mrf.mxu1 }
 0x220   : > { %3414 = vrcp.f32 %v2325_v6  ;;  %v2238_v26 = vsub.f32 0.0, %v4201_v18  ;;  %v2168_v63 = vmul.f32 %v2905_v57, %v4099_v34 }
 0x221   : > { %v3397_v15 = vpop.eup %3396  ;;  %3416 = vrcp.f32 %v2329_v9  ;;  %v2907_v60 = vpop.f32.mrf.mxu1 }
 0x222   : > { %v3399_v14 = vpop.eup %3398  ;;  %v2386_v3 = vmul.f32 %v3397_v15, %v4129_v40  ;;  %3418 = vpow2.f32 %v2284_v30  ;;  %v2286_v42 = vmul.f32 1.442695, %v2238_v26  ;;  %v4208_v52 = vadd.f32 %v4104_v36, %v2168_v63 }
 0x223   : > { %v3401_v19 = vpop.eup %3400  ;;  %v2390_v35 = vmul.f32 %v3399_v14, %v4132_v45  ;;  %v2908_v29 = vadd.f32 %v2907_v60, %v2906_v12  ;;  %v2909_v20 = vpop.f32.mrf.mxu1 }
 0x224   : > { %2418 = vst [vmem:[%s4174_s14 + $0x20] sm:$0xff] %v2386_v3  ;;  %v2330_v2 = vadd.f32 1.0, %v3401_v19  ;;  %3420 = vpow2.f32 %v2286_v42  ;;  %v2239_v37 = vsub.f32 0.0, %v4208_v52 }
 0x225   : > { %v3403_v25 = vpop.eup %3402  ;;  %2422 = vst [vmem:[%s4174_s14 + $0x40] sm:$0xff] %v2390_v35  ;;  %v2169_v40 = vmul.f32 %v2908_v29, %v4099_v34  ;;  %v2910_v49 = vpop.f32.mrf.mxu1 }
 0x226   : > { %v3405_v43 = vpop.eup %3404  ;;  %v2387_v32 = vmul.f32 %v3403_v25, %v4139_v23  ;;  %3422 = vrcp.f32 %v2330_v2  ;;  %v2288_v8 = vmul.f32 1.442695, %v2239_v37  ;;  %v2911_v45 = vadd.f32 %v2910_v49, %v2909_v20 }
 0x227   : > { %v3407_v55 = vpop.eup %3406  ;;  %v2391_v38 = vmul.f32 %v3405_v43, %v4142_v24  ;;  %v4218_v7 = vadd.f32 %v4104_v36, %v2169_v40  ;;  %v2912_v44 = vpop.f32.mrf.mxu1 }
 0x228   : > { %2419 = vst [vmem:[%s4174_s14 + $0x28] sm:$0xff] %v2387_v32  ;;  %v2331_v47 = vadd.f32 1.0, %v3407_v55  ;;  %3424 = vpow2.f32 %v2288_v8  ;;  %v2170_v54 = vmul.f32 %v2911_v45, %v4099_v34 }
 0x229   : > { %v3409_v58 = vpop.eup %3408  ;;  %2423 = vst [vmem:[%s4174_s14 + $0x48] sm:$0xff] %v2391_v38  ;;  %v2240_v23 = vsub.f32 0.0, %v4218_v7  ;;  %v2913_v51 = vpop.f32.mrf.mxu1 }
 0x22a   : > { %v3411_v16 = vpop.eup %3410  ;;  %v2388_v50 = vmul.f32 %v3409_v58, %v4149_v59  ;;  %3426 = vrcp.f32 %v2331_v47  ;;  %v4226_v24 = vadd.f32 %v4104_v36, %v2170_v54  ;;  %v2914_v41 = vadd.f32 %v2913_v51, %v2912_v44 }
 0x22b   : > { %v3413_v53 = vpop.eup %3412  ;;  %v2392_v56 = vmul.f32 %v3411_v16, %v4152_v33  ;;  %v2290_v61 = vmul.f32 1.442695, %v2240_v23  ;;  %v2915_v62 = vpop.f32.mrf.mxu1 }
 0x22c   : > { %2420 = vst [vmem:[%s4174_s14 + $0x30] sm:$0xff] %v2388_v50  ;;  %v2332_v17 = vadd.f32 1.0, %v3413_v53  ;;  %v2241_v28 = vsub.f32 0.0, %v4226_v24  ;;  %v2171_v31 = vmul.f32 %v2914_v41, %v4099_v34 }
 0x22d   : > { %v3415_v1 = vpop.eup %3414  ;;  %2424 = vst [vmem:[%s4174_s14 + $0x50] sm:$0xff] %v2392_v56  ;;  %3428 = vpow2.f32 %v2290_v61  ;;  %v2916_v59 = vpop.f32.mrf.mxu1 }
 0x22e   : > { %v3417_v13 = vpop.eup %3416  ;;  %v2389_v46 = vmul.f32 %v3415_v1, %v4159_v0  ;;  %3430 = vrcp.f32 %v2332_v17  ;;  %v2292_v22 = vmul.f32 1.442695, %v2241_v28  ;;  %v4235_v33 = vadd.f32 %v4104_v36, %v2171_v31 }
 0x22f   : > { %v3419_v4 = vpop.eup %3418  ;;  %v2393_v21 = vmul.f32 %v3417_v13, %v4162_v39  ;;  %v2917_v5 = vadd.f32 %v2916_v59, %v2915_v62  ;;  %v2918_v6 = vpop.f32.mrf.mxu1 }
 0x230   : > { %2421 = vst [vmem:[%s4174_s14 + $0x38] sm:$0xff] %v2389_v46  ;;  %v2333_v57 = vadd.f32 1.0, %v3419_v4  ;;  %3432 = vpow2.f32 %v2292_v22  ;;  %v2242_v9 = vsub.f32 0.0, %v4235_v33 }
 0x231   : > { %v3421_v30 = vpop.eup %3420  ;;  %2425 = vst [vmem:[%s4174_s14 + $0x58] sm:$0xff] %v2393_v21  ;;  %v2172_v12 = vmul.f32 %v2917_v5, %v4099_v34  ;;  %v2919_v0 = vpop.f32.mrf.mxu1 }
 0x232   : > { %3434 = vrcp.f32 %v2333_v57  ;;  %v2334_v26 = vadd.f32 1.0, %v3421_v30  ;;  %v2294_v63 = vmul.f32 1.442695, %v2242_v9  ;;  %v2920_v15 = vadd.f32 %v2919_v0, %v2918_v6 }
 0x233   : > { %v3423_v60 = vpop.eup %3422  ;;  %v4243_v39 = vadd.f32 %v4104_v36, %v2172_v12  ;;  %v2921_v14 = vpop.f32.mrf.mxu1 }
 0x234   : > { %v2394_v3 = vmul.f32 %v3423_v60, %v4169_v11  ;;  %3436 = vrcp.f32 %v2334_v26  ;;  %v2173_v42 = vmul.f32 %v2920_v15, %v4099_v34 }
 0x235   : > { %v3425_v19 = vpop.eup %3424  ;;  %3438 = vpow2.f32 %v2294_v63  ;;  %v2243_v35 = vsub.f32 0.0, %v4243_v39  ;;  %v2922_v29 = vpop.f32.mrf.mxu1 }
 0x236   : > { %2426 = vst [vmem:[%s4174_s14 + $0x60] sm:$0xff] %v2394_v3  ;;  %v2335_v20 = vadd.f32 1.0, %v3425_v19  ;;  %v4250_v2 = vadd.f32 %v4104_v36, %v2173_v42  ;;  %v2923_v37 = vadd.f32 %v2922_v29, %v2921_v14 }
 0x237   : > { %v3427_v25 = vpop.eup %3426  ;;  %v2296_v40 = vmul.f32 1.442695, %v2243_v35  ;;  %v2924_v49 = vpop.f32.mrf.mxu1 }
 0x238   : > { %v2395_v11 = vmul.f32 %v3427_v25, %v4180_v48  ;;  %3440 = vrcp.f32 %v2335_v20  ;;  %v2244_v43 = vsub.f32 0.0, %v4250_v2  ;;  %v2174_v32 = vmul.f32 %v2923_v37, %v4099_v34 }
 0x239   : > { %3442 = vpow2.f32 %v2296_v40  ;;  %v2925_v8 = vpop.f32.mrf.mxu1 }
 0x23a   : > { %v3429_v45 = vpop.eup %3428  ;;  %2427 = vst [vmem:[%s4174_s14 + $0x68] sm:$0xff] %v2395_v11  ;;  %v2298_v55 = vmul.f32 1.442695, %v2244_v43  ;;  %v4257_v38 = vadd.f32 %v4104_v36, %v2174_v32  ;;  %v2926_v44 = vadd.f32 %v2925_v8, %v2924_v49 }
 0x23b   : > { %v3431_v47 = vpop.eup %3430  ;;  %v2336_v54 = vadd.f32 1.0, %v3429_v45  ;;  %v2927_v58 = vpop.f32.mrf.mxu1 }
 0x23c   : > { %v2396_v48 = vmul.f32 %v3431_v47, %v4187_v10  ;;  %3444 = vpow2.f32 %v2298_v55  ;;  %v2245_v23 = vsub.f32 0.0, %v4257_v38  ;;  %v2175_v51 = vmul.f32 %v2926_v44, %v4099_v34 }
 0x23d   : > { %v3433_v16 = vpop.eup %3432  ;;  %3446 = vrcp.f32 %v2336_v54  ;;  %v2928_v50 = vpop.f32.mrf.mxu1 }
 0x23e   : > { %2428 = vst [vmem:[%s4174_s14 + $0x70] sm:$0xff] %v2396_v48  ;;  %v2337_v41 = vadd.f32 1.0, %v3433_v16  ;;  %v2300_v53 = vmul.f32 1.442695, %v2245_v23  ;;  %v4264_v56 = vadd.f32 %v4104_v36, %v2175_v51  ;;  %v2929_v61 = vadd.f32 %v2928_v50, %v2927_v58 }
 0x23f   : > { %v3435_v62 = vpop.eup %3434  ;;  %v2930_v17 = vpop.f32.mrf.mxu1 }
 0x240   : > { %v2397_v10 = vmul.f32 %v3435_v62, %v4195_v27  ;;  %3448 = vrcp.f32 %v2337_v41  ;;  %v2246_v28 = vsub.f32 0.0, %v4264_v56  ;;  %v2176_v31 = vmul.f32 %v2929_v61, %v4099_v34 }
 0x241   : > { %v3437_v1 = vpop.eup %3436  ;;  %3450 = vpow2.f32 %v2300_v53  ;;  %v2931_v59 = vpop.f32.mrf.mxu1 }
 0x242   : > { %v3439_v13 = vpop.eup %3438  ;;  %2429 = vst [vmem:[%s4174_s14 + $0x78] sm:$0xff] %v2397_v10  ;;  %v2398_v46 = vmul.f32 %v3437_v1, %v4201_v18  ;;  %v2302_v22 = vmul.f32 1.442695, %v2246_v28  ;;  %v4272_v4 = vadd.f32 %v4104_v36, %v2176_v31  ;;  %v2932_v21 = vadd.f32 %v2931_v59, %v2930_v17 }
 0x243   : > { %v2338_v5 = vadd.f32 1.0, %v3439_v13  ;;  %v2933_v27 = vpop.f32.mrf.mxu1 }
 0x244   : > { %2430 = vst [vmem:[%s4174_s14 + $0x80] sm:$0xff] %v2398_v46  ;;  %3452 = vpow2.f32 %v2302_v22  ;;  %v2247_v6 = vsub.f32 0.0, %v4272_v4  ;;  %v2177_v57 = vmul.f32 %v2932_v21, %v4099_v34 }
 0x245   : > { %v3441_v9 = vpop.eup %3440  ;;  %3454 = vrcp.f32 %v2338_v5  ;;  %v2934_v30 = vpop.f32.mrf.mxu1 }
 0x246   : > { %v3443_v12 = vpop.eup %3442  ;;  %v2399_v18 = vmul.f32 %v3441_v9, %v4208_v52  ;;  %v2304_v0 = vmul.f32 1.442695, %v2247_v6  ;;  %v4279_v26 = vadd.f32 %v4104_v36, %v2177_v57  ;;  %v2935_v63 = vadd.f32 %v2934_v30, %v2933_v27 }
 0x247   : > { %v2339_v15 = vadd.f32 1.0, %v3443_v12  ;;  %v2936_v60 = vpop.f32.mrf.mxu1 }
 0x248   : > { %2431 = vst [vmem:[%s4174_s14 + $0x88] sm:$0xff] %v2399_v18  ;;  %3456 = vpow2.f32 %v2304_v0  ;;  %v2248_v14 = vsub.f32 0.0, %v4279_v26  ;;  %v2178_v3 = vmul.f32 %v2935_v63, %v4099_v34 }
 0x249   : > { %v3445_v42 = vpop.eup %3444  ;;  %3458 = vrcp.f32 %v2339_v15  ;;  %v2937_v19 = vpop.f32.mrf.mxu1 }
 0x24a   : > { %v3447_v35 = vpop.eup %3446  ;;  %v2340_v29 = vadd.f32 1.0, %v3445_v42  ;;  %v2306_v52 = vmul.f32 1.442695, %v2248_v14  ;;  %v4285_v20 = vadd.f32 %v4104_v36, %v2178_v3  ;;  %v2938_v37 = vadd.f32 %v2937_v19, %v2936_v60 }
 0x24b   : > { %v2400_v25 = vmul.f32 %v3447_v35, %v4218_v7  ;;  %v2939_v40 = vpop.f32.mrf.mxu1 }
 0x24c   : > { %3460 = vrcp.f32 %v2340_v29  ;;  %v2249_v49 = vsub.f32 0.0, %v4285_v20  ;;  %v2179_v11 = vmul.f32 %v2938_v37, %v4099_v34 }
 0x24d   : > { %v3449_v43 = vpop.eup %3448  ;;  %2432 = vst [vmem:[%s4174_s14 + $0x90] sm:$0xff] %v2400_v25  ;;  %3462 = vpow2.f32 %v2306_v52  ;;  %v2940_v32 = vpop.f32.mrf.mxu1 }
 0x24e   : > { %v3451_v8 = vpop.eup %3450  ;;  %v2401_v45 = vmul.f32 %v3449_v43, %v4226_v24  ;;  %v2308_v55 = vmul.f32 1.442695, %v2249_v49  ;;  %v4293_v44 = vadd.f32 %v4104_v36, %v2179_v11  ;;  %v2941_v47 = vadd.f32 %v2940_v32, %v2939_v40 }
 0x24f   : > { %v2341_v7 = vadd.f32 1.0, %v3451_v8  ;;  %v2942_v54 = vpop.f32.mrf.mxu1 }
 0x250   : > { %2433 = vst [vmem:[%s4174_s14 + $0x98] sm:$0xff] %v2401_v45  ;;  %3464 = vpow2.f32 %v2308_v55  ;;  %v2250_v58 = vsub.f32 0.0, %v4293_v44  ;;  %v2180_v48 = vmul.f32 %v2941_v47, %v4099_v34 }
 0x251   : > { %v3453_v23 = vpop.eup %3452  ;;  %3466 = vrcp.f32 %v2341_v7  ;;  %v2943_v51 = vpop.f32.mrf.mxu1 }
 0x252   : > { %v3455_v16 = vpop.eup %3454  ;;  %v2342_v50 = vadd.f32 1.0, %v3453_v23  ;;  %v2310_v24 = vmul.f32 1.442695, %v2250_v58  ;;  %v4299_v41 = vadd.f32 %v4104_v36, %v2180_v48  ;;  %v2944_v53 = vadd.f32 %v2943_v51, %v2942_v54 }
 0x253   : > { %v2402_v61 = vmul.f32 %v3455_v16, %v4235_v33  ;;  %v2945_v62 = vpop.f32.mrf.mxu1 }
 0x254   : > { %3468 = vrcp.f32 %v2342_v50  ;;  %v2251_v17 = vsub.f32 0.0, %v4299_v41  ;;  %v2181_v10 = vmul.f32 %v2944_v53, %v4099_v34 }
 0x255   : > { %v3457_v28 = vpop.eup %3456  ;;  %2434 = vst [vmem:[%s4174_s14 + $0xa0] sm:$0xff] %v2402_v61  ;;  %3470 = vpow2.f32 %v2310_v24  ;;  %v2946_v31 = vpop.f32.mrf.mxu1 }
 0x256   : > { %v3459_v1 = vpop.eup %3458  ;;  %v2343_v59 = vadd.f32 1.0, %v3457_v28  ;;  %v2312_v13 = vmul.f32 1.442695, %v2251_v17  ;;  %v2220_v46 = vadd.f32 %v4104_v36, %v2181_v10  ;;  %v2947_v22 = vadd.f32 %v2946_v31, %v2945_v62 }
 0x257   : > { %v2403_v33 = vmul.f32 %v3459_v1, %v4243_v39 }
 0x258   : > { %3472 = vrcp.f32 %v2343_v59  ;;  %v2252_v21 = vsub.f32 0.0, %v2220_v46  ;;  %v2182_v5 = vmul.f32 %v2947_v22, %v4099_v34 }
 0x259   : > { %v3461_v27 = vpop.eup %3460  ;;  %2435 = vst [vmem:[%s4174_s14 + $0xa8] sm:$0xff] %v2403_v33  ;;  %3474 = vpow2.f32 %v2312_v13 }
 0x25a   : > { %v3463_v6 = vpop.eup %3462  ;;  %v2404_v57 = vmul.f32 %v3461_v27, %v4250_v2  ;;  %v2314_v9 = vmul.f32 1.442695, %v2252_v21  ;;  %v2221_v30 = vadd.f32 %v4104_v36, %v2182_v5 }
 0x25b   : > { %v2344_v12 = vadd.f32 1.0, %v3463_v6 }
 0x25c   : > { %2436 = vst [vmem:[%s4174_s14 + $0xb0] sm:$0xff] %v2404_v57  ;;  %3476 = vpow2.f32 %v2314_v9  ;;  %v2253_v18 = vsub.f32 0.0, %v2221_v30 }
 0x25d   : > { %v3465_v39 = vpop.eup %3464  ;;  %3478 = vrcp.f32 %v2344_v12 }
 0x25e   : > { %v3467_v0 = vpop.eup %3466  ;;  %v2345_v63 = vadd.f32 1.0, %v3465_v39  ;;  %v2316_v34 = vmul.f32 1.442695, %v2253_v18 }
 0x25f   : > { %v2405_v15 = vmul.f32 %v3467_v0, %v4257_v38 }
 0x260   : > { %3480 = vrcp.f32 %v2345_v63 }
 0x261   : > { %v3469_v60 = vpop.eup %3468  ;;  %2437 = vst [vmem:[%s4174_s14 + $0xb8] sm:$0xff] %v2405_v15  ;;  %3482 = vpow2.f32 %v2316_v34 }
 0x262   : > { %v3471_v2 = vpop.eup %3470  ;;  %v2406_v36 = vmul.f32 %v3469_v60, %v4264_v56 }
 0x263   : > { %v2346_v14 = vadd.f32 1.0, %v3471_v2 }
 0x264   : > { %2438 = vst [vmem:[%s4174_s14 + $0xc0] sm:$0xff] %v2406_v36 }
 0x265   : > { %v3473_v3 = vpop.eup %3472  ;;  %3484 = vrcp.f32 %v2346_v14 }
 0x266   : > { %v3475_v42 = vpop.eup %3474  ;;  %v2407_v19 = vmul.f32 %v3473_v3, %v4272_v4 }
 0x267   : > { %v2347_v35 = vadd.f32 1.0, %v3475_v42 }
 0x268   : > { %2439 = vst [vmem:[%s4174_s14 + $0xc8] sm:$0xff] %v2407_v19 }
 0x269   : > { %v3477_v38 = vpop.eup %3476  ;;  %3486 = vrcp.f32 %v2347_v35 }
 0x26a   : > { %v3479_v29 = vpop.eup %3478  ;;  %v2348_v52 = vadd.f32 1.0, %v3477_v38 }
 0x26b   : > { %v2408_v37 = vmul.f32 %v3479_v29, %v4279_v26 }
 0x26c   : > { %3488 = vrcp.f32 %v2348_v52 }
 0x26d   : > { %v3481_v56 = vpop.eup %3480  ;;  %2440 = vst [vmem:[%s4174_s14 + $0xd0] sm:$0xff] %v2408_v37 }
 0x26e   : > { %v3483_v25 = vpop.eup %3482  ;;  %v2409_v40 = vmul.f32 %v3481_v56, %v4285_v20 }
 0x26f   : > { %v2349_v49 = vadd.f32 1.0, %v3483_v25 }
 0x270   : > { %2441 = vst [vmem:[%s4174_s14 + $0xd8] sm:$0xff] %v2409_v40 }
 0x271   : > { %3490 = vrcp.f32 %v2349_v49 }
 0x272   : > { %v3485_v4 = vpop.eup %3484 }
 0x273   : > { %v2410_v11 = vmul.f32 %v3485_v4, %v4293_v44 }
 0x275   : > { %2442 = vst [vmem:[%s4174_s14 + $0xe0] sm:$0xff] %v2410_v11 }
 0x276   : > { %v3487_v43 = vpop.eup %3486 }
 0x277   : > { %v2411_v32 = vmul.f32 %v3487_v43, %v4299_v41 }
 0x279   : > { %v3489_v8 = vpop.eup %3488  ;;  %2443 = vst [vmem:[%s4174_s14 + $0xe8] sm:$0xff] %v2411_v32 }
 0x27a   : > { %v2412_v26 = vmul.f32 %v3489_v8, %v2220_v46 }
 0x27c   : > { %2444 = vst [vmem:[%s4174_s14 + $0xf0] sm:$0xff] %v2412_v26 }
 0x27e   : > { %v3491_v45 = vpop.eup %3490 }
 0x27f   : > { %v2413_v55 = vmul.f32 %v3491_v45, %v2221_v30 }
 0x281   : > { %2445 = vst [vmem:[%s4174_s14 + $0xf8] sm:$0xff] %v2413_v55 }
 0x282 PF: > { %s20_s13 = sadd.s32 1, %s3498_s13  }
 0x283   : > { %p17_p4 = scmp.ge.s32.totalorder %s20_s13, 4  }
 0x285   :  { %19 = sbr.rel (!%p17_p4) target bundleno = 1 (0x1), region = 93 }

// kernel: bottleneck_csp2_forward.4
= control target key start
LH: loop header
LB: loop body
LE: loop exit
PB: predicated region body
PF: predicated region fallthrough
CT: control target
= control target key end

     0   :  { %s8032_s24 = smov 0   ;;  %s10977_s0 = inlined_call_operand.vmem [shape: bf16[2,256,128], index: 0, kind: input, shape index: {}]   ;;  %s10978_s1 = inlined_call_operand.vmem [shape: bf16[128,128], index: 1, kind: input, shape index: {}]   ;;  %s10979_s2 = inlined_call_operand.vmem [shape: f32[1,128], index: 2, kind: input, shape index: {}]   ;;  %s10980_s3 = inlined_call_operand.vmem [shape: f32[1,128], index: 3, kind: input, shape index: {}]   ;;  %s10981_s4 = inlined_call_operand.vmem [shape: bf16[9,128,128], index: 4, kind: input, shape index: {}]   ;;  %s10982_s5 = inlined_call_operand.vmem [shape: f32[1,128], index: 5, kind: input, shape index: {}]   ;;  %s10983_s6 = inlined_call_operand.vmem [shape: f32[1,128], index: 6, kind: input, shape index: {}]   ;;  %s10984_s7 = inlined_call_operand.vmem [shape: bf16[2,256,128], index: 7, kind: output, shape index: {}]  }
   0x1 LB: > { %s6320_s25 = sadd.s32 4294967295, %s7989_s24   ;;  %p6324_p0 = scmp.ge.s32.totalorder %s7989_s24, 1  ;;  %s7989_s24 = sphi %s8032_s24, %s17_s24  }
   0x2   : > { %p237_p1 = scmp.lt.s32.totalorder %s7989_s24, 3 }
   0x4   : > { %p238_p2 = pnand %p6324_p0, %p237_p1 }
   0x6   : > { %241 = sbr.rel (%p238_p2) target bundleno = 1036 (0x40c), region = 48 }
   0xb   : > { %v7547_v0 = vld [vmem:[%s10978_s1 + $0x38] sm:$0xff]   ;;  %p269_p3 = scmp.lt.s32.totalorder %s6320_s25, 1  ;;  %v7548_v1 = vld [vmem:[%s10978_s1 + $0x30] sm:$0xff]   ;;  %v7549_v2 = vld [vmem:[%s10978_s1 + $0x28] sm:$0xff]   ;;  %v7991_v24 = vmov 0   ;;  %vm936_vm0 = vcmask 1043458  }
   0xc   : > { %7022 = vmatprep.subr.bf16.mxu0 %v7547_v0  ;;  %v7550_v3 = vld [vmem:[%s10978_s1 + $0x20] sm:$0xff]   ;;  %v7551_v5 = vld [vmem:[%s10978_s1 + $0x18] sm:$0xff]   ;;  %v7552_v6 = vld [vmem:[%s10978_s1 + $0x10] sm:$0xff]   ;;  %919 = vst [vmem:[#allocation2 + $0x8] sm:$0xe] %v7991_v24  ;;  %vm942_vm3 = vcmask 1043459  }
   0xd   : > { %s11264_s25 = smov (!%p269_p3, %s6320_s25), 1  ;;  %7023 = vmatpush3.bf16.msra.mxu0 %v7547_v0  ;;  %v7553_v7 = vld [vmem:[%s10978_s1 + $0x8] sm:$0xff]   ;;  %v7554_v8 = vld [vmem:[%s10978_s1] sm:$0xff]   ;;  %920 = vst [vmem:[#allocation2 + $0xc] sm:$0xf] %v7991_v24  ;;  %vm930_vm5 = vcmask 1042433  }
   0xe   : > { %7024 = vmatprep.subr.bf16.mxu0 %v7548_v1  ;;  %s6694_s9 = sshll.u32 %s11264_s25, 7  ;;  %921 = vst [vmem:[#allocation2 + $0x10] sm:$0x3] %v7991_v24  ;;  %928 = vst [vmem:[#allocation2 + $0xa4] sm:$0xf] %v7991_v24  ;;  %vm10985_vm9 = vcmask 1041408  }
   0xf   : > { %s8057_s12 = scalar_lea.vmem %s10977_s0, %s6694_s9  ;;  %929 = vst [vmem:[#allocation2 + $0xa8] sm:$0x7] %v7991_v24  ;;  %vm937_vm1 = vsmask.f32 3338  ;;  %v939_v26 = vld [vmem:[#allocation2 + $0x18] sm:$0xc]  ;;  %s10673_s23 = scalar_lea.vmem %s10984_s7, %s6694_s9 }
  0x10   : > { %v7555_v4 = vld [vmem:[%s8057_s12] sm:$0xff]   ;;  %v7556_v9 = vld [vmem:[%s8057_s12 + $0x8] sm:$0xff]   ;;  %v7557_v10 = vld [vmem:[%s8057_s12 + $0x10] sm:$0xff]   ;;  %vm943_vm4 = vsmask.f32 7950  ;;  %vm948_vm12 = vcmask 1040384  }
  0x11   : > { %7025 = vmatpush3.bf16.msra.mxu0 %v7548_v1  ;;  %7038 = vmatprep.mubr.bf16.mxu0 %v7555_v4  ;;  %v7558_v11 = vld [vmem:[%s8057_s12 + $0x18] sm:$0xff]   ;;  %v7559_v12 = vld [vmem:[%s8057_s12 + $0x20] sm:$0xff]   ;;  %v7560_v13 = vld [vmem:[%s8057_s12 + $0x28] sm:$0xff]   ;;  %vm931_vm6 = vsmask.f32 2310  ;;  %vm922_vm15 = vcmask 1043457  }
  0x12   : > { %7026 = vmatprep.subr.bf16.mxu0 %v7549_v2  ;;  %v7561_v14 = vld [vmem:[%s8057_s12 + $0x30] sm:$0xff]   ;;  %v7562_v15 = vld [vmem:[%s8057_s12 + $0x38] sm:$0xff]   ;;  %v7563_v16 = vld [vmem:[%s8057_s12 + $0x40] sm:$0xff]   ;;  %vm955_vm10 = vsmask.f32 1282 }
  0x13   : > { %v7564_v17 = vld [vmem:[%s8057_s12 + $0x48] sm:$0xff]   ;;  %v7565_v18 = vld [vmem:[%s8057_s12 + $0x50] sm:$0xff]   ;;  %v7566_v19 = vld [vmem:[%s8057_s12 + $0x58] sm:$0xff]   ;;  %vm10986_vm13 = vsmask.f32 256 }
  0x14   : > { %v7567_v20 = vld [vmem:[%s8057_s12 + $0x60] sm:$0xff]   ;;  %v7568_v21 = vld [vmem:[%s8057_s12 + $0x68] sm:$0xff]   ;;  %v7569_v22 = vld [vmem:[%s8057_s12 + $0x70] sm:$0xff]  }
  0x15   : > { %7027 = vmatpush3.bf16.msra.mxu0 %v7549_v2  ;;  %v7570_v23 = vld [vmem:[%s8057_s12 + $0x78] sm:$0xff]   ;;  %vm8091_vm2 = vmand %vm936_vm0, %vm937_vm1  ;;  %v933_v29 = vld [vmem:[#allocation2 + $0x10] sm:$0x6]  ;;  %vm923_vm1 = vsmask.f32 7942 }
  0x16   : > { %7028 = vmatprep.subr.bf16.mxu0 %v7550_v3  ;;  %v940_v27 = vsel %vm8091_vm2, 0, %v939_v26  ;;  %vm8097_vm7 = vmand %vm930_vm5, %vm931_vm6  ;;  %v945_v32 = vld [vmem:[#allocation2 + $0x20] sm:$0x8]  ;;  %v957_v35 = vld [vmem:[#allocation2 + $0x2c] sm:$0x3]  ;;  %vm1080_vm6 = vcmask 1043456  }
  0x17   : > { %941 = vst [vmem:[#allocation2 + $0x18] sm:$0xc] %v940_v27  ;;  %v934_v30 = vsel %vm8097_vm7, 0, %v933_v29  ;;  %vm8103_vm8 = vmand %vm942_vm3, %vm943_vm4  ;;  %v951_v37 = vld [vmem:[#allocation2 + $0x24] sm:$0x1]  ;;  %v7571_v46 = vld [vmem:[%s10981_s4 + $0x78] sm:$0xff]  }
  0x18   : > { %935 = vst [vmem:[#allocation2 + $0x10] sm:$0x6] %v934_v30  ;;  %v946_v33 = vsel %vm8103_vm8, 0, %v945_v32  ;;  %vm8110_vm11 = vmand %vm10985_vm9, %vm955_vm10  ;;  %v960_v40 = vld [vmem:[#allocation2 + $0x34] sm:$0x6]  ;;  %7070 = vmatprep.subr.bf16.mxu1 %v7571_v46  ;;  %v7572_v47 = vld [vmem:[%s10981_s4 + $0x38] sm:$0xff]  }
  0x19   : > { %7029 = vmatpush3.bf16.msra.mxu0 %v7550_v3  ;;  %947 = vst [vmem:[#allocation2 + $0x20] sm:$0x8] %v946_v33  ;;  %v958_v36 = vsel %vm8110_vm11, 0, %v957_v35  ;;  %vm8117_vm14 = vmand %vm948_vm12, %vm10986_vm13  ;;  %v961_v41 = vsel %vm8097_vm7, 0, %v960_v40  ;;  %v963_v42 = vld [vmem:[#allocation2 + $0x3c] sm:$0xc]  ;;  %7071 = vmatpush3.bf16.msra.mxu1 %v7571_v46 }
  0x1a   : > { %7030 = vmatprep.subr.bf16.mxu0 %v7551_v5  ;;  %959 = vst [vmem:[#allocation2 + $0x2c] sm:$0x3] %v958_v36  ;;  %v952_v39 = vsel %vm8117_vm14, 0, %v951_v37  ;;  %962 = vst [vmem:[#allocation2 + $0x34] sm:$0x6] %v961_v41  ;;  %v964_v43 = vsel %vm8091_vm2, 0, %v963_v42 }
  0x1b   : > { %953 = vst [vmem:[#allocation2 + $0x24] sm:$0x1] %v952_v39  ;;  %965 = vst [vmem:[#allocation2 + $0x3c] sm:$0xc] %v964_v43  ;;  %v966_v44 = vld [vmem:[#allocation2 + $0x44] sm:$0x8] }
  0x1c   : > { %v967_v45 = vsel %vm8103_vm8, 0, %v966_v44  ;;  %v7573_v48 = vld [vmem:[%s10981_s4 + $0x70] sm:$0xff]   ;;  %v7575_v52 = vld [vmem:[%s10981_s4 + $0x68] sm:$0xff]   ;;  %v975_v56 = vld [vmem:[#allocation2 + $0x58] sm:$0x6] }
  0x1d   : > { %7031 = vmatpush3.bf16.msra.mxu0 %v7551_v5  ;;  %968 = vst [vmem:[#allocation2 + $0x44] sm:$0x8] %v967_v45  ;;  %v972_v49 = vld [vmem:[#allocation2 + $0x50] sm:$0x3]  ;;  %7072 = vmatprep.subr.bf16.mxu1 %v7573_v48  ;;  %v7576_v53 = vld [vmem:[%s10981_s4 + $0x28] sm:$0xff]   ;;  %v976_v57 = vsel %vm8097_vm7, 0, %v975_v56 }
  0x1e   : > { %7032 = vmatprep.subr.bf16.mxu0 %v7552_v6  ;;  %v973_v50 = vsel %vm8110_vm11, 0, %v972_v49  ;;  %v7574_v51 = vld [vmem:[%s10981_s4 + $0x30] sm:$0xff]   ;;  %7073 = vmatpush3.bf16.msra.mxu1 %v7573_v48  ;;  %v969_v54 = vld [vmem:[#allocation2 + $0x48] sm:$0x1]  ;;  %977 = vst [vmem:[#allocation2 + $0x58] sm:$0x6] %v976_v57 }
  0x1f   : > { %974 = vst [vmem:[#allocation2 + $0x50] sm:$0x3] %v973_v50  ;;  %7074 = vmatprep.subr.bf16.mxu1 %v7575_v52  ;;  %v970_v55 = vsel %vm8117_vm14, 0, %v969_v54  ;;  %v7577_v58 = vld [vmem:[%s10981_s4 + $0x60] sm:$0xff]   ;;  %v7579_v62 = vld [vmem:[%s10981_s4 + $0x58] sm:$0xff]   ;;  %v7581_v0 = vld [vmem:[%s10981_s4 + $0x50] sm:$0xff]  }
  0x20   : > { %971 = vst [vmem:[#allocation2 + $0x48] sm:$0x1] %v970_v55  ;;  %v7578_v59 = vld [vmem:[%s10981_s4 + $0x20] sm:$0xff]   ;;  %v7580_v63 = vld [vmem:[%s10981_s4 + $0x18] sm:$0xff]   ;;  %v7582_v1 = vld [vmem:[%s10981_s4 + $0x10] sm:$0xff]  }
  0x21   : > { %7033 = vmatpush3.bf16.msra.mxu0 %v7552_v6  ;;  %v978_v60 = vld [vmem:[#allocation2 + $0x60] sm:$0xc]  ;;  %v981_v2 = vld [vmem:[#allocation2 + $0x68] sm:$0x8]  ;;  %v987_v4 = vld [vmem:[#allocation2 + $0x74] sm:$0x3] }
  0x22   : > { %7034 = vmatprep.subr.bf16.mxu0 %v7553_v7  ;;  %7075 = vmatpush3.bf16.msra.mxu1 %v7575_v52  ;;  %v979_v61 = vsel %vm8091_vm2, 0, %v978_v60  ;;  %v982_v3 = vsel %vm8103_vm8, 0, %v981_v2  ;;  %v7583_v5 = vld [vmem:[%s10981_s4 + $0x48] sm:$0xff]   ;;  %v988_v6 = vsel %vm8110_vm11, 0, %v987_v4  ;;  %vm1035_vm3 = vsmask.f32 7946 }
  0x23   : > { %7076 = vmatprep.subr.bf16.mxu1 %v7577_v58  ;;  %980 = vst [vmem:[#allocation2 + $0x60] sm:$0xc] %v979_v61  ;;  %983 = vst [vmem:[#allocation2 + $0x68] sm:$0x8] %v982_v3  ;;  %v996_v54 = vld [vmem:[#allocation2 + $0x8c] sm:$0x8] }
  0x24   : > { %989 = vst [vmem:[#allocation2 + $0x74] sm:$0x3] %v988_v6  ;;  %v997_v57 = vsel %vm8103_vm8, 0, %v996_v54  ;;  %v999_v3 = vld [vmem:[#allocation2 + $0x90] sm:$0x1] }
  0x25   : > { %7035 = vmatpush3.bf16.msra.mxu0 %v7553_v7  ;;  %v7584_v7 = vld [vmem:[%s10981_s4 + $0x8] sm:$0xff]   ;;  %998 = vst [vmem:[#allocation2 + $0x8c] sm:$0x8] %v997_v57  ;;  %vm1051_vm4 = vsmask.f32 3328 }
  0x26   : > { %7036 = vmatprep.subr.bf16.mxu0 %v7554_v8  ;;  %7077 = vmatpush3.bf16.msra.mxu1 %v7577_v58  ;;  %vm1052_vm5 = vsmask.f32 7440  ;;  %vm1011_vm10 = vsmask.f32 6416  ;;  %vm1112_vm12 = vsmask.f32 7938  ;;  %vm8378_vm9 = vmand %vm1080_vm6, %vm1051_vm4 }
  0x27   : > { %7078 = vmatprep.subr.bf16.mxu1 %v7579_v62 }
  0x29   : > { %7037 = vmatpush3.bf16.msra.mxu0 %v7554_v8  ;;  %v984_v8 = vld [vmem:[#allocation2 + $0x6c] sm:$0x1] }
  0x2a   : > { %7122 = vmatprep.subr.bf16.mxu0 %v7572_v47  ;;  %7079 = vmatpush3.bf16.msra.mxu1 %v7579_v62 }
  0x2b   : > { %7080 = vmatprep.subr.bf16.mxu1 %v7581_v0 }
  0x2c   : > { %7039 = vmatmul.mubr.bf16.vlgmr.msra.gmra.mxu0 %v7556_v9  ;;  %v985_v9 = vsel %vm8117_vm14, 0, %v984_v8 }
  0x2d   : > { %7042 = vmatprep.mubr.bf16.mxu0 %v7557_v10  ;;  %7123 = vmatpush3.bf16.msra.mxu0 %v7572_v47  ;;  %v7585_v10 = vld [vmem:[%s10981_s4 + $0x40] sm:$0xff]   ;;  %986 = vst [vmem:[#allocation2 + $0x6c] sm:$0x1] %v985_v9 }
  0x2e   : > { %7124 = vmatprep.subr.bf16.mxu0 %v7574_v51  ;;  %7081 = vmatpush3.bf16.msra.mxu1 %v7581_v0 }
  0x2f   : > { %7082 = vmatprep.subr.bf16.mxu1 %v7583_v5 }
  0x31   : > { %7125 = vmatpush3.bf16.msra.mxu0 %v7574_v51 }
  0x32   : > { %7126 = vmatprep.subr.bf16.mxu0 %v7576_v53  ;;  %7083 = vmatpush3.bf16.msra.mxu1 %v7583_v5 }
  0x33   : > { %7084 = vmatprep.subr.bf16.mxu1 %v7585_v10 }
  0x34   : > { %7043 = vmatmul.mubr.bf16.gmra.mxu0 %v7558_v11  ;;  %v7588_v11 = vld [vmem:[%s10981_s4] sm:$0xff]  }
  0x35   : > { %7046 = vmatprep.mubr.bf16.mxu0 %v7559_v12  ;;  %7127 = vmatpush3.bf16.msra.mxu0 %v7576_v53  ;;  %v990_v12 = vld [vmem:[#allocation2 + $0x7c] sm:$0x6] }
  0x36   : > { %7128 = vmatprep.subr.bf16.mxu0 %v7578_v59  ;;  %7085 = vmatpush3.bf16.msra.mxu1 %v7585_v10 }
  0x39   : > { %7129 = vmatpush3.bf16.msra.mxu0 %v7578_v59 }
  0x3a   : > { %7130 = vmatprep.subr.bf16.mxu0 %v7580_v63 }
  0x3c   : > { %7047 = vmatmul.mubr.bf16.gmra.mxu0 %v7560_v13  ;;  %v993_v13 = vld [vmem:[#allocation2 + $0x84] sm:$0xc] }
  0x3d   : > { %7050 = vmatprep.mubr.bf16.mxu0 %v7561_v14  ;;  %7131 = vmatpush3.bf16.msra.mxu0 %v7580_v63  ;;  %v991_v14 = vsel %vm8097_vm7, 0, %v990_v12  ;;  %v1002_v63 = vld [vmem:[#allocation2 + $0x98] sm:$0x3]  ;;  %vm1010_vm7 = vsmask.f32 2304 }
  0x3e   : > { %7132 = vmatprep.subr.bf16.mxu0 %v7582_v1  ;;  %992 = vst [vmem:[#allocation2 + $0x7c] sm:$0x6] %v991_v14  ;;  %v1003_v6 = vsel %vm8110_vm11, 0, %v1002_v63  ;;  %v1562_v14 = vld [vmem:[#allocation2 + $0xc] sm:$0xf]  ;;  %vm1041_vm11 = vcmask 1042432   ;;  %vm8388_vm13 = vmor %vm1010_vm7, %vm1011_vm10 }
  0x3f   : > { %1004 = vst [vmem:[#allocation2 + $0x98] sm:$0x3] %v1003_v6  ;;  %vm11083_vm10 = vsmask.f32 256 }
  0x41   : > { %7133 = vmatpush3.bf16.msra.mxu0 %v7582_v1 }
  0x42   : > { %7134 = vmatprep.subr.bf16.mxu0 %v7584_v7 }
  0x44   : > { %7051 = vmatmul.mubr.bf16.gmra.mxu0 %v7562_v15  ;;  %v994_v15 = vsel %vm8091_vm2, 0, %v993_v13  ;;  %vm8263_vm2 = vmand %vm922_vm15, %vm923_vm1 }
  0x45   : > { %7054 = vmatprep.mubr.bf16.mxu0 %v7563_v16  ;;  %7135 = vmatpush3.bf16.msra.mxu0 %v7584_v7  ;;  %995 = vst [vmem:[#allocation2 + $0x84] sm:$0xc] %v994_v15  ;;  %v8198_v16 = vld [vmem:[%s10979_s2] ss:$0 sm:$0xff]  ;;  %v1000_v7 = vsel %vm8117_vm14, 0, %v999_v3  ;;  %v8301_v3 = vld [vmem:[%s10981_s4 + $0xb8] sm:$0xff]   ;;  %vm8356_vm15 = vmand %vm936_vm0, %vm1035_vm3 }
  0x46   : > { %7136 = vmatprep.subr.bf16.mxu0 %v7588_v11  ;;  %1001 = vst [vmem:[#allocation2 + $0x90] sm:$0x1] %v1000_v7  ;;  %v1561_v15 = vld [vmem:[#allocation2 + $0x8] sm:$0xf]  ;;  %7174 = vmatprep.subr.bf16.mxu1 %v8301_v3  ;;  %vm8365_vm1 = vmor %vm1051_vm4, %vm1052_vm5  ;;  %vm1126_vm0 = vsmask.f32 1280 }
  0x47   : > { %vm1127_vm3 = vsmask.f32 5392  ;;  %vm1090_vm5 = vsmask.f32 4368  ;;  %vm8396_vm4 = vmand %vm1041_vm11, %vm1010_vm7 }
  0x48   : > { %vm8407_vm7 = vmand %vm1080_vm6, %vm1112_vm12  ;;  %vm11087_vm12 = vcmask 1041408  }
  0x49   : > { %7137 = vmatpush3.bf16.msra.mxu0 %v7588_v11  ;;  %vm8424_vm6 = vmor %vm1126_vm0, %vm1127_vm3 }
  0x4a   : > { %vm8432_vm11 = vmor %vm11083_vm10, %vm1090_vm5  ;;  %vm2009_vm5 = vsmask.f32 7424 }
  0x4b   : > { %vm8439_vm3 = vmand %vm11087_vm12, %vm1126_vm0  ;;  %vm1725_vm0 = vcmask 1046528  }
  0x4c   : > { %7055 = vmatmul.mubr.bf16.gmra.mxu0 %v7564_v17 }
  0x4d   : > { %7058 = vmatprep.mubr.bf16.mxu0 %v7565_v18  ;;  %v8203_v18 = vld [vmem:[%s10980_s3] ss:$0 sm:$0xff] }
  0x54   : > { %7059 = vmatmul.mubr.bf16.gmra.mxu0 %v7566_v19 }
  0x55   : > { %7062 = vmatprep.mubr.bf16.mxu0 %v7567_v20 }
  0x5c   : > { %7063 = vmatmul.mubr.bf16.gmra.mxu0 %v7568_v21 }
  0x5d   : > { %7066 = vmatprep.mubr.bf16.mxu0 %v7569_v22 }
  0x64   : > { %7067 = vmatmul.mubr.bf16.gmra.mxu0 %v7570_v23 }
  0xec   : > { %v7040_v17 = vpop.f32.mrf.mxu0 }
  0xed   : > { %v642_v19 = vmul.f32 %v7040_v17, %v8198_v16 }
  0xee   : > { %v506_v20 = vpop.f32.mrf.mxu0 }
  0xef   : > { %v8207_v21 = vadd.f32 %v8203_v18, %v642_v19  ;;  %v640_v22 = vmul.f32 %v8198_v16, %v506_v20 }
  0xf0   : > { %v7041_v23 = vpop.f32.mrf.mxu0 }
  0xf1   : > { %v713_v24 = vsub.f32 0.0, %v8207_v21  ;;  %v8212_v25 = vadd.f32 %v8203_v18, %v640_v22  ;;  %v643_v26 = vmul.f32 %v7041_v23, %v8198_v16  ;;  %v925_v22 = vld [vmem:[#allocation2 + $0xa0] sm:$0xe] }
  0xf2   : > { %v509_v27 = vpop.f32.mrf.mxu0 }
  0xf3   : > { %v747_v28 = vmul.f32 1.442695, %v713_v24  ;;  %v711_v29 = vsub.f32 0.0, %v8212_v25  ;;  %v8217_v30 = vadd.f32 %v8203_v18, %v643_v26  ;;  %v641_v32 = vmul.f32 %v8198_v16, %v509_v27 }
  0xf4   : > { %v7044_v33 = vpop.f32.mrf.mxu0 }
  0xf5   : > { %7706 = vpow2.f32 %v747_v28  ;;  %v743_v35 = vmul.f32 1.442695, %v711_v29  ;;  %v714_v36 = vsub.f32 0.0, %v8217_v30  ;;  %v8222_v37 = vadd.f32 %v8203_v18, %v641_v32 }
  0xf6   : > { %v646_v39 = vmul.f32 %v7044_v33, %v8198_v16  ;;  %v522_v40 = vpop.f32.mrf.mxu0  ;;  %v926_v28 = vsel %vm8263_vm2, 0, %v925_v22 }
  0xf7   : > { %7708 = vpow2.f32 %v743_v35  ;;  %v749_v41 = vmul.f32 1.442695, %v714_v36  ;;  %v712_v42 = vsub.f32 0.0, %v8222_v37  ;;  %v644_v43 = vmul.f32 %v8198_v16, %v522_v40  ;;  %927 = vst [vmem:[#allocation2 + $0xa0] sm:$0xe] %v926_v28 }
  0xf8   : > { %v8228_v44 = vadd.f32 %v8203_v18, %v646_v39  ;;  %v7045_v45 = vpop.f32.mrf.mxu0  ;;  %v1614_v35 = vld [vmem:[#allocation2 + $0x8] sm:$0xe] }
  0xf9   : > { %7710 = vpow2.f32 %v749_v41  ;;  %v745_v46 = vmul.f32 1.442695, %v712_v42  ;;  %v8231_v47 = vadd.f32 %v8203_v18, %v644_v43  ;;  %v647_v48 = vmul.f32 %v7045_v45, %v8198_v16 }
  0xfa   : > { %v717_v49 = vsub.f32 0.0, %v8228_v44  ;;  %v525_v50 = vpop.f32.mrf.mxu0  ;;  %v8279_v42 = vcombine.low %v1561_v15, %v1562_v14 }
  0xfb   : > { %7712 = vpow2.f32 %v745_v46  ;;  %v715_v51 = vsub.f32 0.0, %v8231_v47  ;;  %v8237_v52 = vadd.f32 %v8203_v18, %v647_v48  ;;  %v645_v53 = vmul.f32 %v8198_v16, %v525_v50 }
  0xfc   : > { %v755_v55 = vmul.f32 1.442695, %v717_v49  ;;  %v7048_v56 = vpop.f32.mrf.mxu0 }
  0xfd   : > { %v751_v58 = vmul.f32 1.442695, %v715_v51  ;;  %v718_v59 = vsub.f32 0.0, %v8237_v52  ;;  %v8244_v60 = vadd.f32 %v8203_v18, %v645_v53  ;;  %v650_v61 = vmul.f32 %v7048_v56, %v8198_v16 }
  0xfe   : > { %7714 = vpow2.f32 %v755_v55  ;;  %v538_v62 = vpop.f32.mrf.mxu0  ;;  %v8286_v53 = vcombine.low %v1614_v35, %v1562_v14 }
  0xff   : > { %7716 = vpow2.f32 %v751_v58  ;;  %v757_v0 = vmul.f32 1.442695, %v718_v59  ;;  %v716_v1 = vsub.f32 0.0, %v8244_v60  ;;  %v8249_v2 = vadd.f32 %v8203_v18, %v650_v61 }
 0x100   : > { %v648_v4 = vmul.f32 %v8198_v16, %v538_v62  ;;  %v7049_v5 = vpop.f32.mrf.mxu0  ;;  %v2013_v61 = vshll.u32 %v8279_v42, 16 }
 0x101   : > { %7718 = vpow2.f32 %v757_v0  ;;  %v753_v8 = vmul.f32 1.442695, %v716_v1  ;;  %v721_v9 = vsub.f32 0.0, %v8249_v2  ;;  %v651_v10 = vmul.f32 %v7049_v5, %v8198_v16 }
 0x102   : > { %v7707_v11 = vpop.eup %7706  ;;  %v8259_v12 = vadd.f32 %v8203_v18, %v648_v4  ;;  %v541_v13 = vpop.f32.mrf.mxu0 }
 0x103   : > { %v809_v34 = vadd.f32 1.0, %v7707_v11  ;;  %7720 = vpow2.f32 %v753_v8  ;;  %v763_v19 = vmul.f32 1.442695, %v721_v9  ;;  %v8268_v20 = vadd.f32 %v8203_v18, %v651_v10 }
 0x104   : > { %v7709_v23 = vpop.eup %7708  ;;  %v719_v24 = vsub.f32 0.0, %v8259_v12  ;;  %v649_v26 = vmul.f32 %v8198_v16, %v541_v13  ;;  %v7052_v27 = vpop.f32.mrf.mxu0  ;;  %v2011_v8 = vshrl.u32 %v8279_v42, 16 }
 0x105   : > { %7722 = vrcp.f32 %v809_v34  ;;  %v807_v29 = vadd.f32 1.0, %v7709_v23  ;;  %v722_v32 = vsub.f32 0.0, %v8268_v20  ;;  %v654_v33 = vmul.f32 %v7052_v27, %v8198_v16 }
 0x106   : > { %v7711_v36 = vpop.eup %7710  ;;  %7724 = vpow2.f32 %v763_v19  ;;  %v759_v39 = vmul.f32 1.442695, %v719_v24  ;;  %v8277_v40 = vadd.f32 %v8203_v18, %v649_v26  ;;  %v554_v41 = vpop.f32.mrf.mxu0  ;;  %v2015_v19 = vrot.slane %v2013_v61, 1 }
 0x107   : > { %7726 = vrcp.f32 %v807_v29  ;;  %v810_v43 = vadd.f32 1.0, %v7711_v36  ;;  %v765_v45 = vmul.f32 1.442695, %v722_v32  ;;  %v8282_v46 = vadd.f32 %v8203_v18, %v654_v33 }
 0x108   : > { %v7713_v48 = vpop.eup %7712  ;;  %7728 = vpow2.f32 %v759_v39  ;;  %v720_v49 = vsub.f32 0.0, %v8277_v40  ;;  %v652_v50 = vmul.f32 %v8198_v16, %v554_v41  ;;  %v7053_v51 = vpop.f32.mrf.mxu0  ;;  %v1726_v32 = vrot.slane %v8286_v53, 1 }
 0x109   : > { %7730 = vrcp.f32 %v810_v43  ;;  %v808_v54 = vadd.f32 1.0, %v7713_v48  ;;  %v725_v55 = vsub.f32 0.0, %v8282_v46  ;;  %v655_v56 = vmul.f32 %v7053_v51, %v8198_v16 }
 0x10a   : > { %7732 = vpow2.f32 %v765_v45  ;;  %v761_v57 = vmul.f32 1.442695, %v720_v49  ;;  %v8291_v58 = vadd.f32 %v8203_v18, %v652_v50  ;;  %v557_v59 = vpop.f32.mrf.mxu0  ;;  %v8322_v45 = vor.u32 %v2015_v19, %v2011_v8 }
 0x10b   : > { %v7715_v62 = vpop.eup %7714  ;;  %7734 = vrcp.f32 %v808_v54  ;;  %v771_v63 = vmul.f32 1.442695, %v725_v55  ;;  %v8295_v0 = vadd.f32 %v8203_v18, %v655_v56  ;;  %v653_v1 = vmul.f32 %v8198_v16, %v557_v59 }
 0x10c   : > { %v7717_v4 = vpop.eup %7716  ;;  %v813_v5 = vadd.f32 1.0, %v7715_v62  ;;  %7736 = vpow2.f32 %v761_v57  ;;  %v723_v6 = vsub.f32 0.0, %v8291_v58  ;;  %v7056_v7 = vpop.f32.mrf.mxu0 }
 0x10d   : > { %v811_v9 = vadd.f32 1.0, %v7717_v4  ;;  %7738 = vpow2.f32 %v771_v63  ;;  %v726_v10 = vsub.f32 0.0, %v8295_v0  ;;  %v8307_v11 = vadd.f32 %v8203_v18, %v653_v1 }
 0x10e   : > { %v7719_v13 = vpop.eup %7718  ;;  %7740 = vrcp.f32 %v813_v5  ;;  %v767_v14 = vmul.f32 1.442695, %v723_v6  ;;  %v658_v15 = vmul.f32 %v7056_v7, %v8198_v16  ;;  %v570_v34 = vpop.f32.mrf.mxu0 }
 0x10f   : > { %7742 = vrcp.f32 %v811_v9  ;;  %v814_v22 = vadd.f32 1.0, %v7719_v13  ;;  %v773_v23 = vmul.f32 1.442695, %v726_v10  ;;  %v724_v24 = vsub.f32 0.0, %v8307_v11 }
 0x110   : > { %v7721_v26 = vpop.eup %7720  ;;  %7744 = vpow2.f32 %v767_v14  ;;  %v8313_v27 = vadd.f32 %v8203_v18, %v658_v15  ;;  %v656_v28 = vmul.f32 %v8198_v16, %v570_v34  ;;  %v7057_v29 = vpop.f32.mrf.mxu0  ;;  %v1076_v15 = vld [vmem:[#allocation2 + $0x18] sm:$0x8] }
 0x111   : > { %7746 = vrcp.f32 %v814_v22  ;;  %v812_v33 = vadd.f32 1.0, %v7721_v26  ;;  %v769_v35 = vmul.f32 1.442695, %v724_v24  ;;  %v659_v36 = vmul.f32 %v7057_v29, %v8198_v16 }
 0x112   : > { %v7723_v39 = vpop.eup %7722  ;;  %7748 = vpow2.f32 %v773_v23  ;;  %v729_v41 = vsub.f32 0.0, %v8313_v27  ;;  %v8320_v42 = vadd.f32 %v8203_v18, %v656_v28  ;;  %v573_v43 = vpop.f32.mrf.mxu0 }
 0x113   : > { %v7725_v48 = vpop.eup %7724  ;;  %v873_v49 = vmul.f32 %v7723_v39, %v8207_v21  ;;  %7750 = vrcp.f32 %v812_v33  ;;  %v8326_v50 = vadd.f32 %v8203_v18, %v659_v36  ;;  %v657_v51 = vmul.f32 %v8198_v16, %v573_v43  ;;  %v7607_v33 = vld [vmem:[%s10981_s4 + $0xf8] sm:$0xff]  }
 0x114   : > { %v7727_v54 = vpop.eup %7726  ;;  %v817_v55 = vadd.f32 1.0, %v7725_v48  ;;  %7752 = vpow2.f32 %v769_v35  ;;  %v8329_v56 = vmul.f32 1.442695, %v729_v41  ;;  %v727_v57 = vsub.f32 0.0, %v8320_v42  ;;  %v7060_v59 = vpop.f32.mrf.mxu0  ;;  %7226 = vmatprep.subr.bf16.mxu0 %v7607_v33 }
 0x115   : > { %v7729_v61 = vpop.eup %7728  ;;  %v6698_v62 = vpack.c.bf16 %v873_v49, %v873_v49  ;;  %v871_v63 = vmul.f32 %v7727_v54, %v8212_v25  ;;  %v730_v21 = vsub.f32 0.0, %v8326_v50  ;;  %v8335_v1 = vadd.f32 %v8203_v18, %v657_v51 }
 0x116   : > { %v7731_v4 = vpop.eup %7730  ;;  %7754 = vrcp.f32 %v817_v55  ;;  %v815_v5 = vadd.f32 1.0, %v7729_v61  ;;  %v8337_v6 = vmul.f32 1.442695, %v727_v57  ;;  %v8340_v7 = vmul.f32 %v7060_v59, %v8198_v16  ;;  %v1037_v57 = vld [vmem:[#allocation2 + $0x10] sm:$0xc] }
 0x117   : > { %v7733_v8 = vpop.eup %7732  ;;  %v1055_v9 = vshll.u32 %v6698_v62, 16  ;;  %v1058_v10 = vshrl.u32 %v6698_v62, 16  ;;  %v6696_v25 = vpack.c.bf16 %v871_v63, %v871_v63  ;;  %v874_v13 = vmul.f32 %v7731_v4, %v8217_v30 }
 0x118   : > { %v7735_v14 = vpop.eup %7734  ;;  %7756 = vrcp.f32 %v815_v5  ;;  %v818_v34 = vadd.f32 1.0, %v7733_v8  ;;  %v8343_v19 = vmul.f32 1.442695, %v730_v21  ;;  %v728_v22 = vsub.f32 0.0, %v8335_v1 }
 0x119   : > { %v7737_v23 = vpop.eup %7736  ;;  %v1057_v24 = vrot.slane %v1055_v9, 5  ;;  %v1060_v26 = vrot.slane %v1058_v10, 4  ;;  %v1014_v28 = vshrl.u32 %v6696_v25, 16  ;;  %v1017_v29 = vshll.u32 %v6696_v25, 16 }
 0x11a   : > { %v8349_v30 = vpop.eup %7738  ;;  %v6699_v35 = vpack.c.bf16 %v874_v13, %v874_v13  ;;  %v872_v36 = vmul.f32 %v7735_v14, %v8222_v37  ;;  %7758 = vrcp.f32 %v818_v34  ;;  %v816_v39 = vadd.f32 1.0, %v7737_v23 }
 0x11b   : > { %v7741_v41 = vpop.eup %7740  ;;  %v1061_v43 = vor.u32 %v1060_v26, %v1057_v24  ;;  %v1077_v48 = vsel %vm8103_vm8, %v1057_v24, %v1076_v15  ;;  %v1016_v49 = vrot.slane %v1014_v28, 5  ;;  %v1019_v51 = vrot.slane %v1017_v29, 6 }
 0x11c   : > { %v7743_v54 = vpop.eup %7742  ;;  %1078 = vst [vmem:[#allocation2 + $0x18] sm:$0x8] %v1077_v48  ;;  %v1064_v37 = vshll.u32 %v6699_v35, 16  ;;  %v1068_v59 = vshrl.u32 %v6699_v35, 16  ;;  %v6697_v61 = vpack.c.bf16 %v872_v36, %v872_v36  ;;  %v877_v62 = vmul.f32 %v7741_v41, %v8228_v44  ;;  %v8382_v36 = vpop.f32.mrf.mxu0  ;;  %v1082_v41 = vld [vmem:[#allocation2 + $0x20] sm:$0xf] }
 0x11d   : > { %v8361_v63 = vpop.eup %7744  ;;  %v1062_v21 = vrot.slane %v1061_v43, 4  ;;  %v1020_v4 = vor.u32 %v1019_v51, %v1016_v49  ;;  %v11068_v5 = vmov 0  ;;  %v875_v8 = vmul.f32 %v7743_v54, %v8231_v47 }
 0x11e   : > { %v11069_v5 = vsel %vm8365_vm1, 4294967295, %v11068_v5  ;;  %7760 = vrcp.f32 %v816_v39  ;;  %v7747_v9 = vpop.eup %7746  ;;  %v1066_v10 = vrot.slane %v1064_v37, 5  ;;  %v1070_v25 = vrot.slane %v1068_v59, 4 }
 0x11f   : > { %11070 = vst [vmem:[#allocation3_spill] sm:$0xff] %v11069_v5  ;;  %v1023_v13 = vshrl.u32 %v6697_v61, 16  ;;  %v1026_v14 = vshll.u32 %v6697_v61, 16  ;;  %v8370_v44 = vpop.eup %7748  ;;  %v1021_v15 = vrot.slane %v1020_v4, 4  ;;  %v1038_v34 = vsel %vm8356_vm15, %v1020_v4, %v1037_v57  ;;  %v1043_v4 = vld [vmem:[#allocation2 + $0x18] sm:$0x7] }
 0x120   : > { %v6702_v23 = vpack.c.bf16 %v877_v62, %v877_v62  ;;  %v6700_v24 = vpack.c.bf16 %v875_v8, %v875_v8  ;;  %v7751_v26 = vpop.eup %7750  ;;  %1039 = vst [vmem:[#allocation2 + $0x10] sm:$0xc] %v1038_v34  ;;  %v1067_v47 = vsel %vm8365_vm1, %v1062_v21, %v1066_v10  ;;  %v1071_v28 = vor.u32 %v1070_v25, %v1066_v10 }
 0x121   : > { %v1025_v33 = vrot.slane %v1023_v13, 5  ;;  %v1028_v35 = vrot.slane %v1026_v14, 6  ;;  %v8384_v39 = vpop.eup %7752  ;;  %1079 = vst [vmem:[#allocation2 + $0x1c] sm:$0xf] %v1067_v47  ;;  %v11073_v43 = vmov 0  ;;  %v878_v59 = vmul.f32 %v7747_v9, %v8237_v52 }
 0x122   : > { %v11074_v43 = vsel %vm8388_vm13, 4294967295, %v11073_v43  ;;  %v1130_v48 = vshrl.u32 %v6702_v23, 16  ;;  %v1133_v49 = vshll.u32 %v6702_v23, 16  ;;  %v1093_v51 = vshrl.u32 %v6700_v24, 16  ;;  %v1151_v9 = vld [vmem:[#allocation2 + $0x2c] sm:$0xe] }
 0x123   : > { %11075 = vst [vmem:[#allocation4_spill] sm:$0xff] %v11074_v43  ;;  %v1096_v54 = vshll.u32 %v6700_v24, 16  ;;  %v1072_v57 = vrot.slane %v1071_v28, 4  ;;  %v1029_v37 = vor.u32 %v1028_v35, %v1025_v33  ;;  %v876_v61 = vmul.f32 %v7751_v26, %v8244_v60  ;;  %v7755_v62 = vpop.eup %7754  ;;  %v1114_v23 = vld [vmem:[#allocation2 + $0x24] sm:$0xf]  ;;  %v8411_v26 = vpop.f32.mrf.mxu0 }
 0x124   : > { %v1132_v8 = vrot.slane %v1130_v48, 6  ;;  %v1135_v10 = vrot.slane %v1133_v49, 7  ;;  %v1095_v25 = vrot.slane %v1093_v51, 7  ;;  %v821_v13 = vadd.f32 1.0, %v8349_v30 }
 0x125   : > { %v1083_v14 = vsel %vm8378_vm9, %v1072_v57, %v1082_v41  ;;  %v1030_v52 = vsel %vm8388_vm13, %v1021_v15, %v1029_v37  ;;  %v1031_v60 = vrot.slane %v1029_v37, 4  ;;  %v6703_v24 = vpack.c.bf16 %v878_v59, %v878_v59  ;;  %v7757_v47 = vpop.eup %7756 }
 0x126   : > { %1084 = vst [vmem:[#allocation2 + $0x20] sm:$0xf] %v1083_v14  ;;  %1040 = vst [vmem:[#allocation2 + $0x14] sm:$0xf] %v1030_v52  ;;  %v1136_v30 = vor.u32 %v1135_v10, %v1132_v8  ;;  %v1098_v28 = vor.u32 %v1096_v54, %v1095_v25  ;;  %v1099_v33 = vrot.slane %v1095_v25, 4  ;;  %v6701_v35 = vpack.c.bf16 %v876_v61, %v876_v61  ;;  %v8420_v25 = vpop.f32.mrf.mxu0 }
 0x127   : > { %v1044_v15 = vsel %vm8396_vm4, %v1031_v60, %v1043_v4  ;;  %v1139_v41 = vshrl.u32 %v6703_v24, 16  ;;  %v1142_v48 = vshll.u32 %v6703_v24, 16  ;;  %v881_v49 = vmul.f32 %v7755_v62, %v8249_v2  ;;  %v7759_v51 = vpop.eup %7758  ;;  %v1118_v24 = vld [vmem:[#allocation2 + $0x2c] sm:$0x1] }
 0x128   : > { %1045 = vst [vmem:[#allocation2 + $0x18] sm:$0x7] %v1044_v15  ;;  %v1137_v57 = vrot.slane %v1136_v30, 4  ;;  %v1152_v37 = vsel %vm8263_vm2, %v1136_v30, %v1151_v9  ;;  %v1115_v59 = vsel %vm8407_vm7, %v1098_v28, %v1114_v23  ;;  %v1101_v8 = vshrl.u32 %v6701_v35, 16  ;;  %v1220_v15 = vld [vmem:[#allocation2 + $0x3c] sm:$0x8] }
 0x129   : > { %1153 = vst [vmem:[#allocation2 + $0x2c] sm:$0xe] %v1152_v37  ;;  %1116 = vst [vmem:[#allocation2 + $0x24] sm:$0xf] %v1115_v59  ;;  %v1141_v54 = vrot.slane %v1139_v41, 6  ;;  %v1144_v61 = vrot.slane %v1142_v48, 7  ;;  %v6706_v4 = vpack.c.bf16 %v881_v49, %v881_v49  ;;  %v879_v14 = vmul.f32 %v7757_v47, %v8259_v12 }
 0x12a   : > { %v1104_v10 = vshll.u32 %v6701_v35, 16  ;;  %v11080_v2 = vmov 0  ;;  %v1103_v62 = vrot.slane %v1101_v8, 7  ;;  %v882_v52 = vmul.f32 %v7759_v51, %v8268_v20  ;;  %v1156_v20 = vld [vmem:[#allocation2 + $0x34] sm:$0x3]  ;;  %v8445_v8 = vpop.f32.mrf.mxu0 }
 0x12b   : > { %v11081_v2 = vsel %vm8424_vm6, 4294967295, %v11080_v2  ;;  %7762 = vrcp.f32 %v821_v13  ;;  %v7761_v60 = vpop.eup %7760  ;;  %v11084_v9 = vmov 0  ;;  %v1145_v23 = vor.u32 %v1144_v61, %v1141_v54 }
 0x12c   : > { %11082 = vst [vmem:[#allocation5_spill] sm:$0xff] %v11081_v2  ;;  %v11085_v9 = vsel %vm8432_vm11, 4294967295, %v11084_v9  ;;  %v1199_v30 = vshll.u32 %v6706_v4, 16  ;;  %v1202_v28 = vshrl.u32 %v6706_v4, 16  ;;  %v819_v35 = vadd.f32 1.0, %v8361_v63 }
 0x12d   : > { %11086 = vst [vmem:[#allocation6_spill] sm:$0xff] %v11085_v9  ;;  %v1106_v13 = vor.u32 %v1104_v10, %v1103_v62  ;;  %v1108_v47 = vrot.slane %v1103_v62, 4  ;;  %v6704_v41 = vpack.c.bf16 %v879_v14, %v879_v14  ;;  %v6707_v48 = vpack.c.bf16 %v882_v52, %v882_v52  ;;  %v1186_v14 = vld [vmem:[#allocation2 + $0x34] sm:$0xc] }
 0x12e   : > { %v1146_v49 = vsel %vm8424_vm6, %v1137_v57, %v1145_v23  ;;  %v1147_v51 = vrot.slane %v1145_v23, 4  ;;  %v1201_v37 = vrot.slane %v1199_v30, 5  ;;  %v1204_v59 = vrot.slane %v1202_v28, 4 }
 0x12f   : > { %1154 = vst [vmem:[#allocation2 + $0x30] sm:$0xf] %v1146_v49  ;;  %v1107_v63 = vsel %vm8432_vm11, %v1099_v33, %v1106_v13  ;;  %v1119_v54 = vsel %vm8117_vm14, %v1108_v47, %v1118_v24  ;;  %v1165_v61 = vshrl.u32 %v6704_v41, 16  ;;  %v1168_v10 = vshll.u32 %v6704_v41, 16  ;;  %v602_v47 = vpop.f32.mrf.mxu0 }
 0x130   : > { %v1157_v4 = vsel %vm8439_vm3, %v1147_v51, %v1156_v20  ;;  %1117 = vst [vmem:[#allocation2 + $0x28] sm:$0xf] %v1107_v63  ;;  %1120 = vst [vmem:[#allocation2 + $0x2c] sm:$0x1] %v1119_v54  ;;  %v1205_v57 = vor.u32 %v1204_v59, %v1201_v37  ;;  %v1221_v62 = vsel %vm8103_vm8, %v1201_v37, %v1220_v15  ;;  %v1208_v52 = vshll.u32 %v6707_v48, 16 }
 0x131   : > { %1158 = vst [vmem:[#allocation2 + $0x34] sm:$0x3] %v1157_v4  ;;  %1222 = vst [vmem:[#allocation2 + $0x3c] sm:$0x8] %v1221_v62  ;;  %v1167_v23 = vrot.slane %v1165_v61, 5  ;;  %v1170_v33 = vrot.slane %v1168_v10, 6  ;;  %v880_v24 = vmul.f32 %v7761_v60, %v8277_v40  ;;  %7764 = vrcp.f32 %v819_v35  ;;  %v7065_v61 = vpop.f32.mrf.mxu0 }
 0x132   : > { %v1212_v30 = vshrl.u32 %v6707_v48, 16  ;;  %v1206_v28 = vrot.slane %v1205_v57, 4  ;;  %v1210_v13 = vrot.slane %v1208_v52, 5  ;;  %v822_v20 = vadd.f32 1.0, %v8370_v44  ;;  %v1224_v59 = vld [vmem:[#allocation2 + $0x44] sm:$0xf] }
 0x133   : > { %v1171_v41 = vor.u32 %v1170_v33, %v1167_v23  ;;  %v6705_v51 = vpack.c.bf16 %v880_v24, %v880_v24  ;;  %v820_v15 = vadd.f32 1.0, %v8384_v39  ;;  %v777_v48 = vmul.f32 1.442695, %v728_v22  ;;  %v1190_v24 = vld [vmem:[#allocation2 + $0x3c] sm:$0x7] }
 0x134   : > { %v1214_v49 = vrot.slane %v1212_v30, 4  ;;  %v1211_v37 = vsel %vm8365_vm1, %v1206_v28, %v1210_v13  ;;  %7766 = vrcp.f32 %v822_v20  ;;  %v8464_v40 = vadd.f32 %v8203_v18, %v8340_v7  ;;  %v605_v30 = vpop.f32.mrf.mxu0 }
 0x135   : > { %v1172_v60 = vrot.slane %v1171_v41, 4  ;;  %v1187_v44 = vsel %vm8356_vm15, %v1171_v41, %v1186_v14  ;;  %1223 = vst [vmem:[#allocation2 + $0x40] sm:$0xf] %v1211_v37  ;;  %v1174_v63 = vshrl.u32 %v6705_v51, 16  ;;  %v1177_v39 = vshll.u32 %v6705_v51, 16 }
 0x136   : > { %v1215_v35 = vor.u32 %v1214_v49, %v1210_v13  ;;  %1188 = vst [vmem:[#allocation2 + $0x34] sm:$0xc] %v1187_v44  ;;  %7768 = vrcp.f32 %v820_v15  ;;  %v733_v54 = vsub.f32 0.0, %v8464_v40  ;;  %v660_v22 = vmul.f32 %v8198_v16, %v8382_v36  ;;  %v1286_v44 = vld [vmem:[#allocation2 + $0x50] sm:$0xe] }
 0x137   : > { %v1176_v7 = vrot.slane %v1174_v63, 5  ;;  %7770 = vpow2.f32 %v8329_v56  ;;  %v663_v4 = vmul.f32 %v8411_v26, %v8198_v16  ;;  %v1179_v62 = vrot.slane %v1177_v39, 6 }
 0x138   : > { %v1216_v10 = vrot.slane %v1215_v35, 4  ;;  %v7763_v57 = vpop.eup %7762  ;;  %7772 = vpow2.f32 %v8337_v6  ;;  %v787_v14 = vmul.f32 1.442695, %v733_v54  ;;  %v8476_v52 = vadd.f32 %v8203_v18, %v660_v22  ;;  %v7068_v35 = vpop.f32.mrf.mxu0 }
 0x139   : > { %v885_v36 = vmul.f32 %v7763_v57, %v8282_v46  ;;  %7774 = vpow2.f32 %v8343_v19  ;;  %v8483_v56 = vadd.f32 %v8203_v18, %v663_v4  ;;  %v1180_v26 = vor.u32 %v1179_v62, %v1176_v7 }
 0x13a   : > { %v1225_v23 = vsel %vm8378_vm9, %v1216_v10, %v1224_v59  ;;  %7776 = vpow2.f32 %v777_v48  ;;  %v731_v33 = vsub.f32 0.0, %v8476_v52  ;;  %v661_v6 = vmul.f32 %v8198_v16, %v8420_v25 }
 0x13b   : > { %1226 = vst [vmem:[#allocation2 + $0x44] sm:$0xf] %v1225_v23  ;;  %v6710_v28 = vpack.c.bf16 %v885_v36, %v885_v36  ;;  %7778 = vpow2.f32 %v787_v14  ;;  %v734_v13 = vsub.f32 0.0, %v8483_v56  ;;  %v666_v46 = vmul.f32 %v8445_v8, %v8198_v16 }
 0x13c   : > { %v1181_v19 = vsel %vm8388_vm13, %v1172_v60, %v1180_v26  ;;  %v1182_v20 = vrot.slane %v1180_v26, 4  ;;  %v783_v41 = vmul.f32 1.442695, %v731_v33  ;;  %v8494_v49 = vadd.f32 %v8203_v18, %v661_v6 }
 0x13d   : > { %1189 = vst [vmem:[#allocation2 + $0x38] sm:$0xf] %v1181_v19  ;;  %v1265_v51 = vshrl.u32 %v6710_v28, 16  ;;  %v1268_v25 = vshll.u32 %v6710_v28, 16  ;;  %v789_v15 = vmul.f32 1.442695, %v734_v13  ;;  %v8497_v37 = vadd.f32 %v8203_v18, %v666_v46 }
 0x13e   : > { %v1191_v48 = vsel %vm8396_vm4, %v1182_v20, %v1190_v24  ;;  %7780 = vpow2.f32 %v783_v41  ;;  %v732_v8 = vsub.f32 0.0, %v8494_v49  ;;  %v664_v60 = vmul.f32 %v8198_v16, %v602_v47  ;;  %v7765_v59 = vpop.eup %7764  ;;  %v1252_v19 = vld [vmem:[#allocation2 + $0x48] sm:$0xf] }
 0x13f   : > { %1192 = vst [vmem:[#allocation2 + $0x3c] sm:$0x7] %v1191_v48  ;;  %v1267_v63 = vrot.slane %v1265_v51, 6  ;;  %v1270_v39 = vrot.slane %v1268_v25, 7  ;;  %7782 = vpow2.f32 %v789_v15  ;;  %v737_v54 = vsub.f32 0.0, %v8497_v37 }
 0x140   : > { %v883_v22 = vmul.f32 %v7765_v59, %v8291_v58  ;;  %v785_v10 = vmul.f32 1.442695, %v732_v8  ;;  %v8506_v7 = vadd.f32 %v8203_v18, %v664_v60  ;;  %v667_v4 = vmul.f32 %v7065_v61, %v8198_v16 }
 0x141   : > { %v7767_v57 = vpop.eup %7766  ;;  %v1271_v62 = vor.u32 %v1270_v39, %v1267_v63  ;;  %v795_v14 = vmul.f32 1.442695, %v737_v54  ;;  %v665_v47 = vmul.f32 %v8198_v16, %v605_v30  ;;  %v670_v23 = vmul.f32 %v7068_v35, %v8198_v16  ;;  %v618_v35 = vpop.f32.mrf.mxu0 }
 0x142   : > { %v6708_v36 = vpack.c.bf16 %v883_v22, %v883_v22  ;;  %v886_v26 = vmul.f32 %v7767_v57, %v8295_v0  ;;  %7784 = vpow2.f32 %v785_v10  ;;  %v735_v33 = vsub.f32 0.0, %v8506_v7 }
 0x143   : > { %v7769_v58 = vpop.eup %7768  ;;  %v1272_v6 = vrot.slane %v1271_v62, 4  ;;  %v1287_v24 = vsel %vm8263_vm2, %v1271_v62, %v1286_v44  ;;  %7786 = vpow2.f32 %v795_v14  ;;  %v8516_v61 = vadd.f32 %v8203_v18, %v667_v4 }
 0x144   : > { %v7771_v28 = vpop.eup %7770  ;;  %1288 = vst [vmem:[#allocation2 + $0x50] sm:$0xe] %v1287_v24  ;;  %v1233_v30 = vshrl.u32 %v6708_v36, 16  ;;  %v1236_v13 = vshll.u32 %v6708_v36, 16  ;;  %v6711_v16 = vpack.c.bf16 %v886_v26, %v886_v26  ;;  %v884_v46 = vmul.f32 %v7769_v58, %v8307_v11  ;;  %v7069_v58 = vpop.f32.mrf.mxu0 }
 0x145   : > { %v7773_v0 = vpop.eup %7772  ;;  %v825_v20 = vadd.f32 1.0, %v7771_v28  ;;  %v791_v41 = vmul.f32 1.442695, %v735_v33  ;;  %v738_v51 = vsub.f32 0.0, %v8516_v61  ;;  %v8521_v25 = vadd.f32 %v8203_v18, %v665_v47  ;;  %v1290_v28 = vld [vmem:[#allocation2 + $0x58] sm:$0x3] }
 0x146   : > { %v7775_v15 = vpop.eup %7774  ;;  %v1235_v48 = vrot.slane %v1233_v30, 7  ;;  %v1274_v44 = vshrl.u32 %v6711_v16, 16  ;;  %v1277_v8 = vshll.u32 %v6711_v16, 16  ;;  %v6709_v60 = vpack.c.bf16 %v884_v46, %v884_v46 }
 0x147   : > { %v7777_v59 = vpop.eup %7776  ;;  %7788 = vrcp.f32 %v825_v20  ;;  %v823_v63 = vadd.f32 1.0, %v7773_v0  ;;  %v826_v39 = vadd.f32 1.0, %v7775_v15  ;;  %v797_v11 = vmul.f32 1.442695, %v738_v51 }
 0x148   : > { %v7779_v54 = vpop.eup %7778  ;;  %v1238_v22 = vor.u32 %v1236_v13, %v1235_v48  ;;  %v1239_v10 = vrot.slane %v1235_v48, 4  ;;  %v1276_v4 = vrot.slane %v1274_v44, 6  ;;  %v1279_v57 = vrot.slane %v1277_v8, 7 }
 0x149   : > { %v1241_v62 = vshrl.u32 %v6709_v60, 16  ;;  %v1244_v14 = vshll.u32 %v6709_v60, 16  ;;  %7790 = vrcp.f32 %v823_v63  ;;  %v824_v47 = vadd.f32 1.0, %v7777_v59  ;;  %v8534_v60 = vld [vmem:[#allocation2 + $0x10] sm:$0xff]  }
 0x14a   : > { %v1253_v36 = vsel %vm8407_vm7, %v1238_v22, %v1252_v19  ;;  %v1280_v26 = vor.u32 %v1279_v57, %v1276_v4  ;;  %7792 = vrcp.f32 %v826_v39  ;;  %v829_v33 = vadd.f32 1.0, %v7779_v54  ;;  %v1256_v19 = vld [vmem:[#allocation2 + $0x50] sm:$0x1]  ;;  %v7978_v54 = vld [vmem:[%s10979_s2] ss:$0 sm:$0xff] }
 0x14b   : > { %v7781_v24 = vpop.eup %7780  ;;  %1254 = vst [vmem:[#allocation2 + $0x48] sm:$0xf] %v1253_v36  ;;  %v1243_v30 = vrot.slane %v1241_v62, 7  ;;  %7794 = vrcp.f32 %v824_v47  ;;  %v736_v13 = vsub.f32 0.0, %v8521_v25  ;;  %v8527_v16 = vadd.f32 %v8203_v18, %v670_v23  ;;  %v621_v23 = vpop.f32.mrf.mxu0 }
 0x14c   : > { %v7783_v46 = vpop.eup %7782  ;;  %v1281_v0 = vsel %vm8424_vm6, %v1272_v6, %v1280_v26  ;;  %v1282_v20 = vrot.slane %v1280_v26, 4  ;;  %7796 = vrcp.f32 %v829_v33  ;;  %v827_v51 = vadd.f32 1.0, %v7781_v24  ;;  %v8536_v6 = vld [vmem:[#allocation2 + $0x18] sm:$0xff]   ;;  %v8551_v24 = vld [vmem:[#allocation2 + $0x20] sm:$0xff]  }
 0x14d   : > { %1289 = vst [vmem:[#allocation2 + $0x54] sm:$0xf] %v1281_v0  ;;  %v1246_v15 = vor.u32 %v1244_v14, %v1243_v30  ;;  %v1248_v48 = vrot.slane %v1243_v30, 4  ;;  %v830_v44 = vadd.f32 1.0, %v7783_v46  ;;  %7798 = vpow2.f32 %v791_v41 }
 0x14e   : > { %v1291_v8 = vsel %vm8439_vm3, %v1282_v20, %v1290_v28  ;;  %7800 = vrcp.f32 %v827_v51  ;;  %v741_v18 = vsub.f32 0.0, %v8527_v16  ;;  %v2424_v59 = vshrl.u32 %v8286_v53, 16  ;;  %v7594_v51 = vld [vmem:[%s10981_s4 + $0xb0] sm:$0xff]  }
 0x14f   : > { %v7785_v63 = vpop.eup %7784  ;;  %1292 = vst [vmem:[#allocation2 + $0x58] sm:$0x3] %v1291_v8  ;;  %v1247_v39 = vsel %vm8432_vm11, %v1239_v10, %v1246_v15  ;;  %v1257_v41 = vsel %vm8117_vm14, %v1248_v48, %v1256_v19  ;;  %7802 = vrcp.f32 %v830_v44  ;;  %v668_v22 = vmul.f32 %v7978_v54, %v618_v35  ;;  %v7979_v10 = vld [vmem:[%s10980_s3] ss:$0 sm:$0xff] }
 0x150   : > { %v7787_v4 = vpop.eup %7786  ;;  %1255 = vst [vmem:[#allocation2 + $0x4c] sm:$0xf] %v1247_v39  ;;  %1258 = vst [vmem:[#allocation2 + $0x50] sm:$0x1] %v1257_v41  ;;  %v828_v57 = vadd.f32 1.0, %v7785_v63  ;;  %7804 = vpow2.f32 %v797_v11  ;;  %v671_v14 = vmul.f32 %v7978_v54, %v7069_v58  ;;  %v669_v33 = vmul.f32 %v7978_v54, %v621_v23 }
 0x151   : > { %v793_v62 = vmul.f32 1.442695, %v736_v13  ;;  %v833_v47 = vadd.f32 1.0, %v7787_v4  ;;  %v803_v36 = vmul.f32 1.442695, %v741_v18  ;;  %v8549_v26 = vadd.f32 %v7979_v10, %v668_v22 }
 0x152   : > { %7806 = vrcp.f32 %v828_v57  ;;  %v8553_v35 = vadd.f32 %v7979_v10, %v671_v14  ;;  %v1727_v28 = vrot.slane %v8534_v60, 1  ;;  %v1729_v11 = vrot.slane %v8536_v6, 1  ;;  %v7598_v14 = vld [vmem:[%s10981_s4 + $0xa8] sm:$0xff]  }
 0x153   : > { %7808 = vrcp.f32 %v833_v47  ;;  %v739_v58 = vsub.f32 0.0, %v8549_v26  ;;  %v8558_v30 = vadd.f32 %v7979_v10, %v669_v33  ;;  %v10987_v13 = vshll.u32 %v8534_v60, 16  ;;  %v1354_v33 = vld [vmem:[#allocation2 + $0x60] sm:$0x8] }
 0x154   : > { %v7789_v46 = vpop.eup %7788  ;;  %7810 = vpow2.f32 %v793_v62  ;;  %v742_v0 = vsub.f32 0.0, %v8553_v35  ;;  %v1728_v20 = vsel %vm1725_vm0, %v1726_v32, %v1727_v28  ;;  %v1730_v19 = vsel %vm1725_vm0, %v1727_v28, %v1729_v11 }
 0x155   : > { %v889_v15 = vmul.f32 %v7789_v46, %v8313_v27  ;;  %v799_v48 = vmul.f32 1.442695, %v739_v58  ;;  %v740_v44 = vsub.f32 0.0, %v8558_v30  ;;  %7086 = vmatprep.mubr.bf16.mxu1 %v1728_v20  ;;  %v8573_v8 = vrot.slane %v10987_v13, 1 }
 0x156   : > { %v7791_v18 = vpop.eup %7790  ;;  %7812 = vpow2.f32 %v803_v36  ;;  %v805_v23 = vmul.f32 1.442695, %v742_v0  ;;  %7087 = vmatmul.mubr.bf16.vlgmr.msra.gmra.mxu1 %v1730_v19  ;;  %v2022_v32 = vshrl.u32 %v8534_v60, 16  ;;  %v1731_v63 = vrot.slane %v8551_v24, 1 }
 0x157   : > { %v7793_v39 = vpop.eup %7792  ;;  %v6714_v41 = vpack.c.bf16 %v889_v15, %v889_v15  ;;  %v887_v27 = vmul.f32 %v7791_v18, %v8320_v42  ;;  %7814 = vpow2.f32 %v799_v48  ;;  %v801_v54 = vmul.f32 1.442695, %v740_v44  ;;  %7175 = vmatpush3.bf16.msra.mxu1 %v8301_v3 }
 0x158   : > { %v7795_v22 = vpop.eup %7794  ;;  %v890_v4 = vmul.f32 %v7793_v39, %v8326_v50  ;;  %7816 = vpow2.f32 %v805_v23  ;;  %v2021_v57 = vsel %vm2009_vm5, %v8322_v45, %v8573_v8  ;;  %v2026_v62 = vshll.u32 %v8536_v6, 16  ;;  %7176 = vmatprep.subr.bf16.mxu1 %v7594_v51 }
 0x159   : > { %v7797_v42 = vpop.eup %7796  ;;  %v1333_v47 = vshll.u32 %v6714_v41, 16  ;;  %v1336_v36 = vshrl.u32 %v6714_v41, 16  ;;  %v6712_v10 = vpack.c.bf16 %v887_v27, %v887_v27  ;;  %v888_v3 = vmul.f32 %v7795_v22, %v8335_v1  ;;  %7138 = vmatprep.mubr.bf16.mxu0 %v2021_v57 }
 0x15a   : > { %v7799_v50 = vpop.eup %7798  ;;  %v6715_v28 = vpack.c.bf16 %v890_v4, %v890_v4  ;;  %v893_v58 = vmul.f32 %v7797_v42, %v8464_v40  ;;  %7818 = vpow2.f32 %v801_v54  ;;  %v1732_v45 = vsel %vm1725_vm0, %v1729_v11, %v1731_v63  ;;  %v7601_v40 = vld [vmem:[%s10981_s4 + $0xa0] sm:$0xff]  }
 0x15b   : > { %v7801_v46 = vpop.eup %7800  ;;  %v1335_v0 = vrot.slane %v1333_v47, 5  ;;  %v1338_v20 = vrot.slane %v1336_v36, 4  ;;  %v1299_v19 = vshrl.u32 %v6712_v10, 16  ;;  %v1302_v15 = vshll.u32 %v6712_v10, 16  ;;  %7090 = vmatprep.mubr.bf16.mxu1 %v1732_v45  ;;  %7177 = vmatpush3.bf16.msra.mxu1 %v7594_v51  ;;  %v1320_v51 = vld [vmem:[#allocation2 + $0x58] sm:$0xc] }
 0x15c   : > { %v7803_v48 = vpop.eup %7802  ;;  %v1342_v1 = vshll.u32 %v6715_v28, 16  ;;  %v1346_v44 = vshrl.u32 %v6715_v28, 16  ;;  %v6713_v18 = vpack.c.bf16 %v888_v3, %v888_v3  ;;  %v6718_v23 = vpack.c.bf16 %v893_v58, %v893_v58  ;;  %7178 = vmatprep.subr.bf16.mxu1 %v7598_v14 }
 0x15d   : > { %v8595_v39 = vpop.eup %7804  ;;  %v1339_v11 = vor.u32 %v1338_v20, %v1335_v0  ;;  %v1355_v41 = vsel %vm8103_vm8, %v1335_v0, %v1354_v33  ;;  %v1301_v27 = vrot.slane %v1299_v19, 5  ;;  %v1304_v54 = vrot.slane %v1302_v15, 6  ;;  %v7604_v0 = vld [vmem:[%s10981_s4 + $0x98] sm:$0xff]  }
 0x15e   : > { %1356 = vst [vmem:[#allocation2 + $0x60] sm:$0x8] %v1355_v41  ;;  %v1344_v22 = vrot.slane %v1342_v1, 5  ;;  %v1348_v4 = vrot.slane %v1346_v44, 4  ;;  %v1308_v57 = vshrl.u32 %v6713_v18, 16  ;;  %v1311_v42 = vshll.u32 %v6713_v18, 16 }
 0x15f   : > { %v7807_v47 = vpop.eup %7806  ;;  %v1340_v36 = vrot.slane %v1339_v11, 4  ;;  %v1305_v10 = vor.u32 %v1304_v54, %v1301_v27  ;;  %v1399_v3 = vshrl.u32 %v6718_v23, 16  ;;  %v1402_v28 = vshll.u32 %v6718_v23, 16  ;;  %7179 = vmatpush3.bf16.msra.mxu1 %v7598_v14  ;;  %v1358_v44 = vld [vmem:[#allocation2 + $0x68] sm:$0xf] }
 0x160   : > { %v7809_v58 = vpop.eup %7808  ;;  %v1349_v45 = vor.u32 %v1348_v4, %v1344_v22  ;;  %v1310_v20 = vrot.slane %v1308_v57, 5  ;;  %v1313_v13 = vrot.slane %v1311_v42, 6  ;;  %v891_v33 = vmul.f32 %v7801_v46, %v8476_v52  ;;  %7180 = vmatprep.subr.bf16.mxu1 %v7601_v40  ;;  %v1324_v27 = vld [vmem:[#allocation2 + $0x60] sm:$0x7]  ;;  %v1420_v54 = vld [vmem:[#allocation2 + $0x74] sm:$0xe] }
 0x161   : > { %v8603_v19 = vpop.eup %7810  ;;  %v1306_v15 = vrot.slane %v1305_v10, 4  ;;  %v1321_v1 = vsel %vm8356_vm15, %v1305_v10, %v1320_v51  ;;  %v1345_v14 = vsel %vm8365_vm1, %v1340_v36, %v1344_v22  ;;  %v1401_v18 = vrot.slane %v1399_v3, 6 }
 0x162   : > { %1322 = vst [vmem:[#allocation2 + $0x58] sm:$0xc] %v1321_v1  ;;  %v1350_v23 = vrot.slane %v1349_v45, 4  ;;  %1357 = vst [vmem:[#allocation2 + $0x64] sm:$0xf] %v1345_v14  ;;  %v1314_v52 = vor.u32 %v1313_v13, %v1310_v20  ;;  %v1404_v46 = vrot.slane %v1402_v28, 7  ;;  %v6716_v11 = vpack.c.bf16 %v891_v33, %v891_v33 }
 0x163   : > { %v7813_v41 = vpop.eup %7812  ;;  %v894_v4 = vmul.f32 %v7803_v48, %v8483_v56  ;;  %v892_v57 = vmul.f32 %v7807_v47, %v8494_v49  ;;  %v897_v51 = vmul.f32 %v7809_v58, %v8497_v37  ;;  %v831_v42 = vadd.f32 1.0, %v7799_v50  ;;  %7181 = vmatpush3.bf16.msra.mxu1 %v7601_v40  ;;  %v7608_v56 = vld [vmem:[%s10981_s4 + $0x90] sm:$0xff]  }
 0x164   : > { %v7815_v22 = vpop.eup %7814  ;;  %v1359_v36 = vsel %vm8378_vm9, %v1350_v23, %v1358_v44  ;;  %v1315_v13 = vsel %vm8388_vm13, %v1306_v15, %v1314_v52  ;;  %v1316_v10 = vrot.slane %v1314_v52, 4  ;;  %v1405_v3 = vor.u32 %v1404_v46, %v1401_v18  ;;  %7182 = vmatprep.subr.bf16.mxu1 %v7604_v0  ;;  %v1386_v15 = vld [vmem:[#allocation2 + $0x6c] sm:$0xf]  ;;  %v1488_v46 = vld [vmem:[#allocation2 + $0x84] sm:$0x8] }
 0x165   : > { %v8619_v48 = vpop.eup %7816  ;;  %1360 = vst [vmem:[#allocation2 + $0x68] sm:$0xf] %v1359_v36  ;;  %1323 = vst [vmem:[#allocation2 + $0x5c] sm:$0xf] %v1315_v13  ;;  %v1367_v49 = vshrl.u32 %v6716_v11, 16  ;;  %v1370_v37 = vshll.u32 %v6716_v11, 16  ;;  %v6719_v50 = vpack.c.bf16 %v894_v4, %v894_v4  ;;  %v6717_v40 = vpack.c.bf16 %v892_v57, %v892_v57 }
 0x166   : > { %v1325_v47 = vsel %vm8396_vm4, %v1316_v10, %v1324_v27  ;;  %v1406_v28 = vrot.slane %v1405_v3, 4  ;;  %v1421_v58 = vsel %vm8263_vm2, %v1405_v3, %v1420_v54  ;;  %v6722_v45 = vpack.c.bf16 %v897_v51, %v897_v51  ;;  %v7613_v11 = vld [vmem:[%s10981_s4 + $0x88] sm:$0xff]   ;;  %v1390_v51 = vld [vmem:[#allocation2 + $0x74] sm:$0x1]  ;;  %v1424_v36 = vld [vmem:[#allocation2 + $0x7c] sm:$0x3] }
 0x167   : > { %v7819_v20 = vpop.eup %7818  ;;  %1326 = vst [vmem:[#allocation2 + $0x60] sm:$0x7] %v1325_v47  ;;  %1422 = vst [vmem:[#allocation2 + $0x74] sm:$0xe] %v1421_v58  ;;  %v1369_v33 = vrot.slane %v1367_v49, 7  ;;  %v1408_v1 = vshrl.u32 %v6719_v50, 16  ;;  %7183 = vmatpush3.bf16.msra.mxu1 %v7604_v0  ;;  %7820 = vrcp.f32 %v831_v42 }
 0x168   : > { %v1411_v14 = vshll.u32 %v6719_v50, 16  ;;  %v1375_v44 = vshrl.u32 %v6717_v40, 16  ;;  %v1378_v18 = vshll.u32 %v6717_v40, 16  ;;  %v1467_v23 = vshll.u32 %v6722_v45, 16  ;;  %7184 = vmatprep.subr.bf16.mxu1 %v7608_v56 }
 0x169   : > { %v1470_v52 = vshrl.u32 %v6722_v45, 16  ;;  %v1372_v27 = vor.u32 %v1370_v37, %v1369_v33  ;;  %v1373_v54 = vrot.slane %v1369_v33, 4  ;;  %v1410_v4 = vrot.slane %v1408_v1, 6 }
 0x16a   : > { %v1413_v57 = vrot.slane %v1411_v14, 7  ;;  %v1377_v13 = vrot.slane %v1375_v44, 7  ;;  %v1469_v10 = vrot.slane %v1467_v23, 5  ;;  %v834_v0 = vadd.f32 1.0, %v8595_v39  ;;  %v7618_v39 = vld [vmem:[%s10981_s4 + $0x80] sm:$0xff]  }
 0x16b   : > { %v1472_v3 = vrot.slane %v1470_v52, 4  ;;  %v1387_v49 = vsel %vm8407_vm7, %v1372_v27, %v1386_v15  ;;  %v832_v50 = vadd.f32 1.0, %v8603_v19  ;;  %v837_v40 = vadd.f32 1.0, %v7813_v41  ;;  %7185 = vmatpush3.bf16.msra.mxu1 %v7608_v56  ;;  %v8639_v41 = vld [vmem:[#allocation2 + $0x28] sm:$0xff]   ;;  %v8641_v56 = vld [vmem:[#allocation2 + $0x30] sm:$0xff]  }
 0x16c   : > { %v1414_v42 = vor.u32 %v1413_v57, %v1410_v4  ;;  %1388 = vst [vmem:[#allocation2 + $0x6c] sm:$0xf] %v1387_v49  ;;  %v1380_v37 = vor.u32 %v1378_v18, %v1377_v13  ;;  %v1382_v47 = vrot.slane %v1377_v13, 4  ;;  %v1489_v45 = vsel %vm8103_vm8, %v1469_v10, %v1488_v46  ;;  %7186 = vmatprep.subr.bf16.mxu1 %v7613_v11  ;;  %v7609_v46 = vld [vmem:[%s10981_s4 + $0xf0] sm:$0xff]  }
 0x16d   : > { %v1473_v58 = vor.u32 %v1472_v3, %v1469_v10  ;;  %1490 = vst [vmem:[#allocation2 + $0x84] sm:$0x8] %v1489_v45  ;;  %7822 = vrcp.f32 %v834_v0  ;;  %v835_v19 = vadd.f32 1.0, %v7815_v22  ;;  %v838_v22 = vadd.f32 1.0, %v8619_v48  ;;  %v8665_v48 = vld [vmem:[%s10981_s4 + $0x138] sm:$0xff]   ;;  %v8687_v0 = vld [vmem:[%s10981_s4 + $0xe8] sm:$0xff]  }
 0x16e   : > { %v1415_v33 = vsel %vm8424_vm6, %v1406_v28, %v1414_v42  ;;  %v1416_v15 = vrot.slane %v1414_v42, 4  ;;  %v1381_v31 = vsel %vm8432_vm11, %v1373_v54, %v1380_v37  ;;  %v1391_v1 = vsel %vm8117_vm14, %v1382_v47, %v1390_v51  ;;  %v8671_v54 = vld [vmem:[#allocation2 + $0x38] sm:$0xff]   ;;  %v8696_v37 = vld [vmem:[#allocation2 + $0x50] sm:$0xff]  }
 0x16f   : > { %1423 = vst [vmem:[#allocation2 + $0x78] sm:$0xf] %v1415_v33  ;;  %7824 = vrcp.f32 %v832_v50  ;;  %v2024_v28 = vor.u32 %v2022_v32, %v8573_v8  ;;  %1389 = vst [vmem:[#allocation2 + $0x70] sm:$0xf] %v1381_v31  ;;  %v836_v44 = vadd.f32 1.0, %v7819_v20  ;;  %7187 = vmatpush3.bf16.msra.mxu1 %v7613_v11  ;;  %v2028_v18 = vrot.slane %v2026_v62, 1 }
 0x170   : > { %v1425_v14 = vsel %vm8439_vm3, %v1416_v15, %v1424_v36  ;;  %1392 = vst [vmem:[#allocation2 + $0x74] sm:$0x1] %v1391_v1  ;;  %7826 = vrcp.f32 %v837_v40  ;;  %v2030_v23 = vshrl.u32 %v8536_v6, 16  ;;  %v2034_v52 = vshll.u32 %v8551_v24, 16  ;;  %v8657_v8 = vld [vmem:[#allocation2 + $0x40] sm:$0xff]   ;;  %7188 = vmatprep.subr.bf16.mxu1 %v7618_v39  ;;  %v8694_v40 = vld [vmem:[#allocation2 + $0x48] sm:$0xff]  }
 0x171   : > { %1426 = vst [vmem:[#allocation2 + $0x7c] sm:$0x3] %v1425_v14  ;;  %7828 = vrcp.f32 %v835_v19  ;;  %v8667_v20 = vrot.slane %v1473_v58, 4  ;;  %v1733_v11 = vrot.slane %v8639_v41, 1  ;;  %v1735_v27 = vrot.slane %v8641_v56, 1  ;;  %v7980_v47 = vld [vmem:[%s10981_s4 + $0xf8] sm:$0xff]  }
 0x172   : > { %7830 = vrcp.f32 %v838_v22  ;;  %v2029_v4 = vsel %vm2009_vm5, %v2024_v28, %v2028_v18  ;;  %v2032_v57 = vor.u32 %v2030_v23, %v2028_v18  ;;  %v2036_v51 = vrot.slane %v2034_v52, 1 }
 0x173   : > { %v2038_v36 = vshrl.u32 %v8551_v24, 16  ;;  %7832 = vrcp.f32 %v836_v44  ;;  %7139 = vmatmul.mubr.bf16.vlgmr.msra.gmra.mxu0 %v2029_v4  ;;  %v1734_v13 = vsel %vm1725_vm0, %v1731_v63, %v1733_v11  ;;  %v1736_v10 = vsel %vm1725_vm0, %v1733_v11, %v1735_v27  ;;  %7189 = vmatpush3.bf16.msra.mxu1 %v7618_v39 }
 0x174   : > { %v10994_v3 = vshll.u32 %v8639_v41, 16  ;;  %v2037_v49 = vsel %vm2009_vm5, %v2032_v57, %v2036_v51  ;;  %7091 = vmatmul.mubr.bf16.gmra.mxu1 %v1734_v13  ;;  %v10995_v50 = vshrl.u32 %v8639_v41, 16  ;;  %v10989_v63 = vshll.u32 %v8641_v56, 16  ;;  %7227 = vmatpush3.bf16.msra.mxu0 %v7980_v47  ;;  %v7821_v58 = vpop.eup %7820 }
 0x175   : > { %v2040_v42 = vor.u32 %v2038_v36, %v2036_v51  ;;  %7142 = vmatprep.mubr.bf16.mxu0 %v2037_v49  ;;  %7094 = vmatprep.mubr.bf16.mxu1 %v1736_v10  ;;  %v1737_v39 = vrot.slane %v8671_v54, 1  ;;  %v1739_v33 = vrot.slane %v8657_v8, 1  ;;  %v10993_v15 = vshrl.u32 %v8641_v56, 16 }
 0x176   : > { %v2044_v45 = vrot.slane %v10994_v3, 1  ;;  %v895_v19 = vmul.f32 %v7821_v58, %v8506_v7  ;;  %v2052_v31 = vrot.slane %v10989_v63, 1  ;;  %v10988_v1 = vshll.u32 %v8671_v54, 16  ;;  %7228 = vmatprep.subr.bf16.mxu0 %v7609_v46  ;;  %7278 = vmatprep.subr.bf16.mxu1 %v8665_v48 }
 0x177   : > { %v10990_v28 = vshrl.u32 %v8671_v54, 16  ;;  %v1738_v44 = vsel %vm1725_vm0, %v1735_v27, %v1737_v39  ;;  %v10991_v4 = vshll.u32 %v8657_v8, 16  ;;  %v1741_v51 = vrot.slane %v8694_v40, 1 }
 0x178   : > { %v2045_v14 = vsel %vm2009_vm5, %v2040_v42, %v2044_v45  ;;  %v2048_v22 = vor.u32 %v10995_v50, %v2044_v45  ;;  %v6720_v18 = vpack.c.bf16 %v895_v19, %v895_v19  ;;  %v2056_v7 = vor.u32 %v10993_v15, %v2052_v31  ;;  %7229 = vmatpush3.bf16.msra.mxu0 %v7609_v46  ;;  %v1492_v50 = vld [vmem:[#allocation2 + $0x8c] sm:$0xf] }
 0x179   : > { %v2060_v11 = vrot.slane %v10988_v1, 1  ;;  %v1743_v13 = vrot.slane %v8696_v37, 1  ;;  %v2070_v10 = vshrl.u32 %v8657_v8, 16  ;;  %7230 = vmatprep.subr.bf16.mxu0 %v8687_v0  ;;  %v1740_v47 = vsel %vm1725_vm0, %v1737_v39, %v1739_v33 }
 0x17a   : > { %v2053_v57 = vsel %vm2009_vm5, %v2048_v22, %v2052_v31  ;;  %v7823_v27 = vpop.eup %7822  ;;  %v1433_v49 = vshrl.u32 %v6720_v18, 16  ;;  %v1436_v42 = vshll.u32 %v6720_v18, 16  ;;  %v8733_v31 = vrot.slane %v10991_v4, 1  ;;  %v7614_v18 = vld [vmem:[%s10981_s4 + $0xe0] sm:$0xff]  }
 0x17b   : > { %v2064_v58 = vor.u32 %v10990_v28, %v2060_v11  ;;  %v898_v46 = vmul.f32 %v7823_v27, %v8516_v61  ;;  %7143 = vmatmul.mubr.bf16.gmra.mxu0 %v2045_v14  ;;  %v2061_v19 = vsel %vm2009_vm5, %v2056_v7, %v2060_v11  ;;  %v1742_v22 = vsel %vm1725_vm0, %v1739_v33, %v1741_v51  ;;  %v1454_v7 = vld [vmem:[#allocation2 + $0x7c] sm:$0xc] }
 0x17c   : > { %v7825_v45 = vpop.eup %7824  ;;  %v1435_v1 = vrot.slane %v1433_v49, 5  ;;  %v1438_v63 = vrot.slane %v1436_v42, 6  ;;  %7146 = vmatprep.mubr.bf16.mxu0 %v2053_v57  ;;  %7095 = vmatmul.mubr.bf16.gmra.mxu1 %v1738_v44  ;;  %v10992_v61 = vshll.u32 %v8694_v40, 16  ;;  %v1744_v49 = vsel %vm1725_vm0, %v1741_v51, %v1743_v13  ;;  %v7617_v51 = vld [vmem:[%s10981_s4 + $0xd8] sm:$0xff]  }
 0x17d   : > { %v7827_v39 = vpop.eup %7826  ;;  %v896_v28 = vmul.f32 %v7825_v45, %v8521_v25  ;;  %v6723_v11 = vpack.c.bf16 %v898_v46, %v898_v46  ;;  %7098 = vmatprep.mubr.bf16.mxu1 %v1740_v47  ;;  %v2069_v33 = vsel %vm2009_vm5, %v2064_v58, %v8733_v31  ;;  %7231 = vmatpush3.bf16.msra.mxu0 %v8687_v0  ;;  %vm2422_vm8 = vsmask.f32 6400 }
 0x17e   : > { %v7829_v14 = vpop.eup %7828  ;;  %v901_v27 = vmul.f32 %v7827_v39, %v8527_v16  ;;  %v1439_v4 = vor.u32 %v1438_v63, %v1435_v1  ;;  %v8750_v57 = vrot.slane %v10992_v61, 1  ;;  %7232 = vmatprep.subr.bf16.mxu0 %v7614_v18  ;;  %v2072_v17 = vor.u32 %v2070_v10, %v8733_v31  ;;  %v7624_v31 = vld [vmem:[%s10981_s4 + $0xc0] sm:$0xff]  }
 0x17f   : > { %v7831_v42 = vpop.eup %7830  ;;  %v6721_v25 = vpack.c.bf16 %v896_v28, %v896_v28  ;;  %v899_v44 = vmul.f32 %v7829_v14, %v8549_v26  ;;  %v1476_v16 = vshll.u32 %v6723_v11, 16  ;;  %v1480_v47 = vshrl.u32 %v6723_v11, 16 }
 0x180   : > { %v6726_v45 = vpack.c.bf16 %v901_v27, %v901_v27  ;;  %v902_v58 = vmul.f32 %v7831_v42, %v8553_v35  ;;  %v7833_v63 = vpop.eup %7832  ;;  %v1440_v1 = vrot.slane %v1439_v4, 4  ;;  %v1455_v26 = vsel %vm8356_vm15, %v1439_v4, %v1454_v7  ;;  %v7619_v7 = vld [vmem:[%s10981_s4 + $0xd0] sm:$0xff]  }
 0x181   : > { %v1442_v28 = vshrl.u32 %v6721_v25, 16  ;;  %v1445_v46 = vshll.u32 %v6721_v25, 16  ;;  %1456 = vst [vmem:[#allocation2 + $0x7c] sm:$0xc] %v1455_v26  ;;  %v1478_v39 = vrot.slane %v1476_v16, 5  ;;  %v1482_v0 = vrot.slane %v1480_v47, 4  ;;  %7233 = vmatpush3.bf16.msra.mxu0 %v7614_v18 }
 0x182   : > { %v1533_v14 = vshrl.u32 %v6726_v45, 16  ;;  %v1536_v11 = vshll.u32 %v6726_v45, 16  ;;  %v6724_v35 = vpack.c.bf16 %v899_v44, %v899_v44  ;;  %v6727_v42 = vpack.c.bf16 %v902_v58, %v902_v58  ;;  %7234 = vmatprep.subr.bf16.mxu0 %v7617_v51  ;;  %v1554_v16 = vld [vmem:[#allocation2 + $0x98] sm:$0xe] }
 0x183   : > { %v1444_v27 = vrot.slane %v1442_v28, 5  ;;  %v1447_v61 = vrot.slane %v1445_v46, 6  ;;  %v1479_v15 = vsel %vm8365_vm1, %v8667_v20, %v1478_v39  ;;  %v1483_v3 = vor.u32 %v1482_v0, %v1478_v39  ;;  %7147 = vmatmul.mubr.bf16.gmra.mxu0 %v2061_v19  ;;  %v1458_v20 = vld [vmem:[#allocation2 + $0x84] sm:$0x7] }
 0x184   : > { %v1535_v55 = vrot.slane %v1533_v14, 6  ;;  %v1538_v4 = vrot.slane %v1536_v11, 7  ;;  %1491 = vst [vmem:[#allocation2 + $0x88] sm:$0xf] %v1479_v15  ;;  %v1501_v44 = vshrl.u32 %v6724_v35, 16  ;;  %v1504_v47 = vshll.u32 %v6724_v35, 16  ;;  %7150 = vmatprep.mubr.bf16.mxu0 %v2069_v33  ;;  %7099 = vmatmul.mubr.bf16.gmra.mxu1 %v1742_v22 }
 0x185   : > { %v1448_v25 = vor.u32 %v1447_v61, %v1444_v27  ;;  %v1542_v18 = vshrl.u32 %v6727_v42, 16  ;;  %v1484_v45 = vrot.slane %v1483_v3, 4  ;;  %v1545_v26 = vshll.u32 %v6727_v42, 16  ;;  %7102 = vmatprep.mubr.bf16.mxu1 %v1744_v49  ;;  %v8770_v61 = vld [vmem:[#allocation2 + $0x58] sm:$0xff]   ;;  %7235 = vmatpush3.bf16.msra.mxu0 %v7617_v51  ;;  %v1520_v33 = vld [vmem:[#allocation2 + $0x90] sm:$0xf] }
 0x186   : > { %v1539_v58 = vor.u32 %v1538_v4, %v1535_v55  ;;  %v900_v28 = vmul.f32 %v7833_v63, %v8558_v30  ;;  %v8768_v39 = vrot.slane %v1501_v44, 7  ;;  %7236 = vmatprep.subr.bf16.mxu0 %v7619_v7  ;;  %v2427_v49 = vshll.u32 %v8286_v53, 16  ;;  %v7621_v63 = vld [vmem:[%s10981_s4 + $0xc8] sm:$0xff]   ;;  %v1558_v35 = vld [vmem:[#allocation2 + $0xa0] sm:$0x3] }
 0x187   : > { %v1449_v19 = vsel %vm8388_vm13, %v1440_v1, %v1448_v25  ;;  %v1450_v46 = vrot.slane %v1448_v25, 4  ;;  %v1544_v15 = vrot.slane %v1542_v18, 6  ;;  %v1493_v22 = vsel %vm8378_vm9, %v1484_v45, %v1492_v50  ;;  %v8786_v1 = vld [vmem:[#allocation2 + $0x60] sm:$0xff]  }
 0x188   : > { %1457 = vst [vmem:[#allocation2 + $0x80] sm:$0xf] %v1449_v19  ;;  %v1555_v3 = vsel %vm8263_vm2, %v1539_v58, %v1554_v16  ;;  %v1547_v30 = vrot.slane %v1545_v26, 7  ;;  %1494 = vst [vmem:[#allocation2 + $0x8c] sm:$0xf] %v1493_v22  ;;  %v1506_v29 = vor.u32 %v1504_v47, %v8768_v39  ;;  %v6725_v50 = vpack.c.bf16 %v900_v28, %v900_v28 }
 0x189   : > { %v1459_v51 = vsel %vm8396_vm4, %v1450_v46, %v1458_v20  ;;  %1556 = vst [vmem:[#allocation2 + $0x98] sm:$0xe] %v1555_v3  ;;  %v1540_v0 = vrot.slane %v1539_v58, 4  ;;  %v2078_v11 = vshrl.u32 %v8694_v40, 16  ;;  %v11010_v27 = vshll.u32 %v8696_v37, 16  ;;  %7237 = vmatpush3.bf16.msra.mxu0 %v7619_v7  ;;  %v8809_v20 = vld [vmem:[#allocation2 + $0x68] sm:$0xff]  }
 0x18a   : > { %1460 = vst [vmem:[#allocation2 + $0x84] sm:$0x7] %v1459_v51  ;;  %v1548_v14 = vor.u32 %v1547_v30, %v1544_v15  ;;  %v1521_v21 = vsel %vm8407_vm7, %v1506_v29, %v1520_v33  ;;  %v1509_v42 = vshrl.u32 %v6725_v50, 16  ;;  %v2077_v55 = vsel %vm2009_vm5, %v2072_v17, %v8750_v57  ;;  %7238 = vmatprep.subr.bf16.mxu0 %v7621_v63  ;;  %v1524_v26 = vld [vmem:[#allocation2 + $0x98] sm:$0x1]  ;;  %v8816_v46 = vld [vmem:[#allocation2 + $0x70] sm:$0xff]  }
 0x18b   : > { %v1745_v4 = vrot.slane %v8770_v61, 1  ;;  %1522 = vst [vmem:[#allocation2 + $0x90] sm:$0xf] %v1521_v21  ;;  %7151 = vmatmul.mubr.bf16.gmra.mxu0 %v2077_v55  ;;  %v2080_v34 = vor.u32 %v2078_v11, %v8750_v57  ;;  %v2084_v44 = vrot.slane %v11010_v27, 1  ;;  %v1512_v47 = vshll.u32 %v6725_v50, 16 }
 0x18c   : > { %v1549_v25 = vsel %vm8424_vm6, %v1540_v0, %v1548_v14  ;;  %v1550_v16 = vrot.slane %v1548_v14, 4  ;;  %v1511_v7 = vrot.slane %v1509_v42, 7  ;;  %v1747_v45 = vrot.slane %v8786_v1, 1  ;;  %v8837_v0 = vld [vmem:[#allocation2 + $0x78] sm:$0xff]  }
 0x18d   : > { %1557 = vst [vmem:[#allocation2 + $0x9c] sm:$0xf] %v1549_v25  ;;  %v1746_v18 = vsel %vm1725_vm0, %v1743_v13, %v1745_v4  ;;  %v2085_v57 = vsel %vm2009_vm5, %v2080_v34, %v2084_v44  ;;  %v2086_v28 = vshrl.u32 %v8696_v37, 16  ;;  %v2090_v19 = vshll.u32 %v8770_v61, 16  ;;  %7239 = vmatpush3.bf16.msra.mxu0 %v7621_v63 }
 0x18e   : > { %v1559_v58 = vsel %vm8439_vm3, %v1550_v16, %v1558_v35  ;;  %7103 = vmatmul.mubr.bf16.gmra.mxu1 %v1746_v18  ;;  %v1507_v15 = vrot.slane %v8768_v39, 4  ;;  %v1514_v13 = vor.u32 %v1512_v47, %v1511_v7  ;;  %v1516_v22 = vrot.slane %v1511_v7, 4  ;;  %7154 = vmatprep.mubr.bf16.mxu0 %v2085_v57  ;;  %v8829_v39 = vld [vmem:[%s10981_s4 + $0x178] sm:$0xff]  }
 0x18f   : > { %1560 = vst [vmem:[#allocation2 + $0xa0] sm:$0x3] %v1559_v58  ;;  %v1748_v3 = vsel %vm1725_vm0, %v1745_v4, %v1747_v45  ;;  %v2088_v12 = vor.u32 %v2086_v28, %v2084_v44  ;;  %v2092_v33 = vrot.slane %v2090_v19, 1  ;;  %v2094_v30 = vshrl.u32 %v8770_v61, 16  ;;  %7240 = vmatprep.subr.bf16.mxu0 %v7624_v31  ;;  %v8853_v16 = vld [vmem:[#allocation2 + $0x88] sm:$0xff]  }
 0x190   : > { %7106 = vmatprep.mubr.bf16.mxu1 %v1748_v3  ;;  %v11013_v51 = vshll.u32 %v8786_v1, 16  ;;  %v1515_v63 = vsel %vm8432_vm11, %v1507_v15, %v1514_v13  ;;  %v1525_v29 = vsel %vm8117_vm14, %v1516_v22, %v1524_v26  ;;  %v1749_v50 = vrot.slane %v8809_v20, 1  ;;  %v8876_v15 = vld [vmem:[#allocation2 + $0x14] sm:$0xf] }
 0x191   : > { %v11004_v17 = vshll.u32 %v8809_v20, 16  ;;  %1523 = vst [vmem:[#allocation2 + $0x94] sm:$0xf] %v1515_v63  ;;  %1526 = vst [vmem:[#allocation2 + $0x98] sm:$0x1] %v1525_v29  ;;  %v2096_v14 = vor.u32 %v2094_v30, %v2092_v33  ;;  %v1751_v35 = vrot.slane %v8816_v46, 1  ;;  %v2093_v42 = vsel %vm2009_vm5, %v2088_v12, %v2092_v33  ;;  %7241 = vmatpush3.bf16.msra.mxu0 %v7624_v31 }
 0x192   : > { %v2100_v21 = vrot.slane %v11013_v51, 1  ;;  %v10999_v38 = vshll.u32 %v8816_v46, 16  ;;  %v8846_v55 = vld [vmem:[#allocation2 + $0x80] sm:$0xff]   ;;  %v8850_v4 = vrot.slane %v2424_v59, 1  ;;  %v8857_v34 = vrot.slane %v2427_v49, 2  ;;  %7330 = vmatprep.subr.bf16.mxu0 %v8829_v39 }
 0x193   : > { %7155 = vmatmul.mubr.bf16.gmra.mxu0 %v2093_v42  ;;  %v1750_v44 = vsel %vm1725_vm0, %v1747_v45, %v1749_v50  ;;  %v2102_v7 = vshrl.u32 %v8786_v1, 16  ;;  %v2108_v59 = vrot.slane %v11004_v17, 1  ;;  %v10997_v31 = vshll.u32 %v8837_v0, 16  ;;  %v2787_v33 = vld [vmem:[#allocation2 + $0x10] sm:$0xe] }
 0x194   : > { %v2101_v25 = vsel %vm2009_vm5, %v2096_v14, %v2100_v21  ;;  %v1752_v47 = vsel %vm1725_vm0, %v1749_v50, %v1751_v35  ;;  %v11009_v18 = vshrl.u32 %v8809_v20, 16  ;;  %v2116_v49 = vrot.slane %v10999_v38, 1  ;;  %v8911_v38 = vld [vmem:[#allocation2 + $0x18] sm:$0xff]  }
 0x195   : > { %7158 = vmatprep.mubr.bf16.mxu0 %v2101_v25  ;;  %v2104_v53 = vor.u32 %v2102_v7, %v2100_v21  ;;  %v1755_v45 = vrot.slane %v8846_v55, 1  ;;  %v10996_v58 = vshll.u32 %v8846_v55, 16  ;;  %v2435_v26 = vrot.slane %v2030_v23, 1 }
 0x196   : > { %7107 = vmatmul.mubr.bf16.gmra.mxu1 %v1750_v44  ;;  %v10998_v57 = vshll.u32 %v8853_v16, 16  ;;  %v2112_v13 = vor.u32 %v11009_v18, %v2108_v59  ;;  %v1753_v22 = vrot.slane %v8837_v0, 1  ;;  %v2124_v3 = vrot.slane %v10997_v31, 1 }
 0x197   : > { %7110 = vmatprep.mubr.bf16.mxu1 %v1752_v47  ;;  %v2430_v12 = vor.u32 %v8857_v34, %v8850_v4  ;;  %v11003_v63 = vshrl.u32 %v8816_v46, 16  ;;  %v11001_v23 = vshrl.u32 %v8837_v0, 16  ;;  %v2132_v29 = vrot.slane %v10996_v58, 1 }
 0x198   : > { %v8889_v50 = vld [vmem:[#allocation2 + $0x90] sm:$0xff]   ;;  %v11000_v14 = vshrl.u32 %v8846_v55, 16  ;;  %v2109_v21 = vsel %vm2009_vm5, %v2104_v53, %v2108_v59  ;;  %v2117_v42 = vsel %vm2009_vm5, %v2112_v13, %v2116_v49  ;;  %v1756_v25 = vsel %vm1725_vm0, %v1753_v22, %v1755_v45  ;;  %v8897_v34 = vld [vmem:[#allocation2 + $0x98] ss:$0 sps:$4 sm:$0x11]  }
 0x199   : > { %v2140_v4 = vrot.slane %v10998_v57, 1  ;;  %v2120_v44 = vor.u32 %v11003_v63, %v2116_v49  ;;  %v2431_v47 = vrot.slane %v2022_v32, 1  ;;  %v11090_v58 = vshll.u32 %v8534_v60, 16 }
 0x19a   : > { %v6480_v59 = vcombine.low %v2787_v33, %v8876_v15  ;;  %v1754_v53 = vsel %vm1725_vm0, %v1751_v35, %v1753_v22  ;;  %v2128_v13 = vor.u32 %v11001_v23, %v2124_v3  ;;  %v1757_v57 = vrot.slane %v8853_v16, 1  ;;  %v8928_v23 = vld [vmem:[#allocation2 + $0x20] sm:$0xff]  }
 0x19b   : > { %7159 = vmatmul.mubr.bf16.gmra.mxu0 %v2109_v21  ;;  %v2432_v31 = vrot.slane %v11090_v58, 2  ;;  %v11002_v21 = vshrl.u32 %v8853_v16, 16  ;;  %v2125_v32 = vsel %vm2009_vm5, %v2120_v44, %v2124_v3  ;;  %v1759_v60 = vrot.slane %v8889_v50, 1 }
 0x19c   : > { %7162 = vmatprep.mubr.bf16.mxu0 %v2117_v42  ;;  %v2136_v49 = vor.u32 %v11000_v14, %v2132_v29  ;;  %v11006_v58 = vshll.u32 %v8889_v50, 16  ;;  %v2133_v35 = vsel %vm2009_vm5, %v2128_v13, %v2132_v29  ;;  %v1758_v22 = vsel %vm1725_vm0, %v1755_v45, %v1757_v57 }
 0x19d   : > { %v2144_v33 = vor.u32 %v11002_v21, %v2140_v4  ;;  %v1761_v42 = vrot.slane %v8897_v34, 1  ;;  %v11008_v3 = vshrl.u32 %v8889_v50, 16  ;;  %v2935_v44 = vshrl.u32 %v6480_v59, 16 }
 0x19e   : > { %7111 = vmatmul.mubr.bf16.gmra.mxu1 %v1754_v53  ;;  %v8923_v53 = vor.u32 %v2432_v31, %v2431_v47  ;;  %v2436_v14 = vrot.slane %v2026_v62, 2  ;;  %v11005_v29 = vshrl.u32 %v8911_v38, 16  ;;  %v2439_v45 = vrot.slane %v2038_v36, 1  ;;  %v8944_v36 = vld [vmem:[#allocation2 + $0x28] sm:$0xff]  }
 0x19f   : > { %7114 = vmatprep.mubr.bf16.mxu1 %v1756_v25  ;;  %v2938_v25 = vshll.u32 %v6480_v59, 16  ;;  %v2440_v13 = vrot.slane %v2034_v52, 2  ;;  %v1760_v31 = vsel %vm1725_vm0, %v1757_v57, %v1759_v60  ;;  %v2141_v47 = vsel %vm2009_vm5, %v2136_v49, %v2140_v4 }
 0x1a0   : > { %v2148_v21 = vrot.slane %v11006_v58, 1  ;;  %v11007_v6 = vshll.u32 %v8911_v38, 16  ;;  %v1762_v62 = vsel %vm1725_vm0, %v1759_v60, %v1761_v42  ;;  %v2154_v59 = vshll.u32 %v8897_v34, 16 }
 0x1a1   : > { %v8942_v63 = vor.u32 %v2436_v14, %v2435_v26  ;;  %v2441_v17 = vor.u32 %v2440_v13, %v2439_v45  ;;  %v2434_v24 = vsel %vm2422_vm8, %v2430_v12, %v8923_v53  ;;  %v11011_v52 = vshrl.u32 %v8928_v23, 16  ;;  %v8962_v12 = vld [vmem:[#allocation2 + $0x30] sm:$0xff]  }
 0x1a2   : > { %v11012_v57 = vshll.u32 %v8928_v23, 16  ;;  %v11091_v4 = vshrl.u32 %v8639_v41, 16  ;;  %v8952_v60 = vrot.slane %v2935_v44, 1  ;;  %v8954_v34 = vrot.slane %v2938_v25, 2 }
 0x1a3   : > { %7163 = vmatmul.mubr.bf16.gmra.mxu0 %v2125_v32  ;;  %v2945_v26 = vrot.slane %v11005_v29, 1  ;;  %v8960_v14 = vsel %vm2422_vm8, %v8942_v63, %v2441_v17  ;;  %v2948_v32 = vrot.slane %v11007_v6, 2  ;;  %v11092_v42 = vshll.u32 %v8639_v41, 16 }
 0x1a4   : > { %v2443_v49 = vrot.slane %v11091_v4, 1  ;;  %7166 = vmatprep.mubr.bf16.mxu0 %v2133_v35  ;;  %v11093_v44 = vshrl.u32 %v8641_v56, 16  ;;  %v11094_v45 = vshll.u32 %v8641_v56, 16  ;;  %v8972_v4 = vld [vmem:[#allocation2 + $0x38] sm:$0xff]   ;;  %v2149_v29 = vsel %vm2009_vm5, %v2144_v33, %v2148_v21 }
 0x1a5   : > { %v2444_v35 = vrot.slane %v11092_v42, 2  ;;  %v2961_v58 = vshrl.u32 %v8944_v36, 16  ;;  %v11014_v6 = vshll.u32 %v8944_v36, 16  ;;  %v2954_v41 = vrot.slane %v11011_v52, 1 }
 0x1a6   : > { %7115 = vmatmul.mubr.bf16.gmra.mxu1 %v1758_v22  ;;  %v2447_v25 = vrot.slane %v11093_v44, 1  ;;  %v2448_v13 = vrot.slane %v11094_v45, 2  ;;  %v2152_v22 = vor.u32 %v11008_v3, %v2148_v21  ;;  %v2957_v42 = vrot.slane %v11012_v57, 2  ;;  %v8987_v3 = vld [vmem:[#allocation2 + $0x40] sm:$0xff]  }
 0x1a7   : > { %7118 = vmatprep.mubr.bf16.mxu1 %v1760_v31  ;;  %v2445_v56 = vor.u32 %v2444_v35, %v2443_v49  ;;  %v2156_v45 = vrot.slane %v2154_v59, 1  ;;  %v2941_v31 = vor.u32 %v8954_v34, %v8952_v60  ;;  %v11028_v33 = vshrl.u32 %v8962_v12, 16  ;;  %v8996_v35 = vld [vmem:[#allocation2 + $0x48] sm:$0xff]  }
 0x1a8   : > { %v2449_v44 = vor.u32 %v2448_v13, %v2447_v25  ;;  %v11016_v21 = vshll.u32 %v8962_v12, 16  ;;  %v2949_v18 = vor.u32 %v2948_v32, %v2945_v26  ;;  %v11015_v49 = vshrl.u32 %v8972_v4, 16 }
 0x1a9   : > { %v8990_v27 = vsel %vm2422_vm8, %v2441_v17, %v2445_v56  ;;  %v11017_v59 = vshll.u32 %v8972_v4, 16  ;;  %v11095_v60 = vshrl.u32 %v8671_v54, 16  ;;  %v11096_v25 = vshll.u32 %v8671_v54, 16 }
 0x1aa   : > { %v8993_v52 = vsel %vm2422_vm8, %v2445_v56, %v2449_v44  ;;  %v2455_v26 = vrot.slane %v2070_v10, 1  ;;  %v2958_v17 = vor.u32 %v2957_v42, %v2954_v41  ;;  %v2963_v32 = vrot.slane %v2961_v58, 1 }
 0x1ab   : > { %v2451_v34 = vrot.slane %v11095_v60, 1  ;;  %v2452_v13 = vrot.slane %v11096_v25, 2  ;;  %7167 = vmatmul.mubr.bf16.gmra.mxu0 %v2141_v47  ;;  %v2966_v56 = vrot.slane %v11014_v6, 2  ;;  %v11097_v57 = vshll.u32 %v8657_v8, 16 }
 0x1ac   : > { %7170 = vmatprep.mubr.bf16.mxu0 %v2149_v29  ;;  %v2972_v60 = vrot.slane %v11028_v33, 1  ;;  %v2975_v54 = vrot.slane %v11016_v21, 2  ;;  %v11027_v10 = vshrl.u32 %v8987_v3, 16  ;;  %v11022_v41 = vshll.u32 %v8987_v3, 16 }
 0x1ad   : > { %v2456_v51 = vrot.slane %v11097_v57, 2  ;;  %v2453_v25 = vor.u32 %v2452_v13, %v2451_v34  ;;  %v11021_v42 = vshrl.u32 %v8996_v35, 16  ;;  %v11020_v6 = vshll.u32 %v8996_v35, 16 }
 0x1ae   : > { %7119 = vmatmul.mubr.bf16.gmra.mxu1 %v1762_v62  ;;  %v2981_v8 = vrot.slane %v11015_v49, 1  ;;  %v2984_v29 = vrot.slane %v11017_v59, 2  ;;  %v2459_v62 = vrot.slane %v2078_v11, 1  ;;  %v11098_v34 = vshll.u32 %v8694_v40, 16 }
 0x1af   : > { %v2457_v47 = vor.u32 %v2456_v51, %v2455_v26  ;;  %7190 = vmatprep.mubr.bf16.mxu1 %v2434_v24  ;;  %v9024_v57 = vsel %vm2422_vm8, %v2449_v44, %v2453_v25  ;;  %v9033_v26 = vld [vmem:[#allocation2 + $0x50] sm:$0xff]   ;;  %v2157_v24 = vsel %vm2009_vm5, %v2152_v22, %v2156_v45  ;;  %v2967_v49 = vor.u32 %v2966_v56, %v2963_v32  ;;  %v9051_v56 = vld [vmem:[#allocation2 + $0x58] sm:$0xff]  }
 0x1b0   : > { %v2460_v13 = vrot.slane %v11098_v34, 2  ;;  %v2976_v21 = vor.u32 %v2975_v54, %v2972_v60  ;;  %v2990_v59 = vrot.slane %v11027_v10, 1  ;;  %v2993_v44 = vrot.slane %v11022_v41, 2  ;;  %v7628_v60 = vld [vmem:[%s10981_s4 + $0x130] sm:$0xff]   ;;  %v7635_v41 = vld [vmem:[%s10981_s4 + $0x120] sm:$0xff]  }
 0x1b1   : > { %v9029_v51 = vsel %vm2422_vm8, %v2453_v25, %v2457_v47  ;;  %v2999_v11 = vrot.slane %v11021_v42, 1  ;;  %v3002_v25 = vrot.slane %v11020_v6, 2  ;;  %v2950_v34 = vsel %vm2422_vm8, %v2941_v31, %v2949_v18 }
 0x1b2   : > { %v9044_v40 = vor.u32 %v2460_v13, %v2459_v62  ;;  %v2438_v22 = vsel %vm2422_vm8, %v8923_v53, %v8942_v63  ;;  %v2959_v45 = vsel %vm2422_vm8, %v2949_v18, %v2958_v17  ;;  %v2985_v32 = vor.u32 %v2984_v29, %v2981_v8  ;;  %v9072_v29 = vld [vmem:[#allocation2 + $0x60] sm:$0xff]  }
 0x1b3   : > { %7171 = vmatmul.mubr.bf16.gmra.mxu0 %v2157_v24  ;;  %v11019_v31 = vshrl.u32 %v9033_v26, 16  ;;  %v11018_v62 = vshll.u32 %v9033_v26, 16  ;;  %v2467_v63 = vrot.slane %v2094_v30, 1  ;;  %v2968_v18 = vsel %vm2422_vm8, %v2958_v17, %v2967_v49 }
 0x1b4   : > { %v9058_v54 = vsel %vm2422_vm8, %v2457_v47, %v9044_v40  ;;  %7242 = vmatprep.mubr.bf16.mxu0 %v2950_v34  ;;  %v9066_v53 = vsel %vm2422_vm8, %v2967_v49, %v2976_v21  ;;  %v2468_v8 = vrot.slane %v2090_v19, 2  ;;  %v2471_v47 = vrot.slane %v2102_v7, 1 }
 0x1b5   : > { %v2994_v13 = vor.u32 %v2993_v44, %v2990_v59  ;;  %v3003_v24 = vor.u32 %v3002_v25, %v2999_v11  ;;  %v2463_v30 = vrot.slane %v2086_v28, 1  ;;  %v11099_v34 = vshll.u32 %v8786_v1, 16  ;;  %v7631_v1 = vld [vmem:[%s10981_s4 + $0x128] sm:$0xff]  }
 0x1b6   : > { %7191 = vmatmul.mubr.bf16.vlgmr.msra.gmra.mxu1 %v2438_v22  ;;  %v11100_v61 = vshll.u32 %v8696_v37, 16  ;;  %v11023_v7 = vshrl.u32 %v9051_v56, 16  ;;  %v11026_v49 = vshll.u32 %v9051_v56, 16  ;;  %v9084_v22 = vor.u32 %v2468_v8, %v2467_v63  ;;  %v9105_v8 = vld [vmem:[#allocation2 + $0x70] sm:$0xff]  }
 0x1b7   : > { %v2472_v17 = vrot.slane %v11099_v34, 2  ;;  %7279 = vmatpush3.bf16.msra.mxu1 %v8665_v48  ;;  %7194 = vmatprep.mubr.bf16.mxu1 %v8960_v14  ;;  %v9087_v59 = vsel %vm2422_vm8, %v2976_v21, %v2985_v32  ;;  %v3008_v48 = vrot.slane %v11019_v31, 1  ;;  %v3011_v37 = vrot.slane %v11018_v62, 2  ;;  %v9096_v14 = vld [vmem:[#allocation2 + $0x68] sm:$0xff]   ;;  %v9118_v31 = vld [vmem:[#allocation2 + $0x78] sm:$0xff]  }
 0x1b8   : > { %v2464_v19 = vrot.slane %v11100_v61, 2  ;;  %7280 = vmatprep.subr.bf16.mxu1 %v7628_v60  ;;  %v9099_v44 = vsel %vm2422_vm8, %v2985_v32, %v2994_v13  ;;  %v11025_v11 = vshrl.u32 %v9072_v29, 16  ;;  %v11024_v21 = vshll.u32 %v9072_v29, 16 }
 0x1b9   : > { %v2473_v28 = vor.u32 %v2472_v17, %v2471_v47  ;;  %v11101_v25 = vshrl.u32 %v8809_v20, 16  ;;  %v9108_v34 = vsel %vm2422_vm8, %v2994_v13, %v3003_v24  ;;  %v11102_v17 = vshll.u32 %v8809_v20, 16 }
 0x1ba   : > { %v11103_v61 = vshrl.u32 %v8816_v46, 16  ;;  %v9123_v6 = vor.u32 %v2464_v19, %v2463_v30  ;;  %v3017_v13 = vrot.slane %v11023_v7, 1  ;;  %v3020_v42 = vrot.slane %v11026_v49, 2  ;;  %v9162_v49 = vld [vmem:[#allocation2 + $0x80] sm:$0xff]  }
 0x1bb   : > { %v2475_v63 = vrot.slane %v11101_v25, 1  ;;  %v9112_v47 = vsel %vm2422_vm8, %v9084_v22, %v2473_v28  ;;  %v2476_v32 = vrot.slane %v11102_v17, 2  ;;  %v7644_v25 = vld [vmem:[%s10981_s4 + $0x170] sm:$0xff]   ;;  %7281 = vmatpush3.bf16.msra.mxu1 %v7628_v60  ;;  %v11104_v20 = vshll.u32 %v8816_v46, 16  ;;  %7243 = vmatmul.mubr.bf16.vlgmr.msra.gmra.mxu0 %v2959_v45 }
 0x1bc   : > { %v2479_v62 = vrot.slane %v11103_v61, 1  ;;  %7282 = vmatprep.subr.bf16.mxu1 %v7631_v1  ;;  %v3012_v61 = vor.u32 %v3011_v37, %v3008_v48  ;;  %v11034_v60 = vshrl.u32 %v9096_v14, 16  ;;  %v11033_v30 = vshll.u32 %v9096_v14, 16  ;;  %7246 = vmatprep.mubr.bf16.mxu0 %v2968_v18 }
 0x1bd   : > { %v2480_v17 = vrot.slane %v11104_v20, 2  ;;  %v2477_v19 = vor.u32 %v2476_v32, %v2475_v63  ;;  %v3026_v7 = vrot.slane %v11025_v11, 1  ;;  %v3029_v46 = vrot.slane %v11024_v21, 2  ;;  %7331 = vmatpush3.bf16.msra.mxu0 %v8829_v39 }
 0x1be   : > { %v11032_v45 = vshrl.u32 %v9105_v8, 16  ;;  %7195 = vmatmul.mubr.bf16.gmra.mxu1 %v8990_v27  ;;  %v11031_v37 = vshll.u32 %v9105_v8, 16  ;;  %v11030_v18 = vshrl.u32 %v9118_v31, 16  ;;  %7332 = vmatprep.subr.bf16.mxu0 %v7644_v25  ;;  %v11105_v63 = vshrl.u32 %v8837_v0, 16 }
 0x1bf   : > { %v2481_v20 = vor.u32 %v2480_v17, %v2479_v62  ;;  %v9144_v48 = vsel %vm2422_vm8, %v2473_v28, %v2477_v19  ;;  %v7646_v62 = vld [vmem:[%s10981_s4 + $0x168] sm:$0xff]   ;;  %7198 = vmatprep.mubr.bf16.mxu1 %v8993_v52  ;;  %7283 = vmatpush3.bf16.msra.mxu1 %v7631_v1  ;;  %v11029_v39 = vshll.u32 %v9118_v31, 16  ;;  %v11106_v28 = vshll.u32 %v8837_v0, 16  ;;  %v7639_v0 = vld [vmem:[%s10981_s4 + $0x118] sm:$0xff]  }
 0x1c0   : > { %v2483_v32 = vrot.slane %v11105_v63, 1  ;;  %v11107_v21 = vshrl.u32 %v8846_v55, 16  ;;  %v9167_v63 = vsel %vm2422_vm8, %v9044_v40, %v9123_v6  ;;  %v9170_v52 = vsel %vm2422_vm8, %v3003_v24, %v3012_v61  ;;  %7284 = vmatprep.subr.bf16.mxu1 %v7635_v41 }
 0x1c1   : > { %v9155_v27 = vsel %vm2422_vm8, %v2477_v19, %v2481_v20  ;;  %v2484_v17 = vrot.slane %v11106_v28, 2  ;;  %v3021_v1 = vor.u32 %v3020_v42, %v3017_v13  ;;  %v11108_v19 = vshll.u32 %v8846_v55, 16  ;;  %7333 = vmatpush3.bf16.msra.mxu0 %v7644_v25 }
 0x1c2   : > { %v2487_v11 = vrot.slane %v11107_v21, 1  ;;  %v3030_v21 = vor.u32 %v3029_v46, %v3026_v7  ;;  %v3035_v10 = vrot.slane %v11034_v60, 1  ;;  %v3038_v40 = vrot.slane %v11033_v30, 2  ;;  %7334 = vmatprep.subr.bf16.mxu0 %v7646_v62  ;;  %v7649_v7 = vld [vmem:[%s10981_s4 + $0x160] sm:$0xff]   ;;  %v7643_v46 = vld [vmem:[%s10981_s4 + $0x110] sm:$0xff]  }
 0x1c3   : > { %v2488_v28 = vrot.slane %v11108_v19, 2  ;;  %v2485_v33 = vor.u32 %v2484_v17, %v2483_v32  ;;  %v3044_v24 = vrot.slane %v11032_v45, 1  ;;  %v3047_v42 = vrot.slane %v11031_v37, 2  ;;  %7285 = vmatpush3.bf16.msra.mxu1 %v7635_v41  ;;  %v9199_v19 = vld [vmem:[#allocation2 + $0x88] sm:$0xff]   ;;  %7247 = vmatmul.mubr.bf16.gmra.mxu0 %v9066_v53 }
 0x1c4   : > { %v3053_v13 = vrot.slane %v11030_v18, 1  ;;  %v3056_v25 = vrot.slane %v11029_v39, 2  ;;  %v3060_v17 = vshrl.u32 %v9162_v49, 16  ;;  %7286 = vmatprep.subr.bf16.mxu1 %v7639_v0  ;;  %v3063_v39 = vshll.u32 %v9162_v49, 16  ;;  %7250 = vmatprep.mubr.bf16.mxu0 %v9087_v59 }
 0x1c5   : > { %v2489_v55 = vor.u32 %v2488_v28, %v2487_v11  ;;  %v9196_v32 = vsel %vm2422_vm8, %v2481_v20, %v2485_v33  ;;  %v11109_v11 = vshrl.u32 %v8853_v16, 16  ;;  %v11110_v18 = vshll.u32 %v8853_v16, 16  ;;  %v7655_v30 = vld [vmem:[#allocation2 + $0x98] ss:$0 sps:$4 sm:$0x33]   ;;  %7335 = vmatpush3.bf16.msra.mxu0 %v7646_v62 }
 0x1c6   : > { %v11111_v20 = vshrl.u32 %v8889_v50, 16  ;;  %v9214_v60 = vsel %vm2422_vm8, %v3012_v61, %v3021_v1  ;;  %v9219_v53 = vsel %vm2422_vm8, %v9123_v6, %v9084_v22  ;;  %7199 = vmatmul.mubr.bf16.gmra.mxu1 %v9024_v57  ;;  %7336 = vmatprep.subr.bf16.mxu0 %v7649_v7  ;;  %v7651_v61 = vld [vmem:[%s10981_s4 + $0x158] sm:$0xff]   ;;  %v9231_v6 = vor.u32 %v3056_v25, %v3053_v13  ;;  %v3383_v22 = vld [vmem:[#allocation2 + $0x10] sm:$0xc] }
 0x1c7   : > { %v2491_v28 = vrot.slane %v11109_v11, 1  ;;  %v9205_v41 = vsel %vm2422_vm8, %v2485_v33, %v2489_v55  ;;  %v2492_v37 = vrot.slane %v11110_v18, 2  ;;  %v3039_v33 = vor.u32 %v3038_v40, %v3035_v10  ;;  %7202 = vmatprep.mubr.bf16.mxu1 %v9029_v51  ;;  %7287 = vmatpush3.bf16.msra.mxu1 %v7639_v0  ;;  %v7648_v51 = vld [vmem:[%s10981_s4 + $0x108] sm:$0xff]   ;;  %v9245_v0 = vld [vmem:[#allocation2 + $0x90] sm:$0xff]  }
 0x1c8   : > { %v2495_v45 = vrot.slane %v11111_v20, 1  ;;  %v11112_v11 = vshll.u32 %v8889_v50, 16  ;;  %v9225_v18 = vsel %vm2422_vm8, %v3021_v1, %v3030_v21  ;;  %v3048_v20 = vor.u32 %v3047_v42, %v3044_v24  ;;  %7288 = vmatprep.subr.bf16.mxu1 %v7643_v46 }
 0x1c9   : > { %v2493_v59 = vor.u32 %v2492_v37, %v2491_v28  ;;  %v11036_v50 = vshrl.u32 %v9199_v19, 16  ;;  %v11035_v10 = vshll.u32 %v9199_v19, 16  ;;  %v3062_v62 = vrot.slane %v3060_v17, 1  ;;  %7337 = vmatpush3.bf16.msra.mxu0 %v7649_v7  ;;  %v9257_v28 = vld [vmem:[#allocation2 + $0x98] sm:$0xff]  }
 0x1ca   : > { %v2496_v16 = vrot.slane %v11112_v11, 2  ;;  %v3065_v37 = vrot.slane %v3063_v39, 2  ;;  %v2500_v40 = vshrl.u32 %v7655_v30, 16  ;;  %v2503_v42 = vshll.u32 %v7655_v30, 16  ;;  %7338 = vmatprep.subr.bf16.mxu0 %v7651_v61 }
 0x1cb   : > { %v9243_v1 = vsel %vm2422_vm8, %v2489_v55, %v2493_v59  ;;  %v6523_v13 = vcombine.low %v3383_v22, %v8876_v15  ;;  %v9255_v25 = vsel %vm2422_vm8, %v3039_v33, %v3048_v20  ;;  %v7654_v55 = vld [vmem:[%s10981_s4 + $0x150] sm:$0xff]   ;;  %vm3404_vm9 = vcmask 1045504   ;;  %7289 = vmatpush3.bf16.msra.mxu1 %v7643_v46  ;;  %7251 = vmatmul.mubr.bf16.gmra.mxu0 %v9099_v44  ;;  %v7653_v46 = vld [vmem:[%s10981_s4 + $0x100] sm:$0xff]   ;;  %v7658_v22 = vld [vmem:[%s10981_s4 + $0x148] sm:$0xff]  }
 0x1cc   : > { %v2497_v57 = vor.u32 %v2496_v16, %v2495_v45  ;;  %v9248_v45 = vsel %vm2422_vm8, %v3030_v21, %v3039_v33  ;;  %v2502_v11 = vrot.slane %v2500_v40, 1  ;;  %v3406_v21 = vrot.slane %v8911_v38, 2  ;;  %7290 = vmatprep.subr.bf16.mxu1 %v7648_v51  ;;  %7254 = vmatprep.mubr.bf16.mxu0 %v9108_v34 }
 0x1cd   : > { %v9265_v7 = vsel %vm2422_vm8, %v3048_v20, %v9231_v6  ;;  %v9269_v15 = vrot.slane %v11036_v50, 1  ;;  %v2505_v30 = vrot.slane %v2503_v42, 2  ;;  %v3405_v33 = vrot.slane %v6523_v13, 2  ;;  %7339 = vmatpush3.bf16.msra.mxu0 %v7651_v61 }
 0x1ce   : > { %v9251_v24 = vsel %vm2422_vm8, %v2493_v59, %v2497_v57  ;;  %v9272_v16 = vor.u32 %v3065_v37, %v3062_v62  ;;  %v9276_v59 = vrot.slane %v11035_v10, 2  ;;  %v3744_v20 = vshrl.u32 %v6523_v13, 16  ;;  %7203 = vmatmul.mubr.bf16.gmra.mxu1 %v9058_v54  ;;  %7340 = vmatprep.subr.bf16.mxu0 %v7654_v55 }
 0x1cf   : > { %v2506_v44 = vor.u32 %v2505_v30, %v2502_v11  ;;  %v9285_v62 = vsel %vm3404_vm9, %v3405_v33, %v3406_v21  ;;  %v3747_v37 = vshll.u32 %v6523_v13, 16  ;;  %v11113_v34 = vshrl.u32 %v8911_v38, 16  ;;  %7206 = vmatprep.mubr.bf16.mxu1 %v9167_v63  ;;  %7291 = vmatpush3.bf16.msra.mxu1 %v7648_v51 }
 0x1d0   : > { %v3746_v10 = vrot.slane %v3744_v20, 2  ;;  %v11114_v61 = vshll.u32 %v8911_v38, 16  ;;  %v3408_v30 = vrot.slane %v8928_v23, 2  ;;  %v3410_v33 = vrot.slane %v8944_v36, 2  ;;  %7292 = vmatprep.subr.bf16.mxu1 %v7653_v46 }
 0x1d1   : > { %v3751_v50 = vrot.slane %v11113_v34, 2  ;;  %v9298_v13 = vsel %vm2422_vm8, %v2497_v57, %v2506_v44  ;;  %v3749_v54 = vrot.slane %v3747_v37, 3  ;;  %vm3742_vm14 = vsmask.f32 5376  ;;  %v9305_v34 = vld [vmem:[%s10981_s4 + $0x1b8] sm:$0xff]   ;;  %7341 = vmatpush3.bf16.msra.mxu0 %v7654_v55 }
 0x1d2   : > { %v3752_v11 = vrot.slane %v11114_v61, 3  ;;  %v11115_v38 = vshrl.u32 %v8928_v23, 16  ;;  %v11116_v51 = vshll.u32 %v8928_v23, 16  ;;  %v9312_v37 = vsel %vm3404_vm9, %v3406_v21, %v3408_v30  ;;  %7342 = vmatprep.subr.bf16.mxu0 %v7658_v22 }
 0x1d3   : > { %v3750_v44 = vor.u32 %v3749_v54, %v3746_v10  ;;  %v9315_v61 = vsel %vm3404_vm9, %v3408_v30, %v3410_v33  ;;  %v11117_v55 = vshll.u32 %v8944_v36, 16  ;;  %v3412_v21 = vrot.slane %v8962_v12, 2  ;;  %7293 = vmatpush3.bf16.msra.mxu1 %v7653_v46  ;;  %7255 = vmatmul.mubr.bf16.gmra.mxu0 %v9170_v52 }
 0x1d4   : > { %v3753_v20 = vor.u32 %v3752_v11, %v3751_v50  ;;  %v3755_v63 = vrot.slane %v11115_v38, 2  ;;  %v3756_v57 = vrot.slane %v11116_v51, 3  ;;  %v3759_v50 = vrot.slane %v2961_v58, 2  ;;  %v7659_v38 = vld [vmem:[%s10981_s4 + $0x140] sm:$0xff]   ;;  %7382 = vmatprep.subr.bf16.mxu1 %v9305_v34  ;;  %7258 = vmatprep.mubr.bf16.mxu0 %v9214_v60 }
 0x1d5   : > { %v3760_v10 = vrot.slane %v11117_v55, 3  ;;  %v3414_v30 = vrot.slane %v8972_v4, 2  ;;  %v11118_v58 = vshrl.u32 %v8962_v12, 16  ;;  %v11119_v11 = vshll.u32 %v8962_v12, 16  ;;  %7343 = vmatpush3.bf16.msra.mxu0 %v7658_v22 }
 0x1d6   : > { %v3757_v23 = vor.u32 %v3756_v57, %v3755_v63  ;;  %v9327_v54 = vsel %vm3742_vm14, %v3750_v44, %v3753_v20  ;;  %v9340_v46 = vsel %vm3404_vm9, %v3410_v33, %v3412_v21  ;;  %v11120_v57 = vshrl.u32 %v8972_v4, 16  ;;  %7207 = vmatmul.mubr.bf16.gmra.mxu1 %v9219_v53  ;;  %7344 = vmatprep.subr.bf16.mxu0 %v7659_v38 }
 0x1d7   : > { %v3763_v51 = vrot.slane %v11118_v58, 2  ;;  %v3764_v42 = vrot.slane %v11119_v11, 3  ;;  %v3761_v63 = vor.u32 %v3760_v10, %v3759_v50  ;;  %v9346_v12 = vsel %vm3404_vm9, %v3412_v21, %v3414_v30  ;;  %7210 = vmatprep.mubr.bf16.mxu1 %v9112_v47 }
 0x1d8   : > { %v9337_v36 = vsel %vm3742_vm14, %v3753_v20, %v3757_v23  ;;  %v3767_v44 = vrot.slane %v11120_v57, 2  ;;  %v11121_v52 = vshll.u32 %v8972_v4, 16  ;;  %v3416_v20 = vrot.slane %v8987_v3, 2  ;;  %v9363_v4 = vld [vmem:[%s10981_s4 + $0x1f8] sm:$0xff]  }
 0x1d9   : > { %v3765_v11 = vor.u32 %v3764_v42, %v3763_v51  ;;  %v9353_v33 = vsel %vm3742_vm14, %v3757_v23, %v3761_v63  ;;  %v3418_v50 = vrot.slane %v8996_v35, 2  ;;  %v11122_v60 = vshrl.u32 %v8987_v3, 16  ;;  %7345 = vmatpush3.bf16.msra.mxu0 %v7659_v38 }
 0x1da   : > { %v3768_v55 = vrot.slane %v11121_v52, 3  ;;  %v11123_v10 = vshll.u32 %v8987_v3, 16  ;;  %v9370_v23 = vsel %vm3404_vm9, %v3414_v30, %v3416_v20  ;;  %v11124_v58 = vshrl.u32 %v8996_v35, 16  ;;  %7434 = vmatprep.subr.bf16.mxu0 %v9363_v4 }
 0x1db   : > { %v3771_v22 = vrot.slane %v11122_v60, 2  ;;  %v9367_v53 = vsel %vm3742_vm14, %v3761_v63, %v3765_v11  ;;  %v9375_v3 = vsel %vm3404_vm9, %v3416_v20, %v3418_v50  ;;  %v11125_v52 = vshll.u32 %v8996_v35, 16  ;;  %7259 = vmatmul.mubr.bf16.gmra.mxu0 %v9225_v18 }
 0x1dc   : > { %v3772_v21 = vrot.slane %v11123_v10, 3  ;;  %v3769_v42 = vor.u32 %v3768_v55, %v3767_v44  ;;  %v3775_v51 = vrot.slane %v11124_v58, 2  ;;  %v3420_v10 = vrot.slane %v9033_v26, 2  ;;  %7262 = vmatprep.mubr.bf16.mxu0 %v9248_v45 }
 0x1dd   : > { %v3776_v60 = vrot.slane %v11125_v52, 3  ;;  %v3422_v63 = vrot.slane %v9051_v56, 2  ;;  %v11126_v30 = vshrl.u32 %v9033_v26, 16  ;;  %v11127_v55 = vshll.u32 %v9033_v26, 16 }
 0x1de   : > { %v3773_v57 = vor.u32 %v3772_v21, %v3771_v22  ;;  %v9381_v47 = vsel %vm3742_vm14, %v3765_v11, %v3769_v42  ;;  %v9392_v35 = vsel %vm3404_vm9, %v3418_v50, %v3420_v10  ;;  %v11128_v38 = vshrl.u32 %v9051_v56, 16  ;;  %7211 = vmatmul.mubr.bf16.gmra.mxu1 %v9144_v48 }
 0x1df   : > { %v3779_v44 = vrot.slane %v11126_v30, 2  ;;  %v3780_v58 = vrot.slane %v11127_v55, 3  ;;  %v3777_v22 = vor.u32 %v3776_v60, %v3775_v51  ;;  %v9398_v11 = vsel %vm3404_vm9, %v3420_v10, %v3422_v63  ;;  %7214 = vmatprep.mubr.bf16.mxu1 %v9155_v27 }
 0x1e0   : > { %v9389_v20 = vsel %vm3742_vm14, %v3769_v42, %v3773_v57  ;;  %v3783_v21 = vrot.slane %v11128_v38, 2  ;;  %v11129_v30 = vshll.u32 %v9051_v56, 16  ;;  %v3424_v55 = vrot.slane %v9072_v29, 2 }
 0x1e1   : > { %v3781_v52 = vor.u32 %v3780_v58, %v3779_v44  ;;  %v9405_v42 = vsel %vm3742_vm14, %v3773_v57, %v3777_v22  ;;  %v3426_v50 = vrot.slane %v9096_v14, 2  ;;  %v11130_v51 = vshrl.u32 %v9072_v29, 16 }
 0x1e2   : > { %v3784_v26 = vrot.slane %v11129_v30, 3  ;;  %v11131_v38 = vshll.u32 %v9072_v29, 16  ;;  %v9417_v58 = vsel %vm3404_vm9, %v3422_v63, %v3424_v55  ;;  %v11132_v18 = vshrl.u32 %v9096_v14, 16 }
 0x1e3   : > { %v3787_v60 = vrot.slane %v11130_v51, 2  ;;  %v9414_v56 = vsel %vm3742_vm14, %v3777_v22, %v3781_v52  ;;  %v9423_v30 = vsel %vm3404_vm9, %v3424_v55, %v3426_v50  ;;  %v11133_v29 = vshll.u32 %v9096_v14, 16  ;;  %7263 = vmatmul.mubr.bf16.gmra.mxu0 %v9255_v25 }
 0x1e4   : > { %v3788_v10 = vrot.slane %v11131_v38, 3  ;;  %v3785_v44 = vor.u32 %v3784_v26, %v3783_v21  ;;  %v3791_v57 = vrot.slane %v11132_v18, 2  ;;  %v3428_v45 = vrot.slane %v9105_v8, 2  ;;  %7266 = vmatprep.mubr.bf16.mxu0 %v9265_v7 }
 0x1e5   : > { %v3792_v38 = vrot.slane %v11133_v29, 3  ;;  %v3430_v63 = vrot.slane %v9118_v31, 2  ;;  %v11134_v21 = vshrl.u32 %v9105_v8, 16  ;;  %v11135_v48 = vshll.u32 %v9105_v8, 16 }
 0x1e6   : > { %v3789_v51 = vor.u32 %v3788_v10, %v3787_v60  ;;  %v9430_v22 = vsel %vm3742_vm14, %v3781_v52, %v3785_v44  ;;  %v9441_v10 = vsel %vm3404_vm9, %v3426_v50, %v3428_v45  ;;  %v11136_v27 = vshrl.u32 %v9118_v31, 16  ;;  %7215 = vmatmul.mubr.bf16.gmra.mxu1 %v9196_v32 }
 0x1e7   : > { %v3795_v26 = vrot.slane %v11134_v21, 2  ;;  %v3796_v55 = vrot.slane %v11135_v48, 3  ;;  %v3793_v14 = vor.u32 %v3792_v38, %v3791_v57  ;;  %v9446_v52 = vsel %vm3404_vm9, %v3428_v45, %v3430_v63  ;;  %v7657_v38 = vld [vmem:[#allocation2 + $0xa0] ss:$0 sps:$4 sm:$0x33]   ;;  %7218 = vmatprep.mubr.bf16.mxu1 %v9205_v41 }
 0x1e8   : > { %v9438_v60 = vsel %vm3742_vm14, %v3785_v44, %v3789_v51  ;;  %v3799_v18 = vrot.slane %v11136_v27, 2  ;;  %v11137_v40 = vshll.u32 %v9118_v31, 16  ;;  %v3432_v8 = vrot.slane %v9162_v49, 2 }
 0x1e9   : > { %v3797_v29 = vor.u32 %v3796_v55, %v3795_v26  ;;  %v9452_v48 = vsel %vm3742_vm14, %v3789_v51, %v3793_v14  ;;  %v3434_v44 = vrot.slane %v9199_v19, 2  ;;  %v3803_v50 = vrot.slane %v3060_v17, 2 }
 0x1ea   : > { %v3800_v21 = vrot.slane %v11137_v40, 3  ;;  %v3804_v57 = vrot.slane %v3063_v39, 3  ;;  %v9463_v31 = vsel %vm3404_vm9, %v3430_v63, %v3432_v8  ;;  %v11138_v40 = vshrl.u32 %v9199_v19, 16 }
 0x1eb   : > { %v9460_v45 = vsel %vm3742_vm14, %v3793_v14, %v3797_v29  ;;  %v9469_v55 = vsel %vm3404_vm9, %v3432_v8, %v3434_v44  ;;  %v11139_v49 = vshll.u32 %v9199_v19, 16  ;;  %v3436_v27 = vrot.slane %v9245_v0, 2 }
 0x1ec   : > { %v3801_v26 = vor.u32 %v3800_v21, %v3799_v18  ;;  %v3807_v51 = vrot.slane %v11138_v40, 2  ;;  %v3805_v17 = vor.u32 %v3804_v57, %v3803_v50  ;;  %v3438_v63 = vrot.slane %v9257_v28, 2 }
 0x1ed   : > { %v3808_v39 = vrot.slane %v11139_v49, 3  ;;  %v11140_v18 = vshrl.u32 %v9245_v0, 16  ;;  %v11141_v25 = vshll.u32 %v9245_v0, 16  ;;  %v9488_v57 = vsel %vm3404_vm9, %v3434_v44, %v3436_v27 }
 0x1ee   : > { %v9476_v14 = vsel %vm3742_vm14, %v3797_v29, %v3801_v26  ;;  %v9485_v19 = vsel %vm3742_vm14, %v3801_v26, %v3805_v17  ;;  %v11142_v7 = vshrl.u32 %v9257_v28, 16  ;;  %v9494_v40 = vsel %vm3404_vm9, %v3436_v27, %v3438_v63  ;;  %7219 = vmatmul.mubr.bf16.gmra.mxu1 %v9243_v1 }
 0x1ef   : > { %v3811_v21 = vrot.slane %v11140_v18, 2  ;;  %v3812_v8 = vrot.slane %v11141_v25, 3  ;;  %v3809_v50 = vor.u32 %v3808_v39, %v3807_v51  ;;  %v11143_v18 = vshll.u32 %v9257_v28, 16  ;;  %7222 = vmatprep.mubr.bf16.mxu1 %v9251_v24  ;;  %v7661_v24 = vld [vmem:[%s10981_s4 + $0x1b0] sm:$0xff]  }
 0x1f0   : > { %v3815_v29 = vrot.slane %v11142_v7, 2  ;;  %v3440_v32 = vrot.slane %v7657_v38, 2  ;;  %v3075_v41 = vor.u32 %v9276_v59, %v9269_v15  ;;  %v3067_v27 = vsel %vm2422_vm8, %v9231_v6, %v9272_v16 }
 0x1f1   : > { %v3813_v49 = vor.u32 %v3812_v8, %v3811_v21  ;;  %v3816_v25 = vrot.slane %v11143_v18, 3  ;;  %v9499_v26 = vsel %vm3742_vm14, %v3805_v17, %v3809_v50  ;;  %v11144_v21 = vshrl.u32 %v9245_v0, 16  ;;  %7267 = vmatmul.mubr.bf16.gmra.mxu0 %v3067_v27 }
 0x1f2   : > { %v9507_v39 = vsel %vm3404_vm9, %v3438_v63, %v3440_v32  ;;  %v11145_v17 = vshll.u32 %v9245_v0, 16  ;;  %v3076_v63 = vsel %vm2422_vm8, %v9272_v16, %v3075_v41  ;;  %v11146_v15 = vshrl.u32 %v9257_v28, 16 }
 0x1f3   : > { %v9502_v51 = vsel %vm3742_vm14, %v3809_v50, %v3813_v49  ;;  %v9504_v44 = vor.u32 %v3816_v25, %v3815_v29  ;;  %v3080_v8 = vrot.slane %v11144_v21, 1  ;;  %v11147_v29 = vmov %v11143_v18  ;;  %7270 = vmatprep.mubr.bf16.mxu0 %v3076_v63 }
 0x1f4   : > { %v3083_v7 = vrot.slane %v11145_v17, 2  ;;  %v3089_v59 = vrot.slane %v11146_v15, 1  ;;  %v3092_v6 = vrot.slane %v11147_v29, 2  ;;  %v3096_v18 = vshrl.u32 %v7657_v38, 16  ;;  %v9580_v17 = vld [vmem:[#allocation2 + $0x68] sm:$0xff]  }
 0x1f5   : > { %v9520_v50 = vsel %vm3742_vm14, %v3813_v49, %v9504_v44  ;;  %v3099_v25 = vshll.u32 %v7657_v38, 16  ;;  %v9565_v38 = vld [vmem:[#allocation2 + $0x38] sm:$0xff]   ;;  %vm5062_vm2 = vsmask.f32 4352  ;;  %vm4724_vm15 = vcmask 1044480  }
 0x1f6   : > { %v3084_v0 = vor.u32 %v3083_v7, %v3080_v8  ;;  %v3093_v49 = vor.u32 %v3092_v6, %v3089_v59  ;;  %v3098_v27 = vrot.slane %v3096_v18, 1  ;;  %7223 = vmatmul.mubr.bf16.gmra.mxu1 %v9298_v13  ;;  %v7667_v13 = vld [vmem:[%s10981_s4 + $0x1f0] sm:$0xff]   ;;  %v9576_v8 = vld [vmem:[#allocation2 + $0x58] sm:$0xff]   ;;  %v7670_v7 = vld [vmem:[%s10981_s4 + $0x1e0] sm:$0xff]  }
 0x1f7   : > { %v3101_v21 = vrot.slane %v3099_v25, 2  ;;  %7294 = vmatprep.mubr.bf16.mxu1 %v9285_v62  ;;  %v7662_v62 = vld [vmem:[%s10981_s4 + $0x1a8] sm:$0xff]   ;;  %v9589_v6 = vld [vmem:[#allocation2 + $0x70] sm:$0xff]   ;;  %v11043_v25 = vshrl.u32 %v9565_v38, 16 }
 0x1f8   : > { %v3085_v32 = vsel %vm2422_vm8, %v3075_v41, %v3084_v0  ;;  %v3094_v16 = vsel %vm2422_vm8, %v3084_v0, %v3093_v49  ;;  %v9574_v41 = vld [vmem:[#allocation2 + $0x50] sm:$0xff]   ;;  %v11163_v43 = vshll.u32 %v9589_v6, 16 }
 0x1f9   : > { %7271 = vmatmul.mubr.bf16.gmra.mxu0 %v3085_v32  ;;  %v3102_v28 = vor.u32 %v3101_v21, %v3098_v27  ;;  %v9595_v32 = vld [vmem:[#allocation2 + $0x78] sm:$0xff]   ;;  %v9597_v27 = vld [vmem:[#allocation2 + $0x80] sm:$0xff]   ;;  %v7666_v21 = vld [vmem:[%s10981_s4 + $0x190] sm:$0xff]  }
 0x1fa   : > { %7274 = vmatprep.mubr.bf16.mxu0 %v3094_v16  ;;  %v9614_v16 = vld [vmem:[#allocation2 + $0x90] sm:$0xff]  }
 0x1fb   : > { %v3103_v1 = vsel %vm2422_vm8, %v3093_v49, %v3102_v28 }
 0x1fe   : > { %7295 = vmatmul.mubr.bf16.vlgmr.msra.gmra.mxu1 %v9312_v37  ;;  %v7663_v37 = vld [vmem:[%s10981_s4 + $0x1a0] sm:$0xff]  }
 0x1ff   : > { %7383 = vmatpush3.bf16.msra.mxu1 %v9305_v34  ;;  %7298 = vmatprep.mubr.bf16.mxu1 %v9315_v61  ;;  %v7668_v34 = vld [vmem:[%s10981_s4 + $0x1e8] sm:$0xff]   ;;  %v9558_v61 = vld [vmem:[#allocation2 + $0x20] sm:$0xff]  }
 0x200   : > { %7384 = vmatprep.subr.bf16.mxu1 %v7661_v24  ;;  %v11037_v63 = vshrl.u32 %v9558_v61, 16  ;;  %v11038_v15 = vshll.u32 %v9558_v61, 16 }
 0x201   : > { %7275 = vmatmul.mubr.bf16.gmra.mxu0 %v3103_v1 }
 0x202   : > { %7346 = vmatprep.mubr.bf16.mxu0 %v9327_v54  ;;  %v9560_v54 = vld [vmem:[#allocation2 + $0x28] sm:$0xff]   ;;  %v5071_v49 = vrot.slane %v11037_v63, 3 }
 0x203   : > { %7385 = vmatpush3.bf16.msra.mxu1 %v7661_v24  ;;  %v11040_v59 = vshrl.u32 %v9560_v54, 16  ;;  %v11039_v29 = vshll.u32 %v9560_v54, 16  ;;  %v7671_v24 = vld [vmem:[%s10981_s4 + $0x1d8] sm:$0xff]  }
 0x204   : > { %7386 = vmatprep.subr.bf16.mxu1 %v7662_v62 }
 0x205   : > { %v5075_v63 = vrot.slane %v11040_v59, 3  ;;  %v11154_v59 = vshll.u32 %v9574_v41, 16 }
 0x206   : > { %7299 = vmatmul.mubr.bf16.gmra.mxu1 %v9340_v46  ;;  %v7664_v46 = vld [vmem:[%s10981_s4 + $0x198] sm:$0xff]  }
 0x207   : > { %7302 = vmatprep.mubr.bf16.mxu1 %v9346_v12  ;;  %7387 = vmatpush3.bf16.msra.mxu1 %v7662_v62  ;;  %v9578_v12 = vld [vmem:[#allocation2 + $0x60] sm:$0xff]   ;;  %v9607_v62 = vld [vmem:[#allocation2 + $0x88] sm:$0xff]   ;;  %v5096_v2 = vrot.slane %v11154_v59, 4 }
 0x208   : > { %7388 = vmatprep.subr.bf16.mxu1 %v7663_v37  ;;  %v11159_v9 = vshll.u32 %v9578_v12, 16 }
 0x209   : > { %7347 = vmatmul.mubr.bf16.vlgmr.msra.gmra.mxu0 %v9337_v36  ;;  %v9563_v36 = vld [vmem:[#allocation2 + $0x30] sm:$0xff]  }
 0x20a   : > { %7350 = vmatprep.mubr.bf16.mxu0 %v9353_v33  ;;  %7435 = vmatpush3.bf16.msra.mxu0 %v9363_v4  ;;  %v9567_v33 = vld [vmem:[#allocation2 + $0x40] sm:$0xff]   ;;  %v9572_v4 = vld [vmem:[#allocation2 + $0x48] sm:$0xff]   ;;  %v11041_v0 = vshrl.u32 %v9563_v36, 16  ;;  %v11042_v18 = vshll.u32 %v9563_v36, 16  ;;  %v5104_v5 = vrot.slane %v11159_v9, 4 }
 0x20b   : > { %7436 = vmatprep.subr.bf16.mxu0 %v7667_v13  ;;  %7389 = vmatpush3.bf16.msra.mxu1 %v7663_v37  ;;  %v9624_v37 = vld [vmem:[#allocation2 + $0x98] sm:$0xff]  }
 0x20c   : > { %7390 = vmatprep.subr.bf16.mxu1 %v7664_v46  ;;  %v5079_v28 = vrot.slane %v11041_v0, 3 }
 0x20e   : > { %7437 = vmatpush3.bf16.msra.mxu0 %v7667_v13  ;;  %7303 = vmatmul.mubr.bf16.gmra.mxu1 %v9370_v23  ;;  %v7669_v13 = vld [vmem:[%s10981_s4 + $0x188] sm:$0xff]   ;;  %v11150_v23 = vshll.u32 %v9567_v33, 16 }
 0x20f   : > { %7438 = vmatprep.subr.bf16.mxu0 %v7668_v34  ;;  %7306 = vmatprep.mubr.bf16.mxu1 %v9375_v3  ;;  %v7673_v3 = vld [vmem:[%s10981_s4 + $0x1d0] sm:$0xff]  }
 0x210   : > { %7391 = vmatpush3.bf16.msra.mxu1 %v7664_v46  ;;  %v5088_v46 = vrot.slane %v11150_v23, 4 }
 0x211   : > { %7351 = vmatmul.mubr.bf16.gmra.mxu0 %v9367_v53  ;;  %7392 = vmatprep.subr.bf16.mxu1 %v7666_v21  ;;  %v5080_v53 = vrot.slane %v11042_v18, 4 }
 0x212   : > { %7354 = vmatprep.mubr.bf16.mxu0 %v9381_v47  ;;  %7439 = vmatpush3.bf16.msra.mxu0 %v7668_v34  ;;  %v9631_v47 = vld [vmem:[#allocation2 + $0xa0] sm:$0xff]   ;;  %v5072_v34 = vrot.slane %v11038_v15, 4  ;;  %v11148_v15 = vshll.u32 %v9565_v38, 16 }
 0x213   : > { %7440 = vmatprep.subr.bf16.mxu0 %v7670_v7 }
 0x214   : > { %7393 = vmatpush3.bf16.msra.mxu1 %v7666_v21  ;;  %v9658_v1 = vor.u32 %v5072_v34, %v5071_v49  ;;  %v5083_v21 = vrot.slane %v11043_v25, 3  ;;  %v5084_v49 = vrot.slane %v11148_v15, 4  ;;  %v5081_v34 = vor.u32 %v5080_v53, %v5079_v28 }
 0x215   : > { %7394 = vmatprep.subr.bf16.mxu1 %v7669_v13  ;;  %v11151_v28 = vshrl.u32 %v9572_v4, 16  ;;  %v11152_v53 = vshll.u32 %v9572_v4, 16 }
 0x216   : > { %7441 = vmatpush3.bf16.msra.mxu0 %v7670_v7  ;;  %v5076_v7 = vrot.slane %v11039_v29, 4  ;;  %v7672_v29 = vld [vmem:[%s10981_s4 + $0x180] sm:$0xff]   ;;  %7307 = vmatmul.mubr.bf16.gmra.mxu1 %v9392_v35 }
 0x217   : > { %7442 = vmatprep.subr.bf16.mxu0 %v7671_v24  ;;  %7310 = vmatprep.mubr.bf16.mxu1 %v9398_v11 }
 0x218   : > { %v5077_v0 = vor.u32 %v5076_v7, %v5075_v63  ;;  %v7677_v63 = vld [vmem:[%s10981_s4 + $0x1c8] sm:$0xff]   ;;  %v5092_v7 = vrot.slane %v11152_v53, 4  ;;  %7395 = vmatpush3.bf16.msra.mxu1 %v7669_v13  ;;  %v11158_v53 = vshrl.u32 %v9578_v12, 16 }
 0x219   : > { %7355 = vmatmul.mubr.bf16.gmra.mxu0 %v9389_v20  ;;  %v11149_v20 = vshrl.u32 %v9567_v33, 16  ;;  %7396 = vmatprep.subr.bf16.mxu1 %v7672_v29 }
 0x21a   : > { %7358 = vmatprep.mubr.bf16.mxu0 %v9405_v42  ;;  %7443 = vmatpush3.bf16.msra.mxu0 %v7671_v24  ;;  %v9682_v15 = vsel %vm5062_vm2, %v9658_v1, %v5077_v0  ;;  %v5085_v42 = vor.u32 %v5084_v49, %v5083_v21  ;;  %v5091_v24 = vrot.slane %v11151_v28, 3  ;;  %v9690_v35 = vsel %vm5062_vm2, %v5077_v0, %v5081_v34  ;;  %v9699_v21 = vld [vmem:[%s10981_s4 + $0x238] sm:$0xff]  }
 0x21b   : > { %v5087_v18 = vrot.slane %v11149_v20, 3  ;;  %7444 = vmatprep.subr.bf16.mxu0 %v7673_v3  ;;  %v11153_v20 = vshrl.u32 %v9574_v41, 16  ;;  %v11155_v0 = vshrl.u32 %v9576_v8, 16 }
 0x21c   : > { %v9702_v49 = vsel %vm5062_vm2, %v5081_v34, %v5085_v42  ;;  %v5093_v11 = vor.u32 %v5092_v7, %v5091_v24  ;;  %v7679_v34 = vld [vmem:[%s10981_s4 + $0x1c0] sm:$0xff]   ;;  %7397 = vmatpush3.bf16.msra.mxu1 %v7672_v29  ;;  %v11165_v29 = vshrl.u32 %v9595_v32, 16 }
 0x21d   : > { %v5089_v23 = vor.u32 %v5088_v46, %v5087_v18  ;;  %v5095_v25 = vrot.slane %v11153_v20, 3  ;;  %v5099_v13 = vrot.slane %v11155_v0, 3  ;;  %v11156_v18 = vshll.u32 %v9576_v8, 16  ;;  %7486 = vmatprep.subr.bf16.mxu1 %v9699_v21 }
 0x21e   : > { %7445 = vmatpush3.bf16.msra.mxu0 %v7673_v3  ;;  %v5103_v20 = vrot.slane %v11158_v53, 3  ;;  %v11160_v3 = vshrl.u32 %v9580_v17, 16  ;;  %7311 = vmatmul.mubr.bf16.gmra.mxu1 %v9417_v58  ;;  %v11174_v58 = vshrl.u32 %v9614_v16, 16 }
 0x21f   : > { %v5100_v46 = vrot.slane %v11156_v18, 4  ;;  %v9709_v28 = vsel %vm5062_vm2, %v5085_v42, %v5089_v23  ;;  %v5097_v59 = vor.u32 %v5096_v2, %v5095_v25  ;;  %7446 = vmatprep.subr.bf16.mxu0 %v7677_v63  ;;  %v9719_v24 = vsel %vm5062_vm2, %v5089_v23, %v5093_v11  ;;  %7314 = vmatprep.mubr.bf16.mxu1 %v9423_v30 }
 0x220   : > { %11157 = vst [vmem:[#allocation7_spill] sm:$0xff] %v9709_v28  ;;  %v5107_v42 = vrot.slane %v11160_v3, 3  ;;  %v11161_v2 = vshll.u32 %v9580_v17, 16  ;;  %v5105_v9 = vor.u32 %v5104_v5, %v5103_v20  ;;  %v11162_v18 = vshrl.u32 %v9589_v6, 16 }
 0x221   : > { %v5101_v7 = vor.u32 %v5100_v46, %v5099_v13  ;;  %v9726_v0 = vsel %vm5062_vm2, %v5093_v11, %v5097_v59  ;;  %v5112_v28 = vrot.slane %v11163_v43, 4  ;;  %7359 = vmatmul.mubr.bf16.gmra.mxu0 %v9414_v56  ;;  %v5115_v46 = vrot.slane %v11165_v29, 3 }
 0x222   : > { %v5108_v25 = vrot.slane %v11161_v2, 4  ;;  %v5111_v53 = vrot.slane %v11162_v18, 3  ;;  %v11166_v11 = vshll.u32 %v9595_v32, 16  ;;  %7362 = vmatprep.mubr.bf16.mxu0 %v9430_v22  ;;  %7447 = vmatpush3.bf16.msra.mxu0 %v7677_v63  ;;  %v11168_v56 = vshrl.u32 %v9597_v27, 16 }
 0x223   : > { %v9735_v23 = vsel %vm5062_vm2, %v5097_v59, %v5101_v7  ;;  %v9743_v20 = vsel %vm5062_vm2, %v5101_v7, %v5105_v9  ;;  %v11169_v59 = vshll.u32 %v9597_v27, 16  ;;  %7448 = vmatprep.subr.bf16.mxu0 %v7679_v34  ;;  %v11171_v22 = vshrl.u32 %v9607_v62, 16 }
 0x224   : > { %11164 = vst [vmem:[#allocation8_spill] sm:$0xff] %v9735_v23  ;;  %v5109_v13 = vor.u32 %v5108_v25, %v5107_v42  ;;  %v5116_v5 = vrot.slane %v11166_v11, 4  ;;  %11167 = vst [vmem:[#allocation9_spill] sm:$0xff] %v9743_v20  ;;  %v5113_v43 = vor.u32 %v5112_v28, %v5111_v53  ;;  %v5119_v3 = vrot.slane %v11168_v56, 3  ;;  %v7705_v28 = vld [vmem:[#allocation2 + $0xa8] ss:$0 sps:$4 sm:$0xff]  }
 0x225   : > { %v5120_v2 = vrot.slane %v11169_v59, 4  ;;  %v5123_v63 = vrot.slane %v11171_v22, 3  ;;  %v11172_v7 = vshll.u32 %v9607_v62, 16  ;;  %v5127_v11 = vrot.slane %v11174_v58, 3 }
 0x226   : > { %v9751_v42 = vsel %vm5062_vm2, %v5105_v9, %v5109_v13  ;;  %v5117_v25 = vor.u32 %v5116_v5, %v5115_v46  ;;  %v9759_v53 = vsel %vm5062_vm2, %v5109_v13, %v5113_v43  ;;  %v11175_v9 = vshll.u32 %v9614_v16, 16  ;;  %7449 = vmatpush3.bf16.msra.mxu0 %v7679_v34  ;;  %7315 = vmatmul.mubr.bf16.gmra.mxu1 %v9441_v10 }
 0x227   : > { %11170 = vst [vmem:[#allocation10_spill] sm:$0xff] %v9751_v42  ;;  %v5124_v18 = vrot.slane %v11172_v7, 4  ;;  %11173 = vst [vmem:[#allocation11_spill] sm:$0xff] %v9759_v53  ;;  %v5121_v29 = vor.u32 %v5120_v2, %v5119_v3  ;;  %v11177_v59 = vshrl.u32 %v9624_v37, 16  ;;  %v11178_v7 = vshll.u32 %v9624_v37, 16  ;;  %7318 = vmatprep.mubr.bf16.mxu1 %v9446_v52 }
 0x228   : > { %v5128_v56 = vrot.slane %v11175_v9, 4  ;;  %v9766_v46 = vsel %vm5062_vm2, %v5113_v43, %v5117_v25  ;;  %v11180_v2 = vshrl.u32 %v9631_v47, 16  ;;  %v11181_v9 = vshll.u32 %v9631_v47, 16  ;;  %v7676_v52 = vld [vmem:[#allocation2 + $0xa0] ss:$0 sps:$4 sm:$0x77]  }
 0x229   : > { %11176 = vst [vmem:[#allocation12_spill] sm:$0xff] %v9766_v46  ;;  %v5125_v5 = vor.u32 %v5124_v18, %v5123_v63  ;;  %v5131_v22 = vrot.slane %v11177_v59, 3  ;;  %v5132_v30 = vrot.slane %v11178_v7, 4  ;;  %v9773_v13 = vsel %vm5062_vm2, %v5117_v25, %v5121_v29  ;;  %7363 = vmatmul.mubr.bf16.gmra.mxu0 %v9438_v60  ;;  %v7088_v7 = vpop.f32.mrf.mxu1 }
 0x22a   : > { %11179 = vst [vmem:[#allocation13_spill] sm:$0xff] %v9773_v13  ;;  %v5129_v3 = vor.u32 %v5128_v56, %v5127_v11  ;;  %v5135_v58 = vrot.slane %v11180_v2, 3  ;;  %v5136_v53 = vrot.slane %v11181_v9, 4  ;;  %v5140_v18 = vshrl.u32 %v7705_v28, 16  ;;  %7366 = vmatprep.mubr.bf16.mxu0 %v9452_v48  ;;  %v4108_v48 = vld [vmem:[#allocation2 + $0x1c] sm:$0xf] }
 0x22b   : > { %v9780_v43 = vsel %vm5062_vm2, %v5121_v29, %v5125_v5  ;;  %v5133_v63 = vor.u32 %v5132_v30, %v5131_v22  ;;  %v5143_v59 = vshll.u32 %v7705_v28, 16  ;;  %v1863_v60 = vpop.f32.mrf.mxu1 }
 0x22c   : > { %11182 = vst [vmem:[#allocation14_spill] sm:$0xff] %v9780_v43  ;;  %v9783_v46 = vsel %vm5062_vm2, %v5125_v5, %v5129_v3  ;;  %v5137_v34 = vor.u32 %v5136_v53, %v5135_v58  ;;  %v5142_v11 = vrot.slane %v5140_v18, 3  ;;  %v4107_v5 = vld [vmem:[#allocation2 + $0x18] sm:$0xc]  ;;  %v11187_v18 = vshrl.u32 %v9558_v61, 16 }
 0x22d   : > { %11183 = vst [vmem:[#allocation15_spill] sm:$0xff] %v9783_v46  ;;  %v9787_v25 = vsel %vm5062_vm2, %v5129_v3, %v5133_v63  ;;  %v5145_v56 = vrot.slane %v5143_v59, 4  ;;  %v7089_v22 = vpop.f32.mrf.mxu1  ;;  %v6573_v30 = vcombine.low %v4107_v5, %v4108_v48  ;;  %v11188_v59 = vshll.u32 %v9558_v61, 16 }
 0x22e   : > { %11184 = vst [vmem:[#allocation16_spill] sm:$0xff] %v9787_v25  ;;  %v9791_v29 = vsel %vm5062_vm2, %v5133_v63, %v5137_v34  ;;  %7319 = vmatmul.mubr.bf16.gmra.mxu1 %v9463_v31  ;;  %v4734_v25 = vrot.slane %v9567_v33, 3 }
 0x22f   : > { %11185 = vst [vmem:[#allocation17_spill] sm:$0xff] %v9791_v29  ;;  %v5146_v28 = vor.u32 %v5145_v56, %v5142_v11  ;;  %7322 = vmatprep.mubr.bf16.mxu1 %v9469_v55  ;;  %v1866_v10 = vpop.f32.mrf.mxu1  ;;  %v4255_v3 = vshrl.u32 %v6573_v30, 16  ;;  %v4258_v2 = vshll.u32 %v6573_v30, 16  ;;  %v4265_v55 = vrot.slane %v11187_v18, 2 }
 0x230   : > { %v3820_v56 = vshrl.u32 %v7676_v52, 16 }
 0x231   : > { %v9796_v53 = vsel %vm5062_vm2, %v5137_v34, %v5146_v28  ;;  %7367 = vmatmul.mubr.bf16.gmra.mxu0 %v9460_v45  ;;  %v4257_v63 = vrot.slane %v4255_v3, 2  ;;  %v4260_v31 = vrot.slane %v4258_v2, 3  ;;  %v4268_v34 = vrot.slane %v11188_v59, 3 }
 0x232   : > { %11186 = vst [vmem:[#allocation18_spill] sm:$0xff] %v9796_v53  ;;  %7370 = vmatprep.mubr.bf16.mxu0 %v9476_v14  ;;  %v3822_v18 = vrot.slane %v3820_v56, 2 }
 0x233   : > { %v7140_v58 = vpop.f32.mrf.mxu0  ;;  %v4261_v30 = vor.u32 %v4260_v31, %v4257_v63  ;;  %v4269_v3 = vor.u32 %v4268_v34, %v4265_v55  ;;  %v11190_v63 = vshll.u32 %v9560_v54, 16 }
 0x234   : > { %v9803_v9 = vadd.f32 %v7140_v58, %v7088_v7  ;;  %v7092_v45 = vpop.f32.mrf.mxu1  ;;  %v3823_v7 = vshll.u32 %v7676_v52, 16  ;;  %v4703_v52 = vld [vmem:[#allocation2 + $0x18] sm:$0x8] }
 0x235   : > { %v2258_v14 = vpop.f32.mrf.mxu0  ;;  %v4277_v31 = vrot.slane %v11190_v63, 3  ;;  %v4270_v55 = vsel %vm3742_vm14, %v4261_v30, %v4269_v3  ;;  %v9828_v34 = vcombine.low %v4703_v52, %v4108_v48 }
 0x236   : > { %7323 = vmatmul.mubr.bf16.gmra.mxu1 %v9488_v57  ;;  %v9811_v11 = vadd.f32 %v2258_v14, %v1863_v60  ;;  %v3825_v53 = vrot.slane %v3823_v7, 3 }
 0x237   : > { %7326 = vmatprep.mubr.bf16.mxu1 %v9494_v40  ;;  %v4725_v52 = vrot.slane %v9828_v34, 3 }
 0x239   : > { %7371 = vmatmul.mubr.bf16.gmra.mxu0 %v9485_v19  ;;  %v1879_v19 = vpop.f32.mrf.mxu1 }
 0x23a   : > { %7374 = vmatprep.mubr.bf16.mxu0 %v9499_v26  ;;  %v7141_v26 = vpop.f32.mrf.mxu0 }
 0x23b   : > { %v9814_v28 = vadd.f32 %v7141_v26, %v7089_v22  ;;  %v7093_v5 = vpop.f32.mrf.mxu1  ;;  %v11189_v22 = vshrl.u32 %v9560_v54, 16 }
 0x23c   : > { %v2261_v57 = vpop.f32.mrf.mxu0 }
 0x23d   : > { %v9816_v2 = vadd.f32 %v2261_v57, %v1866_v10  ;;  %v1882_v58 = vpop.f32.mrf.mxu1  ;;  %v4274_v14 = vrot.slane %v11189_v22, 2  ;;  %v3826_v57 = vor.u32 %v3825_v53, %v3822_v18  ;;  %v4726_v22 = vrot.slane %v9558_v61, 3  ;;  %v7684_v61 = vld [vmem:[%s10981_s4 + $0x230] sm:$0xff]  }
 0x23e   : > { %v7144_v59 = vpop.f32.mrf.mxu0  ;;  %7327 = vmatmul.mubr.bf16.gmra.mxu1 %v9507_v39 }
 0x23f   : > { %v9819_v60 = vadd.f32 %v7144_v59, %v7092_v45  ;;  %v7096_v40 = vpop.f32.mrf.mxu1  ;;  %7398 = vmatprep.mubr.bf16.mxu1 %v4270_v55  ;;  %v4278_v48 = vor.u32 %v4277_v31, %v4274_v14  ;;  %v4727_v53 = vsel %vm4724_vm15, %v4725_v52, %v4726_v22  ;;  %v11195_v52 = vshrl.u32 %v9567_v33, 16 }
 0x240   : > { %v2274_v10 = vpop.f32.mrf.mxu0 }
 0x241   : > { %7375 = vmatmul.mubr.bf16.gmra.mxu0 %v9502_v51  ;;  %v11191_v51 = vshrl.u32 %v9563_v36, 16  ;;  %v9834_v7 = vadd.f32 %v2274_v10, %v1879_v19  ;;  %v1895_v26 = vpop.f32.mrf.mxu1  ;;  %v3827_v19 = vsel %vm3742_vm14, %v9504_v44, %v3826_v57  ;;  %v4279_v14 = vsel %vm3742_vm14, %v4269_v3, %v4278_v48 }
 0x242   : > { %7378 = vmatprep.mubr.bf16.mxu0 %v9520_v50  ;;  %v11192_v50 = vshll.u32 %v9563_v36, 16  ;;  %v7145_v59 = vpop.f32.mrf.mxu0  ;;  %v11194_v44 = vshll.u32 %v9565_v38, 16  ;;  %v4730_v3 = vrot.slane %v9563_v36, 3 }
 0x243   : > { %v4283_v45 = vrot.slane %v11191_v51, 2  ;;  %v9837_v63 = vadd.f32 %v7145_v59, %v7093_v5  ;;  %v7097_v39 = vpop.f32.mrf.mxu1  ;;  %v4728_v59 = vrot.slane %v9560_v54, 3 }
 0x244   : > { %v4286_v56 = vrot.slane %v11192_v50, 3  ;;  %v2277_v30 = vpop.f32.mrf.mxu0 }
 0x245   : > { %v9840_v29 = vadd.f32 %v2277_v30, %v1882_v58  ;;  %v1898_v10 = vpop.f32.mrf.mxu1  ;;  %v11193_v58 = vshrl.u32 %v9565_v38, 16  ;;  %v4729_v36 = vsel %vm4724_vm15, %v4726_v22, %v4728_v59 }
 0x246   : > { %v4287_v51 = vor.u32 %v4286_v56, %v4283_v45  ;;  %v7148_v55 = vpop.f32.mrf.mxu0  ;;  %v4295_v45 = vrot.slane %v11194_v44, 3  ;;  %7399 = vmatmul.mubr.bf16.vlgmr.msra.gmra.mxu1 %v4279_v14 }
 0x247   : > { %v9848_v5 = vadd.f32 %v7148_v55, %v7096_v40  ;;  %v7100_v18 = vpop.f32.mrf.mxu1  ;;  %v4292_v31 = vrot.slane %v11193_v58, 2  ;;  %7487 = vmatpush3.bf16.msra.mxu1 %v9699_v21  ;;  %v11196_v55 = vshll.u32 %v9567_v33, 16 }
 0x248   : > { %v2290_v50 = vpop.f32.mrf.mxu0  ;;  %v4288_v56 = vsel %vm3742_vm14, %v4278_v48, %v4287_v51  ;;  %7488 = vmatprep.subr.bf16.mxu1 %v7684_v61 }
 0x249   : > { %7379 = vmatmul.mubr.bf16.gmra.mxu0 %v3827_v19  ;;  %v9856_v57 = vadd.f32 %v2290_v50, %v1895_v26  ;;  %7402 = vmatprep.mubr.bf16.mxu1 %v4288_v56  ;;  %v1911_v40 = vpop.f32.mrf.mxu1  ;;  %v4301_v19 = vrot.slane %v11195_v52, 2  ;;  %v7688_v26 = vld [vmem:[%s10981_s4 + $0x228] sm:$0xff]   ;;  %v4296_v14 = vor.u32 %v4295_v45, %v4292_v31  ;;  %v4731_v56 = vsel %vm4724_vm15, %v4728_v59, %v4730_v3 }
 0x24a   : > { %7450 = vmatprep.mubr.bf16.mxu0 %v4727_v53  ;;  %v7149_v30 = vpop.f32.mrf.mxu0  ;;  %v4304_v53 = vrot.slane %v11196_v55, 3  ;;  %v11197_v31 = vshrl.u32 %v9572_v4, 16 }
 0x24b   : > { %v9868_v48 = vadd.f32 %v7149_v30, %v7097_v39  ;;  %v7101_v21 = vpop.f32.mrf.mxu1  ;;  %7489 = vmatpush3.bf16.msra.mxu1 %v7684_v61  ;;  %v7691_v39 = vld [vmem:[%s10981_s4 + $0x220] sm:$0xff]   ;;  %v11198_v61 = vshll.u32 %v9572_v4, 16 }
 0x24c   : > { %v2293_v58 = vpop.f32.mrf.mxu0  ;;  %v4305_v52 = vor.u32 %v4304_v53, %v4301_v19  ;;  %7490 = vmatprep.subr.bf16.mxu1 %v7688_v26  ;;  %v4310_v22 = vrot.slane %v11197_v31, 2  ;;  %v11199_v19 = vshrl.u32 %v9574_v41, 16 }
 0x24d   : > { %v9870_v54 = vadd.f32 %v2293_v58, %v1898_v10  ;;  %v1914_v44 = vpop.f32.mrf.mxu1  ;;  %v4297_v10 = vsel %vm3742_vm14, %v4287_v51, %v4296_v14  ;;  %v4313_v45 = vrot.slane %v11198_v61, 3  ;;  %v4732_v51 = vrot.slane %v9565_v38, 3 }
 0x24e   : > { %v7152_v50 = vpop.f32.mrf.mxu0  ;;  %7403 = vmatmul.mubr.bf16.gmra.mxu1 %v4297_v10  ;;  %v4306_v59 = vsel %vm3742_vm14, %v4296_v14, %v4305_v52  ;;  %v4319_v53 = vrot.slane %v11199_v19, 2  ;;  %v7694_v10 = vld [vmem:[%s10981_s4 + $0x218] sm:$0xff]  }
 0x24f   : > { %v9877_v30 = vadd.f32 %v7152_v50, %v7100_v18  ;;  %v7104_v58 = vpop.f32.mrf.mxu1  ;;  %v11200_v18 = vshll.u32 %v9574_v41, 16  ;;  %7406 = vmatprep.mubr.bf16.mxu1 %v4306_v59  ;;  %7491 = vmatpush3.bf16.msra.mxu1 %v7688_v26  ;;  %v4314_v61 = vor.u32 %v4313_v45, %v4310_v22  ;;  %v4733_v38 = vsel %vm4724_vm15, %v4730_v3, %v4732_v51 }
 0x250   : > { %v2306_v55 = vpop.f32.mrf.mxu0  ;;  %7492 = vmatprep.subr.bf16.mxu1 %v7691_v39  ;;  %v4735_v59 = vsel %vm4724_vm15, %v4732_v51, %v4734_v25  ;;  %v11202_v3 = vshll.u32 %v9576_v8, 16 }
 0x251   : > { %7451 = vmatmul.mubr.bf16.vlgmr.msra.gmra.mxu0 %v4729_v36  ;;  %v4322_v36 = vrot.slane %v11200_v18, 3  ;;  %v9889_v50 = vadd.f32 %v2306_v55, %v1911_v40  ;;  %v1927_v31 = vpop.f32.mrf.mxu1  ;;  %v4315_v33 = vsel %vm3742_vm14, %v4305_v52, %v4314_v61  ;;  %v4736_v52 = vrot.slane %v9572_v4, 3 }
 0x252   : > { %7454 = vmatprep.mubr.bf16.mxu0 %v4731_v56  ;;  %v7153_v56 = vpop.f32.mrf.mxu0 }
 0x253   : > { %v9895_v14 = vadd.f32 %v7153_v56, %v7101_v21  ;;  %v7105_v18 = vpop.f32.mrf.mxu1  ;;  %v4323_v40 = vor.u32 %v4322_v36, %v4319_v53  ;;  %7493 = vmatpush3.bf16.msra.mxu1 %v7691_v39  ;;  %v7697_v21 = vld [vmem:[%s10981_s4 + $0x210] sm:$0xff]   ;;  %v4331_v39 = vrot.slane %v11202_v3, 3  ;;  %v11203_v56 = vshrl.u32 %v9578_v12, 16 }
 0x254   : > { %v2309_v19 = vpop.f32.mrf.mxu0  ;;  %7494 = vmatprep.subr.bf16.mxu1 %v7694_v10  ;;  %v4738_v3 = vrot.slane %v9574_v41, 3  ;;  %v4737_v4 = vsel %vm4724_vm15, %v4734_v25, %v4736_v52  ;;  %v11206_v25 = vshll.u32 %v9580_v17, 16 }
 0x255   : > { %v9898_v55 = vadd.f32 %v2309_v19, %v1914_v44  ;;  %v1930_v46 = vpop.f32.mrf.mxu1  ;;  %v11201_v44 = vshrl.u32 %v9576_v8, 16  ;;  %v4324_v51 = vsel %vm3742_vm14, %v4314_v61, %v4323_v40  ;;  %v4337_v19 = vrot.slane %v11203_v56, 2  ;;  %v7700_v61 = vld [vmem:[%s10981_s4 + $0x208] sm:$0xff]  }
 0x256   : > { %v7156_v26 = vpop.f32.mrf.mxu0  ;;  %7407 = vmatmul.mubr.bf16.gmra.mxu1 %v4315_v33  ;;  %v4739_v41 = vsel %vm4724_vm15, %v4736_v52, %v4738_v3  ;;  %v11207_v52 = vshrl.u32 %v9589_v6, 16 }
 0x257   : > { %v9905_v22 = vadd.f32 %v7156_v26, %v7104_v58  ;;  %v4328_v45 = vrot.slane %v11201_v44, 2  ;;  %v7108_v36 = vpop.f32.mrf.mxu1  ;;  %v11204_v58 = vshll.u32 %v9578_v12, 16  ;;  %7410 = vmatprep.mubr.bf16.mxu1 %v4324_v51  ;;  %7495 = vmatpush3.bf16.msra.mxu1 %v7694_v10 }
 0x258   : > { %v2322_v53 = vpop.f32.mrf.mxu0  ;;  %7496 = vmatprep.subr.bf16.mxu1 %v7697_v21 }
 0x259   : > { %7455 = vmatmul.mubr.bf16.gmra.mxu0 %v4733_v38  ;;  %v4340_v38 = vrot.slane %v11204_v58, 3  ;;  %v9917_v26 = vadd.f32 %v2322_v53, %v1927_v31  ;;  %v1943_v44 = vpop.f32.mrf.mxu1  ;;  %v4332_v56 = vor.u32 %v4331_v39, %v4328_v45 }
 0x25a   : > { %7458 = vmatprep.mubr.bf16.mxu0 %v4735_v59  ;;  %v7157_v59 = vpop.f32.mrf.mxu0 }
 0x25b   : > { %v9924_v33 = vadd.f32 %v7157_v59, %v7105_v18  ;;  %v7109_v58 = vpop.f32.mrf.mxu1  ;;  %v4341_v31 = vor.u32 %v4340_v38, %v4337_v19  ;;  %7497 = vmatpush3.bf16.msra.mxu1 %v7697_v21  ;;  %v7703_v18 = vld [vmem:[%s10981_s4 + $0x200] sm:$0xff]   ;;  %v4333_v45 = vsel %vm3742_vm14, %v4323_v40, %v4332_v56  ;;  %v4349_v21 = vrot.slane %v11206_v25, 3 }
 0x25c   : > { %v2325_v43 = vpop.f32.mrf.mxu0  ;;  %7498 = vmatprep.subr.bf16.mxu1 %v7700_v61  ;;  %v4740_v40 = vrot.slane %v9576_v8, 3  ;;  %v4742_v25 = vrot.slane %v9578_v12, 3 }
 0x25d   : > { %v9926_v53 = vadd.f32 %v2325_v43, %v1930_v46  ;;  %v1946_v51 = vpop.f32.mrf.mxu1  ;;  %v11205_v46 = vshrl.u32 %v9580_v17, 16  ;;  %v4342_v38 = vsel %vm3742_vm14, %v4332_v56, %v4341_v31 }
 0x25e   : > { %v7160_v10 = vpop.f32.mrf.mxu0  ;;  %7411 = vmatmul.mubr.bf16.gmra.mxu1 %v4333_v45  ;;  %v4743_v8 = vsel %vm4724_vm15, %v4740_v40, %v4742_v25 }
 0x25f   : > { %v9933_v59 = vadd.f32 %v7160_v10, %v7108_v36  ;;  %v4346_v43 = vrot.slane %v11205_v46, 2  ;;  %v7112_v19 = vpop.f32.mrf.mxu1  ;;  %v11208_v36 = vshll.u32 %v9589_v6, 16  ;;  %7414 = vmatprep.mubr.bf16.mxu1 %v4342_v38  ;;  %7499 = vmatpush3.bf16.msra.mxu1 %v7700_v61 }
 0x260   : > { %v2338_v39 = vpop.f32.mrf.mxu0  ;;  %7500 = vmatprep.subr.bf16.mxu1 %v7703_v18 }
 0x261   : > { %7459 = vmatmul.mubr.bf16.gmra.mxu0 %v4737_v4  ;;  %v4355_v4 = vrot.slane %v11207_v52, 2  ;;  %v4358_v10 = vrot.slane %v11208_v36, 3  ;;  %v1959_v13 = vpop.f32.mrf.mxu1  ;;  %v4350_v56 = vor.u32 %v4349_v21, %v4346_v43  ;;  %v11211_v21 = vshll.u32 %v9595_v32, 16 }
 0x262   : > { %7462 = vmatprep.mubr.bf16.mxu0 %v4739_v41  ;;  %v9945_v41 = vadd.f32 %v2338_v39, %v1943_v44  ;;  %v7161_v46 = vpop.f32.mrf.mxu0  ;;  %v4741_v44 = vsel %vm4724_vm15, %v4738_v3, %v4740_v40 }
 0x263   : > { %v9949_v45 = vadd.f32 %v7161_v46, %v7109_v58  ;;  %v7113_v20 = vpop.f32.mrf.mxu1  ;;  %v4359_v52 = vor.u32 %v4358_v10, %v4355_v4  ;;  %7501 = vmatpush3.bf16.msra.mxu1 %v7703_v18  ;;  %v4351_v12 = vsel %vm3742_vm14, %v4341_v31, %v4350_v56  ;;  %v11210_v58 = vshrl.u32 %v9595_v32, 16 }
 0x264   : > { %v2341_v42 = vpop.f32.mrf.mxu0  ;;  %v11212_v18 = vshrl.u32 %v9597_v27, 16  ;;  %v4744_v31 = vrot.slane %v9580_v17, 3 }
 0x265   : > { %v9951_v23 = vadd.f32 %v2341_v42, %v1946_v51  ;;  %v1962_v61 = vpop.f32.mrf.mxu1  ;;  %v4364_v43 = vrot.slane %v11210_v58, 2  ;;  %v4367_v42 = vrot.slane %v11211_v21, 3  ;;  %v4360_v3 = vsel %vm3742_vm14, %v4350_v56, %v4359_v52 }
 0x266   : > { %v7164_v39 = vpop.f32.mrf.mxu0  ;;  %7415 = vmatmul.mubr.bf16.gmra.mxu1 %v4351_v12  ;;  %v4373_v36 = vrot.slane %v11212_v18, 2  ;;  %v4745_v18 = vsel %vm4724_vm15, %v4742_v25, %v4744_v31  ;;  %v11216_v25 = vshll.u32 %v9614_v16, 16 }
 0x267   : > { %v9955_v38 = vadd.f32 %v7164_v39, %v7112_v19  ;;  %v7116_v4 = vpop.f32.mrf.mxu1  ;;  %v11213_v19 = vshll.u32 %v9597_v27, 16  ;;  %7418 = vmatprep.mubr.bf16.mxu1 %v4360_v3  ;;  %v4746_v39 = vrot.slane %v9589_v6, 3  ;;  %v4368_v12 = vor.u32 %v4367_v42, %v4364_v43 }
 0x268   : > { %v2354_v51 = vpop.f32.mrf.mxu0 }
 0x269   : > { %7463 = vmatmul.mubr.bf16.gmra.mxu0 %v4741_v44  ;;  %11209 = vst [vmem:[#allocation19_spill] sm:$0xff] %v9955_v38  ;;  %v4376_v10 = vrot.slane %v11213_v19, 3  ;;  %v9967_v40 = vadd.f32 %v2354_v51, %v1959_v13  ;;  %v1975_v44 = vpop.f32.mrf.mxu1  ;;  %v4747_v13 = vsel %vm4724_vm15, %v4744_v31, %v4746_v39  ;;  %v4369_v6 = vsel %vm3742_vm14, %v4359_v52, %v4368_v12 }
 0x26a   : > { %7466 = vmatprep.mubr.bf16.mxu0 %v4743_v8  ;;  %v7165_v46 = vpop.f32.mrf.mxu0  ;;  %v11218_v31 = vshrl.u32 %v9607_v62, 16  ;;  %v11219_v52 = vshll.u32 %v9607_v62, 16 }
 0x26b   : > { %v9971_v8 = vadd.f32 %v7165_v46, %v7113_v20  ;;  %v7117_v56 = vpop.f32.mrf.mxu1  ;;  %v4377_v21 = vor.u32 %v4376_v10, %v4373_v36  ;;  %v4394_v36 = vrot.slane %v11216_v25, 3 }
 0x26c   : > { %v2357_v58 = vpop.f32.mrf.mxu0  ;;  %v4382_v46 = vrot.slane %v11218_v31, 2 }
 0x26d   : > { %v9973_v38 = vadd.f32 %v2357_v58, %v1962_v61  ;;  %v1978_v51 = vpop.f32.mrf.mxu1  ;;  %v4378_v43 = vsel %vm3742_vm14, %v4368_v12, %v4377_v21  ;;  %v11215_v61 = vshrl.u32 %v9614_v16, 16  ;;  %v4385_v58 = vrot.slane %v11219_v52, 3  ;;  %v9999_v52 = vld [vmem:[#allocation2 + $0xa8] ss:$0 sps:$4 sm:$0x77]  }
 0x26e   : > { %v7168_v19 = vpop.f32.mrf.mxu0  ;;  %7419 = vmatmul.mubr.bf16.gmra.mxu1 %v4369_v6  ;;  %v4750_v12 = vrot.slane %v9597_v27, 3 }
 0x26f   : > { %v9977_v17 = vadd.f32 %v7168_v19, %v7116_v4  ;;  %v7120_v3 = vpop.f32.mrf.mxu1  ;;  %v4391_v42 = vrot.slane %v11215_v61, 2  ;;  %7422 = vmatprep.mubr.bf16.mxu1 %v4378_v43  ;;  %v4748_v4 = vrot.slane %v9595_v32, 3  ;;  %v4386_v32 = vor.u32 %v4385_v58, %v4382_v46 }
 0x270   : > { %v2370_v20 = vpop.f32.mrf.mxu0 }
 0x271   : > { %7467 = vmatmul.mubr.bf16.gmra.mxu0 %v4745_v18  ;;  %11214 = vst [vmem:[#allocation20_spill] sm:$0xff] %v9977_v17  ;;  %v9985_v10 = vadd.f32 %v2370_v20, %v1975_v44  ;;  %v1991_v19 = vpop.f32.mrf.mxu1  ;;  %v4395_v25 = vor.u32 %v4394_v36, %v4391_v42  ;;  %v4749_v20 = vsel %vm4724_vm15, %v4746_v39, %v4748_v4 }
 0x272   : > { %7470 = vmatprep.mubr.bf16.mxu0 %v4747_v13  ;;  %v7169_v18 = vpop.f32.mrf.mxu0  ;;  %v4751_v31 = vsel %vm4724_vm15, %v4748_v4, %v4750_v12  ;;  %v4387_v27 = vsel %vm3742_vm14, %v4377_v21, %v4386_v32  ;;  %v11223_v4 = vshrl.u32 %v9631_v47, 16 }
 0x273   : > { %11217 = vst [vmem:[#allocation21_spill] sm:$0xff] %v9985_v10  ;;  %v9993_v13 = vadd.f32 %v7169_v18, %v7117_v56  ;;  %v7121_v61 = vpop.f32.mrf.mxu1  ;;  %v11221_v56 = vshrl.u32 %v9624_v37, 16  ;;  %v4396_v58 = vsel %vm3742_vm14, %v4386_v32, %v4395_v25 }
 0x274   : > { %v2373_v6 = vpop.f32.mrf.mxu0  ;;  %v4409_v18 = vrot.slane %v11223_v4, 2 }
 0x275   : > { %v9995_v44 = vadd.f32 %v2373_v6, %v1978_v51  ;;  %v1994_v10 = vpop.f32.mrf.mxu1  ;;  %v4400_v42 = vrot.slane %v11221_v56, 2  ;;  %v11222_v51 = vshll.u32 %v9624_v37, 16  ;;  %v4752_v56 = vrot.slane %v9607_v62, 3 }
 0x276   : > { %v7172_v43 = vpop.f32.mrf.mxu0  ;;  %7423 = vmatmul.mubr.bf16.gmra.mxu1 %v4387_v27  ;;  %v4416_v27 = vshrl.u32 %v9999_v52, 16 }
 0x277   : > { %v10001_v17 = vadd.f32 %v7172_v43, %v7120_v3  ;;  %v4403_v36 = vrot.slane %v11222_v51, 3  ;;  %v7192_v46 = vpop.f32.mrf.mxu1  ;;  %v11224_v3 = vshll.u32 %v9631_v47, 16  ;;  %7426 = vmatprep.mubr.bf16.mxu1 %v4396_v58  ;;  %v4754_v51 = vrot.slane %v9614_v16, 3 }
 0x278   : > { %v2386_v39 = vpop.f32.mrf.mxu0  ;;  %v2753_v21 = vadd.f32 %v7192_v46, %v9803_v9  ;;  %v4753_v46 = vsel %vm4724_vm15, %v4750_v12, %v4752_v56 }
 0x279   : > { %7471 = vmatmul.mubr.bf16.gmra.mxu0 %v4749_v20  ;;  %11220 = vst [vmem:[#allocation22_spill] sm:$0xff] %v10001_v17  ;;  %v4412_v6 = vrot.slane %v11224_v3, 3  ;;  %v10013_v20 = vadd.f32 %v2386_v39, %v1991_v19  ;;  %v4404_v17 = vor.u32 %v4403_v36, %v4400_v42  ;;  %v4419_v3 = vshll.u32 %v9999_v52, 16 }
 0x27a   : > { %7474 = vmatprep.mubr.bf16.mxu0 %v4751_v31  ;;  %v7173_v43 = vpop.f32.mrf.mxu0  ;;  %v2608_v31 = vpop.f32.mrf.mxu1  ;;  %v4755_v16 = vsel %vm4724_vm15, %v4752_v56, %v4754_v51  ;;  %v5067_v42 = vshll.u32 %v9828_v34, 16 }
 0x27b   : > { %11225 = vst [vmem:[#allocation23_spill] sm:$0xff] %v10013_v20  ;;  %v10019_v32 = vadd.f32 %v7173_v43, %v7121_v61  ;;  %v2751_v4 = vadd.f32 %v2608_v31, %v9811_v11  ;;  %v4413_v20 = vor.u32 %v4412_v6, %v4409_v18  ;;  %v4418_v43 = vrot.slane %v4416_v27, 2 }
 0x27c   : > { %v2389_v19 = vpop.f32.mrf.mxu0  ;;  %v7193_v39 = vpop.f32.mrf.mxu1  ;;  %v5064_v11 = vshrl.u32 %v9828_v34, 16  ;;  %v4405_v18 = vsel %vm3742_vm14, %v4395_v25, %v4404_v17  ;;  %v4421_v12 = vrot.slane %v4419_v3, 3  ;;  %v4756_v34 = vrot.slane %v9624_v37, 3 }
 0x27d   : > { %v10023_v9 = vadd.f32 %v2389_v19, %v1994_v10  ;;  %v2754_v62 = vadd.f32 %v7193_v39, %v9814_v28  ;;  %v4414_v31 = vsel %vm3742_vm14, %v4404_v17, %v4413_v20  ;;  %v4758_v39 = vrot.slane %v9631_v47, 3 }
 0x27e   : > { %v7244_v58 = vpop.f32.mrf.mxu0  ;;  %v2611_v61 = vpop.f32.mrf.mxu1  ;;  %7427 = vmatmul.mubr.bf16.gmra.mxu1 %v4405_v18 }
 0x27f   : > { %v10030_v36 = vadd.f32 %v7244_v58, %v2753_v21  ;;  %v2752_v10 = vadd.f32 %v2611_v61, %v9816_v2  ;;  %7430 = vmatprep.mubr.bf16.mxu1 %v4414_v31  ;;  %v5066_v2 = vrot.slane %v5064_v11, 3  ;;  %v4422_v58 = vor.u32 %v4421_v12, %v4418_v43 }
 0x280   : > { %v3204_v6 = vpop.f32.mrf.mxu0  ;;  %v7196_v28 = vpop.f32.mrf.mxu1  ;;  %v4759_v18 = vsel %vm4724_vm15, %v4756_v34, %v4758_v39 }
 0x281   : > { %7475 = vmatmul.mubr.bf16.gmra.mxu0 %v4753_v46  ;;  %v10035_v56 = vadd.f32 %v3204_v6, %v2751_v4  ;;  %v2757_v27 = vadd.f32 %v7196_v28, %v9819_v60  ;;  %v5069_v46 = vrot.slane %v5067_v42, 4  ;;  %v4757_v60 = vsel %vm4724_vm15, %v4754_v51, %v4756_v34 }
 0x282   : > { %7478 = vmatprep.mubr.bf16.mxu0 %v4755_v16  ;;  %v7245_v21 = vpop.f32.mrf.mxu0  ;;  %v2624_v19 = vpop.f32.mrf.mxu1  ;;  %v4760_v6 = vrot.slane %v9999_v52, 3 }
 0x283   : > { %v10040_v25 = vadd.f32 %v7245_v21, %v2754_v62  ;;  %v2755_v3 = vadd.f32 %v2624_v19, %v9834_v7  ;;  %v5070_v11 = vor.u32 %v5069_v46, %v5066_v2  ;;  %v4423_v62 = vsel %vm3742_vm14, %v4413_v20, %v4422_v58 }
 0x284   : > { %v3207_v16 = vpop.f32.mrf.mxu0  ;;  %v7197_v17 = vpop.f32.mrf.mxu1  ;;  %v4761_v19 = vsel %vm4724_vm15, %v4758_v39, %v4760_v6 }
 0x285   : > { %v10043_v4 = vadd.f32 %v3207_v16, %v2752_v10  ;;  %v2758_v61 = vadd.f32 %v7197_v17, %v9837_v63  ;;  %v5074_v51 = vsel %vm5062_vm2, %v5070_v11, %v9658_v1 }
 0x286   : > { %v7248_v37 = vpop.f32.mrf.mxu0  ;;  %v2627_v47 = vpop.f32.mrf.mxu1  ;;  %7431 = vmatmul.mubr.bf16.gmra.mxu1 %v4423_v62 }
 0x287   : > { %v10048_v42 = vadd.f32 %v7248_v37, %v2757_v27  ;;  %v2756_v7 = vadd.f32 %v2627_v47, %v9840_v29  ;;  %7502 = vmatprep.mubr.bf16.mxu1 %v5074_v51 }
 0x288   : > { %v3220_v43 = vpop.f32.mrf.mxu0  ;;  %v7200_v10 = vpop.f32.mrf.mxu1 }
 0x289   : > { %7479 = vmatmul.mubr.bf16.gmra.mxu0 %v4757_v60  ;;  %v10054_v63 = vadd.f32 %v3220_v43, %v2755_v3  ;;  %v2761_v12 = vadd.f32 %v7200_v10, %v9848_v5  ;;  %v11226_v43 = vld [vmem:[#allocation7_spill] sm:$0xff] }
 0x28a   : > { %7482 = vmatprep.mubr.bf16.mxu0 %v4759_v18  ;;  %v7249_v28 = vpop.f32.mrf.mxu0  ;;  %v2640_v31 = vpop.f32.mrf.mxu1 }
 0x28b   : > { %v10058_v27 = vadd.f32 %v7249_v28, %v2758_v61  ;;  %v2759_v29 = vadd.f32 %v2640_v31, %v9856_v57 }
 0x28c   : > { %v3223_v20 = vpop.f32.mrf.mxu0  ;;  %v7201_v34 = vpop.f32.mrf.mxu1 }
 0x28d   : > { %v10061_v21 = vadd.f32 %v3223_v20, %v2756_v7  ;;  %v2762_v1 = vadd.f32 %v7201_v34, %v9868_v48 }
 0x28e   : > { %v7252_v2 = vpop.f32.mrf.mxu0  ;;  %v2643_v5 = vpop.f32.mrf.mxu1  ;;  %7503 = vmatmul.mubr.bf16.vlgmr.msra.gmra.mxu1 %v9682_v15 }
 0x28f   : > { %v10065_v46 = vadd.f32 %v7252_v2, %v2761_v12  ;;  %v2760_v52 = vadd.f32 %v2643_v5, %v9870_v54  ;;  %7506 = vmatprep.mubr.bf16.mxu1 %v9690_v35 }
 0x290   : > { %v3236_v3 = vpop.f32.mrf.mxu0  ;;  %v7204_v58 = vpop.f32.mrf.mxu1 }
 0x291   : > { %7483 = vmatmul.mubr.bf16.gmra.mxu0 %v4761_v19  ;;  %v10069_v57 = vadd.f32 %v3236_v3, %v2759_v29  ;;  %v2765_v16 = vadd.f32 %v7204_v58, %v9877_v30 }
 0x292   : > { %v7253_v39 = vpop.f32.mrf.mxu0  ;;  %v2656_v17 = vpop.f32.mrf.mxu1 }
 0x293   : > { %v10073_v48 = vadd.f32 %v7253_v39, %v2762_v1  ;;  %v2763_v60 = vadd.f32 %v2656_v17, %v9889_v50 }
 0x294   : > { %v3239_v61 = vpop.f32.mrf.mxu0  ;;  %v7205_v37 = vpop.f32.mrf.mxu1 }
 0x295   : > { %v10076_v18 = vadd.f32 %v3239_v61, %v2760_v52  ;;  %v2766_v54 = vadd.f32 %v7205_v37, %v9895_v14  ;;  %v11227_v61 = vld [vmem:[#allocation8_spill] sm:$0xff] }
 0x296   : > { %v7256_v47 = vpop.f32.mrf.mxu0  ;;  %v2659_v15 = vpop.f32.mrf.mxu1  ;;  %7507 = vmatmul.mubr.bf16.gmra.mxu1 %v9702_v49 }
 0x297   : > { %v10079_v11 = vadd.f32 %v7256_v47, %v2765_v16  ;;  %v2764_v30 = vadd.f32 %v2659_v15, %v9898_v55  ;;  %7510 = vmatprep.mubr.bf16.mxu1 %v11226_v43  ;;  %v11229_v47 = vld [vmem:[#allocation9_spill] sm:$0xff] }
 0x298   : > { %v3252_v7 = vpop.f32.mrf.mxu0  ;;  %v7208_v35 = vpop.f32.mrf.mxu1 }
 0x299   : > { %v10083_v62 = vadd.f32 %v3252_v7, %v2763_v60  ;;  %v2769_v50 = vadd.f32 %v7208_v35, %v9905_v22 }
 0x29a   : > { %v7257_v10 = vpop.f32.mrf.mxu0  ;;  %v2672_v51 = vpop.f32.mrf.mxu1 }
 0x29b   : > { %v10087_v12 = vadd.f32 %v7257_v10, %v2766_v54  ;;  %v2767_v14 = vadd.f32 %v2672_v51, %v9917_v26  ;;  %v11228_v54 = vld [vmem:[#allocation19_spill] sm:$0xff] }
 0x29c   : > { %v3255_v6 = vpop.f32.mrf.mxu0  ;;  %v7209_v28 = vpop.f32.mrf.mxu1 }
 0x29d   : > { %v10090_v31 = vadd.f32 %v3255_v6, %v2764_v30  ;;  %v2770_v55 = vadd.f32 %v7209_v28, %v9924_v33 }
 0x29e   : > { %v7260_v29 = vpop.f32.mrf.mxu0  ;;  %v2675_v49 = vpop.f32.mrf.mxu1  ;;  %7511 = vmatmul.mubr.bf16.gmra.mxu1 %v9719_v24 }
 0x29f   : > { %v10093_v20 = vadd.f32 %v7260_v29, %v2769_v50  ;;  %v2768_v22 = vadd.f32 %v2675_v49, %v9926_v53  ;;  %7514 = vmatprep.mubr.bf16.mxu1 %v9726_v0  ;;  %v11230_v29 = vld [vmem:[#allocation10_spill] sm:$0xff] }
 0x2a0   : > { %v3268_v34 = vpop.f32.mrf.mxu0  ;;  %v7212_v19 = vpop.f32.mrf.mxu1 }
 0x2a1   : > { %v10097_v1 = vadd.f32 %v3268_v34, %v2767_v14  ;;  %v2773_v26 = vadd.f32 %v7212_v19, %v9933_v59  ;;  %v11232_v34 = vld [vmem:[#allocation11_spill] sm:$0xff] }
 0x2a2   : > { %v7261_v2 = vpop.f32.mrf.mxu0  ;;  %v2688_v5 = vpop.f32.mrf.mxu1 }
 0x2a3   : > { %v10101_v52 = vadd.f32 %v7261_v2, %v2770_v55  ;;  %v2771_v33 = vadd.f32 %v2688_v5, %v9945_v41 }
 0x2a4   : > { %v3271_v3 = vpop.f32.mrf.mxu0  ;;  %v7213_v58 = vpop.f32.mrf.mxu1 }
 0x2a5   : > { %v10104_v16 = vadd.f32 %v3271_v3, %v2768_v22  ;;  %v2774_v53 = vadd.f32 %v7213_v58, %v9949_v45  ;;  %v11231_v22 = vld [vmem:[#allocation20_spill] sm:$0xff] }
 0x2a6   : > { %v7264_v39 = vpop.f32.mrf.mxu0  ;;  %v2691_v24 = vpop.f32.mrf.mxu1  ;;  %7515 = vmatmul.mubr.bf16.gmra.mxu1 %v11227_v61  ;;  %v11234_v61 = vld [vmem:[#allocation12_spill] sm:$0xff] }
 0x2a7   : > { %v10107_v17 = vadd.f32 %v7264_v39, %v2773_v26  ;;  %v2772_v59 = vadd.f32 %v2691_v24, %v9951_v23  ;;  %7518 = vmatprep.mubr.bf16.mxu1 %v11229_v47 }
 0x2a8   : > { %v3284_v60 = vpop.f32.mrf.mxu0  ;;  %v7216_v0 = vpop.f32.mrf.mxu1 }
 0x2a9   : > { %v10111_v37 = vadd.f32 %v3284_v60, %v2771_v33  ;;  %v2777_v41 = vadd.f32 %v7216_v0, %v11228_v54 }
 0x2aa   : > { %v7265_v15 = vpop.f32.mrf.mxu0  ;;  %v2704_v30 = vpop.f32.mrf.mxu1 }
 0x2ab   : > { %v10115_v7 = vadd.f32 %v7265_v15, %v2774_v53  ;;  %v2775_v45 = vadd.f32 %v2704_v30, %v9967_v40  ;;  %v11236_v15 = vld [vmem:[#allocation13_spill] sm:$0xff] }
 0x2ac   : > { %v3287_v35 = vpop.f32.mrf.mxu0  ;;  %v7217_v50 = vpop.f32.mrf.mxu1 }
 0x2ad   : > { %v10118_v43 = vadd.f32 %v3287_v35, %v2772_v59  ;;  %v2778_v23 = vadd.f32 %v7217_v50, %v9971_v8  ;;  %v11233_v8 = vld [vmem:[#allocation21_spill] sm:$0xff] }
 0x2ae   : > { %v2707_v51 = vpop.f32.mrf.mxu1  ;;  %7519 = vmatmul.mubr.bf16.gmra.mxu1 %v11230_v29 }
 0x2af   : > { %v2776_v6 = vadd.f32 %v2707_v51, %v9973_v38  ;;  %7522 = vmatprep.mubr.bf16.mxu1 %v11232_v34  ;;  %v11238_v34 = vld [vmem:[#allocation14_spill] sm:$0xff] }
 0x2b0   : > { %v7220_v55 = vpop.f32.mrf.mxu1 }
 0x2b1   : > { %v7268_v10 = vpop.f32.mrf.mxu0  ;;  %v2781_v40 = vadd.f32 %v7220_v55, %v11231_v22 }
 0x2b2   : > { %v10121_v14 = vadd.f32 %v7268_v10, %v2777_v41  ;;  %v2720_v26 = vpop.f32.mrf.mxu1  ;;  %v11235_v41 = vld [vmem:[#allocation22_spill] sm:$0xff] }
 0x2b3   : > { %v3300_v28 = vpop.f32.mrf.mxu0  ;;  %v2779_v5 = vadd.f32 %v2720_v26, %v11233_v8  ;;  %v11239_v8 = vld [vmem:[#allocation15_spill] sm:$0xff] }
 0x2b4   : > { %v10125_v49 = vadd.f32 %v3300_v28, %v2775_v45  ;;  %v7221_v3 = vpop.f32.mrf.mxu1 }
 0x2b5   : > { %v7269_v19 = vpop.f32.mrf.mxu0  ;;  %v2782_v38 = vadd.f32 %v7221_v3, %v9993_v13  ;;  %v11237_v13 = vld [vmem:[#allocation23_spill] sm:$0xff] }
 0x2b6   : > { %v10129_v2 = vadd.f32 %v7269_v19, %v2778_v23  ;;  %v2723_v39 = vpop.f32.mrf.mxu1  ;;  %7523 = vmatmul.mubr.bf16.gmra.mxu1 %v11234_v61 }
 0x2b7   : > { %v3303_v33 = vpop.f32.mrf.mxu0  ;;  %v2780_v59 = vadd.f32 %v2723_v39, %v9995_v44  ;;  %7526 = vmatprep.mubr.bf16.mxu1 %v11236_v15 }
 0x2b8   : > { %v10132_v58 = vadd.f32 %v3303_v33, %v2776_v6  ;;  %v7224_v0 = vpop.f32.mrf.mxu1 }
 0x2b9   : > { %v7272_v53 = vpop.f32.mrf.mxu0  ;;  %v2785_v47 = vadd.f32 %v7224_v0, %v11235_v41 }
 0x2ba   : > { %v10135_v24 = vadd.f32 %v7272_v53, %v2781_v40  ;;  %v2736_v45 = vpop.f32.mrf.mxu1 }
 0x2bb   : > { %v3316_v60 = vpop.f32.mrf.mxu0  ;;  %v2783_v50 = vadd.f32 %v2736_v45, %v11237_v13 }
 0x2bc   : > { %v10139_v54 = vadd.f32 %v3316_v60, %v2779_v5  ;;  %v7225_v10 = vpop.f32.mrf.mxu1 }
 0x2bd   : > { %v7273_v30 = vpop.f32.mrf.mxu0  ;;  %v2786_v44 = vadd.f32 %v7225_v10, %v10019_v32 }
 0x2be   : > { %v10143_v35 = vadd.f32 %v7273_v30, %v2782_v38  ;;  %v2739_v28 = vpop.f32.mrf.mxu1  ;;  %7527 = vmatmul.mubr.bf16.gmra.mxu1 %v11238_v34  ;;  %v11241_v30 = vld [vmem:[#allocation17_spill] sm:$0xff]  ;;  %v11242_v34 = vld [vmem:[#allocation18_spill] sm:$0xff] }
 0x2bf   : > { %v3319_v23 = vpop.f32.mrf.mxu0  ;;  %v2784_v29 = vadd.f32 %v2739_v28, %v10023_v9  ;;  %7530 = vmatprep.mubr.bf16.mxu1 %v11239_v8 }
 0x2c0   : > { %v10146_v51 = vadd.f32 %v3319_v23, %v2780_v59  ;;  %v7296_v40 = vpop.f32.mrf.mxu1 }
 0x2c1   : > { %v7276_v6 = vpop.f32.mrf.mxu0  ;;  %v3687_v26 = vadd.f32 %v7296_v40, %v10030_v36 }
 0x2c2   : > { %v10149_v55 = vadd.f32 %v7276_v6, %v2785_v47  ;;  %v3542_v33 = vpop.f32.mrf.mxu1  ;;  %v11240_v47 = vld [vmem:[#allocation16_spill] sm:$0xff] }
 0x2c3   : > { %v3332_v22 = vpop.f32.mrf.mxu0  ;;  %v3685_v32 = vadd.f32 %v3542_v33, %v10035_v56 }
 0x2c4   : > { %v10153_v19 = vadd.f32 %v3332_v22, %v2783_v50  ;;  %v7297_v53 = vpop.f32.mrf.mxu1 }
 0x2c5   : > { %v7277_v5 = vpop.f32.mrf.mxu0  ;;  %v3688_v9 = vadd.f32 %v7297_v53, %v10040_v25 }
 0x2c6   : > { %v10157_v3 = vadd.f32 %v7277_v5, %v2786_v44  ;;  %v3545_v60 = vpop.f32.mrf.mxu1  ;;  %7531 = vmatmul.mubr.bf16.gmra.mxu1 %v11240_v47 }
 0x2c7   : > { %v3335_v38 = vpop.f32.mrf.mxu0  ;;  %v3686_v36 = vadd.f32 %v3545_v60, %v10043_v4  ;;  %7534 = vmatprep.mubr.bf16.mxu1 %v11241_v30 }
 0x2c8   : > { %v10160_v39 = vadd.f32 %v3335_v38, %v2784_v29  ;;  %v7300_v41 = vpop.f32.mrf.mxu1 }
 0x2c9   : > { %v7348_v59 = vpop.f32.mrf.mxu0  ;;  %v3691_v56 = vadd.f32 %v7300_v41, %v10048_v42 }
 0x2ca   : > { %v10163_v0 = vadd.f32 %v7348_v59, %v3687_v26  ;;  %v3558_v13 = vpop.f32.mrf.mxu1 }
 0x2cb   : > { %v3928_v61 = vpop.f32.mrf.mxu0  ;;  %v3689_v25 = vadd.f32 %v3558_v13, %v10054_v63 }
 0x2cc   : > { %v10167_v15 = vadd.f32 %v3928_v61, %v3685_v32  ;;  %v7301_v10 = vpop.f32.mrf.mxu1 }
 0x2cd   : > { %v7349_v45 = vpop.f32.mrf.mxu0  ;;  %v3692_v4 = vadd.f32 %v7301_v10, %v10058_v27 }
 0x2ce   : > { %v10171_v50 = vadd.f32 %v7349_v45, %v3688_v9  ;;  %v3561_v28 = vpop.f32.mrf.mxu1  ;;  %7535 = vmatmul.mubr.bf16.gmra.mxu1 %v11242_v34 }
 0x2cf   : > { %v3931_v23 = vpop.f32.mrf.mxu0  ;;  %v3690_v42 = vadd.f32 %v3561_v28, %v10061_v21 }
 0x2d0   : > { %v10174_v44 = vadd.f32 %v3931_v23, %v3686_v36  ;;  %v7304_v40 = vpop.f32.mrf.mxu1 }
 0x2d1   : > { %v7352_v6 = vpop.f32.mrf.mxu0  ;;  %v3695_v63 = vadd.f32 %v7304_v40, %v10065_v46 }
 0x2d2   : > { %v10177_v29 = vadd.f32 %v7352_v6, %v3691_v56  ;;  %v3574_v5 = vpop.f32.mrf.mxu1 }
 0x2d3   : > { %v3944_v22 = vpop.f32.mrf.mxu0  ;;  %v3693_v27 = vadd.f32 %v3574_v5, %v10069_v57 }
 0x2d4   : > { %v10181_v26 = vadd.f32 %v3944_v22, %v3689_v25  ;;  %v7305_v38 = vpop.f32.mrf.mxu1 }
 0x2d5   : > { %v7353_v8 = vpop.f32.mrf.mxu0  ;;  %v3696_v21 = vadd.f32 %v7305_v38, %v10073_v48 }
 0x2d6   : > { %v10184_v33 = vadd.f32 %v7353_v8, %v3692_v4  ;;  %v3577_v59 = vpop.f32.mrf.mxu1 }
 0x2d7   : > { %v3947_v32 = vpop.f32.mrf.mxu0  ;;  %v3694_v36 = vadd.f32 %v3577_v59, %v10076_v18 }
 0x2d8   : > { %v10187_v53 = vadd.f32 %v3947_v32, %v3690_v42  ;;  %v7308_v46 = vpop.f32.mrf.mxu1 }
 0x2d9   : > { %v7356_v9 = vpop.f32.mrf.mxu0  ;;  %v3699_v47 = vadd.f32 %v7308_v46, %v10079_v11 }
 0x2da   : > { %v10190_v60 = vadd.f32 %v7356_v9, %v3695_v63  ;;  %v3590_v57 = vpop.f32.mrf.mxu1 }
 0x2db   : > { %v3960_v61 = vpop.f32.mrf.mxu0  ;;  %v3697_v45 = vadd.f32 %v3590_v57, %v10083_v62 }
 0x2dc   : > { %v10193_v41 = vadd.f32 %v3960_v61, %v3693_v27  ;;  %v7309_v48 = vpop.f32.mrf.mxu1 }
 0x2dd   : > { %v7357_v56 = vpop.f32.mrf.mxu0  ;;  %v3700_v23 = vadd.f32 %v7309_v48, %v10087_v12 }
 0x2de   : > { %v10196_v30 = vadd.f32 %v7357_v56, %v3696_v21  ;;  %v3593_v18 = vpop.f32.mrf.mxu1 }
 0x2df   : > { %v3963_v13 = vpop.f32.mrf.mxu0  ;;  %v3698_v6 = vadd.f32 %v3593_v18, %v10090_v31 }
 0x2e0   : > { %v10199_v25 = vadd.f32 %v3963_v13, %v3694_v36  ;;  %v7312_v11 = vpop.f32.mrf.mxu1 }
 0x2e1   : > { %v7360_v10 = vpop.f32.mrf.mxu0  ;;  %v3703_v22 = vadd.f32 %v7312_v11, %v10093_v20 }
 0x2e2   : > { %v10202_v4 = vadd.f32 %v7360_v10, %v3699_v47  ;;  %v3606_v62 = vpop.f32.mrf.mxu1 }
 0x2e3   : > { %v3976_v28 = vpop.f32.mrf.mxu0  ;;  %v3701_v63 = vadd.f32 %v3606_v62, %v10097_v1 }
 0x2e4   : > { %v10205_v42 = vadd.f32 %v3976_v28, %v3697_v45  ;;  %v7313_v12 = vpop.f32.mrf.mxu1 }
 0x2e5   : > { %v7361_v40 = vpop.f32.mrf.mxu0  ;;  %v3704_v27 = vadd.f32 %v7313_v12, %v10101_v52 }
 0x2e6   : > { %v10208_v34 = vadd.f32 %v7361_v40, %v3700_v23  ;;  %v3609_v31 = vpop.f32.mrf.mxu1 }
 0x2e7   : > { %v3979_v8 = vpop.f32.mrf.mxu0  ;;  %v3702_v21 = vadd.f32 %v3609_v31, %v10104_v16 }
 0x2e8   : > { %v10211_v5 = vadd.f32 %v3979_v8, %v3698_v6  ;;  %v7316_v20 = vpop.f32.mrf.mxu1 }
 0x2e9   : > { %v7364_v32 = vpop.f32.mrf.mxu0  ;;  %v3707_v36 = vadd.f32 %v7316_v20, %v10107_v17 }
 0x2ea   : > { %v10214_v38 = vadd.f32 %v7364_v32, %v3703_v22  ;;  %v3622_v1 = vpop.f32.mrf.mxu1 }
 0x2eb   : > { %v3992_v9 = vpop.f32.mrf.mxu0  ;;  %v3705_v47 = vadd.f32 %v3622_v1, %v10111_v37 }
 0x2ec   : > { %v10217_v59 = vadd.f32 %v3992_v9, %v3701_v63  ;;  %v7317_v52 = vpop.f32.mrf.mxu1 }
 0x2ed   : > { %v7365_v61 = vpop.f32.mrf.mxu0  ;;  %v3708_v45 = vadd.f32 %v7317_v52, %v10115_v7 }
 0x2ee   : > { %v10220_v46 = vadd.f32 %v7365_v61, %v3704_v27  ;;  %v3625_v16 = vpop.f32.mrf.mxu1 }
 0x2ef   : > { %v3995_v56 = vpop.f32.mrf.mxu0  ;;  %v3706_v23 = vadd.f32 %v3625_v16, %v10118_v43 }
 0x2f0   : > { %v10223_v57 = vadd.f32 %v3995_v56, %v3702_v21  ;;  %v7320_v17 = vpop.f32.mrf.mxu1 }
 0x2f1   : > { %v7368_v13 = vpop.f32.mrf.mxu0  ;;  %v3711_v6 = vadd.f32 %v7320_v17, %v10121_v14 }
 0x2f2   : > { %v10226_v48 = vadd.f32 %v7368_v13, %v3707_v36  ;;  %v3638_v37 = vpop.f32.mrf.mxu1 }
 0x2f3   : > { %v4008_v10 = vpop.f32.mrf.mxu0  ;;  %v3709_v22 = vadd.f32 %v3638_v37, %v10125_v49 }
 0x2f4   : > { %v10229_v18 = vadd.f32 %v4008_v10, %v3705_v47  ;;  %v7321_v7 = vpop.f32.mrf.mxu1 }
 0x2f5   : > { %v7369_v28 = vpop.f32.mrf.mxu0  ;;  %v3712_v63 = vadd.f32 %v7321_v7, %v10129_v2 }
 0x2f6   : > { %v10232_v11 = vadd.f32 %v7369_v28, %v3708_v45  ;;  %v3641_v43 = vpop.f32.mrf.mxu1 }
 0x2f7   : > { %v4011_v40 = vpop.f32.mrf.mxu0  ;;  %v3710_v27 = vadd.f32 %v3641_v43, %v10132_v58 }
 0x2f8   : > { %v10235_v62 = vadd.f32 %v4011_v40, %v3706_v23  ;;  %v7324_v14 = vpop.f32.mrf.mxu1 }
 0x2f9   : > { %v7372_v8 = vpop.f32.mrf.mxu0  ;;  %v3715_v21 = vadd.f32 %v7324_v14, %v10135_v24 }
 0x2fa   : > { %v10238_v12 = vadd.f32 %v7372_v8, %v3711_v6  ;;  %v3654_v49 = vpop.f32.mrf.mxu1 }
 0x2fb   : > { %v4024_v32 = vpop.f32.mrf.mxu0  ;;  %v3713_v36 = vadd.f32 %v3654_v49, %v10139_v54 }
 0x2fc   : > { %v10241_v31 = vadd.f32 %v4024_v32, %v3709_v22  ;;  %v7325_v2 = vpop.f32.mrf.mxu1 }
 0x2fd   : > { %v7373_v9 = vpop.f32.mrf.mxu0  ;;  %v3716_v47 = vadd.f32 %v7325_v2, %v10143_v35 }
 0x2fe   : > { %v10244_v20 = vadd.f32 %v7373_v9, %v3712_v63  ;;  %v3657_v58 = vpop.f32.mrf.mxu1 }
 0x2ff   : > { %v4027_v61 = vpop.f32.mrf.mxu0  ;;  %v3714_v45 = vadd.f32 %v3657_v58, %v10146_v51 }
 0x300   : > { %v10247_v1 = vadd.f32 %v4027_v61, %v3710_v27  ;;  %v7328_v24 = vpop.f32.mrf.mxu1 }
 0x301   : > { %v7376_v56 = vpop.f32.mrf.mxu0  ;;  %v3719_v23 = vadd.f32 %v7328_v24, %v10149_v55 }
 0x302   : > { %v10250_v52 = vadd.f32 %v7376_v56, %v3715_v21  ;;  %v3670_v54 = vpop.f32.mrf.mxu1 }
 0x303   : > { %v4040_v13 = vpop.f32.mrf.mxu0  ;;  %v3717_v6 = vadd.f32 %v3670_v54, %v10153_v19 }
 0x304   : > { %v10253_v16 = vadd.f32 %v4040_v13, %v3713_v36  ;;  %v7329_v35 = vpop.f32.mrf.mxu1 }
 0x305   : > { %v7377_v10 = vpop.f32.mrf.mxu0  ;;  %v3720_v22 = vadd.f32 %v7329_v35, %v10157_v3 }
 0x306   : > { %v10256_v17 = vadd.f32 %v7377_v10, %v3716_v47  ;;  %v3673_v51 = vpop.f32.mrf.mxu1 }
 0x307   : > { %v4043_v28 = vpop.f32.mrf.mxu0  ;;  %v3718_v63 = vadd.f32 %v3673_v51, %v10160_v39 }
 0x308   : > { %v10259_v37 = vadd.f32 %v4043_v28, %v3714_v45  ;;  %v7400_v55 = vpop.f32.mrf.mxu1 }
 0x309   : > { %v7380_v40 = vpop.f32.mrf.mxu0  ;;  %v10268_v27 = vadd.f32 %v7400_v55, %v10163_v0 }
 0x30a   : > { %v10262_v7 = vadd.f32 %v7380_v40, %v3719_v23  ;;  %v4524_v32 = vpop.f32.mrf.mxu1 }
 0x30b   : > { %v4056_v8 = vpop.f32.mrf.mxu0  ;;  %v10273_v21 = vadd.f32 %v4524_v32, %v10167_v15 }
 0x30c   : > { %v10265_v43 = vadd.f32 %v4056_v8, %v3717_v6  ;;  %v7401_v9 = vpop.f32.mrf.mxu1 }
 0x30d   : > { %v7381_v19 = vpop.f32.mrf.mxu0  ;;  %v10278_v39 = vadd.f32 %v7401_v9, %v10171_v50 }
 0x30e   : > { %v10270_v14 = vadd.f32 %v7381_v19, %v3720_v22  ;;  %v4527_v61 = vpop.f32.mrf.mxu1 }
 0x30f   : > { %v4059_v3 = vpop.f32.mrf.mxu0  ;;  %v10283_v0 = vadd.f32 %v4527_v61, %v10174_v44 }
 0x310   : > { %v10275_v49 = vadd.f32 %v4059_v3, %v3718_v63  ;;  %v7404_v47 = vpop.f32.mrf.mxu1 }
 0x311   : > { %v10280_v36 = vpop.f32.mrf.mxu0  ;;  %v10288_v56 = vadd.f32 %v7404_v47, %v10177_v29 }
 0x312   : > { %v4540_v58 = vpop.f32.mrf.mxu1 }
 0x313   : > { %v10285_v2 = vpop.f32.mrf.mxu0  ;;  %v10293_v45 = vadd.f32 %v4540_v58, %v10181_v26 }
 0x314   : > { %v7405_v13 = vpop.f32.mrf.mxu1 }
 0x315   : > { %v10290_v15 = vpop.f32.mrf.mxu0  ;;  %v10298_v24 = vadd.f32 %v7405_v13, %v10184_v33 }
 0x316   : > { %v4543_v23 = vpop.f32.mrf.mxu1 }
 0x317   : > { %v10295_v50 = vpop.f32.mrf.mxu0  ;;  %v10303_v10 = vadd.f32 %v4543_v23, %v10187_v53 }
 0x318   : > { %v7408_v54 = vpop.f32.mrf.mxu1 }
 0x319   : > { %v10300_v44 = vpop.f32.mrf.mxu0  ;;  %v10308_v6 = vadd.f32 %v7408_v54, %v10190_v60 }
 0x31a   : > { %v4556_v28 = vpop.f32.mrf.mxu1 }
 0x31b   : > { %v10305_v29 = vpop.f32.mrf.mxu0  ;;  %v10313_v35 = vadd.f32 %v4556_v28, %v10193_v41 }
 0x31c   : > { %v7409_v22 = vpop.f32.mrf.mxu1 }
 0x31d   : > { %v10310_v26 = vpop.f32.mrf.mxu0  ;;  %v10318_v40 = vadd.f32 %v7409_v22, %v10196_v30 }
 0x31e   : > { %v4559_v51 = vpop.f32.mrf.mxu1 }
 0x31f   : > { %v10315_v33 = vpop.f32.mrf.mxu0  ;;  %v10323_v63 = vadd.f32 %v4559_v51, %v10199_v25 }
 0x320   : > { %v7412_v8 = vpop.f32.mrf.mxu1 }
 0x321   : > { %v10320_v53 = vpop.f32.mrf.mxu0  ;;  %v10328_v55 = vadd.f32 %v7412_v8, %v10202_v4 }
 0x322   : > { %v4572_v19 = vpop.f32.mrf.mxu1 }
 0x323   : > { %v10325_v60 = vpop.f32.mrf.mxu0  ;;  %v10333_v32 = vadd.f32 %v4572_v19, %v10205_v42 }
 0x324   : > { %v7413_v3 = vpop.f32.mrf.mxu1 }
 0x325   : > { %v10330_v41 = vpop.f32.mrf.mxu0  ;;  %v10338_v9 = vadd.f32 %v7413_v3, %v10208_v34 }
 0x326   : > { %v4575_v25 = vpop.f32.mrf.mxu1 }
 0x327   : > { %v10335_v30 = vpop.f32.mrf.mxu0  ;;  %v10343_v47 = vadd.f32 %v4575_v25, %v10211_v5 }
 0x328   : > { %v7416_v4 = vpop.f32.mrf.mxu1 }
 0x329   : > { %v10340_v61 = vpop.f32.mrf.mxu0  ;;  %v10346_v58 = vadd.f32 %v7416_v4, %v10214_v38 }
 0x32a   : > { %v4588_v13 = vpop.f32.mrf.mxu1 }
 0x32b   : > { %v10348_v23 = vpop.f32.mrf.mxu0  ;;  %v10351_v42 = vadd.f32 %v4588_v13, %v10217_v59 }
 0x32c   : > { %v7417_v54 = vpop.f32.mrf.mxu1 }
 0x32d   : > { %v10354_v34 = vadd.f32 %v7417_v54, %v10220_v46  ;;  %v10356_v22 = vpop.f32.mrf.mxu0 }
 0x32e   : > { %v4591_v28 = vpop.f32.mrf.mxu1 }
 0x32f   : > { %v10359_v5 = vadd.f32 %v4591_v28, %v10223_v57  ;;  %v10364_v19 = vpop.f32.mrf.mxu0 }
 0x330   : > { %v7420_v51 = vpop.f32.mrf.mxu1 }
 0x331   : > { %v10362_v38 = vadd.f32 %v7420_v51, %v10226_v48  ;;  %v10372_v4 = vpop.f32.mrf.mxu0 }
 0x332   : > { %v4604_v8 = vpop.f32.mrf.mxu1 }
 0x333   : > { %v10367_v59 = vadd.f32 %v4604_v8, %v10229_v18  ;;  %v10380_v28 = vpop.f32.mrf.mxu0 }
 0x334   : > { %v7421_v3 = vpop.f32.mrf.mxu1 }
 0x335   : > { %v10370_v46 = vadd.f32 %v7421_v3, %v10232_v11  ;;  %v10388_v3 = vpop.f32.mrf.mxu0 }
 0x336   : > { %v4607_v25 = vpop.f32.mrf.mxu1 }
 0x337   : > { %v10375_v57 = vadd.f32 %v4607_v25, %v10235_v62 }
 0x338   : > { %v7424_v13 = vpop.f32.mrf.mxu1 }
 0x339   : > { %v10378_v48 = vadd.f32 %v7424_v13, %v10238_v12 }
 0x33a   : > { %v4620_v54 = vpop.f32.mrf.mxu1 }
 0x33b   : > { %11243 = vst [vmem:[#allocation7_spill] sm:$0xff] %v10378_v48  ;;  %v10383_v18 = vadd.f32 %v4620_v54, %v10241_v31  ;;  %v10396_v48 = vpop.f32.mrf.mxu0 }
 0x33c   : > { %v7425_v51 = vpop.f32.mrf.mxu1 }
 0x33d   : > { %v10386_v11 = vadd.f32 %v7425_v51, %v10244_v20 }
 0x33e   : > { %v4623_v8 = vpop.f32.mrf.mxu1 }
 0x33f   : > { %11244 = vst [vmem:[#allocation8_spill] sm:$0xff] %v10386_v11  ;;  %v10391_v62 = vadd.f32 %v4623_v8, %v10247_v1  ;;  %v10404_v11 = vpop.f32.mrf.mxu0 }
 0x340   : > { %v7428_v25 = vpop.f32.mrf.mxu1 }
 0x341   : > { %v10394_v12 = vadd.f32 %v7428_v25, %v10250_v52 }
 0x342   : > { %v4636_v13 = vpop.f32.mrf.mxu1 }
 0x343   : > { %11245 = vst [vmem:[#allocation19_spill] sm:$0xff] %v10394_v12  ;;  %v10399_v31 = vadd.f32 %v4636_v13, %v10253_v16  ;;  %v10412_v12 = vpop.f32.mrf.mxu0 }
 0x344   : > { %v7429_v54 = vpop.f32.mrf.mxu1 }
 0x345   : > { %v10402_v20 = vadd.f32 %v7429_v54, %v10256_v17 }
 0x346   : > { %v4639_v51 = vpop.f32.mrf.mxu1 }
 0x347   : > { %11246 = vst [vmem:[#allocation9_spill] sm:$0xff] %v10402_v20  ;;  %v10407_v1 = vadd.f32 %v4639_v51, %v10259_v37  ;;  %v5007_v20 = vadd.f32 %v10280_v36, %v10268_v27  ;;  %v10422_v37 = vpop.f32.mrf.mxu0 }
 0x348   : > { %v7432_v8 = vpop.f32.mrf.mxu1 }
 0x349   : > { %v10410_v52 = vadd.f32 %v7432_v8, %v10262_v7  ;;  %v10430_v8 = vld [vmem:[%s10982_s5] ss:$0 sm:$0xff]  ;;  %v10441_v36 = vpop.f32.mrf.mxu0 }
 0x34a   : > { %v4652_v25 = vpop.f32.mrf.mxu1 }
 0x34b   : > { %v10415_v16 = vadd.f32 %v4652_v25, %v10265_v43  ;;  %v5005_v43 = vadd.f32 %v10285_v2, %v10273_v21  ;;  %v10437_v25 = vld [vmem:[%s10983_s6] ss:$0 sm:$0xff] }
 0x34c   : > { %v7433_v13 = vpop.f32.mrf.mxu1 }
 0x34d   : > { %v10418_v17 = vadd.f32 %v7433_v13, %v10270_v14 }
 0x34e   : > { %v4655_v54 = vpop.f32.mrf.mxu1 }
 0x34f   : > { %11247 = vst [vmem:[#allocation10_spill] sm:$0xff] %v10418_v17  ;;  %v10425_v51 = vadd.f32 %v4655_v54, %v10275_v49  ;;  %v5008_v49 = vadd.f32 %v10290_v15, %v10278_v39  ;;  %v5006_v17 = vadd.f32 %v10295_v50, %v10283_v0  ;;  %v5009_v39 = vadd.f32 %v10305_v29, %v10293_v45 }
 0x350   : > { %v7504_v7 = vpop.f32.mrf.mxu1  ;;  %v5012_v15 = vadd.f32 %v10310_v26, %v10298_v24  ;;  %v5015_v45 = vadd.f32 %v10320_v53, %v10308_v6  ;;  %v5013_v24 = vadd.f32 %v10325_v60, %v10313_v35  ;;  %v10484_v6 = vadd.f32 %v10340_v61, %v10328_v55 }
 0x351   : > { %11248 = vst [vmem:[#allocation20_spill] sm:$0xff] %v10425_v51  ;;  %v5393_v14 = vadd.f32 %v7504_v7, %v5007_v20  ;;  %v5011_v7 = vadd.f32 %v10300_v44, %v10288_v56  ;;  %v5010_v56 = vadd.f32 %v10315_v33, %v10303_v10  ;;  %v10471_v44 = vadd.f32 %v10330_v41, %v10318_v40 }
 0x352   : > { %v5248_v27 = vpop.f32.mrf.mxu1  ;;  %v10480_v10 = vadd.f32 %v10335_v30, %v10323_v63  ;;  %v10488_v35 = vadd.f32 %v10348_v23, %v10333_v32  ;;  %v10496_v63 = vadd.f32 %v10356_v22, %v10338_v9  ;;  %v10500_v55 = vadd.f32 %v10364_v19, %v10343_v47 }
 0x353   : > { %v5436_v13 = vmul.f32 %v10430_v8, %v5393_v14  ;;  %v5391_v54 = vadd.f32 %v5248_v27, %v5005_v43  ;;  %v10456_v14 = vpop.f32.mrf.mxu0  ;;  %v10510_v9 = vadd.f32 %v10380_v28, %v10351_v42  ;;  %v10523_v42 = vadd.f32 %v10396_v48, %v10359_v5 }
 0x354   : > { %v7505_v51 = vpop.f32.mrf.mxu1  ;;  %v10539_v5 = vadd.f32 %v10412_v12, %v10367_v59  ;;  %v10553_v59 = vadd.f32 %v10441_v36, %v10375_v57 }
 0x355   : > { %v10447_v21 = vadd.f32 %v10437_v25, %v5436_v13  ;;  %v5434_v2 = vmul.f32 %v10430_v8, %v5391_v54  ;;  %v5394_v20 = vadd.f32 %v7505_v51, %v5008_v49  ;;  %v4958_v53 = vpop.f32.mrf.mxu0 }
 0x356   : > { %v5251_v43 = vpop.f32.mrf.mxu1 }
 0x357   : > { %v5515_v0 = vsub.f32 0.0, %v10447_v21  ;;  %v10460_v50 = vadd.f32 %v10437_v25, %v5434_v2  ;;  %v5437_v27 = vmul.f32 %v10430_v8, %v5394_v20  ;;  %v5392_v51 = vadd.f32 %v5251_v43, %v5006_v17 }
 0x358   : > { %v7508_v29 = vpop.f32.mrf.mxu1 }
 0x359   : > { %v5553_v26 = vmul.f32 1.442695, %v5515_v0  ;;  %v5513_v49 = vsub.f32 0.0, %v10460_v50  ;;  %v10475_v13 = vadd.f32 %v10437_v25, %v5437_v27  ;;  %v5435_v17 = vmul.f32 %v10430_v8, %v5392_v51 }
 0x35a   : > { %v5397_v33 = vadd.f32 %v7508_v29, %v5011_v7  ;;  %v5264_v40 = vpop.f32.mrf.mxu1  ;;  %v10506_v7 = vadd.f32 %v10372_v4, %v10346_v58  ;;  %v10519_v58 = vadd.f32 %v10388_v3, %v10354_v34  ;;  %v10535_v34 = vadd.f32 %v10404_v11, %v10362_v38 }
 0x35b   : > { %7834 = vpow2.f32 %v5553_v26  ;;  %v5549_v60 = vmul.f32 1.442695, %v5513_v49  ;;  %v5516_v41 = vsub.f32 0.0, %v10475_v13  ;;  %v10492_v54 = vadd.f32 %v10437_v25, %v5435_v17 }
 0x35c   : > { %v5440_v32 = vmul.f32 %v10430_v8, %v5397_v33  ;;  %v5395_v30 = vadd.f32 %v5264_v40, %v5009_v39  ;;  %v7509_v61 = vpop.f32.mrf.mxu1  ;;  %v7477_v39 = vpop.f32.mrf.mxu0  ;;  %v10549_v38 = vadd.f32 %v10422_v37, %v10370_v46  ;;  %v10565_v46 = vadd.f32 %v4958_v53, %v10383_v18 }
 0x35d   : > { %7836 = vpow2.f32 %v5549_v60  ;;  %v5555_v23 = vmul.f32 1.442695, %v5516_v41  ;;  %v5514_v2 = vsub.f32 0.0, %v10492_v54  ;;  %v5398_v20 = vadd.f32 %v7509_v61, %v5012_v15 }
 0x35e   : > { %v10513_v47 = vadd.f32 %v10437_v25, %v5440_v32  ;;  %v5438_v22 = vmul.f32 %v10430_v8, %v5395_v30  ;;  %v5267_v19 = vpop.f32.mrf.mxu1  ;;  %v4961_v49 = vpop.f32.mrf.mxu0 }
 0x35f   : > { %7838 = vpow2.f32 %v5555_v23  ;;  %v5551_v43 = vmul.f32 1.442695, %v5514_v2  ;;  %v5441_v0 = vmul.f32 %v10430_v8, %v5398_v20  ;;  %v5396_v15 = vadd.f32 %v5267_v19, %v5010_v56  ;;  %v11250_v19 = vld [vmem:[#allocation8_spill] sm:$0xff] }
 0x360   : > { %v5519_v4 = vsub.f32 0.0, %v10513_v47  ;;  %v10527_v28 = vadd.f32 %v10437_v25, %v5438_v22  ;;  %v7512_v27 = vpop.f32.mrf.mxu1  ;;  %v7480_v36 = vpop.f32.mrf.mxu0 }
 0x361   : > { %7840 = vpow2.f32 %v5551_v43  ;;  %v10530_v51 = vadd.f32 %v10437_v25, %v5441_v0  ;;  %v5439_v56 = vmul.f32 %v10430_v8, %v5396_v15  ;;  %v5401_v29 = vadd.f32 %v7512_v27, %v5015_v45 }
 0x362   : > { %v5561_v48 = vmul.f32 1.442695, %v5519_v4  ;;  %v5517_v3 = vsub.f32 0.0, %v10527_v28  ;;  %v5280_v26 = vpop.f32.mrf.mxu1  ;;  %v10573_v43 = vadd.f32 %v7477_v39, %v11250_v19 }
 0x363   : > { %v5520_v17 = vsub.f32 0.0, %v10530_v51  ;;  %v10544_v33 = vadd.f32 %v10437_v25, %v5439_v56  ;;  %v5444_v45 = vmul.f32 %v10430_v8, %v5401_v29  ;;  %v5399_v40 = vadd.f32 %v5280_v26, %v5013_v24  ;;  %v11249_v24 = vld [vmem:[#allocation7_spill] sm:$0xff] }
 0x364   : > { %7842 = vpow2.f32 %v5561_v48  ;;  %v5557_v11 = vmul.f32 1.442695, %v5517_v3  ;;  %v7513_v12 = vpop.f32.mrf.mxu1  ;;  %v10562_v61 = vadd.f32 %v10456_v14, %v11249_v24  ;;  %v10576_v14 = vadd.f32 %v4961_v49, %v10391_v62  ;;  %v11251_v56 = vld [vmem:[#allocation19_spill] sm:$0xff] }
 0x365   : > { %v5563_v60 = vmul.f32 1.442695, %v5520_v17  ;;  %v5518_v41 = vsub.f32 0.0, %v10544_v33  ;;  %v10557_v32 = vadd.f32 %v10437_v25, %v5444_v45  ;;  %v5442_v30 = vmul.f32 %v10430_v8, %v5399_v40 }
 0x366   : > { %7844 = vpow2.f32 %v5557_v11  ;;  %v5402_v57 = vadd.f32 %v7513_v12, %v10471_v44  ;;  %v5283_v37 = vpop.f32.mrf.mxu1  ;;  %v10582_v29 = vadd.f32 %v7480_v36, %v11251_v56 }
 0x367   : > { %7846 = vpow2.f32 %v5563_v60  ;;  %v5559_v23 = vmul.f32 1.442695, %v5518_v41  ;;  %v5523_v2 = vsub.f32 0.0, %v10557_v32  ;;  %v10570_v20 = vadd.f32 %v10437_v25, %v5442_v30 }
 0x368   : > { %v7835_v22 = vpop.eup %7834  ;;  %v5445_v18 = vmul.f32 %v10430_v8, %v5402_v57  ;;  %v5400_v44 = vadd.f32 %v5283_v37, %v10480_v10  ;;  %v7516_v53 = vpop.f32.mrf.mxu1 }
 0x369   : > { %v5623_v0 = vadd.f32 1.0, %v7835_v22  ;;  %7848 = vpow2.f32 %v5559_v23  ;;  %v5569_v15 = vmul.f32 1.442695, %v5523_v2  ;;  %v5521_v4 = vsub.f32 0.0, %v10570_v20  ;;  %v4974_v22 = vpop.f32.mrf.mxu0 }
 0x36a   : > { %v7837_v27 = vpop.eup %7836  ;;  %v10585_v39 = vadd.f32 %v10437_v25, %v5445_v18  ;;  %v5443_v62 = vmul.f32 %v10430_v8, %v5400_v44  ;;  %v5405_v48 = vadd.f32 %v7516_v53, %v10484_v6  ;;  %v5296_v3 = vpop.f32.mrf.mxu1 }
 0x36b   : > { %7850 = vrcp.f32 %v5623_v0  ;;  %v5621_v10 = vadd.f32 1.0, %v7837_v27  ;;  %v5565_v26 = vmul.f32 1.442695, %v5521_v4  ;;  %v5403_v49 = vadd.f32 %v5296_v3, %v10488_v35 }
 0x36c   : > { %v7839_v17 = vpop.eup %7838  ;;  %7852 = vpow2.f32 %v5569_v15  ;;  %v5524_v45 = vsub.f32 0.0, %v10585_v39  ;;  %v10592_v40 = vadd.f32 %v10437_v25, %v5443_v62  ;;  %v5448_v11 = vmul.f32 %v10430_v8, %v5405_v48  ;;  %v7517_v12 = vpop.f32.mrf.mxu1 }
 0x36d   : > { %7854 = vrcp.f32 %v5621_v10  ;;  %v5624_v60 = vadd.f32 1.0, %v7839_v17  ;;  %v5446_v6 = vmul.f32 %v10430_v8, %v5403_v49  ;;  %v5406_v41 = vadd.f32 %v7517_v12, %v10496_v63 }
 0x36e   : > { %v7841_v30 = vpop.eup %7840  ;;  %7856 = vpow2.f32 %v5565_v26  ;;  %v5571_v24 = vmul.f32 1.442695, %v5524_v45  ;;  %v5522_v35 = vsub.f32 0.0, %v10592_v40  ;;  %v10599_v57 = vadd.f32 %v10437_v25, %v5448_v11  ;;  %v5299_v37 = vpop.f32.mrf.mxu1 }
 0x36f   : > { %7858 = vrcp.f32 %v5624_v60  ;;  %v5622_v36 = vadd.f32 1.0, %v7841_v30  ;;  %v10602_v23 = vadd.f32 %v10437_v25, %v5446_v6  ;;  %v5449_v2 = vmul.f32 %v10430_v8, %v5406_v41  ;;  %v7481_v45 = vpop.f32.mrf.mxu0 }
 0x370   : > { %7860 = vpow2.f32 %v5571_v24  ;;  %v5567_v19 = vmul.f32 1.442695, %v5522_v35  ;;  %v5527_v63 = vsub.f32 0.0, %v10599_v57  ;;  %v5404_v18 = vadd.f32 %v5299_v37, %v10500_v55  ;;  %v7520_v44 = vpop.f32.mrf.mxu1 }
 0x371   : > { %v7843_v53 = vpop.eup %7842  ;;  %7862 = vrcp.f32 %v5622_v36  ;;  %v5525_v0 = vsub.f32 0.0, %v10602_v23  ;;  %v10609_v15 = vadd.f32 %v10437_v25, %v5449_v2  ;;  %v5409_v4 = vadd.f32 %v7520_v44, %v10506_v7 }
 0x372   : > { %v5627_v27 = vadd.f32 1.0, %v7843_v53  ;;  %7864 = vpow2.f32 %v5567_v19  ;;  %v5577_v56 = vmul.f32 1.442695, %v5527_v63  ;;  %v5447_v62 = vmul.f32 %v10430_v8, %v5404_v18  ;;  %v5312_v48 = vpop.f32.mrf.mxu1  ;;  %v4977_v63 = vpop.f32.mrf.mxu0 }
 0x373   : > { %v7845_v3 = vpop.eup %7844  ;;  %v10614_v10 = vadd.f32 %v4974_v22, %v10399_v31  ;;  %v5528_v55 = vsub.f32 0.0, %v10609_v15  ;;  %v5452_v26 = vmul.f32 %v10430_v8, %v5409_v4  ;;  %v5407_v49 = vadd.f32 %v5312_v48, %v10510_v9  ;;  %v11253_v4 = vld [vmem:[#allocation9_spill] sm:$0xff] }
 0x374   : > { %v7847_v17 = vpop.eup %7846  ;;  %7866 = vrcp.f32 %v5627_v27  ;;  %v5625_v7 = vadd.f32 1.0, %v7845_v3  ;;  %v5573_v11 = vmul.f32 1.442695, %v5525_v0  ;;  %v10620_v12 = vadd.f32 %v10437_v25, %v5447_v62  ;;  %v7521_v60 = vpop.f32.mrf.mxu1 }
 0x375   : > { %v5628_v6 = vadd.f32 1.0, %v7847_v17  ;;  %7868 = vpow2.f32 %v5577_v56  ;;  %v5579_v41 = vmul.f32 1.442695, %v5528_v55  ;;  %v10623_v31 = vadd.f32 %v10437_v25, %v5452_v26 }
 0x376   : > { %v7849_v30 = vpop.eup %7848  ;;  %7870 = vrcp.f32 %v5625_v7  ;;  %v5526_v24 = vsub.f32 0.0, %v10620_v12  ;;  %v5450_v9 = vmul.f32 %v10430_v8, %v5407_v49  ;;  %v5410_v35 = vadd.f32 %v7521_v60, %v10519_v58  ;;  %v5315_v37 = vpop.f32.mrf.mxu1 }
 0x377   : > { %7872 = vrcp.f32 %v5628_v6  ;;  %v5626_v36 = vadd.f32 1.0, %v7849_v30  ;;  %v5531_v2 = vsub.f32 0.0, %v10623_v31  ;;  %v5408_v22 = vadd.f32 %v5315_v37, %v10523_v42 }
 0x378   : > { %v7851_v19 = vpop.eup %7850  ;;  %7874 = vpow2.f32 %v5573_v11  ;;  %v5575_v18 = vmul.f32 1.442695, %v5526_v24  ;;  %v10631_v44 = vadd.f32 %v10437_v25, %v5450_v9  ;;  %v5453_v53 = vmul.f32 %v10430_v8, %v5410_v35 }
 0x379   : > { %v7853_v0 = vpop.eup %7852  ;;  %v10635_v27 = vadd.f32 %v7481_v45, %v11253_v4  ;;  %v5695_v58 = vmul.f32 %v7851_v19, %v10447_v21  ;;  %7876 = vrcp.f32 %v5626_v36  ;;  %v5451_v56 = vmul.f32 %v10430_v8, %v5408_v22 }
 0x37a   : > { %11252 = vst [vmem:[#allocation11_spill] sm:$0xff] %v10631_v44  ;;  %v7855_v62 = vpop.eup %7854  ;;  %v5631_v42 = vadd.f32 1.0, %v7853_v0  ;;  %7878 = vpow2.f32 %v5579_v41  ;;  %v5529_v48 = vsub.f32 0.0, %v10631_v44  ;;  %v10641_v3 = vadd.f32 %v10437_v25, %v5453_v53 }
 0x37b   : > { %v7857_v55 = vpop.eup %7856  ;;  %v10644_v26 = vadd.f32 %v4977_v63, %v10407_v1  ;;  %v6730_v49 = vpack.c.bf16 %v5695_v58, %v5695_v58  ;;  %v5693_v17 = vmul.f32 %v7855_v62, %v10460_v50  ;;  %7880 = vpow2.f32 %v5575_v18 }
 0x37c   : > { %11254 = vst [vmem:[#allocation21_spill] sm:$0xff] %v10641_v3  ;;  %v7859_v21 = vpop.eup %7858  ;;  %7882 = vrcp.f32 %v5631_v42  ;;  %v5629_v45 = vadd.f32 1.0, %v7857_v55  ;;  %v10647_v7 = vmul.f32 1.442695, %v5531_v2  ;;  %v5532_v11 = vsub.f32 0.0, %v10641_v3 }
 0x37d   : > { %v7861_v60 = vpop.eup %7860  ;;  %v5775_v6 = vshll.u32 %v6730_v49, 16  ;;  %v5788_v41 = vshrl.u32 %v6730_v49, 16  ;;  %v6728_v30 = vpack.c.bf16 %v5693_v17, %v5693_v17  ;;  %v5696_v24 = vmul.f32 %v7859_v21, %v10475_v13 }
 0x37e   : > { %v7863_v9 = vpop.eup %7862  ;;  %7884 = vrcp.f32 %v5629_v45  ;;  %v5632_v1 = vadd.f32 1.0, %v7861_v60  ;;  %v10651_v35 = vmul.f32 1.442695, %v5529_v48  ;;  %v10654_v50 = vadd.f32 %v10437_v25, %v5451_v56 }
 0x37f   : > { %v7865_v37 = vpop.eup %7864  ;;  %v5790_v36 = vrot.slane %v5788_v41, 5  ;;  %v5791_v2 = vrot.slane %v5775_v6, 6  ;;  %v5756_v22 = vshrl.u32 %v6728_v30, 16  ;;  %v10656_v19 = vmul.f32 1.442695, %v5532_v11 }
 0x380   : > { %v5759_v63 = vshll.u32 %v6728_v30, 16  ;;  %v6731_v18 = vpack.c.bf16 %v5696_v24, %v5696_v24  ;;  %v5694_v53 = vmul.f32 %v7863_v9, %v10492_v54  ;;  %7886 = vrcp.f32 %v5632_v1  ;;  %v10662_v54 = vpop.f32.mrf.mxu1 }
 0x381   : > { %v7867_v13 = vpop.eup %7866  ;;  %v10659_v0 = vrot.slane %v5775_v6, 5  ;;  %v5792_v4 = vor.u32 %v5791_v2, %v5790_v36  ;;  %v5758_v58 = vrot.slane %v5756_v22, 4  ;;  %v5630_v62 = vadd.f32 1.0, %v7865_v37 }
 0x382   : > { %v7869_v42 = vpop.eup %7868  ;;  %v5761_v56 = vrot.slane %v5759_v63, 5  ;;  %v5795_v48 = vshrl.u32 %v6731_v18, 16  ;;  %v5798_v55 = vshll.u32 %v6731_v18, 16  ;;  %v6729_v49 = vpack.c.bf16 %v5694_v53, %v5694_v53 }
 0x383   : > { %v7871_v17 = vpop.eup %7870  ;;  %v5793_v21 = vrot.slane %v5792_v4, 4  ;;  %v5699_v45 = vmul.f32 %v7867_v13, %v10513_v47  ;;  %7888 = vrcp.f32 %v5630_v62  ;;  %v5635_v11 = vadd.f32 1.0, %v7869_v42 }
 0x384   : > { %v7873_v60 = vpop.eup %7872  ;;  %v5762_v6 = vor.u32 %v5761_v56, %v5758_v58  ;;  %v5797_v41 = vrot.slane %v5795_v48, 5  ;;  %v5800_v30 = vrot.slane %v5798_v55, 6  ;;  %v5765_v24 = vshll.u32 %v6729_v49, 16 }
 0x385   : > { %v10664_v9 = vpop.eup %7874  ;;  %v5769_v1 = vshrl.u32 %v6729_v49, 16  ;;  %v6734_v37 = vpack.c.bf16 %v5699_v45, %v5699_v45  ;;  %v5697_v36 = vmul.f32 %v7871_v17, %v10527_v28  ;;  %v5700_v2 = vmul.f32 %v7873_v60, %v10530_v51  ;;  %v10677_v51 = vpop.f32.mrf.mxu1 }
 0x386   : > { %v7877_v22 = vpop.eup %7876  ;;  %v5763_v47 = vrot.slane %v5762_v6, 4  ;;  %v5801_v63 = vor.u32 %v5800_v30, %v5797_v41  ;;  %v5767_v18 = vrot.slane %v5765_v24, 5  ;;  %7890 = vrcp.f32 %v5635_v11 }
 0x387   : > { %v10675_v53 = vpop.eup %7878  ;;  %v5771_v13 = vrot.slane %v5769_v1, 4  ;;  %v5837_v4 = vshrl.u32 %v6734_v37, 16  ;;  %v5840_v28 = vshll.u32 %v6734_v37, 16  ;;  %v6732_v58 = vpack.c.bf16 %v5697_v36, %v5697_v36 }
 0x388   : > { %v10679_v62 = vpop.eup %7880  ;;  %v5802_v56 = vsel %vm8388_vm13, %v5793_v21, %v5801_v63  ;;  %v5768_v55 = vsel %vm8365_vm1, %v5763_v47, %v5767_v18  ;;  %v6735_v49 = vpack.c.bf16 %v5700_v2, %v5700_v2  ;;  %7892 = vpow2.f32 %v10647_v7  ;;  %v10694_v47 = vpop.f32.mrf.mxu1 }
 0x389   : > { %v7883_v17 = vpop.eup %7882  ;;  %v5803_v45 = vrot.slane %v5801_v63, 4  ;;  %5815 = vst [vmem:[%s10673_s23 + $0x8] sm:$0xf] %v5802_v56  ;;  %v5772_v11 = vor.u32 %v5771_v13, %v5767_v18  ;;  %5781 = vst [vmem:[%s10673_s23] sm:$0xf] %v5768_v55  ;;  %v10688_v60 = vrot.slane %v5837_v4, 6  ;;  %v10690_v6 = vrot.slane %v5840_v28, 7 }
 0x38a   : > { %v6661_v41 = vrot.slane %v5837_v4, 11  ;;  %v5805_v30 = vshrl.u32 %v6732_v58, 16  ;;  %v5808_v24 = vshll.u32 %v6732_v58, 16  ;;  %v5857_v1 = vshrl.u32 %v6735_v49, 16  ;;  %v10704_v44 = vpop.f32.mrf.mxu1 }
 0x38b   : > { %v7885_v21 = vpop.eup %7884  ;;  %v5773_v37 = vrot.slane %v5772_v11, 4  ;;  %v5860_v36 = vshll.u32 %v6735_v49, 16  ;;  %v5698_v2 = vmul.f32 %v7877_v22, %v10544_v33  ;;  %v5703_v7 = vmul.f32 %v7883_v17, %v10557_v32 }
 0x38c   : > { %v5807_v63 = vrot.slane %v5805_v30, 5  ;;  %v5810_v18 = vrot.slane %v5808_v24, 6  ;;  %v5822_v13 = vrot.slane %v5805_v30, 6  ;;  %v5823_v56 = vrot.slane %v5808_v24, 7 }
 0x38d   : > { %v7887_v28 = vpop.eup %7886  ;;  %v5778_v4 = vsel %vm8365_vm1, %v5773_v37, %v10659_v0  ;;  %v5859_v58 = vrot.slane %v5857_v1, 7  ;;  %v6733_v55 = vpack.c.bf16 %v5698_v2, %v5698_v2  ;;  %v6738_v3 = vpack.c.bf16 %v5703_v7, %v5703_v7 }
 0x38e   : > { %5782 = vst [vmem:[%s10673_s23 + $0x4] sm:$0xf] %v5778_v4  ;;  %v5811_v49 = vor.u32 %v5810_v18, %v5807_v63  ;;  %v5824_v33 = vor.u32 %v5823_v56, %v5822_v13  ;;  %v5701_v32 = vmul.f32 %v7885_v21, %v10570_v20  ;;  %v5704_v22 = vmul.f32 %v7887_v28, %v10585_v39 }
 0x38f   : > { %v5843_v17 = vor.u32 %v10690_v6, %v10688_v60  ;;  %v5862_v11 = vor.u32 %v5860_v36, %v5859_v58  ;;  %v5827_v30 = vshrl.u32 %v6733_v55, 16  ;;  %v5830_v24 = vshll.u32 %v6733_v55, 16  ;;  %v10716_v55 = vpop.f32.mrf.mxu1 }
 0x390   : > { %v7889_v0 = vpop.eup %7888  ;;  %v5812_v1 = vsel %vm8388_vm13, %v5803_v45, %v5811_v49  ;;  %v5825_v37 = vrot.slane %v5824_v33, 4  ;;  %v5894_v2 = vshll.u32 %v6738_v3, 16  ;;  %v5898_v7 = vshrl.u32 %v6738_v3, 16 }
 0x391   : > { %5816 = vst [vmem:[%s10673_s23 + $0xc] sm:$0xf] %v5812_v1  ;;  %v5863_v39 = vsel %vm8432_vm11, %v6661_v41, %v5862_v11  ;;  %v5829_v21 = vrot.slane %v5827_v30, 6  ;;  %v5832_v63 = vrot.slane %v5830_v24, 7  ;;  %v6736_v18 = vpack.c.bf16 %v5701_v32, %v5701_v32 }
 0x392   : > { %5875 = vst [vmem:[%s10673_s23 + $0x18] sm:$0xf] %v5863_v39  ;;  %v10712_v60 = vrot.slane %v5894_v2, 5  ;;  %v5900_v6 = vrot.slane %v5898_v7, 4  ;;  %v6739_v36 = vpack.c.bf16 %v5704_v22, %v5704_v22  ;;  %v5702_v13 = vmul.f32 %v7889_v0, %v10592_v40 }
 0x393   : > { %v7891_v56 = vpop.eup %7890  ;;  %v5833_v45 = vor.u32 %v5832_v63, %v5829_v21  ;;  %v5866_v28 = vshrl.u32 %v6736_v18, 16  ;;  %v5869_v4 = vshll.u32 %v6736_v18, 16  ;;  %v5633_v3 = vadd.f32 1.0, %v10664_v9 }
 0x394   : > { %v5901_v41 = vor.u32 %v5900_v6, %v10712_v60  ;;  %v5904_v49 = vshll.u32 %v6739_v36, 16  ;;  %v5917_v33 = vshrl.u32 %v6739_v36, 16  ;;  %v6737_v32 = vpack.c.bf16 %v5702_v13, %v5702_v13  ;;  %v5344_v6 = vpop.f32.mrf.mxu1 }
 0x395   : > { %v7893_v11 = vpop.eup %7892  ;;  %v5834_v22 = vsel %vm8424_vm6, %v5825_v37, %v5833_v45  ;;  %v5835_v40 = vrot.slane %v5833_v45, 4  ;;  %v5868_v24 = vrot.slane %v5866_v28, 7  ;;  %v5707_v0 = vmul.f32 %v7891_v56, %v10599_v57 }
 0x396   : > { %v5864_v1 = vrot.slane %v5859_v58, 4  ;;  %5847 = vst [vmem:[%s10673_s23 + $0x10] sm:$0xf] %v5834_v22  ;;  %v5902_v9 = vrot.slane %v5901_v41, 4  ;;  %v5906_v2 = vrot.slane %v5904_v49, 5  ;;  %v5530_v7 = vsub.f32 0.0, %v10654_v50 }
 0x397   : > { %v5844_v39 = vsel %vm8424_vm6, %v5835_v40, %v5843_v17  ;;  %v5871_v21 = vor.u32 %v5869_v4, %v5868_v24  ;;  %v5885_v63 = vshrl.u32 %v6737_v32, 16  ;;  %v5888_v18 = vshll.u32 %v6737_v32, 16  ;;  %v7529_v40 = vpop.f32.mrf.mxu1 }
 0x398   : > { %5848 = vst [vmem:[%s10673_s23 + $0x14] sm:$0xf] %v5844_v39  ;;  %v5907_v37 = vsel %vm8365_vm1, %v5902_v9, %v5906_v2  ;;  %v10729_v57 = vrot.slane %v5917_v33, 5  ;;  %v6742_v58 = vpack.c.bf16 %v5707_v0, %v5707_v0  ;;  %7894 = vrcp.f32 %v5633_v3 }
 0x399   : > { %v5872_v36 = vsel %vm8432_vm11, %v5864_v1, %v5871_v21  ;;  %5911 = vst [vmem:[%s10673_s23 + $0x24] sm:$0xf] %v5907_v37  ;;  %v5887_v13 = vrot.slane %v5885_v63, 4  ;;  %v5890_v56 = vrot.slane %v5888_v18, 5  ;;  %v5636_v17 = vadd.f32 1.0, %v10675_v53 }
 0x39a   : > { %5876 = vst [vmem:[%s10673_s23 + $0x1c] sm:$0xf] %v5872_v36  ;;  %v5920_v45 = vrot.slane %v5904_v49, 6  ;;  %v5956_v28 = vshrl.u32 %v6742_v58, 16  ;;  %v5959_v4 = vshll.u32 %v6742_v58, 16  ;;  %v5634_v41 = vadd.f32 1.0, %v10679_v62 }
 0x39b   : > { %v5891_v32 = vor.u32 %v5890_v56, %v5887_v13  ;;  %7896 = vrcp.f32 %v5636_v17  ;;  %v5639_v33 = vadd.f32 1.0, %v7893_v11  ;;  %v5583_v22 = vmul.f32 1.442695, %v5530_v7 }
 0x39c   : > { %v5958_v3 = vrot.slane %v5956_v28, 6  ;;  %v5961_v24 = vrot.slane %v5959_v4, 7  ;;  %7898 = vrcp.f32 %v5634_v41  ;;  %v5413_v0 = vadd.f32 %v10662_v54, %v10535_v34 }
 0x39d   : > { %v5892_v1 = vrot.slane %v5891_v32, 4  ;;  %7900 = vrcp.f32 %v5639_v33  ;;  %v5411_v53 = vadd.f32 %v10677_v51, %v10539_v5  ;;  %v5414_v62 = vadd.f32 %v10694_v47, %v10549_v38  ;;  %v5347_v38 = vpop.f32.mrf.mxu1 }
 0x39e   : > { %v5921_v49 = vor.u32 %v5920_v45, %v10729_v57  ;;  %7902 = vpow2.f32 %v10651_v35  ;;  %v5456_v11 = vmul.f32 %v10430_v8, %v5413_v0  ;;  %v5412_v9 = vadd.f32 %v10704_v44, %v10553_v59 }
 0x39f   : > { %v5897_v34 = vsel %vm8365_vm1, %v5892_v1, %v10712_v60  ;;  %7904 = vpow2.f32 %v10656_v19  ;;  %v5454_v5 = vmul.f32 %v10430_v8, %v5411_v53  ;;  %v5457_v54 = vmul.f32 %v10430_v8, %v5414_v62  ;;  %v7532_v36 = vpop.f32.mrf.mxu1 }
 0x3a0   : > { %5910 = vst [vmem:[%s10673_s23 + $0x20] sm:$0xf] %v5897_v34  ;;  %v10755_v51 = vor.u32 %v5961_v24, %v5958_v3  ;;  %7906 = vpow2.f32 %v5583_v22  ;;  %v10758_v35 = vadd.f32 %v10437_v25, %v5456_v11  ;;  %v5455_v59 = vmul.f32 %v10430_v8, %v5412_v9 }
 0x3a1   : > { %v10762_v44 = vadd.f32 %v10437_v25, %v5454_v5  ;;  %v10765_v47 = vadd.f32 %v10437_v25, %v5457_v54  ;;  %v5417_v19 = vadd.f32 %v10716_v55, %v10562_v61  ;;  %v5415_v60 = vadd.f32 %v5344_v6, %v10565_v46  ;;  %v7484_v61 = vpop.f32.mrf.mxu0 }
 0x3a2   : > { %v5535_v2 = vsub.f32 0.0, %v10758_v35  ;;  %v10772_v7 = vadd.f32 %v10437_v25, %v5455_v59  ;;  %v5418_v39 = vadd.f32 %v7529_v40, %v10573_v43  ;;  %v5416_v21 = vadd.f32 %v5347_v38, %v10576_v14 }
 0x3a3   : > { %v5533_v63 = vsub.f32 0.0, %v10762_v44  ;;  %v5536_v18 = vsub.f32 0.0, %v10765_v47  ;;  %v5460_v37 = vmul.f32 %v10430_v8, %v5417_v19  ;;  %v5458_v57 = vmul.f32 %v10430_v8, %v5415_v60 }
 0x3a4   : > { %v5593_v55 = vmul.f32 1.442695, %v5535_v2  ;;  %v5534_v46 = vsub.f32 0.0, %v10772_v7  ;;  %v5461_v6 = vmul.f32 %v10430_v8, %v5418_v39  ;;  %v5459_v58 = vmul.f32 %v10430_v8, %v5416_v21 }
 0x3a5   : > { %v7895_v43 = vpop.eup %7894  ;;  %v5589_v13 = vmul.f32 1.442695, %v5533_v63  ;;  %v5595_v14 = vmul.f32 1.442695, %v5536_v18  ;;  %v10784_v56 = vadd.f32 %v10437_v25, %v5460_v37  ;;  %v10787_v17 = vadd.f32 %v10437_v25, %v5458_v57 }
 0x3a6   : > { %v5705_v45 = vmul.f32 %v7895_v43, %v10602_v23  ;;  %7908 = vpow2.f32 %v5593_v55  ;;  %v5591_v28 = vmul.f32 1.442695, %v5534_v46  ;;  %v10791_v4 = vadd.f32 %v10437_v25, %v5461_v6  ;;  %v10799_v23 = vpop.f32.mrf.mxu1 }
 0x3a7   : > { %v10794_v41 = vadd.f32 %v7484_v61, %v10410_v52  ;;  %v5922_v32 = vrot.slane %v5921_v49, 4  ;;  %7910 = vpow2.f32 %v5589_v13  ;;  %v5539_v33 = vsub.f32 0.0, %v10784_v56 }
 0x3a8   : > { %v7897_v22 = vpop.eup %7896  ;;  %v5964_v40 = vrot.slane %v10755_v51, 4  ;;  %v6740_v3 = vpack.c.bf16 %v5705_v45, %v5705_v45  ;;  %7912 = vpow2.f32 %v5595_v14  ;;  %v5537_v24 = vsub.f32 0.0, %v10787_v17  ;;  %v7533_v21 = vpop.f32.mrf.mxu1 }
 0x3a9   : > { %v7899_v0 = vpop.eup %7898  ;;  %v5708_v1 = vmul.f32 %v7897_v22, %v10609_v15  ;;  %7914 = vpow2.f32 %v5591_v28  ;;  %v5601_v53 = vmul.f32 1.442695, %v5539_v33  ;;  %v10803_v52 = vadd.f32 %v10437_v25, %v5459_v58 }
 0x3aa   : > { %v7901_v62 = vpop.eup %7900  ;;  %v5924_v49 = vshrl.u32 %v6740_v3, 16  ;;  %v5927_v11 = vshll.u32 %v6740_v3, 16  ;;  %v5706_v9 = vmul.f32 %v7899_v0, %v10620_v12  ;;  %v5540_v34 = vsub.f32 0.0, %v10791_v4  ;;  %v5363_v45 = vpop.f32.mrf.mxu1 }
 0x3ab   : > { %v7903_v5 = vpop.eup %7902  ;;  %v10807_v54 = vpack.c.bf16 %v5708_v1, %v5708_v1  ;;  %v5711_v38 = vmul.f32 %v7901_v62, %v10623_v31  ;;  %7916 = vpow2.f32 %v5601_v53  ;;  %v5421_v15 = vadd.f32 %v7532_v36, %v10582_v29  ;;  %v4990_v62 = vpop.f32.mrf.mxu0 }
 0x3ac   : > { %v7905_v59 = vpop.eup %7904  ;;  %v5926_v19 = vrot.slane %v5924_v49, 5  ;;  %v5929_v60 = vrot.slane %v5927_v11, 6  ;;  %v6741_v2 = vpack.c.bf16 %v5706_v9, %v5706_v9  ;;  %v5637_v39 = vadd.f32 1.0, %v7903_v5 }
 0x3ad   : > { %v7907_v63 = vpop.eup %7906  ;;  %v5966_v18 = vshrl.u32 %v10807_v54, 16  ;;  %v5969_v12 = vshll.u32 %v10807_v54, 16  ;;  %v6746_v37 = vpack.c.bf16 %v5711_v38, %v5711_v38  ;;  %v5640_v57 = vadd.f32 1.0, %v7905_v59  ;;  %v7536_v59 = vpop.f32.mrf.mxu1 }
 0x3ae   : > { %v5930_v61 = vor.u32 %v5929_v60, %v5926_v19  ;;  %v5934_v55 = vshrl.u32 %v6741_v2, 16  ;;  %v5937_v31 = vshll.u32 %v6741_v2, 16  ;;  %7918 = vrcp.f32 %v5637_v39 }
 0x3af   : > { %v5968_v29 = vrot.slane %v5966_v18, 6  ;;  %v5971_v46 = vrot.slane %v5969_v12, 7  ;;  %v5597_v6 = vmul.f32 1.442695, %v5537_v24  ;;  %v5603_v58 = vmul.f32 1.442695, %v5540_v34 }
 0x3b0   : > { %v5931_v36 = vsel %vm8388_vm13, %v5922_v32, %v5930_v61  ;;  %v5936_v43 = vrot.slane %v5934_v55, 5  ;;  %v5939_v13 = vrot.slane %v5937_v31, 6  ;;  %v6015_v14 = vshrl.u32 %v6746_v37, 16 }
 0x3b1   : > { %v5932_v28 = vrot.slane %v5930_v61, 4  ;;  %5944 = vst [vmem:[%s10673_s23 + $0x28] sm:$0xf] %v5931_v36  ;;  %v5972_v33 = vor.u32 %v5971_v46, %v5968_v29  ;;  %v5951_v22 = vrot.slane %v5934_v55, 6  ;;  %v5952_v3 = vrot.slane %v5937_v31, 7 }
 0x3b2   : > { %v5940_v0 = vor.u32 %v5939_v13, %v5936_v43  ;;  %v6018_v1 = vshll.u32 %v6746_v37, 16  ;;  %7920 = vrcp.f32 %v5640_v57  ;;  %v5638_v53 = vadd.f32 1.0, %v7907_v63  ;;  %v7485_v57 = vpop.f32.mrf.mxu0 }
 0x3b3   : > { %v7909_v24 = vpop.eup %7908  ;;  %v5973_v32 = vsel %vm8424_vm6, %v5964_v40, %v5972_v33  ;;  %v5953_v49 = vor.u32 %v5952_v3, %v5951_v22  ;;  %7922 = vpow2.f32 %v5597_v6  ;;  %v5538_v11 = vsub.f32 0.0, %v10803_v52  ;;  %v10856_v3 = vld [vmem:[%s10983_s6] ss:$0 sm:$0xff] }
 0x3b4   : > { %v7911_v9 = vpop.eup %7910  ;;  %5977 = vst [vmem:[%s10673_s23 + $0x34] sm:$0xf] %v5973_v32  ;;  %v5941_v34 = vsel %vm8388_vm13, %v5932_v28, %v5940_v0  ;;  %v6017_v5 = vrot.slane %v6015_v14, 4  ;;  %7924 = vrcp.f32 %v5638_v53  ;;  %v5643_v38 = vadd.f32 1.0, %v7909_v24  ;;  %v4993_v13 = vpop.f32.mrf.mxu0  ;;  %v11260_v53 = vld [vmem:[#allocation10_spill] sm:$0xff] }
 0x3b5   : > { %v7913_v19 = vpop.eup %7912  ;;  %5945 = vst [vmem:[%s10673_s23 + $0x2c] sm:$0xf] %v5941_v34  ;;  %v5954_v60 = vrot.slane %v5953_v49, 4  ;;  %v5641_v2 = vadd.f32 1.0, %v7911_v9  ;;  %7926 = vpow2.f32 %v5603_v58  ;;  %v5464_v40 = vmul.f32 %v10430_v8, %v5421_v15  ;;  %v11261_v49 = vld [vmem:[#allocation20_spill] sm:$0xff] }
 0x3b6   : > { %v7915_v39 = vpop.eup %7914  ;;  %v6020_v63 = vrot.slane %v6018_v1, 5  ;;  %7928 = vrcp.f32 %v5643_v38  ;;  %v5644_v12 = vadd.f32 1.0, %v7913_v19  ;;  %v5419_v37 = vadd.f32 %v10799_v23, %v10614_v10  ;;  %v5376_v10 = vpop.f32.mrf.mxu1 }
 0x3b7   : > { %v5963_v61 = vsel %vm8424_vm6, %v5954_v60, %v10755_v51  ;;  %7930 = vrcp.f32 %v5641_v2  ;;  %v5642_v55 = vadd.f32 1.0, %v7915_v39  ;;  %v10832_v31 = vadd.f32 %v10437_v25, %v5464_v40  ;;  %v11262_v40 = vld [vmem:[#allocation21_spill] sm:$0xff] }
 0x3b8   : > { %v7917_v29 = vpop.eup %7916  ;;  %v5037_v15 = vadd.f32 %v4990_v62, %v10415_v16  ;;  %5976 = vst [vmem:[%s10673_s23 + $0x30] sm:$0xf] %v5963_v61  ;;  %7932 = vrcp.f32 %v5644_v12  ;;  %v5462_v46 = vmul.f32 %v10430_v8, %v5419_v37  ;;  %v5422_v6 = vadd.f32 %v7533_v21, %v10635_v27  ;;  %v10846_v16 = vld [vmem:[%s10982_s5] ss:$0 sm:$0xff]  ;;  %v7537_v1 = vpop.f32.mrf.mxu1 }
 0x3b9   : > { %7934 = vrcp.f32 %v5642_v55  ;;  %v5599_v23 = vmul.f32 1.442695, %v5538_v11  ;;  %v5543_v58 = vsub.f32 0.0, %v10832_v31  ;;  %v5420_v51 = vadd.f32 %v5363_v45, %v10644_v26  ;;  %v11259_v45 = vld [vmem:[#allocation11_spill] sm:$0xff] }
 0x3ba   : > { %v5647_v36 = vadd.f32 1.0, %v7917_v29  ;;  %v10841_v43 = vadd.f32 %v10437_v25, %v5462_v46  ;;  %v5465_v8 = vmul.f32 %v10846_v16, %v5422_v6  ;;  %v5425_v27 = vadd.f32 %v7536_v59, %v10794_v41  ;;  %v5379_v37 = vpop.f32.mrf.mxu1 }
 0x3bb   : > { %v7919_v21 = vpop.eup %7918  ;;  %v6021_v14 = vor.u32 %v6020_v63, %v6017_v5  ;;  %v5609_v28 = vmul.f32 1.442695, %v5543_v58  ;;  %v5463_v33 = vmul.f32 %v10846_v16, %v5420_v51  ;;  %v5423_v26 = vadd.f32 %v5376_v10, %v5037_v15 }
 0x3bc   : > { %v5709_v22 = vmul.f32 %v7919_v21, %v11259_v45  ;;  %v5541_v25 = vsub.f32 0.0, %v10841_v43  ;;  %v10859_v0 = vadd.f32 %v10856_v3, %v5465_v8  ;;  %v5468_v41 = vmul.f32 %v10846_v16, %v5425_v27 }
 0x3bd   : > { %v5040_v24 = vadd.f32 %v7485_v57, %v11260_v53  ;;  %7936 = vpow2.f32 %v5599_v23  ;;  %v10864_v62 = vadd.f32 %v10856_v3, %v5463_v33  ;;  %v5466_v32 = vmul.f32 %v10846_v16, %v5423_v26 }
 0x3be   : > { %v5038_v11 = vadd.f32 %v4993_v13, %v11261_v49  ;;  %v6744_v9 = vpack.c.bf16 %v5709_v22, %v5709_v22  ;;  %7938 = vrcp.f32 %v5647_v36  ;;  %v5605_v34 = vmul.f32 1.442695, %v5541_v25 }
 0x3bf   : > { %v7921_v5 = vpop.eup %7920  ;;  %v6671_v38 = vrot.slane %v5966_v18, 11  ;;  %v6022_v59 = vrot.slane %v6021_v14, 4  ;;  %7940 = vpow2.f32 %v5609_v28  ;;  %v5426_v19 = vadd.f32 %v7537_v1, %v5040_v24 }
 0x3c0   : > { %v7923_v60 = vpop.eup %7922  ;;  %v5986_v2 = vshrl.u32 %v6744_v9, 16  ;;  %v5712_v39 = vmul.f32 %v7921_v5, %v11262_v40  ;;  %v5544_v63 = vsub.f32 0.0, %v10859_v0  ;;  %v10873_v12 = vadd.f32 %v10856_v3, %v5468_v41 }
 0x3c1   : > { %v7925_v57 = vpop.eup %7924  ;;  %v5989_v61 = vshll.u32 %v6744_v9, 16  ;;  %v5645_v55 = vadd.f32 1.0, %v7923_v60  ;;  %v5542_v29 = vsub.f32 0.0, %v10864_v62  ;;  %v10877_v54 = vadd.f32 %v10856_v3, %v5466_v32 }
 0x3c2   : > { %v7927_v18 = vpop.eup %7926  ;;  %v5988_v15 = vrot.slane %v5986_v2, 7  ;;  %v6747_v46 = vpack.c.bf16 %v5712_v39, %v5712_v39  ;;  %v5710_v6 = vmul.f32 %v7925_v57, %v10654_v50  ;;  %7942 = vpow2.f32 %v5605_v34 }
 0x3c3   : > { %v7929_v10 = vpop.eup %7928  ;;  %7944 = vrcp.f32 %v5645_v55  ;;  %v5648_v23 = vadd.f32 1.0, %v7927_v18  ;;  %v10881_v58 = vmul.f32 %v10846_v16, %v5426_v19  ;;  %v10883_v51 = vadd.f32 %v5379_v37, %v5038_v11 }
 0x3c4   : > { %v7931_v36 = vpop.eup %7930  ;;  %v5991_v8 = vor.u32 %v5989_v61, %v5988_v15  ;;  %v6024_v27 = vshll.u32 %v6747_v46, 16  ;;  %v6028_v21 = vshrl.u32 %v6747_v46, 16  ;;  %v10885_v13 = vmul.f32 1.442695, %v5544_v63 }
 0x3c5   : > { %v7933_v14 = vpop.eup %7932  ;;  %v6745_v28 = vpack.c.bf16 %v5710_v6, %v5710_v6  ;;  %v5715_v50 = vmul.f32 %v7929_v10, %v10758_v35  ;;  %v5713_v33 = vmul.f32 %v7931_v36, %v10762_v44  ;;  %7946 = vrcp.f32 %v5648_v23 }
 0x3c6   : > { %v7935_v26 = vpop.eup %7934  ;;  %v5992_v45 = vsel %vm8432_vm11, %v6671_v38, %v5991_v8  ;;  %v6026_v22 = vrot.slane %v6024_v27, 5  ;;  %v6030_v25 = vrot.slane %v6028_v21, 4  ;;  %v5716_v41 = vmul.f32 %v7933_v14, %v10765_v47 }
 0x3c7   : > { %6004 = vst [vmem:[%s10673_s23 + $0x38] sm:$0xf] %v5992_v45  ;;  %v5995_v1 = vshrl.u32 %v6745_v28, 16  ;;  %v6750_v53 = vpack.c.bf16 %v5715_v50, %v5715_v50  ;;  %v6748_v24 = vpack.c.bf16 %v5713_v33, %v5713_v33  ;;  %v10893_v32 = vmul.f32 1.442695, %v5542_v29 }
 0x3c8   : > { %v6027_v35 = vsel %vm8365_vm1, %v6022_v59, %v6026_v22  ;;  %v6031_v44 = vor.u32 %v6030_v25, %v6026_v22  ;;  %v5998_v49 = vshll.u32 %v6745_v28, 16  ;;  %v6751_v11 = vpack.c.bf16 %v5716_v41, %v5716_v41 }
 0x3c9   : > { %6040 = vst [vmem:[%s10673_s23 + $0x40] sm:$0xf] %v6027_v35  ;;  %v5997_v9 = vrot.slane %v5995_v1, 7  ;;  %v6064_v34 = vshrl.u32 %v6750_v53, 16  ;;  %v6067_v5 = vshll.u32 %v6750_v53, 16  ;;  %v6034_v38 = vshll.u32 %v6748_v24, 16 }
 0x3ca   : > { %v7937_v19 = vpop.eup %7936  ;;  %v6047_v60 = vshrl.u32 %v6748_v24, 16  ;;  %v6086_v47 = vshrl.u32 %v6751_v11, 16  ;;  %v6089_v2 = vshll.u32 %v6751_v11, 16  ;;  %v5714_v40 = vmul.f32 %v7935_v26, %v10772_v7 }
 0x3cb   : > { %v7939_v39 = vpop.eup %7938  ;;  %v5993_v63 = vrot.slane %v5988_v15, 4  ;;  %v6032_v37 = vrot.slane %v6031_v44, 4  ;;  %v6000_v57 = vor.u32 %v5998_v49, %v5997_v9  ;;  %v6081_v59 = vrot.slane %v6064_v34, 6 }
 0x3cc   : > { %v7941_v61 = vpop.eup %7940  ;;  %v6082_v55 = vrot.slane %v6067_v5, 7  ;;  %v6036_v29 = vrot.slane %v6034_v38, 5  ;;  %v6049_v18 = vrot.slane %v6047_v60, 5  ;;  %v6050_v46 = vrot.slane %v6034_v38, 6 }
 0x3cd   : > { %v6001_v6 = vsel %vm8432_vm11, %v5993_v63, %v6000_v57  ;;  %v6088_v10 = vrot.slane %v6086_v47, 6  ;;  %v6091_v23 = vrot.slane %v6089_v2, 7  ;;  %v5547_v36 = vsub.f32 0.0, %v10873_v12 }
 0x3ce   : > { %6005 = vst [vmem:[%s10673_s23 + $0x3c] sm:$0xf] %v6001_v6  ;;  %v6066_v7 = vrot.slane %v6064_v34, 5  ;;  %v6083_v8 = vor.u32 %v6082_v55, %v6081_v59  ;;  %v6037_v15 = vsel %vm8365_vm1, %v6032_v37, %v6036_v29  ;;  %v6749_v27 = vpack.c.bf16 %v5714_v40, %v5714_v40 }
 0x3cf   : > { %v7943_v21 = vpop.eup %7942  ;;  %v6069_v14 = vrot.slane %v6067_v5, 6  ;;  %6041 = vst [vmem:[%s10673_s23 + $0x44] sm:$0xf] %v6037_v15  ;;  %v6092_v28 = vor.u32 %v6091_v23, %v6088_v10  ;;  %v5646_v50 = vadd.f32 1.0, %v7937_v19  ;;  %v5651_v33 = vadd.f32 1.0, %v7941_v61 }
 0x3d0   : > { %v7945_v26 = vpop.eup %7944  ;;  %v6084_v45 = vrot.slane %v6083_v8, 4  ;;  %v6051_v22 = vor.u32 %v6050_v46, %v6049_v18  ;;  %v6054_v25 = vshrl.u32 %v6749_v27, 16  ;;  %v6057_v41 = vshll.u32 %v6749_v27, 16 }
 0x3d1   : > { %v5717_v1 = vmul.f32 %v7945_v26, %v10787_v17  ;;  %7948 = vrcp.f32 %v5646_v50  ;;  %v5617_v53 = vmul.f32 1.442695, %v5547_v36  ;;  %v5545_v24 = vsub.f32 0.0, %v10877_v54 }
 0x3d2   : > { %v7947_v35 = vpop.eup %7946  ;;  %v6093_v44 = vsel %vm8424_vm6, %v6084_v45, %v6092_v28  ;;  %v6056_v49 = vrot.slane %v6054_v25, 5  ;;  %v6059_v11 = vrot.slane %v6057_v41, 6  ;;  %v10912_v9 = vadd.f32 %v10856_v3, %v10881_v58 }
 0x3d3   : > { %v6070_v34 = vor.u32 %v6069_v14, %v6066_v7  ;;  %6106 = vst [vmem:[%s10673_s23 + $0x50] sm:$0xf] %v6093_v44  ;;  %v5719_v5 = vmul.f32 %v7939_v39, %v10784_v56  ;;  %v6752_v17 = vpack.c.bf16 %v5717_v1, %v5717_v1  ;;  %7950 = vrcp.f32 %v5651_v33 }
 0x3d4   : > { %v6052_v38 = vrot.slane %v6051_v22, 4  ;;  %v6060_v19 = vor.u32 %v6059_v11, %v6056_v49  ;;  %v5649_v60 = vadd.f32 1.0, %v7943_v21  ;;  %7952 = vpow2.f32 %v10885_v13 }
 0x3d5   : > { %v6096_v47 = vshrl.u32 %v6752_v17, 16  ;;  %v6099_v2 = vshll.u32 %v6752_v17, 16  ;;  %v5720_v40 = vmul.f32 %v7947_v35, %v10791_v4  ;;  %v5613_v63 = vmul.f32 1.442695, %v5545_v24 }
 0x3d6   : > { %v6061_v58 = vsel %vm8388_vm13, %v6052_v38, %v6060_v19  ;;  %v6062_v37 = vrot.slane %v6060_v19, 4  ;;  %7954 = vrcp.f32 %v5649_v60  ;;  %v5548_v56 = vsub.f32 0.0, %v10912_v9 }
 0x3d7   : > { %6074 = vst [vmem:[%s10673_s23 + $0x48] sm:$0xf] %v6061_v58  ;;  %v6098_v39 = vrot.slane %v6096_v47, 6  ;;  %v6101_v57 = vrot.slane %v6099_v2, 7  ;;  %v6094_v59 = vrot.slane %v6092_v28, 4  ;;  %v6754_v61 = vpack.c.bf16 %v5719_v5, %v5719_v5 }
 0x3d8   : > { %v6071_v13 = vsel %vm8388_vm13, %v6062_v37, %v6070_v34  ;;  %7956 = vpow2.f32 %v10893_v32  ;;  %v5619_v55 = vmul.f32 1.442695, %v5548_v56  ;;  %v5467_v29 = vmul.f32 %v10846_v16, %v10883_v51 }
 0x3d9   : > { %6075 = vst [vmem:[%s10673_s23 + $0x4c] sm:$0xf] %v6071_v13  ;;  %v6102_v4 = vor.u32 %v6101_v57, %v6098_v39  ;;  %7958 = vpow2.f32 %v5617_v53  ;;  %v6755_v18 = vpack.c.bf16 %v5720_v40, %v5720_v40  ;;  %v6125_v10 = vshrl.u32 %v6754_v61, 16 }
 0x3da   : > { %7960 = vpow2.f32 %v5613_v63  ;;  %v10931_v6 = vadd.f32 %v10856_v3, %v5467_v29  ;;  %v6128_v33 = vshll.u32 %v6754_v61, 16  ;;  %v6681_v11 = vrot.slane %v6096_v47, 11 }
 0x3db   : > { %v6103_v46 = vsel %vm8424_vm6, %v6094_v59, %v6102_v4  ;;  %7962 = vpow2.f32 %v5619_v55  ;;  %v6144_v36 = vshrl.u32 %v6755_v18, 16  ;;  %v6147_v7 = vshll.u32 %v6755_v18, 16 }
 0x3dc   : > { %6107 = vst [vmem:[%s10673_s23 + $0x54] sm:$0xf] %v6103_v46  ;;  %v5546_v32 = vsub.f32 0.0, %v10931_v6  ;;  %v6127_v27 = vrot.slane %v6125_v10, 7 }
 0x3dd   : > { %v6146_v14 = vrot.slane %v6144_v36, 4  ;;  %v6149_v28 = vrot.slane %v6147_v7, 5 }
 0x3de   : > { %v7949_v23 = vpop.eup %7948  ;;  %v5615_v15 = vmul.f32 1.442695, %v5546_v32  ;;  %v6130_v25 = vor.u32 %v6128_v33, %v6127_v27 }
 0x3df   : > { %v5718_v8 = vmul.f32 %v7949_v23, %v10803_v52  ;;  %v6150_v53 = vor.u32 %v6149_v28, %v6146_v14 }
 0x3e0   : > { %v7951_v16 = vpop.eup %7950  ;;  %7964 = vpow2.f32 %v5615_v15 }
 0x3e1   : > { %v7953_v51 = vpop.eup %7952  ;;  %v6753_v21 = vpack.c.bf16 %v5718_v8, %v5718_v8  ;;  %v5723_v24 = vmul.f32 %v7951_v16, %v10832_v31  ;;  %v6151_v2 = vrot.slane %v6150_v53, 4 }
 0x3e2   : > { %v5652_v50 = vadd.f32 1.0, %v7953_v51 }
 0x3e3   : > { %v7955_v3 = vpop.eup %7954  ;;  %v6116_v26 = vshrl.u32 %v6753_v21, 16  ;;  %v6119_v1 = vshll.u32 %v6753_v21, 16  ;;  %v6758_v40 = vpack.c.bf16 %v5723_v24, %v5723_v24 }
 0x3e4   : > { %v5721_v45 = vmul.f32 %v7955_v3, %v10841_v43  ;;  %7966 = vrcp.f32 %v5652_v50 }
 0x3e5   : > { %v7957_v22 = vpop.eup %7956  ;;  %v6118_v41 = vrot.slane %v6116_v26, 7  ;;  %v6183_v56 = vshrl.u32 %v6758_v40, 16  ;;  %v6186_v39 = vshll.u32 %v6758_v40, 16 }
 0x3e6   : > { %v7959_v52 = vpop.eup %7958  ;;  %v6756_v35 = vpack.c.bf16 %v5721_v45, %v5721_v45  ;;  %v5650_v44 = vadd.f32 1.0, %v7957_v22 }
 0x3e7   : > { %v7961_v49 = vpop.eup %7960  ;;  %v6121_v34 = vor.u32 %v6119_v1, %v6118_v41  ;;  %v6123_v5 = vrot.slane %v6118_v41, 4  ;;  %v5655_v17 = vadd.f32 1.0, %v7959_v52  ;;  %v6185_v61 = vrot.slane %v6183_v56, 5 }
 0x3e8   : > { %v7963_v38 = vpop.eup %7962  ;;  %v6153_v43 = vshll.u32 %v6756_v35, 16  ;;  %7968 = vrcp.f32 %v5650_v44  ;;  %v5653_v31 = vadd.f32 1.0, %v7961_v49  ;;  %v6157_v57 = vshrl.u32 %v6756_v35, 16 }
 0x3e9   : > { %v6122_v19 = vsel %vm8432_vm11, %v6681_v11, %v6121_v34  ;;  %v6131_v60 = vsel %vm8432_vm11, %v6123_v5, %v6130_v25  ;;  %7970 = vrcp.f32 %v5655_v17  ;;  %v5656_v63 = vadd.f32 1.0, %v7963_v38 }
 0x3ea   : > { %6134 = vst [vmem:[%s10673_s23 + $0x58] sm:$0xf] %v6122_v19  ;;  %6135 = vst [vmem:[%s10673_s23 + $0x5c] sm:$0xf] %v6131_v60  ;;  %v6155_v47 = vrot.slane %v6153_v43, 5  ;;  %7972 = vrcp.f32 %v5653_v31  ;;  %v6188_v4 = vrot.slane %v6186_v39, 6 }
 0x3eb   : > { %7974 = vrcp.f32 %v5656_v63  ;;  %v6159_v29 = vrot.slane %v6157_v57, 4 }
 0x3ec   : > { %v6156_v58 = vsel %vm8365_vm1, %v6151_v2, %v6155_v47  ;;  %v6189_v32 = vor.u32 %v6188_v4, %v6185_v61 }
 0x3ed   : > { %6169 = vst [vmem:[%s10673_s23 + $0x60] sm:$0xf] %v6156_v58  ;;  %v7965_v37 = vpop.eup %7964  ;;  %v6160_v8 = vor.u32 %v6159_v29, %v6155_v47 }
 0x3ee   : > { %v5654_v59 = vadd.f32 1.0, %v7965_v37  ;;  %v6191_v33 = vrot.slane %v6189_v32, 4 }
 0x3ef   : > { %v6161_v22 = vrot.slane %v6160_v8, 4 }
 0x3f0   : > { %7976 = vrcp.f32 %v5654_v59 }
 0x3f1   : > { %v7967_v13 = vpop.eup %7966 }
 0x3f2   : > { %v5724_v55 = vmul.f32 %v7967_v13, %v10859_v0 }
 0x3f4   : > { %v6759_v18 = vpack.c.bf16 %v5724_v55, %v5724_v55 }
 0x3f5   : > { %v7969_v46 = vpop.eup %7968 }
 0x3f6   : > { %v7971_v10 = vpop.eup %7970  ;;  %v6193_v23 = vshrl.u32 %v6759_v18, 16  ;;  %v6196_v36 = vshll.u32 %v6759_v18, 16  ;;  %v5722_v7 = vmul.f32 %v7969_v46, %v10864_v62 }
 0x3f7   : > { %v5727_v15 = vmul.f32 %v7971_v10, %v10873_v12  ;;  %v7973_v16 = vpop.eup %7972 }
 0x3f8   : > { %v6195_v51 = vrot.slane %v6193_v23, 5  ;;  %v6198_v27 = vrot.slane %v6196_v36, 6  ;;  %v6210_v21 = vrot.slane %v6193_v23, 6  ;;  %v7975_v14 = vpop.eup %7974  ;;  %v6211_v28 = vrot.slane %v6196_v36, 7 }
 0x3f9   : > { %v6757_v0 = vpack.c.bf16 %v5722_v7, %v5722_v7  ;;  %v6762_v50 = vpack.c.bf16 %v5727_v15, %v5727_v15  ;;  %v5725_v3 = vmul.f32 %v7973_v16, %v10877_v54  ;;  %v5728_v45 = vmul.f32 %v7975_v14, %v10912_v9 }
 0x3fa   : > { %v6199_v26 = vor.u32 %v6198_v27, %v6195_v51  ;;  %v6212_v53 = vor.u32 %v6211_v28, %v6210_v21 }
 0x3fb   : > { %v6163_v62 = vshll.u32 %v6757_v0, 16  ;;  %v6176_v25 = vshrl.u32 %v6757_v0, 16  ;;  %v6245_v41 = vshrl.u32 %v6762_v50, 16  ;;  %v6760_v1 = vpack.c.bf16 %v5725_v3, %v5725_v3 }
 0x3fc   : > { %v6200_v12 = vsel %vm8388_vm13, %v6191_v33, %v6199_v26  ;;  %v6763_v52 = vpack.c.bf16 %v5728_v45, %v5728_v45  ;;  %v6213_v2 = vrot.slane %v6212_v53, 4  ;;  %v6248_v56 = vshll.u32 %v6762_v50, 16 }
 0x3fd   : > { %6204 = vst [vmem:[%s10673_s23 + $0x6c] sm:$0xf] %v6200_v12  ;;  %v6165_v24 = vrot.slane %v6163_v62, 5  ;;  %v6178_v35 = vrot.slane %v6176_v25, 5  ;;  %v6179_v44 = vrot.slane %v6163_v62, 6  ;;  %v7977_v54 = vpop.eup %7976  ;;  %v6247_v49 = vrot.slane %v6245_v41, 7 }
 0x3fe   : > { %v6215_v11 = vshrl.u32 %v6760_v1, 16  ;;  %v6218_v34 = vshll.u32 %v6760_v1, 16  ;;  %v6254_v9 = vshrl.u32 %v6763_v52, 16  ;;  %v6257_v38 = vshll.u32 %v6763_v52, 16 }
 0x3ff   : > { %v6166_v5 = vsel %vm8365_vm1, %v6161_v22, %v6165_v24  ;;  %v6180_v17 = vor.u32 %v6179_v44, %v6178_v35  ;;  %v5726_v31 = vmul.f32 %v7977_v54, %v10931_v6  ;;  %v6252_v47 = vrot.slane %v6247_v49, 4 }
 0x400   : > { %6170 = vst [vmem:[%s10673_s23 + $0x64] sm:$0xf] %v6166_v5  ;;  %v6217_v43 = vrot.slane %v6215_v11, 6  ;;  %v6220_v19 = vrot.slane %v6218_v34, 7  ;;  %v6256_v60 = vrot.slane %v6254_v9, 7  ;;  %v6250_v13 = vor.u32 %v6248_v56, %v6247_v49 }
 0x401   : > { %v6181_v40 = vrot.slane %v6180_v17, 4  ;;  %v6761_v37 = vpack.c.bf16 %v5726_v31, %v5726_v31 }
 0x402   : > { %v6221_v63 = vor.u32 %v6220_v19, %v6217_v43  ;;  %v6259_v58 = vor.u32 %v6257_v38, %v6256_v60 }
 0x403   : > { %v6190_v48 = vsel %vm8388_vm13, %v6181_v40, %v6189_v32  ;;  %v6225_v6 = vshrl.u32 %v6761_v37, 16  ;;  %v6228_v59 = vshll.u32 %v6761_v37, 16 }
 0x404   : > { %6203 = vst [vmem:[%s10673_s23 + $0x68] sm:$0xf] %v6190_v48  ;;  %v6222_v39 = vsel %vm8424_vm6, %v6213_v2, %v6221_v63  ;;  %v6260_v57 = vsel %vm8432_vm11, %v6252_v47, %v6259_v58  ;;  %v6223_v29 = vrot.slane %v6221_v63, 4 }
 0x405   : > { %6235 = vst [vmem:[%s10673_s23 + $0x70] sm:$0xf] %v6222_v39  ;;  %6264 = vst [vmem:[%s10673_s23 + $0x7c] sm:$0xf] %v6260_v57  ;;  %v6227_v61 = vrot.slane %v6225_v6, 6  ;;  %v6691_v4 = vrot.slane %v6225_v6, 11 }
 0x406   : > { %v6230_v55 = vrot.slane %v6228_v59, 7 }
 0x407   : > { %v6251_v42 = vsel %vm8432_vm11, %v6691_v4, %v6250_v13 }
 0x408   : > { %v6231_v18 = vor.u32 %v6230_v55, %v6227_v61  ;;  %6263 = vst [vmem:[%s10673_s23 + $0x78] sm:$0xf] %v6251_v42 }
 0x40a   : > { %v6232_v46 = vsel %vm8424_vm6, %v6223_v29, %v6231_v18 }
 0x40b   : > { %6236 = vst [vmem:[%s10673_s23 + $0x74] sm:$0xf] %v6232_v46 }
 0x40c PF: > { %s17_s24 = sadd.s32 1, %s7989_s24  }
 0x40d   : > { %p14_p4 = scmp.ge.s32.totalorder %s17_s24, 4  }
 0x40f   :  { %16 = sbr.rel (!%p14_p4) target bundleno = 1 (0x1), region = 86 }

</bundles_post_ra>
